<compile_context>
chip_gen: v7x
topology: tpu7x:2x2x1
jax: 0.10.0
libtpu: 0.0.40
codegen_flags: <defaults>
</compile_context>

<pallas_src>
import functools

import jax
import jax.numpy as jnp
from jax.experimental import pallas as pl
from jax.experimental.pallas import tpu as pltpu


# ---------------------------------------------------------------------------
# Helpers
# ---------------------------------------------------------------------------

def _round_up(n, m):
    return ((n + m - 1) // m) * m


def _l2_normalize(x, eps=1e-12):
    # torch.nn.functional.normalize(p=2, dim=-1): x / max(||x||, eps)
    # rsqrt + multiply uses the EUP slot instead of a VALU divide.
    sum_sq = jnp.sum(x * x, axis=-1, keepdims=True)
    inv = jax.lax.rsqrt(jnp.maximum(sum_sq, eps * eps))
    return x * inv


# ---------------------------------------------------------------------------
# Fused dual-encoder kernel
# grid = (batch_tiles [parallel], time_tiles [arbitrary / reduction])
# ---------------------------------------------------------------------------

def dual_encoder_kernel(audio_ref,              # (tb, tt, mel_lane) f32
                        ids_ref,                # (tb, L) int32
                        emb_ref,                # (V, D) f32, VMEM-resident
                        aw1_ref, ab1_ref, aw2_ref, ab2_ref,
                        tw1_ref, tb1_ref, tw2_ref, tb2_ref,
                        a_out_ref, t_out_ref,   # (tb, E) f32 each
                        acc_ref,                # (tb, mel_lane) f32 scratch
                        *, t_total, mel, fold, seq_len,
                        vocab_chunk, n_vocab_chunks):
    t = pl.program_id(1)

    @pl.when(t == 0)
    def _():
        acc_ref[...] = jnp.zeros_like(acc_ref)

    # Streamed running sum over the (lane-folded) time axis; zero padding is a
    # no-op for the sum.
    acc_ref[...] += jnp.sum(audio_ref[...], axis=1)

    @pl.when(t == pl.num_programs(1) - 1)
    def _():
        tb_rows = acc_ref.shape[0]

        # ------------------------- audio branch ---------------------------
        s = acc_ref[...]                                    # (tb, fold*mel)
        pooled_a = s[:, 0:mel]
        for g in range(1, fold):                            # un-fold lanes
            pooled_a = pooled_a + s[:, g * mel:(g + 1) * mel]
        pooled_a = pooled_a * jnp.float32(1.0 / t_total)    # mean over time

        h = jnp.dot(pooled_a.astype(jnp.bfloat16), aw1_ref[...],
                    preferred_element_type=jnp.float32) + ab1_ref[...]
        h = jnp.maximum(h, 0.0)
        e = jnp.dot(h.astype(jnp.bfloat16), aw2_ref[...],
                    preferred_element_type=jnp.float32) + ab2_ref[...]
        a_out_ref[...] = _l2_normalize(e)                   # out_norm == 'L2'

        # ------------------------- text branch ----------------------------
        # Gather + mean-pool fused as a count-weighted matmul:
        #   pooled[b] = (1/L) * sum_l emb[ids[b, l]] = (counts[b, :] @ emb)/L
        ids = ids_ref[...]                                  # (tb, L) int32
        d_text = emb_ref.shape[-1]
        iota = jax.lax.broadcasted_iota(
            jnp.int32, (tb_rows, vocab_chunk), 1)
        pooled_t = jnp.zeros((tb_rows, d_text), jnp.float32)
        for c in range(n_vocab_chunks):                     # static, small
            base = c * vocab_chunk
            cnt = jnp.zeros((tb_rows, vocab_chunk), jnp.float32)
            for l in range(seq_len):                        # static, small
                cnt = cnt + ((ids[:, l:l + 1] - base) == iota
                             ).astype(jnp.float32)
            pooled_t = pooled_t + jnp.dot(
                cnt, emb_ref[pl.ds(base, vocab_chunk), :],
                preferred_element_type=jnp.float32)
        pooled_t = pooled_t * jnp.float32(1.0 / seq_len)

        ht = jnp.dot(pooled_t.astype(jnp.bfloat16), tw1_ref[...],
                     preferred_element_type=jnp.float32) + tb1_ref[...]
        ht = jnp.maximum(ht, 0.0)
        et = jnp.dot(ht.astype(jnp.bfloat16), tw2_ref[...],
                     preferred_element_type=jnp.float32) + tb2_ref[...]
        t_out_ref[...] = _l2_normalize(et)                  # out_norm == 'L2'


# ---------------------------------------------------------------------------
# Forward (DualEncoderModel.forward)
# ---------------------------------------------------------------------------

@jax.jit
def dual_encoder_forward(audio, text_ids, audio_params, text_params):
    """Returns (audio_embeds, text_embeds), each L2-normalized."""
    tb = 128                                  # MXU-friendly M; >=2 tiles when B is large
    B, T, MEL = audio.shape
    L = text_ids.shape[1]
    V, D = text_params["emb"].shape
    H = audio_params["w1"].shape[1]
    E = audio_params["w2"].shape[1]

    # ---- lane-dense time folding: fold consecutive timesteps into lanes ----
    fold = (128 // MEL) if (MEL <= 128 and 128 % MEL == 0) else 1
    mel_lane = MEL * fold

    # ---- tile sizing ----
    Bp = _round_up(B, tb)
    t_eff = -(-T // fold)                                   # ceil(T / fold)
    bytes_per_trow = tb * mel_lane * 4
    tt_target = max(8, (4 * 1024 * 1024) // bytes_per_trow)  # ~4 MiB blocks
    tt = min(_round_up(t_eff, 8), _round_up(tt_target, 8))
    t_eff_p = _round_up(t_eff, tt)
    Tp = t_eff_p * fold

    audio_p = jnp.pad(audio, ((0, Bp - B), (0, Tp - T), (0, 0)))
    audio_p = audio_p.reshape(Bp, t_eff_p, mel_lane)        # lane-dense layout
    ids_p = jnp.pad(text_ids.astype(jnp.int32), ((0, Bp - B), (0, 0)))

    # ---- vocab chunking for the counts matmul ----
    vocab_chunk = 128 if V % 128 == 0 else V
    n_vocab_chunks = V // vocab_chunk

    ap, tp = audio_params, text_params
    param_bytes = sum(int(p.size) * p.dtype.itemsize for p in
                      (ap["w1"], ap["b1"], ap["w2"], ap["b2"],
                       tp["emb"], tp["w1"], tp["b1"], tp["w2"], tp["b2"]))
    cost = pl.CostEstimate(
        flops=int(2 * Bp * (MEL * H + H * E)              # audio MLP
                  + 2 * Bp * (V * D + D * H + H * E)      # text counts-mm + MLP
                  + Bp * T * MEL + Bp * L * V),           # pooling / one-hot
        transcendentals=int(2 * Bp),
        bytes_accessed=int(audio_p.size * 4 + ids_p.size * 4
                           + param_bytes + 2 * Bp * E * 4))

    kernel = functools.partial(
        dual_encoder_kernel,
        t_total=float(T), mel=MEL, fold=fold, seq_len=L,
        vocab_chunk=vocab_chunk, n_vocab_chunks=n_vocab_chunks)

    a_out, t_out = pl.pallas_call(
        kernel,
        out_shape=(jax.ShapeDtypeStruct((Bp, E), jnp.float32),
                   jax.ShapeDtypeStruct((Bp, E), jnp.float32)),
        grid_spec=pltpu.PrefetchScalarGridSpec(
            num_scalar_prefetch=0,
            grid=(Bp // tb, t_eff_p // tt),
            in_specs=[
                pl.BlockSpec((tb, tt, mel_lane), lambda i, t: (i, t, 0)),
                pl.BlockSpec((tb, L), lambda i, t: (i, 0)),
                pl.BlockSpec((V, D), lambda i, t: (0, 0)),   # table resident
                pl.BlockSpec((MEL, H), lambda i, t: (0, 0)),
                pl.BlockSpec((1, H), lambda i, t: (0, 0)),
                pl.BlockSpec((H, E), lambda i, t: (0, 0)),
                pl.BlockSpec((1, E), lambda i, t: (0, 0)),
                pl.BlockSpec((D, H), lambda i, t: (0, 0)),
                pl.BlockSpec((1, H), lambda i, t: (0, 0)),
                pl.BlockSpec((H, E), lambda i, t: (0, 0)),
                pl.BlockSpec((1, E), lambda i, t: (0, 0)),
            ],
            out_specs=[
                pl.BlockSpec((tb, E), lambda i, t: (i, 0)),
                pl.BlockSpec((tb, E), lambda i, t: (i, 0)),
            ],
            scratch_shapes=[pltpu.VMEM((tb, mel_lane), jnp.float32)],
        ),
        compiler_params=pltpu.CompilerParams(
            dimension_semantics=("parallel", "arbitrary"),
            vmem_limit_bytes=32 * 1024 * 1024,   # blocks capped ~4 MiB -> fits v5e/v6e/v7x
        ),
        cost_estimate=cost,
    )(audio_p, ids_p, tp["emb"],
      ap["w1"], ap["b1"], ap["w2"], ap["b2"],
      tp["w1"], tp["b1"], tp["w2"], tp["b2"])

    return a_out[:B], t_out[:B]


# ---------------------------------------------------------------------------
# Deterministic params, pure-JAX reference, run
# ---------------------------------------------------------------------------

def init_params(key, mel, hidden, embed, vocab, text_dim):
    ks = jax.random.split(key, 7)
    scale = 0.02
    audio_params = {
        "w1": (scale * jax.random.normal(ks[0], (mel, hidden), jnp.float32)
               ).astype(jnp.bfloat16),
        "b1": 0.01 * jax.random.normal(ks[1], (1, hidden), jnp.float32),
        "w2": (scale * jax.random.normal(ks[2], (hidden, embed), jnp.float32)
               ).astype(jnp.bfloat16),
        "b2": 0.01 * jax.random.normal(ks[3], (1, embed), jnp.float32),
    }
    text_params = {
        "emb": scale * jax.random.normal(ks[4], (vocab, text_dim), jnp.float32),
        "w1": (scale * jax.random.normal(ks[5], (text_dim, hidden), jnp.float32)
               ).astype(jnp.bfloat16),
        "b1": 0.01 * jax.random.normal(ks[6], (1, hidden), jnp.float32),
        "w2": (scale * jax.random.normal(ks[0], (hidden, embed), jnp.float32)
               ).astype(jnp.bfloat16),
        "b2": 0.01 * jax.random.normal(ks[1], (1, embed), jnp.float32),
    }
    return audio_params, text_params


def reference_forward(audio, text_ids, ap, tp):
    pooled_a = jnp.mean(audio, axis=1)
    h = jnp.dot(pooled_a.astype(jnp.bfloat16), ap["w1"],
                preferred_element_type=jnp.float32) + ap["b1"]
    h = jnp.maximum(h, 0.0)
    e = jnp.dot(h.astype(jnp.bfloat16), ap["w2"],
                preferred_element_type=jnp.float32) + ap["b2"]
    a = e / jnp.maximum(jnp.linalg.norm(e, axis=-1, keepdims=True), 1e-12)

    tok = tp["emb"][text_ids]
    pooled_t = jnp.mean(tok, axis=1)
    ht = jnp.dot(pooled_t.astype(jnp.bfloat16), tp["w1"],
                 preferred_element_type=jnp.float32) + tp["b1"]
    ht = jnp.maximum(ht, 0.0)
    et = jnp.dot(ht.astype(jnp.bfloat16), tp["w2"],
                 preferred_element_type=jnp.float32) + tp["b2"]
    t = et / jnp.maximum(jnp.linalg.norm(et, axis=-1, keepdims=True), 1e-12)
    return a, t


if __name__ == "__main__":
    B, T, MEL = 2, 32, 64          # audio: (batch, time_steps, Mel_bands)
    L, VOCAB = 8, 512              # text:  (batch, len_padded_text) token ids
    HIDDEN, EMBED, TEXT_DIM = 128, 128, 128

    key = jax.random.PRNGKey(0)
    k_audio, k_text, k_params = jax.random.split(key, 3)

    audio = jax.random.normal(k_audio, (B, T, MEL), jnp.float32)
    text = jax.random.randint(k_text, (B, L), 0, VOCAB, jnp.int32)

    audio_params, text_params = init_params(k_params, MEL, HIDDEN, EMBED,
                                            VOCAB, TEXT_DIM)

    audio_embeds, text_embeds = dual_encoder_forward(audio, text,
                                                     audio_params, text_params)
    jax.block_until_ready((audio_embeds, text_embeds))

    ref_a, ref_t = reference_forward(audio, text, audio_params, text_params)

    assert audio_embeds.shape == (B, EMBED)
    assert text_embeds.shape == (B, EMBED)
    # out_norm == 'L2' => unit-norm embeddings
    assert jnp.allclose(jnp.linalg.norm(audio_embeds, axis=-1), 1.0, atol=1e-3)
    assert jnp.allclose(jnp.linalg.norm(text_embeds, axis=-1), 1.0, atol=1e-3)
    # match pure-JAX reference (bf16 weights, f32 accumulate)
    assert jnp.allclose(audio_embeds, ref_a, atol=1e-2)
    assert jnp.allclose(text_embeds, ref_t, atol=1e-2)

    print("KERNEL_OK")
</pallas_src>

<mosaic_0001>
module attributes {stable_mosaic.version = 11 : i64} {
  func.func @dual_encoder_kernel(%arg0: i32, %arg1: i32, %arg2: memref<128x16x128xf32, #tpu.memory_space<vmem>>, %arg3: memref<128x8xi32, #tpu.memory_space<vmem>>, %arg4: memref<512x128xf32, #tpu.memory_space<vmem>>, %arg5: memref<64x128xbf16, #tpu.memory_space<vmem>>, %arg6: memref<1x128xf32, #tpu.memory_space<vmem>>, %arg7: memref<128x128xbf16, #tpu.memory_space<vmem>>, %arg8: memref<1x128xf32, #tpu.memory_space<vmem>>, %arg9: memref<128x128xbf16, #tpu.memory_space<vmem>>, %arg10: memref<1x128xf32, #tpu.memory_space<vmem>>, %arg11: memref<128x128xbf16, #tpu.memory_space<vmem>>, %arg12: memref<1x128xf32, #tpu.memory_space<vmem>>, %arg13: memref<128x128xf32, #tpu.memory_space<vmem>>, %arg14: memref<128x128xf32, #tpu.memory_space<vmem>>, %arg15: memref<128x128xf32, #tpu.memory_space<vmem>>) attributes {dimension_semantics = [#tpu.dimension_semantics<parallel>, #tpu.dimension_semantics<arbitrary>], iteration_bounds = array<i64: 1, 1>, scalar_prefetch = 0 : i64, scratch_operands = 1 : i64, tpu.core_type = #tpu.core_type<tc>, window_params = [{transform_indices = @transform_0, window_bounds = array<i64: 128, 16, 128>}, {transform_indices = @transform_1, window_bounds = array<i64: 128, 8>}, {pipeline_mode = #tpu.pipeline_mode<synchronous>, transform_indices = @transform_2, window_bounds = array<i64: 512, 128>}, {pipeline_mode = #tpu.pipeline_mode<synchronous>, transform_indices = @transform_3, window_bounds = array<i64: 64, 128>}, {pipeline_mode = #tpu.pipeline_mode<synchronous>, transform_indices = @transform_4, window_bounds = array<i64: 1, 128>}, {pipeline_mode = #tpu.pipeline_mode<synchronous>, transform_indices = @transform_5, window_bounds = array<i64: 128, 128>}, {pipeline_mode = #tpu.pipeline_mode<synchronous>, transform_indices = @transform_6, window_bounds = array<i64: 1, 128>}, {pipeline_mode = #tpu.pipeline_mode<synchronous>, transform_indices = @transform_7, window_bounds = array<i64: 128, 128>}, {pipeline_mode = #tpu.pipeline_mode<synchronous>, transform_indices = @transform_8, window_bounds = array<i64: 1, 128>}, {pipeline_mode = #tpu.pipeline_mode<synchronous>, transform_indices = @transform_9, window_bounds = array<i64: 128, 128>}, {pipeline_mode = #tpu.pipeline_mode<synchronous>, transform_indices = @transform_10, window_bounds = array<i64: 1, 128>}, {transform_indices = @transform_11, window_bounds = array<i64: 128, 128>}, {transform_indices = @transform_12, window_bounds = array<i64: 128, 128>}]} {
    %c0_i32 = arith.constant 0 : i32
    %0 = arith.cmpi eq, %arg1, %c0_i32 : i32
    %1 = arith.extui %0 : i1 to i32
    %c0_i32_0 = arith.constant 0 : i32
    %2 = arith.cmpi ne, %1, %c0_i32_0 : i32
    scf.if %2 {
      %cst_9 = arith.constant 0.000000e+00 : f32
      %11 = vector.broadcast %cst_9 : f32 to vector<128x128xf32>
      %c0_10 = arith.constant 0 : index
      %c0_11 = arith.constant 0 : index
      %12 = vector.load %arg15[%c0_10, %c0_11] : memref<128x128xf32, #tpu.memory_space<vmem>>, vector<128x128xf32>
      tpu.vector_store %arg15[%c0_10, %c0_11], %11 {strides = array<i32>} : memref<128x128xf32, #tpu.memory_space<vmem>>, vector<128x128xf32>,
    } else {
    }
    %c0 = arith.constant 0 : index
    %c0_1 = arith.constant 0 : index
    %3 = vector.load %arg15[%c0, %c0_1] : memref<128x128xf32, #tpu.memory_space<vmem>>, vector<128x128xf32>
    %c0_2 = arith.constant 0 : index
    %c0_3 = arith.constant 0 : index
    %c0_4 = arith.constant 0 : index
    %4 = vector.load %arg2[%c0_2, %c0_3, %c0_4] : memref<128x16x128xf32, #tpu.memory_space<vmem>>, vector<128x16x128xf32>
    %cst = arith.constant dense<0.000000e+00> : vector<128x128xf32>
    %5 = vector.multi_reduction <add>, %4, %cst [1] : vector<128x16x128xf32> to vector<128x128xf32>
    %6 = arith.addf %3, %5 : vector<128x128xf32>
    %c0_5 = arith.constant 0 : index
    %c0_6 = arith.constant 0 : index
    %7 = vector.load %arg15[%c0_5, %c0_6] : memref<128x128xf32, #tpu.memory_space<vmem>>, vector<128x128xf32>
    tpu.vector_store %arg15[%c0_5, %c0_6], %6 {strides = array<i32>} : memref<128x128xf32, #tpu.memory_space<vmem>>, vector<128x128xf32>,
    %c0_i32_7 = arith.constant 0 : i32
    %8 = arith.cmpi eq, %arg1, %c0_i32_7 : i32
    %9 = arith.extui %8 : i1 to i32
    %c0_i32_8 = arith.constant 0 : i32
    %10 = arith.cmpi ne, %9, %c0_i32_8 : i32
    scf.if %10 {
      %c0_9 = arith.constant 0 : index
      %c0_10 = arith.constant 0 : index
      %11 = vector.load %arg15[%c0_9, %c0_10] : memref<128x128xf32, #tpu.memory_space<vmem>>, vector<128x128xf32>
      %12 = vector.extract_strided_slice %11 {offsets = [0, 0], sizes = [128, 64], strides = [1, 1]} : vector<128x128xf32> to vector<128x64xf32>
      %13 = vector.extract_strided_slice %11 {offsets = [0, 64], sizes = [128, 64], strides = [1, 1]} : vector<128x128xf32> to vector<128x64xf32>
      %14 = arith.addf %12, %13 : vector<128x64xf32>
      %cst_11 = arith.constant 3.125000e-02 : f32
      %15 = vector.broadcast %cst_11 : f32 to vector<128x64xf32>
      %16 = arith.mulf %14, %15 : vector<128x64xf32>
      %17 = arith.truncf %16 : vector<128x64xf32> to vector<128x64xbf16>
      %c0_12 = arith.constant 0 : index
      %c0_13 = arith.constant 0 : index
      %18 = vector.load %arg5[%c0_12, %c0_13] : memref<64x128xbf16, #tpu.memory_space<vmem>>, vector<64x128xbf16>
      %cst_14 = arith.constant dense<0.000000e+00> : vector<128x128xf32>
      %19 = tpu.matmul %17, %18, %cst_14 {dimension_numbers = #tpu.dot_dimension_numbers<[1], [0], [0], [1], [0, 0, 1, 1], [], []>} : vector<128x64xbf16>, vector<64x128xbf16>, vector<128x128xf32> -> vector<128x128xf32>
      %c0_15 = arith.constant 0 : index
      %c0_16 = arith.constant 0 : index
      %20 = vector.load %arg6[%c0_15, %c0_16] : memref<1x128xf32, #tpu.memory_space<vmem>>, vector<1x128xf32>
      %21 = vector.broadcast %20 : vector<1x128xf32> to vector<128x128xf32>
      %22 = arith.addf %19, %21 : vector<128x128xf32>
      %cst_17 = arith.constant 0.000000e+00 : f32
      %23 = vector.broadcast %cst_17 : f32 to vector<128x128xf32>
      %24 = arith.maximumf %22, %23 : vector<128x128xf32>
      %25 = arith.truncf %24 : vector<128x128xf32> to vector<128x128xbf16>
      %c0_18 = arith.constant 0 : index
      %c0_19 = arith.constant 0 : index
      %26 = vector.load %arg7[%c0_18, %c0_19] : memref<128x128xbf16, #tpu.memory_space<vmem>>, vector<128x128xbf16>
      %cst_20 = arith.constant dense<0.000000e+00> : vector<128x128xf32>
      %27 = tpu.matmul %25, %26, %cst_20 {dimension_numbers = #tpu.dot_dimension_numbers<[1], [0], [0], [1], [0, 0, 1, 1], [], []>} : vector<128x128xbf16>, vector<128x128xbf16>, vector<128x128xf32> -> vector<128x128xf32>
      %c0_21 = arith.constant 0 : index
      %c0_22 = arith.constant 0 : index
      %28 = vector.load %arg8[%c0_21, %c0_22] : memref<1x128xf32, #tpu.memory_space<vmem>>, vector<1x128xf32>
      %29 = vector.broadcast %28 : vector<1x128xf32> to vector<128x128xf32>
      %30 = arith.addf %27, %29 : vector<128x128xf32>
      %31 = arith.mulf %30, %30 : vector<128x128xf32>
      %cst_23 = arith.constant dense<0.000000e+00> : vector<128xf32>
      %32 = vector.multi_reduction <add>, %31, %cst_23 [1] : vector<128x128xf32> to vector<128xf32>
      %33 = vector.shape_cast %32 : vector<128xf32> to vector<128x1xf32>
      %cst_24 = arith.constant 1.000000e-24 : f32
      %34 = vector.broadcast %cst_24 : f32 to vector<128x1xf32>
      %35 = arith.maximumf %33, %34 : vector<128x1xf32>
      %36 = math.rsqrt %35 : vector<128x1xf32>
      %37 = vector.broadcast %36 : vector<128x1xf32> to vector<128x128xf32>
      %38 = arith.mulf %30, %37 : vector<128x128xf32>
      %c0_25 = arith.constant 0 : index
      %c0_26 = arith.constant 0 : index
      %39 = vector.load %arg13[%c0_25, %c0_26] : memref<128x128xf32, #tpu.memory_space<vmem>>, vector<128x128xf32>
      tpu.vector_store %arg13[%c0_25, %c0_26], %38 {strides = array<i32>} : memref<128x128xf32, #tpu.memory_space<vmem>>, vector<128x128xf32>,
      %c0_27 = arith.constant 0 : index
      %c0_28 = arith.constant 0 : index
      %40 = vector.load %arg3[%c0_27, %c0_28] : memref<128x8xi32, #tpu.memory_space<vmem>>, vector<128x8xi32>
      %41 = tpu.iota {dimensions = array<i32: 1>} : vector<128x128xi32>
      %cst_29 = arith.constant 0.000000e+00 : f32
      %42 = vector.broadcast %cst_29 : f32 to vector<128x128xf32>
      %cst_30 = arith.constant 0.000000e+00 : f32
      %43 = vector.broadcast %cst_30 : f32 to vector<128x128xf32>
      %44 = vector.extract_strided_slice %40 {offsets = [0, 0], sizes = [128, 1], strides = [1, 1]} : vector<128x8xi32> to vector<128x1xi32>
      %c0_i32_31 = arith.constant 0 : i32
      %45 = vector.broadcast %c0_i32_31 : i32 to vector<128x1xi32>
      %46 = arith.subi %44, %45 : vector<128x1xi32>
      %47 = vector.broadcast %46 : vector<128x1xi32> to vector<128x128xi32>
      %48 = arith.cmpi eq, %47, %41 : vector<128x128xi32>
      %49 = arith.extui %48 : vector<128x128xi1> to vector<128x128xi32>
      %50 = arith.sitofp %49 : vector<128x128xi32> to vector<128x128xf32>
      %51 = arith.addf %43, %50 : vector<128x128xf32>
      %52 = vector.extract_strided_slice %40 {offsets = [0, 1], sizes = [128, 1], strides = [1, 1]} : vector<128x8xi32> to vector<128x1xi32>
      %c0_i32_32 = arith.constant 0 : i32
      %53 = vector.broadcast %c0_i32_32 : i32 to vector<128x1xi32>
      %54 = arith.subi %52, %53 : vector<128x1xi32>
      %55 = vector.broadcast %54 : vector<128x1xi32> to vector<128x128xi32>
      %56 = arith.cmpi eq, %55, %41 : vector<128x128xi32>
      %57 = arith.extui %56 : vector<128x128xi1> to vector<128x128xi32>
      %58 = arith.sitofp %57 : vector<128x128xi32> to vector<128x128xf32>
      %59 = arith.addf %51, %58 : vector<128x128xf32>
      %60 = vector.extract_strided_slice %40 {offsets = [0, 2], sizes = [128, 1], strides = [1, 1]} : vector<128x8xi32> to vector<128x1xi32>
      %c0_i32_33 = arith.constant 0 : i32
      %61 = vector.broadcast %c0_i32_33 : i32 to vector<128x1xi32>
      %62 = arith.subi %60, %61 : vector<128x1xi32>
      %63 = vector.broadcast %62 : vector<128x1xi32> to vector<128x128xi32>
      %64 = arith.cmpi eq, %63, %41 : vector<128x128xi32>
      %65 = arith.extui %64 : vector<128x128xi1> to vector<128x128xi32>
      %66 = arith.sitofp %65 : vector<128x128xi32> to vector<128x128xf32>
      %67 = arith.addf %59, %66 : vector<128x128xf32>
      %68 = vector.extract_strided_slice %40 {offsets = [0, 3], sizes = [128, 1], strides = [1, 1]} : vector<128x8xi32> to vector<128x1xi32>
      %c0_i32_34 = arith.constant 0 : i32
      %69 = vector.broadcast %c0_i32_34 : i32 to vector<128x1xi32>
      %70 = arith.subi %68, %69 : vector<128x1xi32>
      %71 = vector.broadcast %70 : vector<128x1xi32> to vector<128x128xi32>
      %72 = arith.cmpi eq, %71, %41 : vector<128x128xi32>
      %73 = arith.extui %72 : vector<128x128xi1> to vector<128x128xi32>
      %74 = arith.sitofp %73 : vector<128x128xi32> to vector<128x128xf32>
      %75 = arith.addf %67, %74 : vector<128x128xf32>
      %76 = vector.extract_strided_slice %40 {offsets = [0, 4], sizes = [128, 1], strides = [1, 1]} : vector<128x8xi32> to vector<128x1xi32>
      %c0_i32_35 = arith.constant 0 : i32
      %77 = vector.broadcast %c0_i32_35 : i32 to vector<128x1xi32>
      %78 = arith.subi %76, %77 : vector<128x1xi32>
      %79 = vector.broadcast %78 : vector<128x1xi32> to vector<128x128xi32>
      %80 = arith.cmpi eq, %79, %41 : vector<128x128xi32>
      %81 = arith.extui %80 : vector<128x128xi1> to vector<128x128xi32>
      %82 = arith.sitofp %81 : vector<128x128xi32> to vector<128x128xf32>
      %83 = arith.addf %75, %82 : vector<128x128xf32>
      %84 = vector.extract_strided_slice %40 {offsets = [0, 5], sizes = [128, 1], strides = [1, 1]} : vector<128x8xi32> to vector<128x1xi32>
      %c0_i32_36 = arith.constant 0 : i32
      %85 = vector.broadcast %c0_i32_36 : i32 to vector<128x1xi32>
      %86 = arith.subi %84, %85 : vector<128x1xi32>
      %87 = vector.broadcast %86 : vector<128x1xi32> to vector<128x128xi32>
      %88 = arith.cmpi eq, %87, %41 : vector<128x128xi32>
      %89 = arith.extui %88 : vector<128x128xi1> to vector<128x128xi32>
      %90 = arith.sitofp %89 : vector<128x128xi32> to vector<128x128xf32>
      %91 = arith.addf %83, %90 : vector<128x128xf32>
      %92 = vector.extract_strided_slice %40 {offsets = [0, 6], sizes = [128, 1], strides = [1, 1]} : vector<128x8xi32> to vector<128x1xi32>
      %c0_i32_37 = arith.constant 0 : i32
      %93 = vector.broadcast %c0_i32_37 : i32 to vector<128x1xi32>
      %94 = arith.subi %92, %93 : vector<128x1xi32>
      %95 = vector.broadcast %94 : vector<128x1xi32> to vector<128x128xi32>
      %96 = arith.cmpi eq, %95, %41 : vector<128x128xi32>
      %97 = arith.extui %96 : vector<128x128xi1> to vector<128x128xi32>
      %98 = arith.sitofp %97 : vector<128x128xi32> to vector<128x128xf32>
      %99 = arith.addf %91, %98 : vector<128x128xf32>
      %100 = vector.extract_strided_slice %40 {offsets = [0, 7], sizes = [128, 1], strides = [1, 1]} : vector<128x8xi32> to vector<128x1xi32>
      %c0_i32_38 = arith.constant 0 : i32
      %101 = vector.broadcast %c0_i32_38 : i32 to vector<128x1xi32>
      %102 = arith.subi %100, %101 : vector<128x1xi32>
      %103 = vector.broadcast %102 : vector<128x1xi32> to vector<128x128xi32>
      %104 = arith.cmpi eq, %103, %41 : vector<128x128xi32>
      %105 = arith.extui %104 : vector<128x128xi1> to vector<128x128xi32>
      %106 = arith.sitofp %105 : vector<128x128xi32> to vector<128x128xf32>
      %107 = arith.addf %99, %106 : vector<128x128xf32>
      %c0_39 = arith.constant 0 : index
      %c0_40 = arith.constant 0 : index
      %108 = vector.load %arg4[%c0_39, %c0_40] : memref<512x128xf32, #tpu.memory_space<vmem>>, vector<128x128xf32>
      %cst_41 = arith.constant dense<0.000000e+00> : vector<128x128xf32>
      %109 = tpu.matmul %107, %108, %cst_41 {dimension_numbers = #tpu.dot_dimension_numbers<[1], [0], [0], [1], [0, 0, 1, 1], [], []>} : vector<128x128xf32>, vector<128x128xf32>, vector<128x128xf32> -> vector<128x128xf32>
      %110 = arith.addf %42, %109 : vector<128x128xf32>
      %cst_42 = arith.constant 0.000000e+00 : f32
      %111 = vector.broadcast %cst_42 : f32 to vector<128x128xf32>
      %112 = vector.extract_strided_slice %40 {offsets = [0, 0], sizes = [128, 1], strides = [1, 1]} : vector<128x8xi32> to vector<128x1xi32>
      %c128_i32 = arith.constant 128 : i32
      %113 = vector.broadcast %c128_i32 : i32 to vector<128x1xi32>
      %114 = arith.subi %112, %113 : vector<128x1xi32>
      %115 = vector.broadcast %114 : vector<128x1xi32> to vector<128x128xi32>
      %116 = arith.cmpi eq, %115, %41 : vector<128x128xi32>
      %117 = arith.extui %116 : vector<128x128xi1> to vector<128x128xi32>
      %118 = arith.sitofp %117 : vector<128x128xi32> to vector<128x128xf32>
      %119 = arith.addf %111, %118 : vector<128x128xf32>
      %120 = vector.extract_strided_slice %40 {offsets = [0, 1], sizes = [128, 1], strides = [1, 1]} : vector<128x8xi32> to vector<128x1xi32>
      %c128_i32_43 = arith.constant 128 : i32
      %121 = vector.broadcast %c128_i32_43 : i32 to vector<128x1xi32>
      %122 = arith.subi %120, %121 : vector<128x1xi32>
      %123 = vector.broadcast %122 : vector<128x1xi32> to vector<128x128xi32>
      %124 = arith.cmpi eq, %123, %41 : vector<128x128xi32>
      %125 = arith.extui %124 : vector<128x128xi1> to vector<128x128xi32>
      %126 = arith.sitofp %125 : vector<128x128xi32> to vector<128x128xf32>
      %127 = arith.addf %119, %126 : vector<128x128xf32>
      %128 = vector.extract_strided_slice %40 {offsets = [0, 2], sizes = [128, 1], strides = [1, 1]} : vector<128x8xi32> to vector<128x1xi32>
      %c128_i32_44 = arith.constant 128 : i32
      %129 = vector.broadcast %c128_i32_44 : i32 to vector<128x1xi32>
      %130 = arith.subi %128, %129 : vector<128x1xi32>
      %131 = vector.broadcast %130 : vector<128x1xi32> to vector<128x128xi32>
      %132 = arith.cmpi eq, %131, %41 : vector<128x128xi32>
      %133 = arith.extui %132 : vector<128x128xi1> to vector<128x128xi32>
      %134 = arith.sitofp %133 : vector<128x128xi32> to vector<128x128xf32>
      %135 = arith.addf %127, %134 : vector<128x128xf32>
      %136 = vector.extract_strided_slice %40 {offsets = [0, 3], sizes = [128, 1], strides = [1, 1]} : vector<128x8xi32> to vector<128x1xi32>
      %c128_i32_45 = arith.constant 128 : i32
      %137 = vector.broadcast %c128_i32_45 : i32 to vector<128x1xi32>
      %138 = arith.subi %136, %137 : vector<128x1xi32>
      %139 = vector.broadcast %138 : vector<128x1xi32> to vector<128x128xi32>
      %140 = arith.cmpi eq, %139, %41 : vector<128x128xi32>
      %141 = arith.extui %140 : vector<128x128xi1> to vector<128x128xi32>
      %142 = arith.sitofp %141 : vector<128x128xi32> to vector<128x128xf32>
      %143 = arith.addf %135, %142 : vector<128x128xf32>
      %144 = vector.extract_strided_slice %40 {offsets = [0, 4], sizes = [128, 1], strides = [1, 1]} : vector<128x8xi32> to vector<128x1xi32>
      %c128_i32_46 = arith.constant 128 : i32
      %145 = vector.broadcast %c128_i32_46 : i32 to vector<128x1xi32>
      %146 = arith.subi %144, %145 : vector<128x1xi32>
      %147 = vector.broadcast %146 : vector<128x1xi32> to vector<128x128xi32>
      %148 = arith.cmpi eq, %147, %41 : vector<128x128xi32>
      %149 = arith.extui %148 : vector<128x128xi1> to vector<128x128xi32>
      %150 = arith.sitofp %149 : vector<128x128xi32> to vector<128x128xf32>
      %151 = arith.addf %143, %150 : vector<128x128xf32>
      %152 = vector.extract_strided_slice %40 {offsets = [0, 5], sizes = [128, 1], strides = [1, 1]} : vector<128x8xi32> to vector<128x1xi32>
      %c128_i32_47 = arith.constant 128 : i32
      %153 = vector.broadcast %c128_i32_47 : i32 to vector<128x1xi32>
      %154 = arith.subi %152, %153 : vector<128x1xi32>
      %155 = vector.broadcast %154 : vector<128x1xi32> to vector<128x128xi32>
      %156 = arith.cmpi eq, %155, %41 : vector<128x128xi32>
      %157 = arith.extui %156 : vector<128x128xi1> to vector<128x128xi32>
      %158 = arith.sitofp %157 : vector<128x128xi32> to vector<128x128xf32>
      %159 = arith.addf %151, %158 : vector<128x128xf32>
      %160 = vector.extract_strided_slice %40 {offsets = [0, 6], sizes = [128, 1], strides = [1, 1]} : vector<128x8xi32> to vector<128x1xi32>
      %c128_i32_48 = arith.constant 128 : i32
      %161 = vector.broadcast %c128_i32_48 : i32 to vector<128x1xi32>
      %162 = arith.subi %160, %161 : vector<128x1xi32>
      %163 = vector.broadcast %162 : vector<128x1xi32> to vector<128x128xi32>
      %164 = arith.cmpi eq, %163, %41 : vector<128x128xi32>
      %165 = arith.extui %164 : vector<128x128xi1> to vector<128x128xi32>
      %166 = arith.sitofp %165 : vector<128x128xi32> to vector<128x128xf32>
      %167 = arith.addf %159, %166 : vector<128x128xf32>
      %168 = vector.extract_strided_slice %40 {offsets = [0, 7], sizes = [128, 1], strides = [1, 1]} : vector<128x8xi32> to vector<128x1xi32>
      %c128_i32_49 = arith.constant 128 : i32
      %169 = vector.broadcast %c128_i32_49 : i32 to vector<128x1xi32>
      %170 = arith.subi %168, %169 : vector<128x1xi32>
      %171 = vector.broadcast %170 : vector<128x1xi32> to vector<128x128xi32>
      %172 = arith.cmpi eq, %171, %41 : vector<128x128xi32>
      %173 = arith.extui %172 : vector<128x128xi1> to vector<128x128xi32>
      %174 = arith.sitofp %173 : vector<128x128xi32> to vector<128x128xf32>
      %175 = arith.addf %167, %174 : vector<128x128xf32>
      %c128 = arith.constant 128 : index
      %c0_50 = arith.constant 0 : index
      %176 = vector.load %arg4[%c128, %c0_50] : memref<512x128xf32, #tpu.memory_space<vmem>>, vector<128x128xf32>
      %cst_51 = arith.constant dense<0.000000e+00> : vector<128x128xf32>
      %177 = tpu.matmul %175, %176, %cst_51 {dimension_numbers = #tpu.dot_dimension_numbers<[1], [0], [0], [1], [0, 0, 1, 1], [], []>} : vector<128x128xf32>, vector<128x128xf32>, vector<128x128xf32> -> vector<128x128xf32>
      %178 = arith.addf %110, %177 : vector<128x128xf32>
      %cst_52 = arith.constant 0.000000e+00 : f32
      %179 = vector.broadcast %cst_52 : f32 to vector<128x128xf32>
      %180 = vector.extract_strided_slice %40 {offsets = [0, 0], sizes = [128, 1], strides = [1, 1]} : vector<128x8xi32> to vector<128x1xi32>
      %c256_i32 = arith.constant 256 : i32
      %181 = vector.broadcast %c256_i32 : i32 to vector<128x1xi32>
      %182 = arith.subi %180, %181 : vector<128x1xi32>
      %183 = vector.broadcast %182 : vector<128x1xi32> to vector<128x128xi32>
      %184 = arith.cmpi eq, %183, %41 : vector<128x128xi32>
      %185 = arith.extui %184 : vector<128x128xi1> to vector<128x128xi32>
      %186 = arith.sitofp %185 : vector<128x128xi32> to vector<128x128xf32>
      %187 = arith.addf %179, %186 : vector<128x128xf32>
      %188 = vector.extract_strided_slice %40 {offsets = [0, 1], sizes = [128, 1], strides = [1, 1]} : vector<128x8xi32> to vector<128x1xi32>
      %c256_i32_53 = arith.constant 256 : i32
      %189 = vector.broadcast %c256_i32_53 : i32 to vector<128x1xi32>
      %190 = arith.subi %188, %189 : vector<128x1xi32>
      %191 = vector.broadcast %190 : vector<128x1xi32> to vector<128x128xi32>
      %192 = arith.cmpi eq, %191, %41 : vector<128x128xi32>
      %193 = arith.extui %192 : vector<128x128xi1> to vector<128x128xi32>
      %194 = arith.sitofp %193 : vector<128x128xi32> to vector<128x128xf32>
      %195 = arith.addf %187, %194 : vector<128x128xf32>
      %196 = vector.extract_strided_slice %40 {offsets = [0, 2], sizes = [128, 1], strides = [1, 1]} : vector<128x8xi32> to vector<128x1xi32>
      %c256_i32_54 = arith.constant 256 : i32
      %197 = vector.broadcast %c256_i32_54 : i32 to vector<128x1xi32>
      %198 = arith.subi %196, %197 : vector<128x1xi32>
      %199 = vector.broadcast %198 : vector<128x1xi32> to vector<128x128xi32>
      %200 = arith.cmpi eq, %199, %41 : vector<128x128xi32>
      %201 = arith.extui %200 : vector<128x128xi1> to vector<128x128xi32>
      %202 = arith.sitofp %201 : vector<128x128xi32> to vector<128x128xf32>
      %203 = arith.addf %195, %202 : vector<128x128xf32>
      %204 = vector.extract_strided_slice %40 {offsets = [0, 3], sizes = [128, 1], strides = [1, 1]} : vector<128x8xi32> to vector<128x1xi32>
      %c256_i32_55 = arith.constant 256 : i32
      %205 = vector.broadcast %c256_i32_55 : i32 to vector<128x1xi32>
      %206 = arith.subi %204, %205 : vector<128x1xi32>
      %207 = vector.broadcast %206 : vector<128x1xi32> to vector<128x128xi32>
      %208 = arith.cmpi eq, %207, %41 : vector<128x128xi32>
      %209 = arith.extui %208 : vector<128x128xi1> to vector<128x128xi32>
      %210 = arith.sitofp %209 : vector<128x128xi32> to vector<128x128xf32>
      %211 = arith.addf %203, %210 : vector<128x128xf32>
      %212 = vector.extract_strided_slice %40 {offsets = [0, 4], sizes = [128, 1], strides = [1, 1]} : vector<128x8xi32> to vector<128x1xi32>
      %c256_i32_56 = arith.constant 256 : i32
      %213 = vector.broadcast %c256_i32_56 : i32 to vector<128x1xi32>
      %214 = arith.subi %212, %213 : vector<128x1xi32>
      %215 = vector.broadcast %214 : vector<128x1xi32> to vector<128x128xi32>
      %216 = arith.cmpi eq, %215, %41 : vector<128x128xi32>
      %217 = arith.extui %216 : vector<128x128xi1> to vector<128x128xi32>
      %218 = arith.sitofp %217 : vector<128x128xi32> to vector<128x128xf32>
      %219 = arith.addf %211, %218 : vector<128x128xf32>
      %220 = vector.extract_strided_slice %40 {offsets = [0, 5], sizes = [128, 1], strides = [1, 1]} : vector<128x8xi32> to vector<128x1xi32>
      %c256_i32_57 = arith.constant 256 : i32
      %221 = vector.broadcast %c256_i32_57 : i32 to vector<128x1xi32>
      %222 = arith.subi %220, %221 : vector<128x1xi32>
      %223 = vector.broadcast %222 : vector<128x1xi32> to vector<128x128xi32>
      %224 = arith.cmpi eq, %223, %41 : vector<128x128xi32>
      %225 = arith.extui %224 : vector<128x128xi1> to vector<128x128xi32>
      %226 = arith.sitofp %225 : vector<128x128xi32> to vector<128x128xf32>
      %227 = arith.addf %219, %226 : vector<128x128xf32>
      %228 = vector.extract_strided_slice %40 {offsets = [0, 6], sizes = [128, 1], strides = [1, 1]} : vector<128x8xi32> to vector<128x1xi32>
      %c256_i32_58 = arith.constant 256 : i32
      %229 = vector.broadcast %c256_i32_58 : i32 to vector<128x1xi32>
      %230 = arith.subi %228, %229 : vector<128x1xi32>
      %231 = vector.broadcast %230 : vector<128x1xi32> to vector<128x128xi32>
      %232 = arith.cmpi eq, %231, %41 : vector<128x128xi32>
      %233 = arith.extui %232 : vector<128x128xi1> to vector<128x128xi32>
      %234 = arith.sitofp %233 : vector<128x128xi32> to vector<128x128xf32>
      %235 = arith.addf %227, %234 : vector<128x128xf32>
      %236 = vector.extract_strided_slice %40 {offsets = [0, 7], sizes = [128, 1], strides = [1, 1]} : vector<128x8xi32> to vector<128x1xi32>
      %c256_i32_59 = arith.constant 256 : i32
      %237 = vector.broadcast %c256_i32_59 : i32 to vector<128x1xi32>
      %238 = arith.subi %236, %237 : vector<128x1xi32>
      %239 = vector.broadcast %238 : vector<128x1xi32> to vector<128x128xi32>
      %240 = arith.cmpi eq, %239, %41 : vector<128x128xi32>
      %241 = arith.extui %240 : vector<128x128xi1> to vector<128x128xi32>
      %242 = arith.sitofp %241 : vector<128x128xi32> to vector<128x128xf32>
      %243 = arith.addf %235, %242 : vector<128x128xf32>
      %c256 = arith.constant 256 : index
      %c0_60 = arith.constant 0 : index
      %244 = vector.load %arg4[%c256, %c0_60] : memref<512x128xf32, #tpu.memory_space<vmem>>, vector<128x128xf32>
      %cst_61 = arith.constant dense<0.000000e+00> : vector<128x128xf32>
      %245 = tpu.matmul %243, %244, %cst_61 {dimension_numbers = #tpu.dot_dimension_numbers<[1], [0], [0], [1], [0, 0, 1, 1], [], []>} : vector<128x128xf32>, vector<128x128xf32>, vector<128x128xf32> -> vector<128x128xf32>
      %246 = arith.addf %178, %245 : vector<128x128xf32>
      %cst_62 = arith.constant 0.000000e+00 : f32
      %247 = vector.broadcast %cst_62 : f32 to vector<128x128xf32>
      %248 = vector.extract_strided_slice %40 {offsets = [0, 0], sizes = [128, 1], strides = [1, 1]} : vector<128x8xi32> to vector<128x1xi32>
      %c384_i32 = arith.constant 384 : i32
      %249 = vector.broadcast %c384_i32 : i32 to vector<128x1xi32>
      %250 = arith.subi %248, %249 : vector<128x1xi32>
      %251 = vector.broadcast %250 : vector<128x1xi32> to vector<128x128xi32>
      %252 = arith.cmpi eq, %251, %41 : vector<128x128xi32>
      %253 = arith.extui %252 : vector<128x128xi1> to vector<128x128xi32>
      %254 = arith.sitofp %253 : vector<128x128xi32> to vector<128x128xf32>
      %255 = arith.addf %247, %254 : vector<128x128xf32>
      %256 = vector.extract_strided_slice %40 {offsets = [0, 1], sizes = [128, 1], strides = [1, 1]} : vector<128x8xi32> to vector<128x1xi32>
      %c384_i32_63 = arith.constant 384 : i32
      %257 = vector.broadcast %c384_i32_63 : i32 to vector<128x1xi32>
      %258 = arith.subi %256, %257 : vector<128x1xi32>
      %259 = vector.broadcast %258 : vector<128x1xi32> to vector<128x128xi32>
      %260 = arith.cmpi eq, %259, %41 : vector<128x128xi32>
      %261 = arith.extui %260 : vector<128x128xi1> to vector<128x128xi32>
      %262 = arith.sitofp %261 : vector<128x128xi32> to vector<128x128xf32>
      %263 = arith.addf %255, %262 : vector<128x128xf32>
      %264 = vector.extract_strided_slice %40 {offsets = [0, 2], sizes = [128, 1], strides = [1, 1]} : vector<128x8xi32> to vector<128x1xi32>
      %c384_i32_64 = arith.constant 384 : i32
      %265 = vector.broadcast %c384_i32_64 : i32 to vector<128x1xi32>
      %266 = arith.subi %264, %265 : vector<128x1xi32>
      %267 = vector.broadcast %266 : vector<128x1xi32> to vector<128x128xi32>
      %268 = arith.cmpi eq, %267, %41 : vector<128x128xi32>
      %269 = arith.extui %268 : vector<128x128xi1> to vector<128x128xi32>
      %270 = arith.sitofp %269 : vector<128x128xi32> to vector<128x128xf32>
      %271 = arith.addf %263, %270 : vector<128x128xf32>
      %272 = vector.extract_strided_slice %40 {offsets = [0, 3], sizes = [128, 1], strides = [1, 1]} : vector<128x8xi32> to vector<128x1xi32>
      %c384_i32_65 = arith.constant 384 : i32
      %273 = vector.broadcast %c384_i32_65 : i32 to vector<128x1xi32>
      %274 = arith.subi %272, %273 : vector<128x1xi32>
      %275 = vector.broadcast %274 : vector<128x1xi32> to vector<128x128xi32>
      %276 = arith.cmpi eq, %275, %41 : vector<128x128xi32>
      %277 = arith.extui %276 : vector<128x128xi1> to vector<128x128xi32>
      %278 = arith.sitofp %277 : vector<128x128xi32> to vector<128x128xf32>
      %279 = arith.addf %271, %278 : vector<128x128xf32>
      %280 = vector.extract_strided_slice %40 {offsets = [0, 4], sizes = [128, 1], strides = [1, 1]} : vector<128x8xi32> to vector<128x1xi32>
      %c384_i32_66 = arith.constant 384 : i32
      %281 = vector.broadcast %c384_i32_66 : i32 to vector<128x1xi32>
      %282 = arith.subi %280, %281 : vector<128x1xi32>
      %283 = vector.broadcast %282 : vector<128x1xi32> to vector<128x128xi32>
      %284 = arith.cmpi eq, %283, %41 : vector<128x128xi32>
      %285 = arith.extui %284 : vector<128x128xi1> to vector<128x128xi32>
      %286 = arith.sitofp %285 : vector<128x128xi32> to vector<128x128xf32>
      %287 = arith.addf %279, %286 : vector<128x128xf32>
      %288 = vector.extract_strided_slice %40 {offsets = [0, 5], sizes = [128, 1], strides = [1, 1]} : vector<128x8xi32> to vector<128x1xi32>
      %c384_i32_67 = arith.constant 384 : i32
      %289 = vector.broadcast %c384_i32_67 : i32 to vector<128x1xi32>
      %290 = arith.subi %288, %289 : vector<128x1xi32>
      %291 = vector.broadcast %290 : vector<128x1xi32> to vector<128x128xi32>
      %292 = arith.cmpi eq, %291, %41 : vector<128x128xi32>
      %293 = arith.extui %292 : vector<128x128xi1> to vector<128x128xi32>
      %294 = arith.sitofp %293 : vector<128x128xi32> to vector<128x128xf32>
      %295 = arith.addf %287, %294 : vector<128x128xf32>
      %296 = vector.extract_strided_slice %40 {offsets = [0, 6], sizes = [128, 1], strides = [1, 1]} : vector<128x8xi32> to vector<128x1xi32>
      %c384_i32_68 = arith.constant 384 : i32
      %297 = vector.broadcast %c384_i32_68 : i32 to vector<128x1xi32>
      %298 = arith.subi %296, %297 : vector<128x1xi32>
      %299 = vector.broadcast %298 : vector<128x1xi32> to vector<128x128xi32>
      %300 = arith.cmpi eq, %299, %41 : vector<128x128xi32>
      %301 = arith.extui %300 : vector<128x128xi1> to vector<128x128xi32>
      %302 = arith.sitofp %301 : vector<128x128xi32> to vector<128x128xf32>
      %303 = arith.addf %295, %302 : vector<128x128xf32>
      %304 = vector.extract_strided_slice %40 {offsets = [0, 7], sizes = [128, 1], strides = [1, 1]} : vector<128x8xi32> to vector<128x1xi32>
      %c384_i32_69 = arith.constant 384 : i32
      %305 = vector.broadcast %c384_i32_69 : i32 to vector<128x1xi32>
      %306 = arith.subi %304, %305 : vector<128x1xi32>
      %307 = vector.broadcast %306 : vector<128x1xi32> to vector<128x128xi32>
      %308 = arith.cmpi eq, %307, %41 : vector<128x128xi32>
      %309 = arith.extui %308 : vector<128x128xi1> to vector<128x128xi32>
      %310 = arith.sitofp %309 : vector<128x128xi32> to vector<128x128xf32>
      %311 = arith.addf %303, %310 : vector<128x128xf32>
      %c384 = arith.constant 384 : index
      %c0_70 = arith.constant 0 : index
      %312 = vector.load %arg4[%c384, %c0_70] : memref<512x128xf32, #tpu.memory_space<vmem>>, vector<128x128xf32>
      %cst_71 = arith.constant dense<0.000000e+00> : vector<128x128xf32>
      %313 = tpu.matmul %311, %312, %cst_71 {dimension_numbers = #tpu.dot_dimension_numbers<[1], [0], [0], [1], [0, 0, 1, 1], [], []>} : vector<128x128xf32>, vector<128x128xf32>, vector<128x128xf32> -> vector<128x128xf32>
      %314 = arith.addf %246, %313 : vector<128x128xf32>
      %cst_72 = arith.constant 1.250000e-01 : f32
      %315 = vector.broadcast %cst_72 : f32 to vector<128x128xf32>
      %316 = arith.mulf %314, %315 : vector<128x128xf32>
      %317 = arith.truncf %316 : vector<128x128xf32> to vector<128x128xbf16>
      %c0_73 = arith.constant 0 : index
      %c0_74 = arith.constant 0 : index
      %318 = vector.load %arg9[%c0_73, %c0_74] : memref<128x128xbf16, #tpu.memory_space<vmem>>, vector<128x128xbf16>
      %cst_75 = arith.constant dense<0.000000e+00> : vector<128x128xf32>
      %319 = tpu.matmul %317, %318, %cst_75 {dimension_numbers = #tpu.dot_dimension_numbers<[1], [0], [0], [1], [0, 0, 1, 1], [], []>} : vector<128x128xbf16>, vector<128x128xbf16>, vector<128x128xf32> -> vector<128x128xf32>
      %c0_76 = arith.constant 0 : index
      %c0_77 = arith.constant 0 : index
      %320 = vector.load %arg10[%c0_76, %c0_77] : memref<1x128xf32, #tpu.memory_space<vmem>>, vector<1x128xf32>
      %321 = vector.broadcast %320 : vector<1x128xf32> to vector<128x128xf32>
      %322 = arith.addf %319, %321 : vector<128x128xf32>
      %cst_78 = arith.constant 0.000000e+00 : f32
      %323 = vector.broadcast %cst_78 : f32 to vector<128x128xf32>
      %324 = arith.maximumf %322, %323 : vector<128x128xf32>
      %325 = arith.truncf %324 : vector<128x128xf32> to vector<128x128xbf16>
      %c0_79 = arith.constant 0 : index
      %c0_80 = arith.constant 0 : index
      %326 = vector.load %arg11[%c0_79, %c0_80] : memref<128x128xbf16, #tpu.memory_space<vmem>>, vector<128x128xbf16>
      %cst_81 = arith.constant dense<0.000000e+00> : vector<128x128xf32>
      %327 = tpu.matmul %325, %326, %cst_81 {dimension_numbers = #tpu.dot_dimension_numbers<[1], [0], [0], [1], [0, 0, 1, 1], [], []>} : vector<128x128xbf16>, vector<128x128xbf16>, vector<128x128xf32> -> vector<128x128xf32>
      %c0_82 = arith.constant 0 : index
      %c0_83 = arith.constant 0 : index
      %328 = vector.load %arg12[%c0_82, %c0_83] : memref<1x128xf32, #tpu.memory_space<vmem>>, vector<1x128xf32>
      %329 = vector.broadcast %328 : vector<1x128xf32> to vector<128x128xf32>
      %330 = arith.addf %327, %329 : vector<128x128xf32>
      %331 = arith.mulf %330, %330 : vector<128x128xf32>
      %cst_84 = arith.constant dense<0.000000e+00> : vector<128xf32>
      %332 = vector.multi_reduction <add>, %331, %cst_84 [1] : vector<128x128xf32> to vector<128xf32>
      %333 = vector.shape_cast %332 : vector<128xf32> to vector<128x1xf32>
      %cst_85 = arith.constant 1.000000e-24 : f32
      %334 = vector.broadcast %cst_85 : f32 to vector<128x1xf32>
      %335 = arith.maximumf %333, %334 : vector<128x1xf32>
      %336 = math.rsqrt %335 : vector<128x1xf32>
      %337 = vector.broadcast %336 : vector<128x1xf32> to vector<128x128xf32>
      %338 = arith.mulf %330, %337 : vector<128x128xf32>
      %c0_86 = arith.constant 0 : index
      %c0_87 = arith.constant 0 : index
      %339 = vector.load %arg14[%c0_86, %c0_87] : memref<128x128xf32, #tpu.memory_space<vmem>>, vector<128x128xf32>
      tpu.vector_store %arg14[%c0_86, %c0_87], %338 {strides = array<i32>} : memref<128x128xf32, #tpu.memory_space<vmem>>, vector<128x128xf32>,
    } else {
    }
    return
  }
  func.func @transform_0(%arg0: i32, %arg1: i32) -> (i32, i32, i32) {
    %c0_i32 = arith.constant 0 : i32
    %c0_i32_0 = arith.constant 0 : i32
    return %arg0, %arg1, %c0_i32 : i32, i32, i32
  }
  func.func @transform_1(%arg0: i32, %arg1: i32) -> (i32, i32) {
    %c0_i32 = arith.constant 0 : i32
    %c0_i32_0 = arith.constant 0 : i32
    return %arg0, %c0_i32 : i32, i32
  }
  func.func @transform_2(%arg0: i32, %arg1: i32) -> (i32, i32) {
    %c0_i32 = arith.constant 0 : i32
    %c0_i32_0 = arith.constant 0 : i32
    %c0_i32_1 = arith.constant 0 : i32
    return %c0_i32, %c0_i32_0 : i32, i32
  }
  func.func @transform_3(%arg0: i32, %arg1: i32) -> (i32, i32) {
    %c0_i32 = arith.constant 0 : i32
    %c0_i32_0 = arith.constant 0 : i32
    %c0_i32_1 = arith.constant 0 : i32
    return %c0_i32, %c0_i32_0 : i32, i32
  }
  func.func @transform_4(%arg0: i32, %arg1: i32) -> (i32, i32) {
    %c0_i32 = arith.constant 0 : i32
    %c0_i32_0 = arith.constant 0 : i32
    %c0_i32_1 = arith.constant 0 : i32
    return %c0_i32, %c0_i32_0 : i32, i32
  }
  func.func @transform_5(%arg0: i32, %arg1: i32) -> (i32, i32) {
    %c0_i32 = arith.constant 0 : i32
    %c0_i32_0 = arith.constant 0 : i32
    %c0_i32_1 = arith.constant 0 : i32
    return %c0_i32, %c0_i32_0 : i32, i32
  }
  func.func @transform_6(%arg0: i32, %arg1: i32) -> (i32, i32) {
    %c0_i32 = arith.constant 0 : i32
    %c0_i32_0 = arith.constant 0 : i32
    %c0_i32_1 = arith.constant 0 : i32
    return %c0_i32, %c0_i32_0 : i32, i32
  }
  func.func @transform_7(%arg0: i32, %arg1: i32) -> (i32, i32) {
    %c0_i32 = arith.constant 0 : i32
    %c0_i32_0 = arith.constant 0 : i32
    %c0_i32_1 = arith.constant 0 : i32
    return %c0_i32, %c0_i32_0 : i32, i32
  }
  func.func @transform_8(%arg0: i32, %arg1: i32) -> (i32, i32) {
    %c0_i32 = arith.constant 0 : i32
    %c0_i32_0 = arith.constant 0 : i32
    %c0_i32_1 = arith.constant 0 : i32
    return %c0_i32, %c0_i32_0 : i32, i32
  }
  func.func @transform_9(%arg0: i32, %arg1: i32) -> (i32, i32) {
    %c0_i32 = arith.constant 0 : i32
    %c0_i32_0 = arith.constant 0 : i32
    %c0_i32_1 = arith.constant 0 : i32
    return %c0_i32, %c0_i32_0 : i32, i32
  }
  func.func @transform_10(%arg0: i32, %arg1: i32) -> (i32, i32) {
    %c0_i32 = arith.constant 0 : i32
    %c0_i32_0 = arith.constant 0 : i32
    %c0_i32_1 = arith.constant 0 : i32
    return %c0_i32, %c0_i32_0 : i32, i32
  }
  func.func @transform_11(%arg0: i32, %arg1: i32) -> (i32, i32) {
    %c0_i32 = arith.constant 0 : i32
    %c0_i32_0 = arith.constant 0 : i32
    return %arg0, %c0_i32 : i32, i32
  }
  func.func @transform_12(%arg0: i32, %arg1: i32) -> (i32, i32) {
    %c0_i32 = arith.constant 0 : i32
    %c0_i32_0 = arith.constant 0 : i32
    return %arg0, %c0_i32 : i32, i32
  }
}

</mosaic_0001>

<bundles_post_ra>
// kernel: dual_encoder_forward.1
= control target key start
LH: loop header
LB: loop body
LE: loop exit
PB: predicated region body
PF: predicated region fallthrough
CT: control target
= control target key end

     0   :  { %vm1357_vm0 = vcmask 1041409   ;;  %vm1359_vm1 = vcmask 1042434   ;;  %vm1361_vm2 = vcmask 1043459   ;;  %vm1363_vm3 = vcmask 1044484   ;;  %s8532_s13 = smov 64   ;;  %s15227_s0 = inlined_call_operand.vmem [shape: f32[128,16,128], index: 0, kind: input, shape index: {}]   ;;  %s15228_s3 = inlined_call_operand.vmem [shape: bf16[64,128], index: 3, kind: input, shape index: {}]   ;;  %s15229_s1 = inlined_call_operand.vmem [shape: s32[128,8], index: 1, kind: input, shape index: {}]   ;;  %s15230_s5 = inlined_call_operand.vmem [shape: bf16[128,128], index: 5, kind: input, shape index: {}]   ;;  %s15231_s4 = inlined_call_operand.vmem [shape: f32[1,128], index: 4, kind: input, shape index: {}]   ;;  %s15232_s6 = inlined_call_operand.vmem [shape: f32[1,128], index: 6, kind: input, shape index: {}]   ;;  %s15233_s11 = inlined_call_operand.vmem [shape: f32[128,128], index: 11, kind: output, shape index: {0}]   ;;  %s15234_s2 = inlined_call_operand.vmem [shape: f32[512,128], index: 2, kind: input, shape index: {}]   ;;  %s15235_s7 = inlined_call_operand.vmem [shape: bf16[128,128], index: 7, kind: input, shape index: {}]   ;;  %s15236_s9 = inlined_call_operand.vmem [shape: bf16[128,128], index: 9, kind: input, shape index: {}]   ;;  %s15237_s8 = inlined_call_operand.vmem [shape: f32[1,128], index: 8, kind: input, shape index: {}]   ;;  %s15238_s10 = inlined_call_operand.vmem [shape: f32[1,128], index: 10, kind: input, shape index: {}]   ;;  %s15239_s12 = inlined_call_operand.vmem [shape: f32[128,128], index: 12, kind: output, shape index: {1}]  }
   0x1   :  { %v109_v0 = vld [vmem:[%s15227_s0 + $0x100] sm:$0xff]  ;;  %v110_v1 = vld [vmem:[%s15227_s0 + $0x108] sm:$0xff]  ;;  %v111_v2 = vld [vmem:[%s15227_s0 + $0x110] sm:$0xff]  ;;  %vm1365_vm4 = vcmask 1045509   ;;  %vm1367_vm5 = vcmask 1046534   ;;  %vm1369_vm6 = vcmask 1047559  }
   0x2   :  { %v112_v3 = vld [vmem:[%s15227_s0 + $0x118] sm:$0xff]  ;;  %v113_v4 = vld [vmem:[%s15227_s0 + $0x120] sm:$0xff]  ;;  %v114_v5 = vld [vmem:[%s15227_s0 + $0x128] sm:$0xff]  ;;  %v445_v6 = vadd.f32 %v110_v1, %v109_v0  ;;  %vm1686_vm7 = vcmask 523264  }
   0x3   :  { %v115_v7 = vld [vmem:[%s15227_s0 + $0x130] sm:$0xff]  ;;  %v116_v8 = vld [vmem:[%s15227_s0 + $0x138] sm:$0xff]  ;;  %v117_v9 = vld [vmem:[%s15227_s0 + $0x140] sm:$0xff]  ;;  %v452_v10 = vadd.f32 %v112_v3, %v111_v2  ;;  %v459_v11 = vadd.f32 %v114_v5, %v113_v4 }
   0x4   :  { %v118_v12 = vld [vmem:[%s15227_s0 + $0x148] sm:$0xff]  ;;  %v119_v13 = vld [vmem:[%s15227_s0 + $0x150] sm:$0xff]  ;;  %v120_v14 = vld [vmem:[%s15227_s0 + $0x158] sm:$0xff]  ;;  %v446_v15 = vrot.slane %v445_v6, 4  ;;  %v466_v16 = vadd.f32 %v116_v8, %v115_v7 }
   0x5   :  { %v121_v17 = vld [vmem:[%s15227_s0 + $0x160] sm:$0xff]  ;;  %v122_v18 = vld [vmem:[%s15227_s0 + $0x168] sm:$0xff]  ;;  %v123_v19 = vld [vmem:[%s15227_s0 + $0x170] sm:$0xff]  ;;  %v453_v20 = vrot.slane %v452_v10, 4  ;;  %v460_v21 = vrot.slane %v459_v11, 4  ;;  %v473_v22 = vadd.f32 %v118_v12, %v117_v9  ;;  %v480_v23 = vadd.f32 %v120_v14, %v119_v13 }
   0x6   :  { %v124_v24 = vld [vmem:[%s15227_s0 + $0x178] sm:$0xff]  ;;  %v447_v25 = vadd.f32 %v446_v15, %v445_v6  ;;  %v467_v26 = vrot.slane %v466_v16, 4  ;;  %v487_v27 = vadd.f32 %v122_v18, %v121_v17  ;;  %v77_v56 = vld [vmem:[%s15227_s0] sm:$0xff]  ;;  %v78_v57 = vld [vmem:[%s15227_s0 + $0x8] sm:$0xff] }
   0x7   :  { %v454_v28 = vadd.f32 %v453_v20, %v452_v10  ;;  %v461_v29 = vadd.f32 %v460_v21, %v459_v11  ;;  %v474_v30 = vrot.slane %v473_v22, 4  ;;  %v481_v31 = vrot.slane %v480_v23, 4  ;;  %v79_v62 = vld [vmem:[%s15227_s0 + $0x10] sm:$0xff]  ;;  %v80_v63 = vld [vmem:[%s15227_s0 + $0x18] sm:$0xff]  ;;  %v81_v4 = vld [vmem:[%s15227_s0 + $0x20] sm:$0xff] }
   0x8   :  { %v448_v32 = vrot.slane %v447_v25, 2  ;;  %v468_v33 = vadd.f32 %v467_v26, %v466_v16  ;;  %v488_v34 = vrot.slane %v487_v27, 4  ;;  %v494_v35 = vadd.f32 %v124_v24, %v123_v19  ;;  %v82_v8 = vld [vmem:[%s15227_s0 + $0x28] sm:$0xff]  ;;  %v83_v9 = vld [vmem:[%s15227_s0 + $0x30] sm:$0xff]  ;;  %v84_v10 = vld [vmem:[%s15227_s0 + $0x38] sm:$0xff] }
   0x9   :  { %v455_v36 = vrot.slane %v454_v28, 2  ;;  %v462_v37 = vrot.slane %v461_v29, 2  ;;  %v475_v38 = vadd.f32 %v474_v30, %v473_v22  ;;  %v482_v39 = vadd.f32 %v481_v31, %v480_v23  ;;  %v85_v15 = vld [vmem:[%s15227_s0 + $0x40] sm:$0xff]  ;;  %v86_v16 = vld [vmem:[%s15227_s0 + $0x48] sm:$0xff]  ;;  %v87_v23 = vld [vmem:[%s15227_s0 + $0x50] sm:$0xff] }
   0xa   :  { %v449_v40 = vadd.f32 %v448_v32, %v447_v25  ;;  %v469_v41 = vrot.slane %v468_v33, 2  ;;  %v489_v42 = vadd.f32 %v488_v34, %v487_v27  ;;  %v495_v43 = vrot.slane %v494_v35, 4  ;;  %v88_v24 = vld [vmem:[%s15227_s0 + $0x58] sm:$0xff]  ;;  %v90_v34 = vld [vmem:[%s15227_s0 + $0x68] sm:$0xff] }
   0xb   :  { %v456_v44 = vadd.f32 %v455_v36, %v454_v28  ;;  %v463_v45 = vadd.f32 %v462_v37, %v461_v29  ;;  %v476_v46 = vrot.slane %v475_v38, 2  ;;  %v483_v47 = vrot.slane %v482_v39, 2 }
   0xc   :  { %v450_v48 = vrot.slane %v449_v40, 1  ;;  %v470_v49 = vadd.f32 %v469_v41, %v468_v33  ;;  %v490_v50 = vrot.slane %v489_v42, 2  ;;  %v496_v51 = vadd.f32 %v495_v43, %v494_v35  ;;  %v89_v33 = vld [vmem:[%s15227_s0 + $0x60] sm:$0xff] }
   0xd   :  { %v457_v52 = vrot.slane %v456_v44, 1  ;;  %v464_v53 = vrot.slane %v463_v45, 1  ;;  %v477_v54 = vadd.f32 %v476_v46, %v475_v38  ;;  %v484_v55 = vadd.f32 %v483_v47, %v482_v39  ;;  %v91_v39 = vld [vmem:[%s15227_s0 + $0x70] sm:$0xff] }
   0xe   :  { %v451_v58 = vadd.f32 %v450_v48, %v449_v40  ;;  %v471_v59 = vrot.slane %v470_v49, 1  ;;  %v491_v60 = vadd.f32 %v490_v50, %v489_v42  ;;  %v497_v61 = vrot.slane %v496_v51, 2  ;;  %v92_v40 = vld [vmem:[%s15227_s0 + $0x78] sm:$0xff] }
   0xf   :  { %v458_v0 = vadd.f32 %v457_v52, %v456_v44  ;;  %v465_v1 = vadd.f32 %v464_v53, %v463_v45  ;;  %v478_v2 = vrot.slane %v477_v54, 1  ;;  %v485_v3 = vrot.slane %v484_v55, 1 }
  0x10   :  { %v472_v5 = vadd.f32 %v471_v59, %v470_v49  ;;  %v492_v6 = vrot.slane %v491_v60, 1  ;;  %v498_v7 = vadd.f32 %v497_v61, %v496_v51  ;;  %v333_v11 = vadd.f32 %v78_v57, %v77_v56 }
  0x11   :  { %v479_v12 = vadd.f32 %v478_v2, %v477_v54  ;;  %v486_v13 = vadd.f32 %v485_v3, %v484_v55  ;;  %v1378_v14 = vsel %vm1357_vm0, %v458_v0, %v451_v58  ;;  %v340_v17 = vadd.f32 %v80_v63, %v79_v62  ;;  %v125_v0 = vld [vmem:[%s15227_s0 + $0x180] sm:$0xff] }
  0x12   :  { %v493_v18 = vadd.f32 %v492_v6, %v491_v60  ;;  %v499_v19 = vrot.slane %v498_v7, 1  ;;  %v1379_v20 = vsel %vm1359_vm1, %v465_v1, %v1378_v14  ;;  %v334_v21 = vrot.slane %v333_v11, 4  ;;  %v126_v1 = vld [vmem:[%s15227_s0 + $0x188] sm:$0xff]  ;;  %v128_v14 = vld [vmem:[%s15227_s0 + $0x198] sm:$0xff] }
  0x13   :  { %v1380_v22 = vsel %vm1361_vm2, %v472_v5, %v1379_v20  ;;  %v341_v25 = vrot.slane %v340_v17, 4  ;;  %v347_v26 = vadd.f32 %v82_v8, %v81_v4  ;;  %v354_v27 = vadd.f32 %v84_v10, %v83_v9  ;;  %v127_v10 = vld [vmem:[%s15227_s0 + $0x190] sm:$0xff] }
  0x14   :  { %v500_v28 = vadd.f32 %v499_v19, %v498_v7  ;;  %v1381_v29 = vsel %vm1363_vm3, %v479_v12, %v1380_v22  ;;  %v335_v30 = vadd.f32 %v334_v21, %v333_v11  ;;  %v361_v31 = vadd.f32 %v86_v16, %v85_v15  ;;  %v129_v15 = vld [vmem:[%s15227_s0 + $0x1a0] sm:$0xff]  ;;  %v130_v16 = vld [vmem:[%s15227_s0 + $0x1a8] sm:$0xff] }
  0x15   :  { %v1382_v32 = vsel %vm1365_vm4, %v486_v13, %v1381_v29  ;;  %v342_v35 = vadd.f32 %v341_v25, %v340_v17  ;;  %v348_v36 = vrot.slane %v347_v26, 4  ;;  %v355_v37 = vrot.slane %v354_v27, 4  ;;  %v132_v29 = vld [vmem:[%s15227_s0 + $0x1b8] sm:$0xff] }
  0x16   :  { %v1383_v38 = vsel %vm1367_vm5, %v493_v18, %v1382_v32  ;;  %v336_v41 = vrot.slane %v335_v30, 2  ;;  %v362_v42 = vrot.slane %v361_v31, 4  ;;  %v368_v43 = vadd.f32 %v88_v24, %v87_v23 }
  0x17   :  { %v8710_v44 = vsel %vm1369_vm6, %v500_v28, %v1383_v38  ;;  %v343_v45 = vrot.slane %v342_v35, 2  ;;  %v349_v46 = vadd.f32 %v348_v36, %v347_v26  ;;  %v356_v47 = vadd.f32 %v355_v37, %v354_v27  ;;  %v131_v28 = vld [vmem:[%s15227_s0 + $0x1b0] sm:$0xff]  ;;  %v134_v36 = vld [vmem:[%s15227_s0 + $0x1c8] sm:$0xff] }
  0x18   :  { %1563 = vrot.lane.b32.xlu1 %v8710_v44, %s8532_s13  ;;  %v337_v48 = vadd.f32 %v336_v41, %v335_v30  ;;  %v363_v49 = vadd.f32 %v362_v42, %v361_v31  ;;  %v369_v50 = vrot.slane %v368_v43, 4  ;;  %v375_v51 = vadd.f32 %v90_v34, %v89_v33  ;;  %v136_v41 = vld [vmem:[%s15227_s0 + $0x1d8] sm:$0xff] }
  0x19   :  { %v344_v52 = vadd.f32 %v343_v45, %v342_v35  ;;  %v350_v53 = vrot.slane %v349_v46, 2  ;;  %v357_v54 = vrot.slane %v356_v47, 2  ;;  %v382_v55 = vadd.f32 %v92_v40, %v91_v39  ;;  %v133_v35 = vld [vmem:[%s15227_s0 + $0x1c0] sm:$0xff]  ;;  %v135_v40 = vld [vmem:[%s15227_s0 + $0x1d0] sm:$0xff] }
  0x1a   :  { %v338_v56 = vrot.slane %v337_v48, 1  ;;  %v364_v57 = vrot.slane %v363_v49, 2  ;;  %v370_v58 = vadd.f32 %v369_v50, %v368_v43  ;;  %v376_v59 = vrot.slane %v375_v51, 4  ;;  %v137_v50 = vld [vmem:[%s15227_s0 + $0x1e0] sm:$0xff] }
  0x1b   :  { %v345_v60 = vrot.slane %v344_v52, 1  ;;  %v351_v61 = vadd.f32 %v350_v53, %v349_v46  ;;  %v358_v62 = vadd.f32 %v357_v54, %v356_v47  ;;  %v383_v63 = vrot.slane %v382_v55, 4 }
  0x1c   :  { %v339_v2 = vadd.f32 %v338_v56, %v337_v48  ;;  %v365_v3 = vadd.f32 %v364_v57, %v363_v49  ;;  %v371_v4 = vrot.slane %v370_v58, 2  ;;  %v377_v5 = vadd.f32 %v376_v59, %v375_v51  ;;  %v138_v51 = vld [vmem:[%s15227_s0 + $0x1e8] sm:$0xff]  ;;  %v139_v56 = vld [vmem:[%s15227_s0 + $0x1f0] sm:$0xff]  ;;  %v140_v57 = vld [vmem:[%s15227_s0 + $0x1f8] sm:$0xff] }
  0x1d   :  { %v346_v6 = vadd.f32 %v345_v60, %v344_v52  ;;  %v352_v7 = vrot.slane %v351_v61, 1  ;;  %v359_v8 = vrot.slane %v358_v62, 1  ;;  %v384_v9 = vadd.f32 %v383_v63, %v382_v55 }
  0x1e   :  { %v366_v11 = vrot.slane %v365_v3, 1  ;;  %v372_v12 = vadd.f32 %v371_v4, %v370_v58  ;;  %v378_v13 = vrot.slane %v377_v5, 2  ;;  %v501_v17 = vadd.f32 %v126_v1, %v125_v0 }
  0x1f   :  { %v353_v18 = vadd.f32 %v352_v7, %v351_v61  ;;  %v360_v19 = vadd.f32 %v359_v8, %v358_v62  ;;  %v385_v20 = vrot.slane %v384_v9, 2  ;;  %v1358_v21 = vsel %vm1357_vm0, %v346_v6, %v339_v2 }
  0x20   :  { %v367_v22 = vadd.f32 %v366_v11, %v365_v3  ;;  %v373_v23 = vrot.slane %v372_v12, 1  ;;  %v379_v24 = vadd.f32 %v378_v13, %v377_v5  ;;  %v502_v25 = vrot.slane %v501_v17, 4 }
  0x21   :  { %v386_v26 = vadd.f32 %v385_v20, %v384_v9  ;;  %v1360_v27 = vsel %vm1359_vm1, %v353_v18, %v1358_v21  ;;  %v508_v30 = vadd.f32 %v128_v14, %v127_v10  ;;  %v515_v31 = vadd.f32 %v130_v16, %v129_v15  ;;  %v93_v9 = vld [vmem:[%s15227_s0 + $0x80] sm:$0xff]  ;;  %v94_v10 = vld [vmem:[%s15227_s0 + $0x88] sm:$0xff] }
  0x22   :  { %v374_v32 = vadd.f32 %v373_v23, %v372_v12  ;;  %v380_v33 = vrot.slane %v379_v24, 1  ;;  %v1362_v34 = vsel %vm1361_vm2, %v360_v19, %v1360_v27  ;;  %v503_v37 = vadd.f32 %v502_v25, %v501_v17  ;;  %v96_v23 = vld [vmem:[%s15227_s0 + $0x98] sm:$0xff] }
  0x23   :  { %v387_v38 = vrot.slane %v386_v26, 1  ;;  %v1364_v39 = vsel %vm1363_vm3, %v367_v22, %v1362_v34  ;;  %v509_v42 = vrot.slane %v508_v30, 4  ;;  %v516_v43 = vrot.slane %v515_v31, 4  ;;  %v95_v22 = vld [vmem:[%s15227_s0 + $0x90] sm:$0xff] }
  0x24   :  { %v381_v45 = vadd.f32 %v380_v33, %v379_v24  ;;  %v1366_v46 = vsel %vm1365_vm4, %v374_v32, %v1364_v39  ;;  %v504_v47 = vrot.slane %v503_v37, 2  ;;  %v522_v48 = vadd.f32 %v132_v29, %v131_v28 }
  0x25   :  { %v388_v49 = vadd.f32 %v387_v38, %v386_v26  ;;  %v510_v52 = vadd.f32 %v509_v42, %v508_v30  ;;  %v517_v53 = vadd.f32 %v516_v43, %v515_v31  ;;  %v529_v54 = vadd.f32 %v134_v36, %v133_v35  ;;  %v97_v36 = vld [vmem:[%s15227_s0 + $0xa0] sm:$0xff] }
  0x26   :  { %v1368_v55 = vsel %vm1367_vm5, %v381_v45, %v1366_v46  ;;  %v505_v58 = vadd.f32 %v504_v47, %v503_v37  ;;  %v523_v59 = vrot.slane %v522_v48, 4  ;;  %v536_v60 = vadd.f32 %v136_v41, %v135_v40  ;;  %v98_v37 = vld [vmem:[%s15227_s0 + $0xa8] sm:$0xff]  ;;  %v99_v46 = vld [vmem:[%s15227_s0 + $0xb0] sm:$0xff]  ;;  %v100_v47 = vld [vmem:[%s15227_s0 + $0xb8] sm:$0xff] }
  0x27   :  { %v8769_v61 = vsel %vm1369_vm6, %v388_v49, %v1368_v55  ;;  %v511_v62 = vrot.slane %v510_v52, 2  ;;  %v518_v63 = vrot.slane %v517_v53, 2  ;;  %v530_v0 = vrot.slane %v529_v54, 4 }
  0x28   :  { %1559 = vrot.lane.b32.xlu0 %v8769_v61, %s8532_s13  ;;  %v506_v1 = vrot.slane %v505_v58, 1  ;;  %v524_v2 = vadd.f32 %v523_v59, %v522_v48  ;;  %v537_v3 = vrot.slane %v536_v60, 4  ;;  %v543_v4 = vadd.f32 %v138_v51, %v137_v50  ;;  %v104_v59 = vld [vmem:[%s15227_s0 + $0xd8] sm:$0xff] }
  0x29   :  { %v512_v5 = vadd.f32 %v511_v62, %v510_v52  ;;  %v519_v6 = vadd.f32 %v518_v63, %v517_v53  ;;  %v531_v7 = vadd.f32 %v530_v0, %v529_v54  ;;  %v550_v8 = vadd.f32 %v140_v57, %v139_v56  ;;  %v101_v53 = vld [vmem:[%s15227_s0 + $0xc0] sm:$0xff]  ;;  %v102_v54 = vld [vmem:[%s15227_s0 + $0xc8] sm:$0xff] }
  0x2a   :  { %v507_v11 = vadd.f32 %v506_v1, %v505_v58  ;;  %v525_v12 = vrot.slane %v524_v2, 2  ;;  %v538_v13 = vadd.f32 %v537_v3, %v536_v60  ;;  %v544_v14 = vrot.slane %v543_v4, 4  ;;  %v103_v58 = vld [vmem:[%s15227_s0 + $0xd0] sm:$0xff] }
  0x2b   :  { %v513_v15 = vrot.slane %v512_v5, 1  ;;  %v520_v16 = vrot.slane %v519_v6, 1  ;;  %v532_v17 = vrot.slane %v531_v7, 2  ;;  %v551_v18 = vrot.slane %v550_v8, 4 }
  0x2c   :  { %v526_v19 = vadd.f32 %v525_v12, %v524_v2  ;;  %v539_v20 = vrot.slane %v538_v13, 2  ;;  %v545_v21 = vadd.f32 %v544_v14, %v543_v4  ;;  %v389_v24 = vadd.f32 %v94_v10, %v93_v9  ;;  %v105_v4 = vld [vmem:[%s15227_s0 + $0xe0] sm:$0xff]  ;;  %v107_v10 = vld [vmem:[%s15227_s0 + $0xf0] sm:$0xff] }
  0x2d   :  { %v514_v25 = vadd.f32 %v513_v15, %v512_v5  ;;  %v521_v26 = vadd.f32 %v520_v16, %v519_v6  ;;  %v533_v27 = vadd.f32 %v532_v17, %v531_v7  ;;  %v552_v28 = vadd.f32 %v551_v18, %v550_v8  ;;  %v106_v5 = vld [vmem:[%s15227_s0 + $0xe8] sm:$0xff] }
  0x2e   :  { %v527_v29 = vrot.slane %v526_v19, 1  ;;  %v540_v30 = vadd.f32 %v539_v20, %v538_v13  ;;  %v546_v31 = vrot.slane %v545_v21, 2  ;;  %v390_v32 = vrot.slane %v389_v24, 4 }
  0x2f   :  { %v534_v33 = vrot.slane %v533_v27, 1  ;;  %v553_v34 = vrot.slane %v552_v28, 2  ;;  %v1385_v35 = vsel %vm1357_vm0, %v514_v25, %v507_v11  ;;  %v396_v38 = vadd.f32 %v96_v23, %v95_v22  ;;  %v108_v11 = vld [vmem:[%s15227_s0 + $0xf8] sm:$0xff]  ;;  %v157_v23 = vld [vmem:[%s15227_s0 + $0x280] sm:$0xff] }
  0x30   :  { %v528_v39 = vadd.f32 %v527_v29, %v526_v19  ;;  %v541_v40 = vrot.slane %v540_v30, 1  ;;  %v547_v41 = vadd.f32 %v546_v31, %v545_v21  ;;  %v1386_v42 = vsel %vm1359_vm1, %v521_v26, %v1385_v35 }
  0x31   :  { %v535_v43 = vadd.f32 %v534_v33, %v533_v27  ;;  %v554_v45 = vadd.f32 %v553_v34, %v552_v28  ;;  %v391_v48 = vadd.f32 %v390_v32, %v389_v24  ;;  %v397_v49 = vrot.slane %v396_v38, 4  ;;  %v158_v24 = vld [vmem:[%s15227_s0 + $0x288] sm:$0xff] }
  0x32   :  { %v542_v50 = vadd.f32 %v541_v40, %v540_v30  ;;  %v548_v51 = vrot.slane %v547_v41, 1  ;;  %v1387_v52 = vsel %vm1361_vm2, %v528_v39, %v1386_v42  ;;  %v403_v55 = vadd.f32 %v98_v37, %v97_v36  ;;  %v160_v42 = vld [vmem:[%s15227_s0 + $0x298] sm:$0xff] }
  0x33   :  { %v555_v56 = vrot.slane %v554_v45, 1  ;;  %v1388_v57 = vsel %vm1363_vm3, %v535_v43, %v1387_v52  ;;  %v392_v60 = vrot.slane %v391_v48, 2  ;;  %v398_v62 = vadd.f32 %v397_v49, %v396_v38 }
  0x34   :  { %v549_v63 = vadd.f32 %v548_v51, %v547_v41  ;;  %v1389_v0 = vsel %vm1365_vm4, %v542_v50, %v1388_v57  ;;  %v404_v1 = vrot.slane %v403_v55, 4  ;;  %v410_v2 = vadd.f32 %v100_v47, %v99_v46  ;;  %v159_v41 = vld [vmem:[%s15227_s0 + $0x290] sm:$0xff] }
  0x35   :  { %v556_v3 = vadd.f32 %v555_v56, %v554_v45  ;;  %v393_v6 = vadd.f32 %v392_v60, %v391_v48  ;;  %v399_v7 = vrot.slane %v398_v62, 2  ;;  %v417_v8 = vadd.f32 %v102_v54, %v101_v53  ;;  %v161_v54 = vld [vmem:[%s15227_s0 + $0x2a0] sm:$0xff] }
  0x36   :  { %v1390_v9 = vsel %vm1367_vm5, %v549_v63, %v1389_v0  ;;  %v405_v12 = vadd.f32 %v404_v1, %v403_v55  ;;  %v411_v13 = vrot.slane %v410_v2, 4  ;;  %v424_v14 = vadd.f32 %v104_v59, %v103_v58  ;;  %v162_v55 = vld [vmem:[%s15227_s0 + $0x2a8] sm:$0xff]  ;;  %v163_v1 = vld [vmem:[%s15227_s0 + $0x2b0] sm:$0xff] }
  0x37   :  { %v8828_v15 = vsel %vm1369_vm6, %v556_v3, %v1390_v9  ;;  %v394_v16 = vrot.slane %v393_v6, 1  ;;  %v400_v17 = vadd.f32 %v399_v7, %v398_v62  ;;  %v418_v18 = vrot.slane %v417_v8, 4  ;;  %v166_v9 = vld [vmem:[%s15227_s0 + $0x2c8] sm:$0xff] }
  0x38   :  { %1565 = vrot.lane.b32.xlu1 %v8828_v15, %s8532_s13  ;;  %v406_v19 = vrot.slane %v405_v12, 2  ;;  %v412_v20 = vadd.f32 %v411_v13, %v410_v2  ;;  %v425_v21 = vrot.slane %v424_v14, 4  ;;  %v431_v22 = vadd.f32 %v106_v5, %v105_v4  ;;  %v164_v2 = vld [vmem:[%s15227_s0 + $0x2b8] sm:$0xff]  ;;  %v167_v13 = vld [vmem:[%s15227_s0 + $0x2d0] sm:$0xff] }
  0x39   :  { %v395_v25 = vadd.f32 %v394_v16, %v393_v6  ;;  %v401_v26 = vrot.slane %v400_v17, 1  ;;  %v419_v27 = vadd.f32 %v418_v18, %v417_v8  ;;  %v438_v28 = vadd.f32 %v108_v11, %v107_v10  ;;  %v165_v8 = vld [vmem:[%s15227_s0 + $0x2c0] sm:$0xff] }
  0x3a   :  { %v407_v29 = vadd.f32 %v406_v19, %v405_v12  ;;  %v413_v30 = vrot.slane %v412_v20, 2  ;;  %v426_v31 = vadd.f32 %v425_v21, %v424_v14  ;;  %v432_v32 = vrot.slane %v431_v22, 4  ;;  %v168_v14 = vld [vmem:[%s15227_s0 + $0x2d8] sm:$0xff] }
  0x3b   :  { %v402_v33 = vadd.f32 %v401_v26, %v400_v17  ;;  %v420_v34 = vrot.slane %v419_v27, 2  ;;  %v439_v35 = vrot.slane %v438_v28, 4  ;;  %v613_v36 = vadd.f32 %v158_v24, %v157_v23  ;;  %v169_v23 = vld [vmem:[%s15227_s0 + $0x2e0] sm:$0xff]  ;;  %v170_v24 = vld [vmem:[%s15227_s0 + $0x2e8] sm:$0xff] }
  0x3c   :  { %v408_v37 = vrot.slane %v407_v29, 1  ;;  %v414_v38 = vadd.f32 %v413_v30, %v412_v20  ;;  %v427_v39 = vrot.slane %v426_v31, 2  ;;  %v433_v40 = vadd.f32 %v432_v32, %v431_v22  ;;  %v172_v30 = vld [vmem:[%s15227_s0 + $0x2f8] sm:$0xff] }
  0x3d   :  { %v421_v43 = vadd.f32 %v420_v34, %v419_v27  ;;  %v440_v45 = vadd.f32 %v439_v35, %v438_v28  ;;  %v1371_v46 = vsel %vm1357_vm0, %v402_v33, %v395_v25  ;;  %v614_v47 = vrot.slane %v613_v36, 4  ;;  %v171_v25 = vld [vmem:[%s15227_s0 + $0x2f0] sm:$0xff]  ;;  %v141_v34 = vld [vmem:[%s15227_s0 + $0x200] sm:$0xff]  ;;  %v142_v35 = vld [vmem:[%s15227_s0 + $0x208] sm:$0xff] }
  0x3e   :  { %v409_v48 = vadd.f32 %v408_v37, %v407_v29  ;;  %v415_v49 = vrot.slane %v414_v38, 1  ;;  %v428_v50 = vadd.f32 %v427_v39, %v426_v31  ;;  %v434_v51 = vrot.slane %v433_v40, 2 }
  0x3f   :  { %v422_v52 = vrot.slane %v421_v43, 1  ;;  %v441_v53 = vrot.slane %v440_v45, 2  ;;  %v615_v56 = vadd.f32 %v614_v47, %v613_v36  ;;  %v620_v57 = vadd.f32 %v160_v42, %v159_v41 }
  0x40   :  { %v416_v58 = vadd.f32 %v415_v49, %v414_v38  ;;  %v429_v59 = vrot.slane %v428_v50, 1  ;;  %v435_v60 = vadd.f32 %v434_v51, %v433_v40  ;;  %v1372_v62 = vsel %vm1359_vm1, %v409_v48, %v1371_v46 }
  0x41   :  { %v423_v63 = vadd.f32 %v422_v52, %v421_v43  ;;  %v442_v0 = vadd.f32 %v441_v53, %v440_v45  ;;  %v616_v3 = vrot.slane %v615_v56, 2  ;;  %v621_v4 = vrot.slane %v620_v57, 4 }
  0x42   :  { %v430_v5 = vadd.f32 %v429_v59, %v428_v50  ;;  %v436_v6 = vrot.slane %v435_v60, 1  ;;  %v1373_v7 = vsel %vm1361_vm2, %v416_v58, %v1372_v62  ;;  %v627_v10 = vadd.f32 %v162_v55, %v161_v54  ;;  %v143_v62 = vld [vmem:[%s15227_s0 + $0x210] sm:$0xff] }
  0x43   :  { %v443_v11 = vrot.slane %v442_v0, 1  ;;  %v1374_v12 = vsel %vm1363_vm3, %v423_v63, %v1373_v7  ;;  %v617_v16 = vadd.f32 %v616_v3, %v615_v56  ;;  %v622_v17 = vadd.f32 %v621_v4, %v620_v57  ;;  %v144_v63 = vld [vmem:[%s15227_s0 + $0x218] sm:$0xff] }
  0x44   :  { %v437_v18 = vadd.f32 %v436_v6, %v435_v60  ;;  %v1375_v19 = vsel %vm1365_vm4, %v430_v5, %v1374_v12  ;;  %v628_v20 = vrot.slane %v627_v10, 4  ;;  %v634_v21 = vadd.f32 %v164_v2, %v163_v1 }
  0x45   :  { %v444_v22 = vadd.f32 %v443_v11, %v442_v0  ;;  %v618_v26 = vrot.slane %v617_v16, 1  ;;  %v623_v27 = vrot.slane %v622_v17, 2  ;;  %v641_v28 = vadd.f32 %v166_v9, %v165_v8  ;;  %v146_v11 = vld [vmem:[%s15227_s0 + $0x228] sm:$0xff] }
  0x46   :  { %v1376_v29 = vsel %vm1367_vm5, %v437_v18, %v1375_v19  ;;  %v629_v31 = vadd.f32 %v628_v20, %v627_v10  ;;  %v635_v32 = vrot.slane %v634_v21, 4  ;;  %v648_v33 = vadd.f32 %v168_v14, %v167_v13  ;;  %v145_v10 = vld [vmem:[%s15227_s0 + $0x220] sm:$0xff] }
  0x47   :  { %v8893_v36 = vsel %vm1369_vm6, %v444_v22, %v1376_v29  ;;  %v619_v37 = vadd.f32 %v618_v26, %v617_v16  ;;  %v624_v38 = vadd.f32 %v623_v27, %v622_v17  ;;  %v642_v39 = vrot.slane %v641_v28, 4  ;;  %v148_v22 = vld [vmem:[%s15227_s0 + $0x238] sm:$0xff]  ;;  %v150_v29 = vld [vmem:[%s15227_s0 + $0x248] sm:$0xff] }
  0x48   :  { %1561 = vrot.lane.b32.xlu0 %v8893_v36, %s8532_s13  ;;  %v630_v40 = vrot.slane %v629_v31, 2  ;;  %v636_v41 = vadd.f32 %v635_v32, %v634_v21  ;;  %v649_v42 = vrot.slane %v648_v33, 4  ;;  %v655_v43 = vadd.f32 %v170_v24, %v169_v23  ;;  %v147_v21 = vld [vmem:[%s15227_s0 + $0x230] sm:$0xff] }
  0x49   :  { %v625_v45 = vrot.slane %v624_v38, 1  ;;  %v643_v46 = vadd.f32 %v642_v39, %v641_v28  ;;  %v662_v47 = vadd.f32 %v172_v30, %v171_v25  ;;  %v557_v48 = vadd.f32 %v142_v35, %v141_v34  ;;  %v149_v28 = vld [vmem:[%s15227_s0 + $0x240] sm:$0xff]  ;;  %v152_v34 = vld [vmem:[%s15227_s0 + $0x258] sm:$0xff] }
  0x4a   :  { %v631_v49 = vadd.f32 %v630_v40, %v629_v31  ;;  %v637_v50 = vrot.slane %v636_v41, 2  ;;  %v650_v51 = vadd.f32 %v649_v42, %v648_v33  ;;  %v656_v52 = vrot.slane %v655_v43, 4  ;;  %v151_v33 = vld [vmem:[%s15227_s0 + $0x250] sm:$0xff]  ;;  %v153_v40 = vld [vmem:[%s15227_s0 + $0x260] sm:$0xff] }
  0x4b   :  { %v626_v53 = vadd.f32 %v625_v45, %v624_v38  ;;  %v644_v54 = vrot.slane %v643_v46, 2  ;;  %v663_v55 = vrot.slane %v662_v47, 4  ;;  %v558_v56 = vrot.slane %v557_v48, 4 }
  0x4c   :  { %v632_v57 = vrot.slane %v631_v49, 1  ;;  %v638_v58 = vadd.f32 %v637_v50, %v636_v41  ;;  %v651_v59 = vrot.slane %v650_v51, 2  ;;  %v657_v60 = vadd.f32 %v656_v52, %v655_v43  ;;  %v154_v41 = vld [vmem:[%s15227_s0 + $0x268] sm:$0xff] }
  0x4d   :  { %v645_v0 = vadd.f32 %v644_v54, %v643_v46  ;;  %v664_v1 = vadd.f32 %v663_v55, %v662_v47  ;;  %v1399_v2 = vsel %vm1357_vm0, %v626_v53, %v619_v37  ;;  %v559_v3 = vadd.f32 %v558_v56, %v557_v48  ;;  %v155_v46 = vld [vmem:[%s15227_s0 + $0x270] sm:$0xff]  ;;  %v156_v47 = vld [vmem:[%s15227_s0 + $0x278] sm:$0xff]  ;;  %v189_v55 = vld [vmem:[%s15227_s0 + $0x380] sm:$0xff] }
  0x4e   :  { %v633_v4 = vadd.f32 %v632_v57, %v631_v49  ;;  %v639_v5 = vrot.slane %v638_v58, 1  ;;  %v652_v6 = vadd.f32 %v651_v59, %v650_v51  ;;  %v658_v7 = vrot.slane %v657_v60, 2  ;;  %v190_v56 = vld [vmem:[%s15227_s0 + $0x388] sm:$0xff] }
  0x4f   :  { %v646_v8 = vrot.slane %v645_v0, 1  ;;  %v665_v9 = vrot.slane %v664_v1, 2  ;;  %v560_v12 = vrot.slane %v559_v3, 2  ;;  %v564_v13 = vadd.f32 %v144_v63, %v143_v62 }
  0x50   :  { %v640_v14 = vadd.f32 %v639_v5, %v638_v58  ;;  %v653_v16 = vrot.slane %v652_v6, 1  ;;  %v659_v17 = vadd.f32 %v658_v7, %v657_v60  ;;  %v1400_v18 = vsel %vm1359_vm1, %v633_v4, %v1399_v2 }
  0x51   :  { %v647_v19 = vadd.f32 %v646_v8, %v645_v0  ;;  %v666_v20 = vadd.f32 %v665_v9, %v664_v1  ;;  %v561_v23 = vadd.f32 %v560_v12, %v559_v3  ;;  %v565_v24 = vrot.slane %v564_v13, 4 }
  0x52   :  { %v654_v25 = vadd.f32 %v653_v16, %v652_v6  ;;  %v660_v26 = vrot.slane %v659_v17, 1  ;;  %v1401_v27 = vsel %vm1361_vm2, %v640_v14, %v1400_v18  ;;  %v571_v30 = vadd.f32 %v146_v11, %v145_v10 }
  0x53   :  { %v667_v31 = vrot.slane %v666_v20, 1  ;;  %v1402_v32 = vsel %vm1363_vm3, %v647_v19, %v1401_v27  ;;  %v562_v35 = vrot.slane %v561_v23, 1  ;;  %v566_v37 = vadd.f32 %v565_v24, %v564_v13  ;;  %v191_v19 = vld [vmem:[%s15227_s0 + $0x390] sm:$0xff] }
  0x54   :  { %v661_v38 = vadd.f32 %v660_v26, %v659_v17  ;;  %v1403_v39 = vsel %vm1365_vm4, %v654_v25, %v1402_v32  ;;  %v572_v42 = vrot.slane %v571_v30, 4  ;;  %v578_v43 = vadd.f32 %v148_v22, %v147_v21  ;;  %v194_v32 = vld [vmem:[%s15227_s0 + $0x3a8] sm:$0xff] }
  0x55   :  { %v668_v45 = vadd.f32 %v667_v31, %v666_v20  ;;  %v563_v48 = vadd.f32 %v562_v35, %v561_v23  ;;  %v567_v49 = vrot.slane %v566_v37, 2  ;;  %v585_v50 = vadd.f32 %v150_v29, %v149_v28  ;;  %v192_v20 = vld [vmem:[%s15227_s0 + $0x398] sm:$0xff]  ;;  %v193_v31 = vld [vmem:[%s15227_s0 + $0x3a0] sm:$0xff] }
  0x56   :  { %v1404_v51 = vsel %vm1367_vm5, %v661_v38, %v1403_v39  ;;  %v573_v52 = vadd.f32 %v572_v42, %v571_v30  ;;  %v579_v53 = vrot.slane %v578_v43, 4  ;;  %v592_v54 = vadd.f32 %v152_v34, %v151_v33  ;;  %v195_v42 = vld [vmem:[%s15227_s0 + $0x3b0] sm:$0xff] }
  0x57   :  { %v8952_v57 = vsel %vm1369_vm6, %v668_v45, %v1404_v51  ;;  %v568_v58 = vadd.f32 %v567_v49, %v566_v37  ;;  %v586_v59 = vrot.slane %v585_v50, 4  ;;  %v599_v60 = vadd.f32 %v154_v41, %v153_v40  ;;  %v198_v51 = vld [vmem:[%s15227_s0 + $0x3c8] sm:$0xff] }
  0x58   :  { %1569 = vrot.lane.b32.xlu1 %v8952_v57, %s8532_s13  ;;  %v574_v62 = vrot.slane %v573_v52, 2  ;;  %v580_v63 = vadd.f32 %v579_v53, %v578_v43  ;;  %v593_v0 = vrot.slane %v592_v54, 4  ;;  %v606_v1 = vadd.f32 %v156_v47, %v155_v46  ;;  %v196_v43 = vld [vmem:[%s15227_s0 + $0x3b8] sm:$0xff] }
  0x59   :  { %v569_v2 = vrot.slane %v568_v58, 1  ;;  %v587_v3 = vadd.f32 %v586_v59, %v585_v50  ;;  %v600_v4 = vrot.slane %v599_v60, 4  ;;  %v725_v5 = vadd.f32 %v190_v56, %v189_v55  ;;  %v197_v50 = vld [vmem:[%s15227_s0 + $0x3c0] sm:$0xff]  ;;  %v199_v55 = vld [vmem:[%s15227_s0 + $0x3d0] sm:$0xff]  ;;  %v200_v56 = vld [vmem:[%s15227_s0 + $0x3d8] sm:$0xff] }
  0x5a   :  { %v575_v6 = vadd.f32 %v574_v62, %v573_v52  ;;  %v581_v7 = vrot.slane %v580_v63, 2  ;;  %v594_v8 = vadd.f32 %v593_v0, %v592_v54  ;;  %v607_v9 = vrot.slane %v606_v1, 4  ;;  %v202_v0 = vld [vmem:[%s15227_s0 + $0x3e8] sm:$0xff] }
  0x5b   :  { %v570_v10 = vadd.f32 %v569_v2, %v568_v58  ;;  %v588_v11 = vrot.slane %v587_v3, 2  ;;  %v601_v12 = vadd.f32 %v600_v4, %v599_v60  ;;  %v726_v13 = vrot.slane %v725_v5, 4  ;;  %v201_v58 = vld [vmem:[%s15227_s0 + $0x3e0] sm:$0xff]  ;;  %v204_v2 = vld [vmem:[%s15227_s0 + $0x3f8] sm:$0xff] }
  0x5c   :  { %v576_v14 = vrot.slane %v575_v6, 1  ;;  %v582_v16 = vadd.f32 %v581_v7, %v580_v63  ;;  %v595_v17 = vrot.slane %v594_v8, 2  ;;  %v608_v18 = vadd.f32 %v607_v9, %v606_v1  ;;  %v203_v1 = vld [vmem:[%s15227_s0 + $0x3f0] sm:$0xff]  ;;  %v173_v9 = vld [vmem:[%s15227_s0 + $0x300] sm:$0xff] }
  0x5d   :  { %v589_v21 = vadd.f32 %v588_v11, %v587_v3  ;;  %v602_v22 = vrot.slane %v601_v12, 2  ;;  %v1392_v23 = vsel %vm1357_vm0, %v570_v10, %v563_v48  ;;  %v727_v24 = vadd.f32 %v726_v13, %v725_v5  ;;  %v174_v10 = vld [vmem:[%s15227_s0 + $0x308] sm:$0xff] }
  0x5e   :  { %v577_v25 = vadd.f32 %v576_v14, %v575_v6  ;;  %v583_v26 = vrot.slane %v582_v16, 1  ;;  %v596_v27 = vadd.f32 %v595_v17, %v594_v8  ;;  %v609_v28 = vrot.slane %v608_v18, 2 }
  0x5f   :  { %v590_v29 = vrot.slane %v589_v21, 1  ;;  %v603_v30 = vadd.f32 %v602_v22, %v601_v12  ;;  %v728_v33 = vrot.slane %v727_v24, 2  ;;  %v732_v34 = vadd.f32 %v192_v20, %v191_v19 }
  0x60   :  { %v584_v35 = vadd.f32 %v583_v26, %v582_v16  ;;  %v597_v37 = vrot.slane %v596_v27, 1  ;;  %v610_v38 = vadd.f32 %v609_v28, %v608_v18  ;;  %v1393_v39 = vsel %vm1359_vm1, %v577_v25, %v1392_v23 }
  0x61   :  { %v591_v40 = vadd.f32 %v590_v29, %v589_v21  ;;  %v604_v41 = vrot.slane %v603_v30, 1  ;;  %v729_v45 = vadd.f32 %v728_v33, %v727_v24  ;;  %v733_v46 = vrot.slane %v732_v34, 4 }
  0x62   :  { %v598_v47 = vadd.f32 %v597_v37, %v596_v27  ;;  %v611_v48 = vrot.slane %v610_v38, 1  ;;  %v1394_v49 = vsel %vm1361_vm2, %v584_v35, %v1393_v39  ;;  %v739_v52 = vadd.f32 %v194_v32, %v193_v31 }
  0x63   :  { %v605_v53 = vadd.f32 %v604_v41, %v603_v30  ;;  %v1395_v54 = vsel %vm1363_vm3, %v591_v40, %v1394_v49  ;;  %v730_v59 = vrot.slane %v729_v45, 1  ;;  %v734_v60 = vadd.f32 %v733_v46, %v732_v34  ;;  %v175_v40 = vld [vmem:[%s15227_s0 + $0x310] sm:$0xff]  ;;  %v176_v41 = vld [vmem:[%s15227_s0 + $0x318] sm:$0xff] }
  0x64   :  { %v612_v62 = vadd.f32 %v611_v48, %v610_v38  ;;  %v1396_v63 = vsel %vm1365_vm4, %v598_v47, %v1395_v54  ;;  %v740_v3 = vrot.slane %v739_v52, 4  ;;  %v746_v4 = vadd.f32 %v196_v43, %v195_v42 }
  0x65   :  { %v1397_v5 = vsel %vm1367_vm5, %v605_v53, %v1396_v63  ;;  %v731_v6 = vadd.f32 %v730_v59, %v729_v45  ;;  %v735_v7 = vrot.slane %v734_v60, 2  ;;  %v753_v8 = vadd.f32 %v198_v51, %v197_v50 }
  0x66   :  { %v9011_v11 = vsel %vm1369_vm6, %v612_v62, %v1397_v5  ;;  %v741_v12 = vadd.f32 %v740_v3, %v739_v52  ;;  %v747_v13 = vrot.slane %v746_v4, 4  ;;  %v760_v14 = vadd.f32 %v200_v56, %v199_v55  ;;  %v177_v55 = vld [vmem:[%s15227_s0 + $0x320] sm:$0xff]  ;;  %v178_v56 = vld [vmem:[%s15227_s0 + $0x328] sm:$0xff]  ;;  %v179_v3 = vld [vmem:[%s15227_s0 + $0x330] sm:$0xff] }
  0x67   :  { %1567 = vrot.lane.b32.xlu0 %v9011_v11, %s8532_s13  ;;  %v736_v16 = vadd.f32 %v735_v7, %v734_v60  ;;  %v754_v17 = vrot.slane %v753_v8, 4  ;;  %v767_v18 = vadd.f32 %v202_v0, %v201_v58  ;;  %v774_v19 = vadd.f32 %v204_v2, %v203_v1  ;;  %v181_v5 = vld [vmem:[%s15227_s0 + $0x340] sm:$0xff] }
  0x68   :  { %v742_v20 = vrot.slane %v741_v12, 2  ;;  %v748_v21 = vadd.f32 %v747_v13, %v746_v4  ;;  %v761_v22 = vrot.slane %v760_v14, 4  ;;  %v669_v23 = vadd.f32 %v174_v10, %v173_v9  ;;  %v180_v4 = vld [vmem:[%s15227_s0 + $0x338] sm:$0xff]  ;;  %v182_v9 = vld [vmem:[%s15227_s0 + $0x348] sm:$0xff]  ;;  %v183_v10 = vld [vmem:[%s15227_s0 + $0x350] sm:$0xff] }
  0x69   :  { %v737_v24 = vrot.slane %v736_v16, 1  ;;  %v755_v25 = vadd.f32 %v754_v17, %v753_v8  ;;  %v768_v26 = vrot.slane %v767_v18, 4  ;;  %v775_v27 = vrot.slane %v774_v19, 4 }
  0x6a   :  { %v743_v28 = vadd.f32 %v742_v20, %v741_v12  ;;  %v749_v29 = vrot.slane %v748_v21, 2  ;;  %v762_v30 = vadd.f32 %v761_v22, %v760_v14  ;;  %v670_v31 = vrot.slane %v669_v23, 4  ;;  %v184_v12 = vld [vmem:[%s15227_s0 + $0x358] sm:$0xff]  ;;  %v186_v20 = vld [vmem:[%s15227_s0 + $0x368] sm:$0xff] }
  0x6b   :  { %v738_v32 = vadd.f32 %v737_v24, %v736_v16  ;;  %v756_v33 = vrot.slane %v755_v25, 2  ;;  %v769_v34 = vadd.f32 %v768_v26, %v767_v18  ;;  %v776_v35 = vadd.f32 %v775_v27, %v774_v19  ;;  %v185_v19 = vld [vmem:[%s15227_s0 + $0x360] sm:$0xff]  ;;  %v188_v24 = vld [vmem:[%s15227_s0 + $0x378] sm:$0xff] }
  0x6c   :  { %v744_v37 = vrot.slane %v743_v28, 1  ;;  %v750_v38 = vadd.f32 %v749_v29, %v748_v21  ;;  %v763_v39 = vrot.slane %v762_v30, 2  ;;  %v671_v42 = vadd.f32 %v670_v31, %v669_v23  ;;  %v187_v23 = vld [vmem:[%s15227_s0 + $0x370] sm:$0xff] }
  0x6d   :  { %v757_v43 = vadd.f32 %v756_v33, %v755_v25  ;;  %v770_v45 = vrot.slane %v769_v34, 2  ;;  %v777_v46 = vrot.slane %v776_v35, 2  ;;  %v1413_v47 = vsel %vm1357_vm0, %v738_v32, %v731_v6  ;;  %v221_v32 = vld [vmem:[%s15227_s0 + $0x480] sm:$0xff]  ;;  %v222_v33 = vld [vmem:[%s15227_s0 + $0x488] sm:$0xff] }
  0x6e   :  { %v745_v48 = vadd.f32 %v744_v37, %v743_v28  ;;  %v751_v49 = vrot.slane %v750_v38, 1  ;;  %v764_v50 = vadd.f32 %v763_v39, %v762_v30  ;;  %v672_v51 = vrot.slane %v671_v42, 2 }
  0x6f   :  { %v758_v52 = vrot.slane %v757_v43, 1  ;;  %v771_v53 = vadd.f32 %v770_v45, %v769_v34  ;;  %v778_v54 = vadd.f32 %v777_v46, %v776_v35  ;;  %v676_v58 = vadd.f32 %v176_v41, %v175_v40 }
  0x70   :  { %v752_v59 = vadd.f32 %v751_v49, %v750_v38  ;;  %v765_v60 = vrot.slane %v764_v50, 1  ;;  %v1414_v62 = vsel %vm1359_vm1, %v745_v48, %v1413_v47  ;;  %v673_v63 = vadd.f32 %v672_v51, %v671_v42 }
  0x71   :  { %v759_v0 = vadd.f32 %v758_v52, %v757_v43  ;;  %v772_v1 = vrot.slane %v771_v53, 1  ;;  %v779_v2 = vrot.slane %v778_v54, 1  ;;  %v677_v6 = vrot.slane %v676_v58, 4 }
  0x72   :  { %v766_v7 = vadd.f32 %v765_v60, %v764_v50  ;;  %v1415_v8 = vsel %vm1361_vm2, %v752_v59, %v1414_v62  ;;  %v674_v13 = vrot.slane %v673_v63, 1  ;;  %v683_v14 = vadd.f32 %v178_v56, %v177_v55 }
  0x73   :  { %v773_v16 = vadd.f32 %v772_v1, %v771_v53  ;;  %v780_v17 = vadd.f32 %v779_v2, %v778_v54  ;;  %v1416_v18 = vsel %vm1363_vm3, %v759_v0, %v1415_v8  ;;  %v678_v21 = vadd.f32 %v677_v6, %v676_v58  ;;  %v223_v1 = vld [vmem:[%s15227_s0 + $0x490] sm:$0xff]  ;;  %v224_v2 = vld [vmem:[%s15227_s0 + $0x498] sm:$0xff] }
  0x74   :  { %v1417_v22 = vsel %vm1365_vm4, %v766_v7, %v1416_v18  ;;  %v675_v25 = vadd.f32 %v674_v13, %v673_v63  ;;  %v684_v26 = vrot.slane %v683_v14, 4  ;;  %v690_v27 = vadd.f32 %v180_v4, %v179_v3  ;;  %v226_v18 = vld [vmem:[%s15227_s0 + $0x4a8] sm:$0xff] }
  0x75   :  { %v1418_v28 = vsel %vm1367_vm5, %v773_v16, %v1417_v22  ;;  %v679_v29 = vrot.slane %v678_v21, 2  ;;  %v697_v30 = vadd.f32 %v182_v9, %v181_v5  ;;  %v704_v31 = vadd.f32 %v184_v12, %v183_v10 }
  0x76   :  { %v9070_v34 = vsel %vm1369_vm6, %v780_v17, %v1418_v28  ;;  %v685_v35 = vadd.f32 %v684_v26, %v683_v14  ;;  %v691_v37 = vrot.slane %v690_v27, 4  ;;  %v711_v38 = vadd.f32 %v186_v20, %v185_v19  ;;  %v225_v17 = vld [vmem:[%s15227_s0 + $0x4a0] sm:$0xff] }
  0x77   :  { %1573 = vrot.lane.b32.xlu1 %v9070_v34, %s8532_s13  ;;  %v680_v39 = vadd.f32 %v679_v29, %v678_v21  ;;  %v698_v40 = vrot.slane %v697_v30, 4  ;;  %v705_v41 = vrot.slane %v704_v31, 4  ;;  %v718_v42 = vadd.f32 %v188_v24, %v187_v23  ;;  %v227_v23 = vld [vmem:[%s15227_s0 + $0x4b0] sm:$0xff]  ;;  %v228_v24 = vld [vmem:[%s15227_s0 + $0x4b8] sm:$0xff]  ;;  %v229_v29 = vld [vmem:[%s15227_s0 + $0x4c0] sm:$0xff] }
  0x78   :  { %v686_v43 = vrot.slane %v685_v35, 2  ;;  %v692_v45 = vadd.f32 %v691_v37, %v690_v27  ;;  %v712_v46 = vrot.slane %v711_v38, 4  ;;  %v837_v47 = vadd.f32 %v222_v33, %v221_v32  ;;  %v232_v37 = vld [vmem:[%s15227_s0 + $0x4d8] sm:$0xff] }
  0x79   :  { %v681_v48 = vrot.slane %v680_v39, 1  ;;  %v699_v49 = vadd.f32 %v698_v40, %v697_v30  ;;  %v706_v50 = vadd.f32 %v705_v41, %v704_v31  ;;  %v719_v51 = vrot.slane %v718_v42, 4  ;;  %v230_v30 = vld [vmem:[%s15227_s0 + $0x4c8] sm:$0xff] }
  0x7a   :  { %v687_v52 = vadd.f32 %v686_v43, %v685_v35  ;;  %v693_v53 = vrot.slane %v692_v45, 2  ;;  %v713_v54 = vadd.f32 %v712_v46, %v711_v38  ;;  %v838_v55 = vrot.slane %v837_v47, 4  ;;  %v231_v35 = vld [vmem:[%s15227_s0 + $0x4d0] sm:$0xff]  ;;  %v234_v43 = vld [vmem:[%s15227_s0 + $0x4e8] sm:$0xff] }
  0x7b   :  { %v682_v56 = vadd.f32 %v681_v48, %v680_v39  ;;  %v700_v58 = vrot.slane %v699_v49, 2  ;;  %v707_v59 = vrot.slane %v706_v50, 2  ;;  %v720_v60 = vadd.f32 %v719_v51, %v718_v42  ;;  %v233_v42 = vld [vmem:[%s15227_s0 + $0x4e0] sm:$0xff]  ;;  %v235_v48 = vld [vmem:[%s15227_s0 + $0x4f0] sm:$0xff] }
  0x7c   :  { %v688_v62 = vrot.slane %v687_v52, 1  ;;  %v694_v63 = vadd.f32 %v693_v53, %v692_v45  ;;  %v714_v0 = vrot.slane %v713_v54, 2  ;;  %v839_v3 = vadd.f32 %v838_v55, %v837_v47 }
  0x7d   :  { %v701_v4 = vadd.f32 %v700_v58, %v699_v49  ;;  %v708_v5 = vadd.f32 %v707_v59, %v706_v50  ;;  %v721_v6 = vrot.slane %v720_v60, 2  ;;  %v1406_v7 = vsel %vm1357_vm0, %v682_v56, %v675_v25  ;;  %v236_v49 = vld [vmem:[%s15227_s0 + $0x4f8] sm:$0xff]  ;;  %v205_v58 = vld [vmem:[%s15227_s0 + $0x400] sm:$0xff]  ;;  %v206_v59 = vld [vmem:[%s15227_s0 + $0x408] sm:$0xff] }
  0x7e   :  { %v689_v8 = vadd.f32 %v688_v62, %v687_v52  ;;  %v695_v9 = vrot.slane %v694_v63, 1  ;;  %v715_v10 = vadd.f32 %v714_v0, %v713_v54  ;;  %v840_v12 = vrot.slane %v839_v3, 2 }
  0x7f   :  { %v702_v13 = vrot.slane %v701_v4, 1  ;;  %v709_v14 = vrot.slane %v708_v5, 1  ;;  %v722_v16 = vadd.f32 %v721_v6, %v720_v60  ;;  %v844_v19 = vadd.f32 %v224_v2, %v223_v1 }
  0x80   :  { %v696_v20 = vadd.f32 %v695_v9, %v694_v63  ;;  %v716_v21 = vrot.slane %v715_v10, 1  ;;  %v1407_v22 = vsel %vm1359_vm1, %v689_v8, %v1406_v7  ;;  %v841_v25 = vadd.f32 %v840_v12, %v839_v3 }
  0x81   :  { %v703_v26 = vadd.f32 %v702_v13, %v701_v4  ;;  %v710_v27 = vadd.f32 %v709_v14, %v708_v5  ;;  %v723_v28 = vrot.slane %v722_v16, 1  ;;  %v845_v31 = vrot.slane %v844_v19, 4 }
  0x82   :  { %v717_v32 = vadd.f32 %v716_v21, %v715_v10  ;;  %v1408_v33 = vsel %vm1361_vm2, %v696_v20, %v1407_v22  ;;  %v842_v38 = vrot.slane %v841_v25, 1  ;;  %v851_v39 = vadd.f32 %v226_v18, %v225_v17 }
  0x83   :  { %v724_v40 = vadd.f32 %v723_v28, %v722_v16  ;;  %v1409_v41 = vsel %vm1363_vm3, %v703_v26, %v1408_v33  ;;  %v846_v45 = vadd.f32 %v845_v31, %v844_v19  ;;  %v858_v46 = vadd.f32 %v228_v24, %v227_v23  ;;  %v207_v26 = vld [vmem:[%s15227_s0 + $0x410] sm:$0xff] }
  0x84   :  { %v1410_v47 = vsel %vm1365_vm4, %v710_v27, %v1409_v41  ;;  %v843_v50 = vadd.f32 %v842_v38, %v841_v25  ;;  %v852_v51 = vrot.slane %v851_v39, 4  ;;  %v865_v52 = vadd.f32 %v230_v30, %v229_v29  ;;  %v208_v27 = vld [vmem:[%s15227_s0 + $0x418] sm:$0xff] }
  0x85   :  { %v1411_v53 = vsel %vm1367_vm5, %v717_v32, %v1410_v47  ;;  %v847_v54 = vrot.slane %v846_v45, 2  ;;  %v859_v55 = vrot.slane %v858_v46, 4  ;;  %v872_v56 = vadd.f32 %v232_v37, %v231_v35 }
  0x86   :  { %v9129_v60 = vsel %vm1369_vm6, %v724_v40, %v1411_v53  ;;  %v853_v62 = vadd.f32 %v852_v51, %v851_v39  ;;  %v866_v63 = vrot.slane %v865_v52, 4  ;;  %v879_v0 = vadd.f32 %v234_v43, %v233_v42  ;;  %v209_v42 = vld [vmem:[%s15227_s0 + $0x420] sm:$0xff]  ;;  %v210_v43 = vld [vmem:[%s15227_s0 + $0x428] sm:$0xff] }
  0x87   :  { %1571 = vrot.lane.b32.xlu0 %v9129_v60, %s8532_s13  ;;  %v848_v1 = vadd.f32 %v847_v54, %v846_v45  ;;  %v860_v2 = vadd.f32 %v859_v55, %v858_v46  ;;  %v873_v3 = vrot.slane %v872_v56, 4  ;;  %v886_v4 = vadd.f32 %v236_v49, %v235_v48  ;;  %v211_v49 = vld [vmem:[%s15227_s0 + $0x430] sm:$0xff]  ;;  %v213_v55 = vld [vmem:[%s15227_s0 + $0x440] sm:$0xff] }
  0x88   :  { %v854_v5 = vrot.slane %v853_v62, 2  ;;  %v867_v6 = vadd.f32 %v866_v63, %v865_v52  ;;  %v880_v7 = vrot.slane %v879_v0, 4  ;;  %v781_v8 = vadd.f32 %v206_v59, %v205_v58  ;;  %v215_v63 = vld [vmem:[%s15227_s0 + $0x450] sm:$0xff] }
  0x89   :  { %v849_v9 = vrot.slane %v848_v1, 1  ;;  %v861_v10 = vrot.slane %v860_v2, 2  ;;  %v874_v12 = vadd.f32 %v873_v3, %v872_v56  ;;  %v887_v13 = vrot.slane %v886_v4, 4  ;;  %v214_v56 = vld [vmem:[%s15227_s0 + $0x448] sm:$0xff] }
  0x8a   :  { %v855_v14 = vadd.f32 %v854_v5, %v853_v62  ;;  %v868_v16 = vrot.slane %v867_v6, 2  ;;  %v881_v17 = vadd.f32 %v880_v7, %v879_v0  ;;  %v782_v18 = vrot.slane %v781_v8, 4  ;;  %v216_v0 = vld [vmem:[%s15227_s0 + $0x458] sm:$0xff]  ;;  %v219_v7 = vld [vmem:[%s15227_s0 + $0x470] sm:$0xff] }
  0x8b   :  { %v850_v19 = vadd.f32 %v849_v9, %v848_v1  ;;  %v862_v20 = vadd.f32 %v861_v10, %v860_v2  ;;  %v875_v21 = vrot.slane %v874_v12, 2  ;;  %v888_v22 = vadd.f32 %v887_v13, %v886_v4  ;;  %v217_v1 = vld [vmem:[%s15227_s0 + $0x460] sm:$0xff] }
  0x8c   :  { %v856_v23 = vrot.slane %v855_v14, 1  ;;  %v869_v24 = vadd.f32 %v868_v16, %v867_v6  ;;  %v882_v25 = vrot.slane %v881_v17, 2  ;;  %v783_v28 = vadd.f32 %v782_v18, %v781_v8  ;;  %v218_v6 = vld [vmem:[%s15227_s0 + $0x468] sm:$0xff]  ;;  %v220_v8 = vld [vmem:[%s15227_s0 + $0x478] sm:$0xff] }
  0x8d   :  { %v863_v29 = vrot.slane %v862_v20, 1  ;;  %v876_v30 = vadd.f32 %v875_v21, %v874_v12  ;;  %v889_v31 = vrot.slane %v888_v22, 2  ;;  %v1427_v32 = vsel %vm1357_vm0, %v850_v19, %v843_v50  ;;  %v212_v50 = vld [vmem:[%s15227_s0 + $0x438] sm:$0xff]  ;;  %v254_v18 = vld [vmem:[%s15227_s0 + $0x588] sm:$0xff] }
  0x8e   :  { %v857_v33 = vadd.f32 %v856_v23, %v855_v14  ;;  %v870_v35 = vrot.slane %v869_v24, 1  ;;  %v883_v37 = vadd.f32 %v882_v25, %v881_v17  ;;  %v784_v38 = vrot.slane %v783_v28, 2  ;;  %v253_v17 = vld [vmem:[%s15227_s0 + $0x580] sm:$0xff] }
  0x8f   :  { %v864_v39 = vadd.f32 %v863_v29, %v862_v20  ;;  %v877_v40 = vrot.slane %v876_v30, 1  ;;  %v890_v41 = vadd.f32 %v889_v31, %v888_v22  ;;  %v788_v45 = vadd.f32 %v208_v27, %v207_v26 }
  0x90   :  { %v871_v46 = vadd.f32 %v870_v35, %v869_v24  ;;  %v884_v47 = vrot.slane %v883_v37, 1  ;;  %v1428_v48 = vsel %vm1359_vm1, %v857_v33, %v1427_v32  ;;  %v785_v51 = vadd.f32 %v784_v38, %v783_v28 }
  0x91   :  { %v878_v52 = vadd.f32 %v877_v40, %v876_v30  ;;  %v891_v53 = vrot.slane %v890_v41, 1  ;;  %v1429_v54 = vsel %vm1361_vm2, %v864_v39, %v1428_v48  ;;  %v789_v58 = vrot.slane %v788_v45, 4 }
  0x92   :  { %v885_v59 = vadd.f32 %v884_v47, %v883_v37  ;;  %v1430_v62 = vsel %vm1363_vm3, %v871_v46, %v1429_v54  ;;  %v786_v2 = vrot.slane %v785_v51, 1  ;;  %v795_v3 = vadd.f32 %v210_v43, %v209_v42  ;;  %v255_v54 = vld [vmem:[%s15227_s0 + $0x590] sm:$0xff] }
  0x93   :  { %v892_v4 = vadd.f32 %v891_v53, %v890_v41  ;;  %v1431_v5 = vsel %vm1365_vm4, %v878_v52, %v1430_v62  ;;  %v790_v9 = vadd.f32 %v789_v58, %v788_v45  ;;  %v802_v10 = vadd.f32 %v212_v50, %v211_v49 }
  0x94   :  { %v1432_v12 = vsel %vm1367_vm5, %v885_v59, %v1431_v5  ;;  %v787_v13 = vadd.f32 %v786_v2, %v785_v51  ;;  %v796_v14 = vrot.slane %v795_v3, 4  ;;  %v809_v16 = vadd.f32 %v214_v56, %v213_v55  ;;  %v256_v55 = vld [vmem:[%s15227_s0 + $0x598] sm:$0xff]  ;;  %v257_v5 = vld [vmem:[%s15227_s0 + $0x5a0] sm:$0xff] }
  0x95   :  { %v9188_v19 = vsel %vm1369_vm6, %v892_v4, %v1432_v12  ;;  %v791_v20 = vrot.slane %v790_v9, 2  ;;  %v803_v21 = vrot.slane %v802_v10, 4  ;;  %v816_v22 = vadd.f32 %v216_v0, %v215_v63 }
  0x96   :  { %1577 = vrot.lane.b32.xlu1 %v9188_v19, %s8532_s13  ;;  %v797_v23 = vadd.f32 %v796_v14, %v795_v3  ;;  %v810_v24 = vrot.slane %v809_v16, 4  ;;  %v823_v25 = vadd.f32 %v218_v6, %v217_v1  ;;  %v830_v26 = vadd.f32 %v220_v8, %v219_v7  ;;  %v258_v6 = vld [vmem:[%s15227_s0 + $0x5a8] sm:$0xff]  ;;  %v259_v14 = vld [vmem:[%s15227_s0 + $0x5b0] sm:$0xff] }
  0x97   :  { %v792_v27 = vadd.f32 %v791_v20, %v790_v9  ;;  %v804_v28 = vadd.f32 %v803_v21, %v802_v10  ;;  %v817_v29 = vrot.slane %v816_v22, 4  ;;  %v949_v30 = vadd.f32 %v254_v18, %v253_v17  ;;  %v261_v17 = vld [vmem:[%s15227_s0 + $0x5c0] sm:$0xff]  ;;  %v262_v21 = vld [vmem:[%s15227_s0 + $0x5c8] sm:$0xff] }
  0x98   :  { %v798_v31 = vrot.slane %v797_v23, 2  ;;  %v811_v32 = vadd.f32 %v810_v24, %v809_v16  ;;  %v824_v33 = vrot.slane %v823_v25, 4  ;;  %v831_v35 = vrot.slane %v830_v26, 4  ;;  %v260_v16 = vld [vmem:[%s15227_s0 + $0x5b8] sm:$0xff] }
  0x99   :  { %v793_v37 = vrot.slane %v792_v27, 1  ;;  %v805_v38 = vrot.slane %v804_v28, 2  ;;  %v818_v39 = vadd.f32 %v817_v29, %v816_v22  ;;  %v950_v40 = vrot.slane %v949_v30, 4  ;;  %v263_v22 = vld [vmem:[%s15227_s0 + $0x5d0] sm:$0xff]  ;;  %v265_v29 = vld [vmem:[%s15227_s0 + $0x5e0] sm:$0xff] }
  0x9a   :  { %v799_v41 = vadd.f32 %v798_v31, %v797_v23  ;;  %v812_v42 = vrot.slane %v811_v32, 2  ;;  %v825_v43 = vadd.f32 %v824_v33, %v823_v25  ;;  %v832_v45 = vadd.f32 %v831_v35, %v830_v26  ;;  %v264_v23 = vld [vmem:[%s15227_s0 + $0x5d8] sm:$0xff]  ;;  %v267_v33 = vld [vmem:[%s15227_s0 + $0x5f0] sm:$0xff] }
  0x9b   :  { %v794_v46 = vadd.f32 %v793_v37, %v792_v27  ;;  %v806_v47 = vadd.f32 %v805_v38, %v804_v28  ;;  %v819_v48 = vrot.slane %v818_v39, 2  ;;  %v951_v49 = vadd.f32 %v950_v40, %v949_v30  ;;  %v266_v30 = vld [vmem:[%s15227_s0 + $0x5e8] sm:$0xff]  ;;  %v268_v35 = vld [vmem:[%s15227_s0 + $0x5f8] sm:$0xff] }
  0x9c   :  { %v800_v50 = vrot.slane %v799_v41, 1  ;;  %v813_v51 = vadd.f32 %v812_v42, %v811_v32  ;;  %v826_v52 = vrot.slane %v825_v43, 2  ;;  %v833_v53 = vrot.slane %v832_v45, 2 }
  0x9d   :  { %v807_v56 = vrot.slane %v806_v47, 1  ;;  %v820_v58 = vadd.f32 %v819_v48, %v818_v39  ;;  %v1420_v59 = vsel %vm1357_vm0, %v794_v46, %v787_v13  ;;  %v952_v62 = vrot.slane %v951_v49, 2  ;;  %v238_v46 = vld [vmem:[%s15227_s0 + $0x508] sm:$0xff] }
  0x9e   :  { %v801_v63 = vadd.f32 %v800_v50, %v799_v41  ;;  %v814_v0 = vrot.slane %v813_v51, 1  ;;  %v827_v1 = vadd.f32 %v826_v52, %v825_v43  ;;  %v834_v2 = vadd.f32 %v833_v53, %v832_v45  ;;  %v237_v45 = vld [vmem:[%s15227_s0 + $0x500] sm:$0xff] }
  0x9f   :  { %v808_v3 = vadd.f32 %v807_v56, %v806_v47  ;;  %v821_v4 = vrot.slane %v820_v58, 1  ;;  %v953_v7 = vadd.f32 %v952_v62, %v951_v49  ;;  %v956_v8 = vadd.f32 %v256_v55, %v255_v54 }
  0xa0   :  { %v815_v9 = vadd.f32 %v814_v0, %v813_v51  ;;  %v828_v10 = vrot.slane %v827_v1, 1  ;;  %v835_v12 = vrot.slane %v834_v2, 1  ;;  %v1421_v13 = vsel %vm1359_vm1, %v801_v63, %v1420_v59 }
  0xa1   :  { %v822_v18 = vadd.f32 %v821_v4, %v820_v58  ;;  %v1422_v20 = vsel %vm1361_vm2, %v808_v3, %v1421_v13  ;;  %v954_v24 = vrot.slane %v953_v7, 1  ;;  %v957_v25 = vrot.slane %v956_v8, 4 }
  0xa2   :  { %v829_v26 = vadd.f32 %v828_v10, %v827_v1  ;;  %v836_v27 = vadd.f32 %v835_v12, %v834_v2  ;;  %v1423_v28 = vsel %vm1363_vm3, %v815_v9, %v1422_v20  ;;  %v963_v31 = vadd.f32 %v258_v6, %v257_v5 }
  0xa3   :  { %v1424_v32 = vsel %vm1365_vm4, %v822_v18, %v1423_v28  ;;  %v955_v37 = vadd.f32 %v954_v24, %v953_v7  ;;  %v958_v38 = vadd.f32 %v957_v25, %v956_v8  ;;  %v970_v39 = vadd.f32 %v260_v16, %v259_v14 }
  0xa4   :  { %v1425_v40 = vsel %vm1367_vm5, %v829_v26, %v1424_v32  ;;  %v964_v41 = vrot.slane %v963_v31, 4  ;;  %v977_v42 = vadd.f32 %v262_v21, %v261_v17  ;;  %v984_v43 = vadd.f32 %v264_v23, %v263_v22  ;;  %v239_v21 = vld [vmem:[%s15227_s0 + $0x510] sm:$0xff]  ;;  %v240_v22 = vld [vmem:[%s15227_s0 + $0x518] sm:$0xff] }
  0xa5   :  { %v9247_v47 = vsel %vm1369_vm6, %v836_v27, %v1425_v40  ;;  %v959_v48 = vrot.slane %v958_v38, 2  ;;  %v971_v49 = vrot.slane %v970_v39, 4  ;;  %v991_v50 = vadd.f32 %v266_v30, %v265_v29 }
  0xa6   :  { %1575 = vrot.lane.b32.xlu0 %v9247_v47, %s8532_s13  ;;  %v965_v51 = vadd.f32 %v964_v41, %v963_v31  ;;  %v978_v52 = vrot.slane %v977_v42, 4  ;;  %v985_v53 = vrot.slane %v984_v43, 4  ;;  %v998_v54 = vadd.f32 %v268_v35, %v267_v33  ;;  %v241_v31 = vld [vmem:[%s15227_s0 + $0x520] sm:$0xff]  ;;  %v242_v35 = vld [vmem:[%s15227_s0 + $0x528] sm:$0xff] }
  0xa7   :  { %v960_v55 = vadd.f32 %v959_v48, %v958_v38  ;;  %v972_v56 = vadd.f32 %v971_v49, %v970_v39  ;;  %v992_v58 = vrot.slane %v991_v50, 4  ;;  %v893_v59 = vadd.f32 %v238_v46, %v237_v45  ;;  %v243_v38 = vld [vmem:[%s15227_s0 + $0x530] sm:$0xff]  ;;  %v245_v46 = vld [vmem:[%s15227_s0 + $0x540] sm:$0xff]  ;;  %v246_v48 = vld [vmem:[%s15227_s0 + $0x548] sm:$0xff] }
  0xa8   :  { %v966_v62 = vrot.slane %v965_v51, 2  ;;  %v979_v63 = vadd.f32 %v978_v52, %v977_v42  ;;  %v986_v0 = vadd.f32 %v985_v53, %v984_v43  ;;  %v999_v1 = vrot.slane %v998_v54, 4  ;;  %v248_v52 = vld [vmem:[%s15227_s0 + $0x558] sm:$0xff] }
  0xa9   :  { %v961_v2 = vrot.slane %v960_v55, 1  ;;  %v973_v3 = vrot.slane %v972_v56, 2  ;;  %v993_v4 = vadd.f32 %v992_v58, %v991_v50  ;;  %v894_v5 = vrot.slane %v893_v59, 4  ;;  %v249_v58 = vld [vmem:[%s15227_s0 + $0x560] sm:$0xff] }
  0xaa   :  { %v967_v6 = vadd.f32 %v966_v62, %v965_v51  ;;  %v980_v7 = vrot.slane %v979_v63, 2  ;;  %v987_v8 = vrot.slane %v986_v0, 2  ;;  %v1000_v9 = vadd.f32 %v999_v1, %v998_v54  ;;  %v247_v51 = vld [vmem:[%s15227_s0 + $0x550] sm:$0xff] }
  0xab   :  { %v962_v10 = vadd.f32 %v961_v2, %v960_v55  ;;  %v974_v12 = vadd.f32 %v973_v3, %v972_v56  ;;  %v994_v13 = vrot.slane %v993_v4, 2  ;;  %v895_v14 = vadd.f32 %v894_v5, %v893_v59  ;;  %v250_v59 = vld [vmem:[%s15227_s0 + $0x568] sm:$0xff]  ;;  %v251_v1 = vld [vmem:[%s15227_s0 + $0x570] sm:$0xff]  ;;  %v252_v2 = vld [vmem:[%s15227_s0 + $0x578] sm:$0xff] }
  0xac   :  { %v968_v16 = vrot.slane %v967_v6, 1  ;;  %v981_v17 = vadd.f32 %v980_v7, %v979_v63  ;;  %v988_v18 = vadd.f32 %v987_v8, %v986_v0  ;;  %v1001_v20 = vrot.slane %v1000_v9, 2 }
  0xad   :  { %v975_v23 = vrot.slane %v974_v12, 1  ;;  %v995_v24 = vadd.f32 %v994_v13, %v993_v4  ;;  %v1441_v25 = vsel %vm1357_vm0, %v962_v10, %v955_v37  ;;  %v896_v26 = vrot.slane %v895_v14, 2  ;;  %v244_v37 = vld [vmem:[%s15227_s0 + $0x538] sm:$0xff]  ;;  %v285_v10 = vld [vmem:[%s15227_s0 + $0x680] sm:$0xff] }
  0xae   :  { %v969_v27 = vadd.f32 %v968_v16, %v967_v6  ;;  %v982_v28 = vrot.slane %v981_v17, 1  ;;  %v989_v29 = vrot.slane %v988_v18, 1  ;;  %v1002_v30 = vadd.f32 %v1001_v20, %v1000_v9 }
  0xaf   :  { %v976_v32 = vadd.f32 %v975_v23, %v974_v12  ;;  %v996_v33 = vrot.slane %v995_v24, 1  ;;  %v897_v39 = vadd.f32 %v896_v26, %v895_v14  ;;  %v900_v40 = vadd.f32 %v240_v22, %v239_v21  ;;  %v286_v12 = vld [vmem:[%s15227_s0 + $0x688] sm:$0xff] }
  0xb0   :  { %v983_v41 = vadd.f32 %v982_v28, %v981_v17  ;;  %v990_v42 = vadd.f32 %v989_v29, %v988_v18  ;;  %v1003_v43 = vrot.slane %v1002_v30, 1  ;;  %v1442_v45 = vsel %vm1359_vm1, %v969_v27, %v1441_v25 }
  0xb1   :  { %v997_v49 = vadd.f32 %v996_v33, %v995_v24  ;;  %v1443_v50 = vsel %vm1361_vm2, %v976_v32, %v1442_v45  ;;  %v898_v53 = vrot.slane %v897_v39, 1  ;;  %v901_v54 = vrot.slane %v900_v40, 4 }
  0xb2   :  { %v1004_v55 = vadd.f32 %v1003_v43, %v1002_v30  ;;  %v1444_v56 = vsel %vm1363_vm3, %v983_v41, %v1443_v50  ;;  %v907_v62 = vadd.f32 %v242_v35, %v241_v31  ;;  %v914_v63 = vadd.f32 %v244_v37, %v243_v38 }
  0xb3   :  { %v1445_v0 = vsel %vm1365_vm4, %v990_v42, %v1444_v56  ;;  %v899_v3 = vadd.f32 %v898_v53, %v897_v39  ;;  %v902_v4 = vadd.f32 %v901_v54, %v900_v40  ;;  %v921_v5 = vadd.f32 %v246_v48, %v245_v46  ;;  %v289_v56 = vld [vmem:[%s15227_s0 + $0x6a0] sm:$0xff] }
  0xb4   :  { %v1446_v6 = vsel %vm1367_vm5, %v997_v49, %v1445_v0  ;;  %v908_v7 = vrot.slane %v907_v62, 4  ;;  %v915_v8 = vrot.slane %v914_v63, 4  ;;  %v928_v9 = vadd.f32 %v248_v52, %v247_v51  ;;  %v287_v51 = vld [vmem:[%s15227_s0 + $0x690] sm:$0xff]  ;;  %v288_v52 = vld [vmem:[%s15227_s0 + $0x698] sm:$0xff] }
  0xb5   :  { %v9306_v13 = vsel %vm1369_vm6, %v1004_v55, %v1446_v6  ;;  %v903_v14 = vrot.slane %v902_v4, 2  ;;  %v922_v16 = vrot.slane %v921_v5, 4  ;;  %v935_v17 = vadd.f32 %v250_v59, %v249_v58  ;;  %v290_v58 = vld [vmem:[%s15227_s0 + $0x6a8] sm:$0xff] }
  0xb6   :  { %1581 = vrot.lane.b32.xlu1 %v9306_v13, %s8532_s13  ;;  %v909_v18 = vadd.f32 %v908_v7, %v907_v62  ;;  %v916_v20 = vadd.f32 %v915_v8, %v914_v63  ;;  %v929_v21 = vrot.slane %v928_v9, 4  ;;  %v942_v22 = vadd.f32 %v252_v2, %v251_v1 }
  0xb7   :  { %v904_v23 = vadd.f32 %v903_v14, %v902_v4  ;;  %v923_v24 = vadd.f32 %v922_v16, %v921_v5  ;;  %v936_v25 = vrot.slane %v935_v17, 4  ;;  %v1061_v26 = vadd.f32 %v286_v12, %v285_v10  ;;  %v291_v5 = vld [vmem:[%s15227_s0 + $0x6b0] sm:$0xff]  ;;  %v293_v12 = vld [vmem:[%s15227_s0 + $0x6c0] sm:$0xff]  ;;  %v294_v14 = vld [vmem:[%s15227_s0 + $0x6c8] sm:$0xff] }
  0xb8   :  { %v910_v27 = vrot.slane %v909_v18, 2  ;;  %v917_v28 = vrot.slane %v916_v20, 2  ;;  %v930_v29 = vadd.f32 %v929_v21, %v928_v9  ;;  %v943_v30 = vrot.slane %v942_v22, 4  ;;  %v296_v21 = vld [vmem:[%s15227_s0 + $0x6d8] sm:$0xff] }
  0xb9   :  { %v905_v31 = vrot.slane %v904_v23, 1  ;;  %v924_v32 = vrot.slane %v923_v24, 2  ;;  %v937_v33 = vadd.f32 %v936_v25, %v935_v17  ;;  %v1062_v35 = vrot.slane %v1061_v26, 4 }
  0xba   :  { %v911_v38 = vadd.f32 %v910_v27, %v909_v18  ;;  %v918_v37 = vadd.f32 %v917_v28, %v916_v20  ;;  %v931_v39 = vrot.slane %v930_v29, 2  ;;  %v944_v40 = vadd.f32 %v943_v30, %v942_v22  ;;  %v295_v20 = vld [vmem:[%s15227_s0 + $0x6d0] sm:$0xff]  ;;  %v298_v27 = vld [vmem:[%s15227_s0 + $0x6e8] sm:$0xff] }
  0xbb   :  { %v906_v41 = vadd.f32 %v905_v31, %v904_v23  ;;  %v925_v42 = vadd.f32 %v924_v32, %v923_v24  ;;  %v938_v43 = vrot.slane %v937_v33, 2  ;;  %v1063_v45 = vadd.f32 %v1062_v35, %v1061_v26  ;;  %v297_v26 = vld [vmem:[%s15227_s0 + $0x6e0] sm:$0xff]  ;;  %v299_v31 = vld [vmem:[%s15227_s0 + $0x6f0] sm:$0xff]  ;;  %v300_v32 = vld [vmem:[%s15227_s0 + $0x6f8] sm:$0xff] }
  0xbc   :  { %v912_v46 = vrot.slane %v911_v38, 1  ;;  %v919_v48 = vrot.slane %v918_v37, 1  ;;  %v932_v49 = vadd.f32 %v931_v39, %v930_v29  ;;  %v945_v50 = vrot.slane %v944_v40, 2 }
  0xbd   :  { %v926_v53 = vrot.slane %v925_v42, 1  ;;  %v939_v54 = vadd.f32 %v938_v43, %v937_v33  ;;  %v1434_v55 = vsel %vm1357_vm0, %v906_v41, %v899_v3  ;;  %v1064_v59 = vrot.slane %v1063_v45, 2  ;;  %v292_v3 = vld [vmem:[%s15227_s0 + $0x6b8] sm:$0xff]  ;;  %v270_v43 = vld [vmem:[%s15227_s0 + $0x608] sm:$0xff] }
  0xbe   :  { %v913_v62 = vadd.f32 %v912_v46, %v911_v38  ;;  %v920_v63 = vadd.f32 %v919_v48, %v918_v37  ;;  %v933_v0 = vrot.slane %v932_v49, 1  ;;  %v946_v1 = vadd.f32 %v945_v50, %v944_v40 }
  0xbf   :  { %v927_v2 = vadd.f32 %v926_v53, %v925_v42  ;;  %v940_v4 = vrot.slane %v939_v54, 1  ;;  %v1065_v6 = vadd.f32 %v1064_v59, %v1063_v45  ;;  %v1068_v7 = vadd.f32 %v288_v52, %v287_v51  ;;  %v269_v42 = vld [vmem:[%s15227_s0 + $0x600] sm:$0xff] }
  0xc0   :  { %v934_v8 = vadd.f32 %v933_v0, %v932_v49  ;;  %v947_v9 = vrot.slane %v946_v1, 1  ;;  %v1435_v10 = vsel %vm1359_vm1, %v913_v62, %v1434_v55  ;;  %v1075_v16 = vadd.f32 %v290_v58, %v289_v56  ;;  %v8416_v59 = vld [vmem:[%s15228_s3] sm:$0xff]  }
  0xc1   :  { %v941_v17 = vadd.f32 %v940_v4, %v939_v54  ;;  %v1436_v18 = vsel %vm1361_vm2, %v920_v63, %v1435_v10  ;;  %v1066_v22 = vrot.slane %v1065_v6, 1  ;;  %v1069_v23 = vrot.slane %v1068_v7, 4  ;;  %7730 = vmatprep.subr.bf16.mxu1 %v8416_v59  ;;  %v8417_v10 = vld [vmem:[%s15228_s3 + $0x8] sm:$0xff]  }
  0xc2   :  { %v948_v24 = vadd.f32 %v947_v9, %v946_v1  ;;  %v1437_v25 = vsel %vm1363_vm3, %v927_v2, %v1436_v18  ;;  %v1076_v28 = vrot.slane %v1075_v16, 4  ;;  %v1082_v29 = vadd.f32 %v292_v3, %v291_v5  ;;  %7731 = vmatpush3.bf16.msra.mxu1 %v8416_v59  ;;  %v8418_v18 = vld [vmem:[%s15228_s3 + $0x10] sm:$0xff]   ;;  %v281_v59 = vld [vmem:[%s15227_s0 + $0x660] sm:$0xff] }
  0xc3   :  { %v1438_v30 = vsel %vm1365_vm4, %v934_v8, %v1437_v25  ;;  %v1067_v33 = vadd.f32 %v1066_v22, %v1065_v6  ;;  %v1070_v35 = vadd.f32 %v1069_v23, %v1068_v7  ;;  %v1089_v38 = vadd.f32 %v294_v14, %v293_v12  ;;  %v272_v25 = vld [vmem:[%s15227_s0 + $0x618] sm:$0xff]  ;;  %7732 = vmatprep.subr.bf16.mxu1 %v8417_v10 }
  0xc4   :  { %v1439_v37 = vsel %vm1367_vm5, %v941_v17, %v1438_v30  ;;  %v1077_v39 = vadd.f32 %v1076_v28, %v1075_v16  ;;  %v1083_v40 = vrot.slane %v1082_v29, 4  ;;  %v1096_v41 = vadd.f32 %v296_v21, %v295_v20  ;;  %v274_v30 = vld [vmem:[%s15227_s0 + $0x628] sm:$0xff] }
  0xc5   :  { %v9365_v45 = vsel %vm1369_vm6, %v948_v24, %v1439_v37  ;;  %v1071_v46 = vrot.slane %v1070_v35, 2  ;;  %v1090_v48 = vrot.slane %v1089_v38, 4  ;;  %v1103_v49 = vadd.f32 %v298_v27, %v297_v26  ;;  %v271_v24 = vld [vmem:[%s15227_s0 + $0x610] sm:$0xff] }
  0xc6   :  { %1579 = vrot.lane.b32.xlu0 %v9365_v45, %s8532_s13  ;;  %v1078_v50 = vrot.slane %v1077_v39, 2  ;;  %v1084_v51 = vadd.f32 %v1083_v40, %v1082_v29  ;;  %v1097_v52 = vrot.slane %v1096_v41, 4  ;;  %v1110_v53 = vadd.f32 %v300_v32, %v299_v31  ;;  %v273_v29 = vld [vmem:[%s15227_s0 + $0x620] sm:$0xff]  ;;  %7733 = vmatpush3.bf16.msra.mxu1 %v8417_v10 }
  0xc7   :  { %v1072_v54 = vadd.f32 %v1071_v46, %v1070_v35  ;;  %v1091_v55 = vadd.f32 %v1090_v48, %v1089_v38  ;;  %v1104_v56 = vrot.slane %v1103_v49, 4  ;;  %v1005_v58 = vadd.f32 %v270_v43, %v269_v42  ;;  %7734 = vmatprep.subr.bf16.mxu1 %v8418_v18  ;;  %v8419_v46 = vld [vmem:[%s15228_s3 + $0x18] sm:$0xff]  }
  0xc8   :  { %v1079_v62 = vadd.f32 %v1078_v50, %v1077_v39  ;;  %v1085_v63 = vrot.slane %v1084_v51, 2  ;;  %v1098_v0 = vadd.f32 %v1097_v52, %v1096_v41  ;;  %v1111_v1 = vrot.slane %v1110_v53, 4  ;;  %v276_v41 = vld [vmem:[%s15227_s0 + $0x638] sm:$0xff]  ;;  %v278_v52 = vld [vmem:[%s15227_s0 + $0x648] sm:$0xff] }
  0xc9   :  { %v1073_v2 = vrot.slane %v1072_v54, 1  ;;  %v1092_v4 = vrot.slane %v1091_v55, 2  ;;  %v1105_v5 = vadd.f32 %v1104_v56, %v1103_v49  ;;  %v1006_v3 = vrot.slane %v1005_v58, 4  ;;  %v279_v56 = vld [vmem:[%s15227_s0 + $0x650] sm:$0xff] }
  0xca   :  { %v1080_v6 = vrot.slane %v1079_v62, 1  ;;  %v1086_v7 = vadd.f32 %v1085_v63, %v1084_v51  ;;  %v1099_v8 = vrot.slane %v1098_v0, 2  ;;  %v1112_v9 = vadd.f32 %v1111_v1, %v1110_v53  ;;  %v277_v51 = vld [vmem:[%s15227_s0 + $0x640] sm:$0xff]  ;;  %7735 = vmatpush3.bf16.msra.mxu1 %v8418_v18 }
  0xcb   :  { %v1074_v12 = vadd.f32 %v1073_v2, %v1072_v54  ;;  %v1093_v14 = vadd.f32 %v1092_v4, %v1091_v55  ;;  %v1106_v16 = vrot.slane %v1105_v5, 2  ;;  %v1007_v17 = vadd.f32 %v1006_v3, %v1005_v58  ;;  %v280_v58 = vld [vmem:[%s15227_s0 + $0x658] sm:$0xff]  ;;  %v282_v2 = vld [vmem:[%s15227_s0 + $0x668] sm:$0xff]  ;;  %v283_v4 = vld [vmem:[%s15227_s0 + $0x670] sm:$0xff]  ;;  %7736 = vmatprep.subr.bf16.mxu1 %v8419_v46 }
  0xcc   :  { %v1081_v20 = vadd.f32 %v1080_v6, %v1079_v62  ;;  %v1087_v21 = vrot.slane %v1086_v7, 1  ;;  %v1100_v22 = vadd.f32 %v1099_v8, %v1098_v0  ;;  %v1113_v23 = vrot.slane %v1112_v9, 2 }
  0xcd   :  { %v1094_v26 = vrot.slane %v1093_v14, 1  ;;  %v1107_v27 = vadd.f32 %v1106_v16, %v1105_v5  ;;  %v1455_v28 = vsel %vm1357_vm0, %v1074_v12, %v1067_v33  ;;  %v1008_v31 = vrot.slane %v1007_v17, 2  ;;  %v275_v33 = vld [vmem:[%s15227_s0 + $0x630] sm:$0xff]  ;;  %v284_v5 = vld [vmem:[%s15227_s0 + $0x678] sm:$0xff]  ;;  %v317_v12 = vld [vmem:[%s15227_s0 + $0x780] sm:$0xff] }
  0xce   :  { %v1088_v32 = vadd.f32 %v1087_v21, %v1086_v7  ;;  %v1101_v35 = vrot.slane %v1100_v22, 1  ;;  %v1114_v38 = vadd.f32 %v1113_v23, %v1112_v9  ;;  %v1456_v37 = vsel %vm1359_vm1, %v1081_v20, %v1455_v28  ;;  %7737 = vmatpush3.bf16.msra.mxu1 %v8419_v46 }
  0xcf   :  { %v1095_v39 = vadd.f32 %v1094_v26, %v1093_v14  ;;  %v1108_v40 = vrot.slane %v1107_v27, 1  ;;  %v1009_v42 = vadd.f32 %v1008_v31, %v1007_v17  ;;  %v1012_v43 = vadd.f32 %v272_v25, %v271_v24  ;;  %v318_v14 = vld [vmem:[%s15227_s0 + $0x788] sm:$0xff] }
  0xd0   :  { %v1102_v48 = vadd.f32 %v1101_v35, %v1100_v22  ;;  %v1115_v49 = vrot.slane %v1114_v38, 1  ;;  %v1457_v50 = vsel %vm1361_vm2, %v1088_v32, %v1456_v37  ;;  %v1019_v53 = vadd.f32 %v274_v30, %v273_v29 }
  0xd1   :  { %v1109_v54 = vadd.f32 %v1108_v40, %v1107_v27  ;;  %v1458_v55 = vsel %vm1363_vm3, %v1095_v39, %v1457_v50  ;;  %v1010_v62 = vrot.slane %v1009_v42, 1  ;;  %v1013_v63 = vrot.slane %v1012_v43, 4 }
  0xd2   :  { %v1116_v0 = vadd.f32 %v1115_v49, %v1114_v38  ;;  %v1459_v1 = vsel %vm1365_vm4, %v1102_v48, %v1458_v55  ;;  %v1020_v3 = vrot.slane %v1019_v53, 4  ;;  %v1026_v6 = vadd.f32 %v276_v41, %v275_v33 }
  0xd3   :  { %v1460_v7 = vsel %vm1367_vm5, %v1109_v54, %v1459_v1  ;;  %v1011_v8 = vadd.f32 %v1010_v62, %v1009_v42  ;;  %v1014_v9 = vadd.f32 %v1013_v63, %v1012_v43  ;;  %v1033_v10 = vadd.f32 %v278_v52, %v277_v51 }
  0xd4   :  { %v9436_v16 = vsel %vm1369_vm6, %v1116_v0, %v1460_v7  ;;  %v1021_v17 = vadd.f32 %v1020_v3, %v1019_v53  ;;  %v1027_v20 = vrot.slane %v1026_v6, 4  ;;  %v1040_v18 = vadd.f32 %v280_v58, %v279_v56  ;;  %v319_v58 = vld [vmem:[%s15227_s0 + $0x790] sm:$0xff] }
  0xd5   :  { %1585 = vrot.lane.b32.xlu1 %v9436_v16, %s8532_s13  ;;  %v1015_v21 = vrot.slane %v1014_v9, 2  ;;  %v1034_v22 = vrot.slane %v1033_v10, 4  ;;  %v1047_v23 = vadd.f32 %v282_v2, %v281_v59  ;;  %v1054_v24 = vadd.f32 %v284_v5, %v283_v4  ;;  %v320_v59 = vld [vmem:[%s15227_s0 + $0x798] sm:$0xff]  ;;  %v321_v4 = vld [vmem:[%s15227_s0 + $0x7a0] sm:$0xff]  ;;  %v322_v5 = vld [vmem:[%s15227_s0 + $0x7a8] sm:$0xff] }
  0xd6   :  { %v1022_v25 = vrot.slane %v1021_v17, 2  ;;  %v1028_v26 = vadd.f32 %v1027_v20, %v1026_v6  ;;  %v1041_v27 = vrot.slane %v1040_v18, 4  ;;  %v1173_v28 = vadd.f32 %v318_v14, %v317_v12  ;;  %v325_v20 = vld [vmem:[%s15227_s0 + $0x7c0] sm:$0xff] }
  0xd7   :  { %v1016_v29 = vadd.f32 %v1015_v21, %v1014_v9  ;;  %v1035_v30 = vadd.f32 %v1034_v22, %v1033_v10  ;;  %v1048_v31 = vrot.slane %v1047_v23, 4  ;;  %v1055_v32 = vrot.slane %v1054_v24, 4 }
  0xd8   :  { %v1023_v35 = vadd.f32 %v1022_v25, %v1021_v17  ;;  %v1029_v38 = vrot.slane %v1028_v26, 2  ;;  %v1042_v37 = vadd.f32 %v1041_v27, %v1040_v18  ;;  %v1174_v39 = vrot.slane %v1173_v28, 4  ;;  %v324_v17 = vld [vmem:[%s15227_s0 + $0x7b8] sm:$0xff] }
  0xd9   :  { %v1017_v40 = vrot.slane %v1016_v29, 1  ;;  %v1036_v33 = vrot.slane %v1035_v30, 2  ;;  %v1049_v41 = vadd.f32 %v1048_v31, %v1047_v23  ;;  %v1056_v42 = vadd.f32 %v1055_v32, %v1054_v24  ;;  %v326_v23 = vld [vmem:[%s15227_s0 + $0x7c8] sm:$0xff]  ;;  %v327_v24 = vld [vmem:[%s15227_s0 + $0x7d0] sm:$0xff]  ;;  %v328_v25 = vld [vmem:[%s15227_s0 + $0x7d8] sm:$0xff] }
  0xda   :  { %v1024_v43 = vrot.slane %v1023_v35, 1  ;;  %v1030_v48 = vadd.f32 %v1029_v38, %v1028_v26  ;;  %v1043_v49 = vrot.slane %v1042_v37, 2  ;;  %v1175_v50 = vadd.f32 %v1174_v39, %v1173_v28  ;;  %v329_v31 = vld [vmem:[%s15227_s0 + $0x7e0] sm:$0xff]  ;;  %v330_v32 = vld [vmem:[%s15227_s0 + $0x7e8] sm:$0xff]  ;;  %v332_v39 = vld [vmem:[%s15227_s0 + $0x7f8] sm:$0xff] }
  0xdb   :  { %v1018_v51 = vadd.f32 %v1017_v40, %v1016_v29  ;;  %v1037_v52 = vadd.f32 %v1036_v33, %v1035_v30  ;;  %v1050_v53 = vrot.slane %v1049_v41, 2  ;;  %v1057_v46 = vrot.slane %v1056_v42, 2 }
  0xdc   :  { %v1025_v54 = vadd.f32 %v1024_v43, %v1023_v35  ;;  %v1031_v55 = vrot.slane %v1030_v48, 1  ;;  %v1044_v56 = vadd.f32 %v1043_v49, %v1042_v37  ;;  %v1176_v62 = vrot.slane %v1175_v50, 2  ;;  %v331_v37 = vld [vmem:[%s15227_s0 + $0x7f0] sm:$0xff] }
  0xdd   :  { %v1038_v63 = vrot.slane %v1037_v52, 1  ;;  %v1051_v0 = vadd.f32 %v1050_v53, %v1049_v41  ;;  %v1058_v1 = vadd.f32 %v1057_v46, %v1056_v42  ;;  %v1448_v2 = vsel %vm1357_vm0, %v1018_v51, %v1011_v8  ;;  %v323_v8 = vld [vmem:[%s15227_s0 + $0x7b0] sm:$0xff]  ;;  %v302_v51 = vld [vmem:[%s15227_s0 + $0x708] sm:$0xff] }
  0xde   :  { %v1032_v3 = vadd.f32 %v1031_v55, %v1030_v48  ;;  %v1045_v6 = vrot.slane %v1044_v56, 1  ;;  %v1449_v7 = vsel %vm1359_vm1, %v1025_v54, %v1448_v2  ;;  %v1177_v9 = vadd.f32 %v1176_v62, %v1175_v50  ;;  %v301_v50 = vld [vmem:[%s15227_s0 + $0x700] sm:$0xff] }
  0xdf   :  { %v1039_v10 = vadd.f32 %v1038_v63, %v1037_v52  ;;  %v1052_v12 = vrot.slane %v1051_v0, 1  ;;  %v1059_v14 = vrot.slane %v1058_v1, 1  ;;  %v1180_v18 = vadd.f32 %v320_v59, %v319_v58 }
  0xe0   :  { %v1046_v21 = vadd.f32 %v1045_v6, %v1044_v56  ;;  %v1450_v22 = vsel %vm1361_vm2, %v1032_v3, %v1449_v7  ;;  %v1178_v26 = vrot.slane %v1177_v9, 1  ;;  %v1187_v27 = vadd.f32 %v322_v5, %v321_v4 }
  0xe1   :  { %v1053_v28 = vadd.f32 %v1052_v12, %v1051_v0  ;;  %v1060_v29 = vadd.f32 %v1059_v14, %v1058_v1  ;;  %v1451_v30 = vsel %vm1363_vm3, %v1039_v10, %v1450_v22  ;;  %v1181_v35 = vrot.slane %v1180_v18, 4 }
  0xe2   :  { %v1452_v38 = vsel %vm1365_vm4, %v1046_v21, %v1451_v30  ;;  %v1179_v40 = vadd.f32 %v1178_v26, %v1177_v9  ;;  %v1188_v33 = vrot.slane %v1187_v27, 4  ;;  %v1194_v41 = vadd.f32 %v324_v17, %v323_v8  ;;  %v303_v30 = vld [vmem:[%s15227_s0 + $0x710] sm:$0xff] }
  0xe3   :  { %v1453_v42 = vsel %vm1367_vm5, %v1053_v28, %v1452_v38  ;;  %v1182_v43 = vadd.f32 %v1181_v35, %v1180_v18  ;;  %v1201_v48 = vadd.f32 %v326_v23, %v325_v20  ;;  %v1208_v49 = vadd.f32 %v328_v25, %v327_v24 }
  0xe4   :  { %v9495_v52 = vsel %vm1369_vm6, %v1060_v29, %v1453_v42  ;;  %v1189_v53 = vadd.f32 %v1188_v33, %v1187_v27  ;;  %v1195_v46 = vrot.slane %v1194_v41, 4  ;;  %v1215_v54 = vadd.f32 %v330_v32, %v329_v31  ;;  %v304_v31 = vld [vmem:[%s15227_s0 + $0x718] sm:$0xff]  ;;  %v305_v33 = vld [vmem:[%s15227_s0 + $0x720] sm:$0xff] }
  0xe5   :  { %1583 = vrot.lane.b32.xlu0 %v9495_v52, %s8532_s13  ;;  %v1183_v55 = vrot.slane %v1182_v43, 2  ;;  %v1202_v56 = vrot.slane %v1201_v48, 4  ;;  %v1209_v58 = vrot.slane %v1208_v49, 4  ;;  %v1222_v59 = vadd.f32 %v332_v39, %v331_v37 }
  0xe6   :  { %v1190_v62 = vrot.slane %v1189_v53, 2  ;;  %v1196_v63 = vadd.f32 %v1195_v46, %v1194_v41  ;;  %v1216_v0 = vrot.slane %v1215_v54, 4  ;;  %v1117_v1 = vadd.f32 %v302_v51, %v301_v50  ;;  %v306_v41 = vld [vmem:[%s15227_s0 + $0x728] sm:$0xff]  ;;  %v9519_v51 = vpop.permute.xlu1 %1563 }
  0xe7   :  { %v1184_v2 = vadd.f32 %v1183_v55, %v1182_v43  ;;  %v1203_v4 = vadd.f32 %v1202_v56, %v1201_v48  ;;  %v1210_v5 = vadd.f32 %v1209_v58, %v1208_v49  ;;  %v1223_v3 = vrot.slane %v1222_v59, 4  ;;  %v307_v49 = vld [vmem:[%s15227_s0 + $0x730] sm:$0xff]  ;;  %v309_v55 = vld [vmem:[%s15227_s0 + $0x740] sm:$0xff]  ;;  %v310_v56 = vld [vmem:[%s15227_s0 + $0x748] sm:$0xff] }
  0xe8   :  { %v1191_v6 = vadd.f32 %v1190_v62, %v1189_v53  ;;  %v1197_v7 = vrot.slane %v1196_v63, 2  ;;  %v1217_v9 = vadd.f32 %v1216_v0, %v1215_v54  ;;  %v1118_v10 = vrot.slane %v1117_v1, 4  ;;  %v311_v0 = vld [vmem:[%s15227_s0 + $0x750] sm:$0xff] }
  0xe9   :  { %v1185_v12 = vrot.slane %v1184_v2, 1  ;;  %v1204_v14 = vrot.slane %v1203_v4, 2  ;;  %v1211_v8 = vrot.slane %v1210_v5, 2  ;;  %v1224_v17 = vadd.f32 %v1223_v3, %v1222_v59  ;;  %v9527_v59 = vpop.permute.xlu0 %1559  ;;  %v313_v3 = vld [vmem:[%s15227_s0 + $0x760] sm:$0xff] }
  0xea   :  { %v1192_v20 = vrot.slane %v1191_v6, 1  ;;  %v1198_v18 = vadd.f32 %v1197_v7, %v1196_v63  ;;  %v1218_v21 = vrot.slane %v1217_v9, 2  ;;  %v1119_v22 = vadd.f32 %v1118_v10, %v1117_v1  ;;  %v312_v1 = vld [vmem:[%s15227_s0 + $0x758] sm:$0xff] }
  0xeb   :  { %v1186_v23 = vadd.f32 %v1185_v12, %v1184_v2  ;;  %v1205_v24 = vadd.f32 %v1204_v14, %v1203_v4  ;;  %v1212_v25 = vadd.f32 %v1211_v8, %v1210_v5  ;;  %v1225_v26 = vrot.slane %v1224_v17, 2  ;;  %v315_v12 = vld [vmem:[%s15227_s0 + $0x770] sm:$0xff]  ;;  %v316_v14 = vld [vmem:[%s15227_s0 + $0x778] sm:$0xff] }
  0xec   :  { %v1193_v27 = vadd.f32 %v1192_v20, %v1191_v6  ;;  %v1199_v28 = vrot.slane %v1198_v18, 1  ;;  %v1219_v29 = vadd.f32 %v1218_v21, %v1217_v9  ;;  %v1120_v32 = vrot.slane %v1119_v22, 2  ;;  %v314_v6 = vld [vmem:[%s15227_s0 + $0x768] sm:$0xff] }
  0xed   :  { %v1206_v35 = vrot.slane %v1205_v24, 1  ;;  %v1213_v38 = vrot.slane %v1212_v25, 1  ;;  %v1226_v37 = vadd.f32 %v1225_v26, %v1224_v17  ;;  %v1469_v39 = vsel %vm1357_vm0, %v1186_v23, %v1179_v40  ;;  %v308_v40 = vld [vmem:[%s15227_s0 + $0x738] sm:$0xff] }
  0xee   :  { %v1200_v42 = vadd.f32 %v1199_v28, %v1198_v18  ;;  %v1220_v43 = vrot.slane %v1219_v29, 1  ;;  %v1470_v48 = vsel %vm1359_vm1, %v1193_v27, %v1469_v39  ;;  %v1121_v50 = vadd.f32 %v1120_v32, %v1119_v22  ;;  %v1566_v28 = vpop.permute.xlu1 %1565 }
  0xef   :  { %v1207_v53 = vadd.f32 %v1206_v35, %v1205_v24  ;;  %v1214_v46 = vadd.f32 %v1213_v38, %v1212_v25  ;;  %v1227_v54 = vrot.slane %v1226_v37, 1  ;;  %v1124_v58 = vadd.f32 %v304_v31, %v303_v30  ;;  %v1562_v35 = vpop.permute.xlu0 %1561 }
  0xf0   :  { %v1221_v62 = vadd.f32 %v1220_v43, %v1219_v29  ;;  %v1471_v63 = vsel %vm1361_vm2, %v1200_v42, %v1470_v48  ;;  %v1131_v2 = vadd.f32 %v306_v41, %v305_v33  ;;  %v1138_v9 = vadd.f32 %v308_v40, %v307_v49  ;;  %v9559_v33 = vld [vmem:[%s15229_s1] sm:$0xff] }
  0xf1   :  { %v1228_v4 = vadd.f32 %v1227_v54, %v1226_v37  ;;  %v1472_v5 = vsel %vm1363_vm3, %v1207_v53, %v1471_v63  ;;  %v1125_v7 = vrot.slane %v1124_v58, 4  ;;  %v1122_v8 = vrot.slane %v1121_v50, 1 }
  0xf2   :  { %v1473_v10 = vsel %vm1365_vm4, %v1214_v46, %v1472_v5  ;;  %v1132_v17 = vrot.slane %v1131_v2, 4  ;;  %v1145_v20 = vadd.f32 %v310_v56, %v309_v55  ;;  %v1139_v22 = vrot.slane %v1138_v9, 4 }
  0xf3   :  { %v1474_v18 = vsel %vm1367_vm5, %v1221_v62, %v1473_v10  ;;  %v1126_v21 = vadd.f32 %v1125_v7, %v1124_v58  ;;  %v1152_v23 = vadd.f32 %v312_v1, %v311_v0  ;;  %v1159_v27 = vadd.f32 %v314_v6, %v313_v3  ;;  %v1568_v7 = vpop.permute.xlu0 %1567 }
  0xf4   :  { %v9552_v24 = vsel %vm1369_vm6, %v1228_v4, %v1474_v18  ;;  %v1133_v25 = vadd.f32 %v1132_v17, %v1131_v2  ;;  %v1146_v26 = vrot.slane %v1145_v20, 4  ;;  %v1140_v30 = vadd.f32 %v1139_v22, %v1138_v9  ;;  %v9566_v2 = vld [vmem:[%s15229_s1 + $0x10] sm:$0xff]  ;;  %v1570_v4 = vpop.permute.xlu1 %1569 }
  0xf5   :  { %1589 = vrot.lane.b32.xlu1 %v9552_v24, %s8532_s13  ;;  %v1127_v29 = vrot.slane %v1126_v21, 2  ;;  %v1153_v31 = vrot.slane %v1152_v23, 4  ;;  %v1166_v32 = vadd.f32 %v316_v14, %v315_v12  ;;  %v1160_v39 = vrot.slane %v1159_v27, 4 }
  0xf6   :  { %v1134_v38 = vrot.slane %v1133_v25, 2  ;;  %v1147_v37 = vadd.f32 %v1146_v26, %v1145_v20  ;;  %v1141_v42 = vrot.slane %v1140_v30, 2  ;;  %v15252_v49 = vmov 0  }
  0xf7   :  { %v1128_v41 = vadd.f32 %v1127_v29, %v1126_v21  ;;  %v1154_v43 = vadd.f32 %v1153_v31, %v1152_v23  ;;  %v1167_v48 = vrot.slane %v1166_v32, 4  ;;  %8260 = vset.pattern.permute.xlu1 %v15252_v49  ;;  %v1123_v40 = vadd.f32 %v1122_v8, %v1121_v50 }
  0xf8   :  { %v1135_v53 = vadd.f32 %v1134_v38, %v1133_v25  ;;  %v1148_v46 = vrot.slane %v1147_v37, 2  ;;  %v1161_v54 = vadd.f32 %v1160_v39, %v1159_v27  ;;  %v1142_v56 = vadd.f32 %v1141_v42, %v1140_v30  ;;  %v9576_v25 = vld [vmem:[%s15229_s1 + $0x18] sm:$0xff] }
  0xf9   :  { %v1129_v55 = vrot.slane %v1128_v41, 1  ;;  %v1155_v58 = vrot.slane %v1154_v43, 2  ;;  %v1168_v62 = vadd.f32 %v1167_v48, %v1166_v32  ;;  %2131 = vperm.xlu1 %8260, %v9559_v33   ;;  %v1609_v14 = vadd.f32 %v9519_v51, %v8710_v44  ;;  %v1572_v48 = vpop.permute.xlu0 %1571 }
  0xfa   :  { %v1136_v63 = vrot.slane %v1135_v53, 1  ;;  %v1149_v0 = vadd.f32 %v1148_v46, %v1147_v37  ;;  %v1162_v1 = vrot.slane %v1161_v54, 2  ;;  %v1143_v50 = vrot.slane %v1142_v56, 1  ;;  %v1574_v37 = vpop.permute.xlu1 %1573 }
  0xfb   :  { %v1130_v5 = vadd.f32 %v1129_v55, %v1128_v41  ;;  %v1156_v3 = vadd.f32 %v1155_v58, %v1154_v43  ;;  %v1169_v6 = vrot.slane %v1168_v62, 2  ;;  %v1625_v26 = vmul.f32 0.03125, %v1609_v14 }
  0xfc   :  { %v1137_v9 = vadd.f32 %v1136_v63, %v1135_v53  ;;  %v1150_v10 = vrot.slane %v1149_v0, 1  ;;  %v1163_v12 = vadd.f32 %v1162_v1, %v1161_v54  ;;  %v1144_v8 = vadd.f32 %v1143_v50, %v1142_v56  ;;  %v9620_v63 = vld [vmem:[%s15229_s1 + $0x38] sm:$0xff] }
  0xfd   :  { %v1157_v17 = vrot.slane %v1156_v3, 1  ;;  %v1170_v20 = vadd.f32 %v1169_v6, %v1168_v62  ;;  %v1462_v18 = vsel %vm1357_vm0, %v1130_v5, %v1123_v40  ;;  %2137 = vperm.xlu1 %8260, %v9566_v2   ;;  %v1607_v51 = vadd.f32 %v9527_v59, %v8769_v61  ;;  %v9591_v61 = vld [vmem:[%s15229_s1 + $0x20] sm:$0xff]  ;;  %v9634_v5 = vld [vmem:[%s15229_s1 + $0x48] sm:$0xff] }
  0xfe   :  { %v1151_v21 = vadd.f32 %v1150_v10, %v1149_v0  ;;  %v1164_v22 = vrot.slane %v1163_v12, 1  ;;  %v1463_v23 = vsel %vm1359_vm1, %v1137_v9, %v1462_v18  ;;  %v1610_v32 = vadd.f32 %v1566_v28, %v8828_v15  ;;  %v9627_v0 = vld [vmem:[%s15229_s1 + $0x40] sm:$0xff]  ;;  %v9647_v10 = vld [vmem:[%s15229_s1 + $0x68] sm:$0xff] }
  0xff   :  { %v1158_v27 = vadd.f32 %v1157_v17, %v1156_v3  ;;  %v1171_v29 = vrot.slane %v1170_v20, 1  ;;  %v1464_v44 = vsel %vm1361_vm2, %v1144_v8, %v1463_v23  ;;  %v1608_v38 = vadd.f32 %v1562_v35, %v8893_v36  ;;  %v9676_v23 = vld [vmem:[%s15229_s1 + $0x50] sm:$0xff] }
 0x100   :  { %v1165_v30 = vadd.f32 %v1164_v22, %v1163_v12  ;;  %v1465_v31 = vsel %vm1363_vm3, %v1151_v21, %v1464_v44  ;;  %v1623_v42 = vmul.f32 0.03125, %v1607_v51  ;;  %v1612_v43 = vadd.f32 %v1570_v4, %v8952_v57  ;;  %v9660_v12 = vld [vmem:[%s15229_s1 + $0x8] sm:$0xff] }
 0x101   :  { %v1172_v39 = vadd.f32 %v1171_v29, %v1170_v20  ;;  %v1466_v41 = vsel %vm1365_vm4, %v1158_v27, %v1465_v31  ;;  %2140 = vperm.xlu1 %8260, %v9576_v25   ;;  %v1626_v15 = vmul.f32 0.03125, %v1610_v32  ;;  %v1624_v59 = vmul.f32 0.03125, %v1608_v38  ;;  %v9683_v27 = vld [vmem:[%s15229_s1 + $0x60] sm:$0xff] }
 0x102   :  { %v1467_v40 = vsel %vm1367_vm5, %v1165_v30, %v1466_v41  ;;  %v1611_v36 = vadd.f32 %v1568_v7, %v9011_v11  ;;  %v1628_v35 = vmul.f32 0.03125, %v1612_v43  ;;  %v1614_v53 = vadd.f32 %v1574_v37, %v9070_v34  ;;  %v9605_v11 = vld [vmem:[%s15229_s1 + $0x28] sm:$0xff]  ;;  %v9641_v7 = vld [vmem:[%s15229_s1 + $0x58] sm:$0xff] }
 0x103   :  { %v9595_v28 = vsel %vm1369_vm6, %v1172_v39, %v1467_v40  ;;  %v1640_v57 = vpack.c.bf16 %v1626_v15, %v1625_v26  ;;  %v1639_v54 = vpack.c.bf16 %v1624_v59, %v1623_v42  ;;  %v1613_v55 = vadd.f32 %v1572_v48, %v9129_v60  ;;  %v9614_v60 = vld [vmem:[%s15229_s1 + $0x30] sm:$0xff] }
 0x104   :  { %1587 = vrot.lane.b32.xlu0 %v9595_v28, %s8532_s13  ;;  %v1627_v46 = vmul.f32 0.03125, %v1611_v36  ;;  %v1630_v58 = vmul.f32 0.03125, %v1614_v53  ;;  %v15250_v14 = vmov 1   ;;  %v15242_v20 = vmov 5  }
 0x105   :  { %2143 = vperm.xlu1 %8260, %v9591_v61   ;;  %7738 = vmatprep.mubr.msk.bf16.mxu1 %vm1686_vm7, %v1639_v54  ;;  %v1629_v34 = vmul.f32 0.03125, %v1613_v55  ;;  %v15248_v29 = vmov 2   ;;  %v15244_v53 = vmov 4   ;;  %v8420_v55 = vld [vmem:[%s15230_s5] sm:$0xff]  }
 0x106   :  { %v1641_v56 = vpack.c.bf16 %v1628_v35, %v1627_v46  ;;  %7739 = vmatmul.mubr.msk.bf16.vlgmr.msra.gmra.mrb[0].mxu1 %vm1686_vm7, %v1640_v57  ;;  %8265 = vset.pattern.permute.xlu0 %v15242_v20 }
 0x107   :  { %v1642_v62 = vpack.c.bf16 %v1630_v58, %v1629_v34  ;;  %7754 = vmatprep.subr.bf16.mxu1 %v8420_v55  ;;  %v9755_v34 = vadd.s32 4294967168, %v9559_v33 }
 0x108   :  { %7742 = vmatprep.mubr.msk.bf16.mxu1 %vm1686_vm7, %v1641_v56  ;;  %v1578_v1 = vpop.permute.xlu1 %1577  ;;  %2691 = vperm.xlu0 %8265, %v9559_v33   ;;  %v8421_v56 = vld [vmem:[%s15230_s5 + $0x8] sm:$0xff]  }
 0x109   :  { %2146 = vperm.xlu1 %8260, %v9605_v11   ;;  %v1616_v4 = vadd.f32 %v1578_v1, %v9188_v19  ;;  %7755 = vmatpush3.bf16.msra.mxu1 %v8420_v55  ;;  %v9857_v55 = vld [vmem:[%s15231_s4] ss:$0 sm:$0xff] }
 0x10a   :  { %7756 = vmatprep.subr.bf16.mxu1 %v8421_v56 }
 0x10b   :  { %v1632_v3 = vmul.f32 0.03125, %v1616_v4  ;;  %v8423_v4 = vld [vmem:[%s15230_s5 + $0x18] sm:$0xff]  }
 0x10c   :  { %2700 = vperm.xlu0 %8265, %v9576_v25  }
 0x10d   :  { %2149 = vperm.xlu1 %8260, %v9614_v60   ;;  %7757 = vmatpush3.bf16.msra.mxu1 %v8421_v56 }
 0x10e   :  { %7743 = vmatmul.mubr.msk.bf16.gmra.mrb[4].mxu1 %vm1686_vm7, %v1642_v62  ;;  %v8422_v62 = vld [vmem:[%s15230_s5 + $0x10] sm:$0xff]  }
 0x10f   :  { %7758 = vmatprep.subr.bf16.mxu1 %v8422_v62 }
 0x110   :  { %2706 = vperm.xlu0 %8265, %v9605_v11  }
 0x111   :  { %2152 = vperm.xlu1 %8260, %v9620_v63   ;;  %7759 = vmatpush3.bf16.msra.mxu1 %v8422_v62 }
 0x112   :  { %7760 = vmatprep.subr.bf16.mxu1 %v8423_v4 }
 0x114   :  { %2712 = vperm.xlu0 %8265, %v9620_v63  }
 0x115   :  { %2155 = vperm.xlu1 %8260, %v9627_v0   ;;  %7761 = vmatpush3.bf16.msra.mxu1 %v8423_v4 }
 0x118   :  { %v1576_v50 = vpop.permute.xlu0 %1575  ;;  %2718 = vperm.xlu0 %8265, %v9634_v5  }
 0x119   :  { %2158 = vperm.xlu1 %8260, %v9634_v5   ;;  %v1615_v6 = vadd.f32 %v1576_v50, %v9247_v47  ;;  %v9654_v47 = vld [vmem:[%s15229_s1 + $0x78] sm:$0xff] }
 0x11b   :  { %v1631_v9 = vmul.f32 0.03125, %v1615_v6  ;;  %v8424_v6 = vld [vmem:[%s15230_s5 + $0x20] sm:$0xff]  }
 0x11c   :  { %2724 = vperm.xlu0 %8265, %v9641_v7   ;;  %7762 = vmatprep.subr.bf16.mxu1 %v8424_v6 }
 0x11d   :  { %2164 = vperm.xlu1 %8260, %v9641_v7   ;;  %v1643_v19 = vpack.c.bf16 %v1632_v3, %v1631_v9  ;;  %v9771_v3 = vadd.s32 4294967168, %v9576_v25  ;;  %7763 = vmatpush3.bf16.msra.mxu1 %v8424_v6 }
 0x11f   :  { %7746 = vmatprep.mubr.msk.bf16.mxu1 %vm1686_vm7, %v1643_v19  ;;  %v9781_v19 = vadd.s32 4294967168, %v9605_v11 }
 0x120   :  { %2730 = vperm.xlu0 %8265, %v9647_v10  }
 0x121   :  { %2170 = vperm.xlu1 %8260, %v9647_v10  }
 0x124   :  { %2736 = vperm.xlu0 %8265, %v9654_v47  }
 0x125   :  { %2176 = vperm.xlu1 %8260, %v9654_v47  }
 0x128   :  { %v1582_v8 = vpop.permute.xlu1 %1581  ;;  %3619 = vperm.xlu0 %8265, %v9755_v34  }
 0x129   :  { %8261 = vset.pattern.permute.xlu1 %v15250_v14  ;;  %v1618_v17 = vadd.f32 %v1582_v8, %v9306_v13  ;;  %v8425_v8 = vld [vmem:[%s15230_s5 + $0x28] sm:$0xff]  }
 0x12a   :  { %2246 = vperm.xlu1 %8261, %v9660_v12   ;;  %7764 = vmatprep.subr.bf16.mxu1 %v8425_v8 }
 0x12b   :  { %v1634_v21 = vmul.f32 0.03125, %v1618_v17  ;;  %7765 = vmatpush3.bf16.msra.mxu1 %v8425_v8 }
 0x12c   :  { %3628 = vperm.xlu0 %8265, %v9771_v3  }
 0x12e   :  { %2249 = vperm.xlu1 %8261, %v9566_v2  }
 0x130   :  { %3634 = vperm.xlu0 %8265, %v9781_v19  }
 0x132   :  { %2255 = vperm.xlu1 %8261, %v9591_v61  }
 0x136   :  { %2261 = vperm.xlu1 %8261, %v9614_v60  }
 0x138   :  { %v1580_v18 = vpop.permute.xlu0 %1579 }
 0x139   :  { %v1617_v22 = vadd.f32 %v1580_v18, %v9365_v45  ;;  %v9691_v45 = vld [vmem:[%s15229_s1 + $0x70] sm:$0xff]  ;;  %v9791_v18 = vadd.s32 4294967168, %v9620_v63 }
 0x13a   :  { %2267 = vperm.xlu1 %8261, %v9627_v0  }
 0x13b   :  { %v1633_v13 = vmul.f32 0.03125, %v1617_v22  ;;  %3640 = vperm.xlu0 %8265, %v9791_v18  }
 0x13d   :  { %v1644_v26 = vpack.c.bf16 %v1634_v21, %v1633_v13  ;;  %v8426_v21 = vld [vmem:[%s15230_s5 + $0x30] sm:$0xff]   ;;  %v9801_v13 = vadd.s32 4294967168, %v9634_v5 }
 0x13e   :  { %2273 = vperm.xlu1 %8261, %v9676_v23   ;;  %7766 = vmatprep.subr.bf16.mxu1 %v8426_v21 }
 0x13f   :  { %7747 = vmatmul.mubr.msk.bf16.gmra.mrb[8].mxu1 %vm1686_vm7, %v1644_v26  ;;  %v8427_v26 = vld [vmem:[%s15230_s5 + $0x38] sm:$0xff]   ;;  %3646 = vperm.xlu0 %8265, %v9801_v13  }
 0x140   :  { %7767 = vmatpush3.bf16.msra.mxu1 %v8426_v21 }
 0x141   :  { %7768 = vmatprep.subr.bf16.mxu1 %v8427_v26 }
 0x142   :  { %2279 = vperm.xlu1 %8261, %v9683_v27  }
 0x144   :  { %7769 = vmatpush3.bf16.msra.mxu1 %v8427_v26 }
 0x146   :  { %2285 = vperm.xlu1 %8261, %v9691_v45  }
 0x147   :  { %v1586_v44 = vpop.permute.xlu1 %1585 }
 0x148   :  { %v1620_v51 = vadd.f32 %v1586_v44, %v9436_v16  ;;  %v15246_v16 = vmov 3  }
 0x14a   :  { %8262 = vset.pattern.permute.xlu1 %v15248_v29  ;;  %v1636_v31 = vmul.f32 0.03125, %v1620_v51  ;;  %v9812_v51 = vadd.s32 4294967168, %v9641_v7 }
 0x14b   :  { %2355 = vperm.xlu1 %8262, %v9559_v33  }
 0x14c   :  { %3652 = vperm.xlu0 %8265, %v9812_v51  }
 0x14f   :  { %2361 = vperm.xlu1 %8262, %v9566_v2  }
 0x153   :  { %2364 = vperm.xlu1 %8262, %v9576_v25  }
 0x157   :  { %2370 = vperm.xlu1 %8262, %v9605_v11   ;;  %v1584_v30 = vpop.permute.xlu0 %1583 }
 0x158   :  { %v1619_v32 = vadd.f32 %v1584_v30, %v9495_v52 }
 0x15a   :  { %v1635_v38 = vmul.f32 0.03125, %v1619_v32 }
 0x15b   :  { %2376 = vperm.xlu1 %8262, %v9620_v63  }
 0x15c   :  { %v1645_v37 = vpack.c.bf16 %v1636_v31, %v1635_v38  ;;  %v9819_v31 = vadd.s32 4294967168, %v9647_v10  ;;  %v9826_v38 = vadd.s32 4294967168, %v9654_v47 }
 0x15e   :  { %7750 = vmatprep.mubr.msk.bf16.mxu1 %vm1686_vm7, %v1645_v37  ;;  %15478 = vst [vmem:[#allocation20_spill] sm:$0xff] %v9819_v31  ;;  %3658 = vperm.xlu0 %8265, %v9819_v31   ;;  %15480 = vst [vmem:[#allocation22_spill] sm:$0xff] %v9826_v38 }
 0x15f   :  { %2382 = vperm.xlu1 %8262, %v9634_v5  }
 0x162   :  { %3664 = vperm.xlu0 %8265, %v9826_v38  }
 0x163   :  { %2388 = vperm.xlu1 %8262, %v9641_v7  }
 0x167   :  { %2394 = vperm.xlu1 %8262, %v9647_v10   ;;  %v1590_v39 = vpop.permute.xlu1 %1589 }
 0x168   :  { %v1622_v52 = vadd.f32 %v1590_v39, %v9552_v24  ;;  %v15254_v39 = vmov 7  }
 0x169   :  { %8275 = vset.pattern.permute.xlu0 %v15254_v39 }
 0x16a   :  { %v1638_v42 = vmul.f32 0.03125, %v1622_v52  ;;  %2915 = vperm.xlu0 %8275, %v9559_v33  }
 0x16b   :  { %2400 = vperm.xlu1 %8262, %v9654_v47  }
 0x16e   :  { %2924 = vperm.xlu0 %8275, %v9576_v25  }
 0x16f   :  { %8263 = vset.pattern.permute.xlu1 %v15246_v16 }
 0x170   :  { %2470 = vperm.xlu1 %8263, %v9660_v12  }
 0x172   :  { %2930 = vperm.xlu0 %8275, %v9605_v11  }
 0x174   :  { %2473 = vperm.xlu1 %8263, %v9566_v2  }
 0x176   :  { %v1588_v41 = vpop.permute.xlu0 %1587  ;;  %2936 = vperm.xlu0 %8275, %v9620_v63  }
 0x177   :  { %v1621_v43 = vadd.f32 %v1588_v41, %v9595_v28 }
 0x178   :  { %2479 = vperm.xlu1 %8263, %v9591_v61   ;;  %v9717_v48 = vpop.permute.xlu1 %2131 }
 0x179   :  { %15461 = vst [vmem:[#allocation3_spill] sm:$0xff] %v9717_v48  ;;  %v1637_v40 = vmul.f32 0.03125, %v1621_v43 }
 0x17a   :  { %2942 = vperm.xlu0 %8275, %v9634_v5  }
 0x17b   :  { %v1646_v15 = vpack.c.bf16 %v1638_v42, %v1637_v40  ;;  %v15240_v40 = vmov 6  }
 0x17c   :  { %2485 = vperm.xlu1 %8263, %v9614_v60   ;;  %v9720_v59 = vpop.permute.xlu1 %2137 }
 0x17d   :  { %15462 = vst [vmem:[#allocation4_spill] sm:$0xff] %v9720_v59  ;;  %7751 = vmatmul.mubr.msk.bf16.gmra.mrb[12].mxu1 %vm1686_vm7, %v1646_v15 }
 0x17e   :  { %2948 = vperm.xlu0 %8275, %v9641_v7  }
 0x180   :  { %2491 = vperm.xlu1 %8263, %v9627_v0   ;;  %v9724_v24 = vpop.permute.xlu1 %2140 }
 0x181   :  { %15463 = vst [vmem:[#allocation5_spill] sm:$0xff] %v9724_v24 }
 0x182   :  { %2954 = vperm.xlu0 %8275, %v9647_v10  }
 0x184   :  { %2497 = vperm.xlu1 %8263, %v9676_v23   ;;  %v9727_v36 = vpop.permute.xlu1 %2143 }
 0x185   :  { %15464 = vst [vmem:[#allocation6_spill] sm:$0xff] %v9727_v36 }
 0x186   :  { %2960 = vperm.xlu0 %8275, %v9654_v47  }
 0x188   :  { %2503 = vperm.xlu1 %8263, %v9683_v27   ;;  %v9730_v28 = vpop.permute.xlu1 %2146 }
 0x189   :  { %15465 = vst [vmem:[#allocation7_spill] sm:$0xff] %v9730_v28 }
 0x18c   :  { %2509 = vperm.xlu1 %8263, %v9691_v45   ;;  %v9733_v35 = vpop.permute.xlu1 %2149 }
 0x18d   :  { %15466 = vst [vmem:[#allocation8_spill] sm:$0xff] %v9733_v35 }
 0x190   :  { %8264 = vset.pattern.permute.xlu1 %v15244_v53  ;;  %v9736_v57 = vpop.permute.xlu1 %2152 }
 0x191   :  { %15467 = vst [vmem:[#allocation9_spill] sm:$0xff] %v9736_v57  ;;  %2579 = vperm.xlu1 %8264, %v9559_v33  }
 0x194   :  { %v9739_v46 = vpop.permute.xlu1 %2155 }
 0x195   :  { %15468 = vst [vmem:[#allocation10_spill] sm:$0xff] %v9739_v46  ;;  %2585 = vperm.xlu1 %8264, %v9566_v2  }
 0x198   :  { %v9742_v54 = vpop.permute.xlu1 %2158 }
 0x199   :  { %15469 = vst [vmem:[#allocation11_spill] sm:$0xff] %v9742_v54  ;;  %2588 = vperm.xlu1 %8264, %v9576_v25  }
 0x19c   :  { %v9751_v58 = vpop.permute.xlu1 %2164 }
 0x19d   :  { %15470 = vst [vmem:[#allocation12_spill] sm:$0xff] %v9751_v58  ;;  %2594 = vperm.xlu1 %8264, %v9605_v11  }
 0x1a0   :  { %v9760_v1 = vpop.permute.xlu1 %2170 }
 0x1a1   :  { %15471 = vst [vmem:[#allocation13_spill] sm:$0xff] %v9760_v1  ;;  %2600 = vperm.xlu1 %8264, %v9620_v63  }
 0x1a4   :  { %v9767_v50 = vpop.permute.xlu1 %2176 }
 0x1a5   :  { %15472 = vst [vmem:[#allocation14_spill] sm:$0xff] %v9767_v50  ;;  %2606 = vperm.xlu1 %8264, %v9634_v5  }
 0x1a9   :  { %2612 = vperm.xlu1 %8264, %v9641_v7   ;;  %v9778_v9 = vpop.permute.xlu1 %2246 }
 0x1aa   :  { %15473 = vst [vmem:[#allocation15_spill] sm:$0xff] %v9778_v9 }
 0x1ad   :  { %2618 = vperm.xlu1 %8264, %v9647_v10   ;;  %v9788_v17 = vpop.permute.xlu1 %2249 }
 0x1ae   :  { %15474 = vst [vmem:[#allocation16_spill] sm:$0xff] %v9788_v17 }
 0x1b1   :  { %2624 = vperm.xlu1 %8264, %v9654_v47   ;;  %v9798_v22 = vpop.permute.xlu1 %2255 }
 0x1b2   :  { %15475 = vst [vmem:[#allocation17_spill] sm:$0xff] %v9798_v22 }
 0x1b5   :  { %8266 = vset.pattern.permute.xlu1 %v15242_v20  ;;  %v9808_v44 = vpop.permute.xlu1 %2261 }
 0x1b6   :  { %15476 = vst [vmem:[#allocation18_spill] sm:$0xff] %v9808_v44  ;;  %2694 = vperm.xlu1 %8266, %v9660_v12  }
 0x1b9   :  { %v9815_v30 = vpop.permute.xlu1 %2267 }
 0x1ba   :  { %15477 = vst [vmem:[#allocation19_spill] sm:$0xff] %v9815_v30  ;;  %2697 = vperm.xlu1 %8266, %v9566_v2  }
 0x1bd   :  { %v9822_v32 = vpop.permute.xlu1 %2273 }
 0x1be   :  { %15479 = vst [vmem:[#allocation21_spill] sm:$0xff] %v9822_v32  ;;  %2703 = vperm.xlu1 %8266, %v9591_v61  }
 0x1c1   :  { %v9829_v37 = vpop.permute.xlu1 %2279 }
 0x1c2   :  { %15481 = vst [vmem:[#allocation23_spill] sm:$0xff] %v9829_v37  ;;  %2709 = vperm.xlu1 %8266, %v9614_v60  }
 0x1c5   :  { %v9833_v52 = vpop.permute.xlu1 %2285 }
 0x1c6   :  { %15482 = vst [vmem:[#allocation24_spill] sm:$0xff] %v9833_v52  ;;  %2715 = vperm.xlu1 %8266, %v9627_v0  }
 0x1ca   :  { %2721 = vperm.xlu1 %8266, %v9676_v23   ;;  %v9839_v41 = vpop.permute.xlu1 %2355 }
 0x1cb   :  { %15483 = vst [vmem:[#allocation25_spill] sm:$0xff] %v9839_v41 }
 0x1ce   :  { %2727 = vperm.xlu1 %8266, %v9683_v27   ;;  %v9843_v42 = vpop.permute.xlu1 %2361 }
 0x1cf   :  { %15484 = vst [vmem:[#allocation26_spill] sm:$0xff] %v9843_v42 }
 0x1d2   :  { %2733 = vperm.xlu1 %8266, %v9691_v45   ;;  %v9847_v43 = vpop.permute.xlu1 %2364 }
 0x1d3   :  { %15485 = vst [vmem:[#allocation27_spill] sm:$0xff] %v9847_v43 }
 0x1d6   :  { %8267 = vset.pattern.permute.xlu1 %v15240_v40  ;;  %v9851_v15 = vpop.permute.xlu1 %2370 }
 0x1d7   :  { %15486 = vst [vmem:[#allocation28_spill] sm:$0xff] %v9851_v15  ;;  %2803 = vperm.xlu1 %8267, %v9559_v33   ;;  %v15556_v15 = vmov 5  }
 0x1d9   :  { %v7740_v62 = vpop.f32.mrb[0].mxu1 }
 0x1da   :  { %v9860_v56 = vpop.permute.xlu1 %2376  ;;  %v1754_v4 = vadd.f32 %v7740_v62, %v9857_v55  ;;  %v1745_v6 = vpop.f32.mrb[1].mxu1 }
 0x1db   :  { %15487 = vst [vmem:[#allocation29_spill] sm:$0xff] %v9860_v56  ;;  %2809 = vperm.xlu1 %8267, %v9566_v2   ;;  %v1746_v8 = vadd.f32 %v9857_v55, %v1745_v6  ;;  %v7741_v21 = vpop.f32.mrb[2].mxu1 }
 0x1dc   :  { %v1757_v33 = vadd.f32 %v7741_v21, %v9857_v55  ;;  %v1748_v26 = vpop.f32.mrb[3].mxu1  ;;  %v1810_v53 = vmax.f32 %v1754_v4, 0.0 }
 0x1dd   :  { %v1749_v20 = vadd.f32 %v9857_v55, %v1748_v26  ;;  %v1808_v29 = vmax.f32 %v1746_v8, 0.0 }
 0x1de   :  { %v9867_v40 = vpop.permute.xlu1 %2382  ;;  %v1811_v16 = vmax.f32 %v1757_v33, 0.0 }
 0x1df   :  { %15488 = vst [vmem:[#allocation30_spill] sm:$0xff] %v9867_v40  ;;  %2812 = vperm.xlu1 %8267, %v9576_v25   ;;  %v1809_v14 = vmax.f32 %v1749_v20, 0.0 }
 0x1e0   :  { %v1825_v62 = vpack.c.bf16 %v1811_v16, %v1810_v53 }
 0x1e1   :  { %v1824_v49 = vpack.c.bf16 %v1809_v14, %v1808_v29  ;;  %v7744_v21 = vpop.f32.mrb[4].mxu1 }
 0x1e2   :  { %v9872_v6 = vpop.permute.xlu1 %2388  ;;  %v1770_v39 = vadd.f32 %v7744_v21, %v9857_v55  ;;  %v1761_v40 = vpop.f32.mrb[5].mxu1 }
 0x1e3   :  { %15489 = vst [vmem:[#allocation31_spill] sm:$0xff] %v9872_v6  ;;  %2818 = vperm.xlu1 %8267, %v9605_v11   ;;  %v1762_v26 = vadd.f32 %v9857_v55, %v1761_v40  ;;  %v7745_v56 = vpop.f32.mrb[6].mxu1  ;;  %7770 = vmatprep.mubr.bf16.mxu1 %v1824_v49 }
 0x1e4   :  { %v1773_v25 = vadd.f32 %v7745_v56, %v9857_v55  ;;  %v1764_v4 = vpop.f32.mrb[7].mxu1  ;;  %7771 = vmatmul.mubr.bf16.vlgmr.msra.gmra.mrb[16].mxu1 %v1825_v62  ;;  %v1814_v14 = vmax.f32 %v1770_v39, 0.0  ;;  %v15495_v39 = vmov 7  }
 0x1e5   :  { %v1765_v16 = vadd.f32 %v9857_v55, %v1764_v4  ;;  %v1812_v11 = vmax.f32 %v1762_v26, 0.0 }
 0x1e6   :  { %v9878_v20 = vpop.permute.xlu1 %2394  ;;  %v1815_v29 = vmax.f32 %v1773_v25, 0.0 }
 0x1e7   :  { %15490 = vst [vmem:[#allocation32_spill] sm:$0xff] %v9878_v20  ;;  %2824 = vperm.xlu1 %8267, %v9620_v63   ;;  %v1813_v53 = vmax.f32 %v1765_v16, 0.0 }
 0x1e8   :  { %v1827_v8 = vpack.c.bf16 %v1815_v29, %v1814_v14 }
 0x1e9   :  { %v1826_v40 = vpack.c.bf16 %v1813_v53, %v1812_v11 }
 0x1ea   :  { %v9882_v33 = vpop.permute.xlu1 %2400 }
 0x1eb   :  { %15491 = vst [vmem:[#allocation33_spill] sm:$0xff] %v9882_v33  ;;  %2830 = vperm.xlu1 %8267, %v9634_v5   ;;  %7774 = vmatprep.mubr.bf16.mxu1 %v1826_v40 }
 0x1ec   :  { %7775 = vmatmul.mubr.bf16.gmra.mrb[20].mxu1 %v1827_v8 }
 0x1ef   :  { %2836 = vperm.xlu1 %8267, %v9641_v7   ;;  %v9886_v49 = vpop.permute.xlu1 %2470 }
 0x1f0   :  { %15492 = vst [vmem:[#allocation34_spill] sm:$0xff] %v9886_v49 }
 0x1f3   :  { %2842 = vperm.xlu1 %8267, %v9647_v10   ;;  %v9889_v56 = vpop.permute.xlu1 %2473 }
 0x1f4   :  { %15493 = vst [vmem:[#allocation35_spill] sm:$0xff] %v9889_v56 }
 0x1f7   :  { %2848 = vperm.xlu1 %8267, %v9654_v47   ;;  %v9892_v63 = vpop.permute.xlu1 %2479 }
 0x1f8   :  { %15494 = vst [vmem:[#allocation36_spill] sm:$0xff] %v9892_v63 }
 0x1fb   :  { %8268 = vset.pattern.permute.xlu1 %v15495_v39  ;;  %v9895_v62 = vpop.permute.xlu1 %2485 }
 0x1fc   :  { %15496 = vst [vmem:[#allocation37_spill] sm:$0xff] %v9895_v62  ;;  %2918 = vperm.xlu1 %8268, %v9660_v12   ;;  %v15504_v62 = vmov 0  }
 0x1ff   :  { %v9898_v5 = vpop.permute.xlu1 %2491 }
 0x200   :  { %15497 = vst [vmem:[#allocation38_spill] sm:$0xff] %v9898_v5  ;;  %2921 = vperm.xlu1 %8268, %v9566_v2  }
 0x203   :  { %v9901_v7 = vpop.permute.xlu1 %2497 }
 0x204   :  { %15498 = vst [vmem:[#allocation39_spill] sm:$0xff] %v9901_v7  ;;  %2927 = vperm.xlu1 %8268, %v9591_v61  }
 0x207   :  { %v9904_v10 = vpop.permute.xlu1 %2503 }
 0x208   :  { %15499 = vst [vmem:[#allocation40_spill] sm:$0xff] %v9904_v10  ;;  %2933 = vperm.xlu1 %8268, %v9614_v60  }
 0x20b   :  { %v9907_v47 = vpop.permute.xlu1 %2509 }
 0x20c   :  { %15500 = vst [vmem:[#allocation41_spill] sm:$0xff] %v9907_v47  ;;  %2939 = vperm.xlu1 %8268, %v9627_v0  }
 0x210   :  { %2945 = vperm.xlu1 %8268, %v9676_v23   ;;  %v9911_v21 = vpop.permute.xlu1 %2579 }
 0x211   :  { %15501 = vst [vmem:[#allocation42_spill] sm:$0xff] %v9911_v21 }
 0x212   :  { %v7748_v26 = vpop.f32.mrb[8].mxu1 }
 0x213   :  { %v1786_v25 = vadd.f32 %v7748_v26, %v9857_v55  ;;  %v1777_v4 = vpop.f32.mrb[9].mxu1 }
 0x214   :  { %2951 = vperm.xlu1 %8268, %v9683_v27   ;;  %v9915_v16 = vpop.permute.xlu1 %2585  ;;  %v1778_v14 = vadd.f32 %v9857_v55, %v1777_v4  ;;  %v7749_v29 = vpop.f32.mrb[10].mxu1  ;;  %v9928_v4 = vadd.s32 4294967168, %v9566_v2 }
 0x215   :  { %15502 = vst [vmem:[#allocation43_spill] sm:$0xff] %v9915_v16  ;;  %v1789_v11 = vadd.f32 %v7749_v29, %v9857_v55  ;;  %v1780_v53 = vpop.f32.mrb[11].mxu1  ;;  %v1818_v40 = vmax.f32 %v1786_v25, 0.0 }
 0x216   :  { %v1781_v8 = vadd.f32 %v9857_v55, %v1780_v53  ;;  %v1816_v26 = vmax.f32 %v1778_v14, 0.0  ;;  %v15514_v53 = vmov 1  }
 0x217   :  { %v1819_v47 = vmax.f32 %v1789_v11, 0.0  ;;  %v9955_v11 = vadd.s32 4294967168, %v9660_v12 }
 0x218   :  { %2957 = vperm.xlu1 %8268, %v9691_v45   ;;  %v9921_v21 = vpop.permute.xlu1 %2588  ;;  %v1817_v10 = vmax.f32 %v1781_v8, 0.0 }
 0x219   :  { %15503 = vst [vmem:[#allocation44_spill] sm:$0xff] %v9921_v21  ;;  %v1829_v7 = vpack.c.bf16 %v1819_v47, %v1818_v40 }
 0x21a   :  { %v1828_v5 = vpack.c.bf16 %v1817_v10, %v1816_v26  ;;  %v9965_v26 = vadd.s32 4294967168, %v9591_v61 }
 0x21c   :  { %8269 = vset.pattern.permute.xlu1 %v15504_v62  ;;  %v9924_v16 = vpop.permute.xlu1 %2594  ;;  %7778 = vmatprep.mubr.bf16.mxu1 %v1828_v5  ;;  %15517 = vst [vmem:[#allocation56_spill] sm:$0xff] %v9965_v26 }
 0x21d   :  { %15505 = vst [vmem:[#allocation45_spill] sm:$0xff] %v9924_v16  ;;  %3059 = vperm.xlu1 %8269, %v9755_v34   ;;  %7779 = vmatmul.mubr.bf16.gmra.mrb[24].mxu1 %v1829_v7 }
 0x220   :  { %v9930_v25 = vpop.permute.xlu1 %2600 }
 0x221   :  { %15506 = vst [vmem:[#allocation46_spill] sm:$0xff] %v9930_v25  ;;  %3065 = vperm.xlu1 %8269, %v9928_v4  }
 0x224   :  { %v9933_v29 = vpop.permute.xlu1 %2606 }
 0x225   :  { %15507 = vst [vmem:[#allocation47_spill] sm:$0xff] %v9933_v29  ;;  %3068 = vperm.xlu1 %8269, %v9771_v3  }
 0x228   :  { %v9936_v10 = vpop.permute.xlu1 %2612 }
 0x229   :  { %15508 = vst [vmem:[#allocation48_spill] sm:$0xff] %v9936_v10  ;;  %3074 = vperm.xlu1 %8269, %v9781_v19  }
 0x22c   :  { %v9939_v47 = vpop.permute.xlu1 %2618 }
 0x22d   :  { %15509 = vst [vmem:[#allocation49_spill] sm:$0xff] %v9939_v47  ;;  %3080 = vperm.xlu1 %8269, %v9791_v18  }
 0x230   :  { %v9942_v5 = vpop.permute.xlu1 %2624 }
 0x231   :  { %15510 = vst [vmem:[#allocation50_spill] sm:$0xff] %v9942_v5  ;;  %3086 = vperm.xlu1 %8269, %v9801_v13  }
 0x235   :  { %3092 = vperm.xlu1 %8269, %v9812_v51   ;;  %v9946_v2 = vpop.permute.xlu1 %2694 }
 0x236   :  { %15511 = vst [vmem:[#allocation51_spill] sm:$0xff] %v9946_v2 }
 0x239   :  { %3098 = vperm.xlu1 %8269, %v9819_v31   ;;  %v9949_v7 = vpop.permute.xlu1 %2697 }
 0x23a   :  { %15512 = vst [vmem:[#allocation52_spill] sm:$0xff] %v9949_v7 }
 0x23d   :  { %3104 = vperm.xlu1 %8269, %v9826_v38   ;;  %v9952_v14 = vpop.permute.xlu1 %2703 }
 0x23e   :  { %15513 = vst [vmem:[#allocation53_spill] sm:$0xff] %v9952_v14  ;;  %v9971_v14 = vadd.s32 4294967168, %v9614_v60  ;;  %v9985_v60 = vadd.s32 4294967168, %v9676_v23 }
 0x241   :  { %8270 = vset.pattern.permute.xlu1 %v15514_v53  ;;  %v9958_v8 = vpop.permute.xlu1 %2709 }
 0x242   :  { %15515 = vst [vmem:[#allocation54_spill] sm:$0xff] %v9958_v8  ;;  %3174 = vperm.xlu1 %8270, %v9955_v11   ;;  %v9977_v8 = vadd.s32 4294967168, %v9627_v0 }
 0x245   :  { %v9961_v40 = vpop.permute.xlu1 %2715 }
 0x246   :  { %15516 = vst [vmem:[#allocation55_spill] sm:$0xff] %v9961_v40  ;;  %3177 = vperm.xlu1 %8270, %v9928_v4  }
 0x249   :  { %v9967_v2 = vpop.permute.xlu1 %2721 }
 0x24a   :  { %15518 = vst [vmem:[#allocation57_spill] sm:$0xff] %v9967_v2  ;;  %3183 = vperm.xlu1 %8270, %v9965_v26  }
 0x24d   :  { %v9973_v5 = vpop.permute.xlu1 %2727 }
 0x24e   :  { %15519 = vst [vmem:[#allocation58_spill] sm:$0xff] %v9973_v5  ;;  %3189 = vperm.xlu1 %8270, %v9971_v14  }
 0x250   :  { %v7752_v40 = vpop.f32.mrb[12].mxu1 }
 0x251   :  { %v1802_v47 = vadd.f32 %v7752_v40, %v9857_v55  ;;  %v1793_v10 = vpop.f32.mrb[13].mxu1  ;;  %v9980_v61 = vpop.permute.xlu1 %2733 }
 0x252   :  { %15520 = vst [vmem:[#allocation59_spill] sm:$0xff] %v9980_v61  ;;  %v1794_v2 = vadd.f32 %v9857_v55, %v1793_v10  ;;  %v7753_v29 = vpop.f32.mrb[14].mxu1  ;;  %3195 = vperm.xlu1 %8270, %v9977_v8   ;;  %v9993_v10 = vadd.s32 4294967168, %v9683_v27 }
 0x253   :  { %v1805_v5 = vadd.f32 %v7753_v29, %v9857_v55  ;;  %v1796_v25 = vpop.f32.mrb[15].mxu1  ;;  %v1822_v16 = vmax.f32 %v1802_v47, 0.0  ;;  %v15524_v29 = vmov 2  }
 0x254   :  { %v1797_v0 = vadd.f32 %v9857_v55, %v1796_v25  ;;  %v1820_v21 = vmax.f32 %v1794_v2, 0.0  ;;  %v9999_v55 = vadd.s32 4294967168, %v9691_v45 }
 0x255   :  { %v1823_v7 = vmax.f32 %v1805_v5, 0.0 }
 0x256   :  { %v1821_v40 = vmax.f32 %v1797_v0, 0.0  ;;  %3201 = vperm.xlu1 %8270, %v9985_v60   ;;  %v9990_v61 = vpop.permute.xlu1 %2803 }
 0x257   :  { %15521 = vst [vmem:[#allocation60_spill] sm:$0xff] %v9990_v61  ;;  %v1831_v63 = vpack.c.bf16 %v1823_v7, %v1822_v16  ;;  %v15534_v7 = vmov 3  }
 0x258   :  { %v1830_v49 = vpack.c.bf16 %v1821_v40, %v1820_v21 }
 0x25a   :  { %7782 = vmatprep.mubr.bf16.mxu1 %v1830_v49  ;;  %3207 = vperm.xlu1 %8270, %v9993_v10   ;;  %v9996_v23 = vpop.permute.xlu1 %2809 }
 0x25b   :  { %15522 = vst [vmem:[#allocation61_spill] sm:$0xff] %v9996_v23  ;;  %7783 = vmatmul.mubr.bf16.gmra.mrb[28].mxu1 %v1831_v63 }
 0x25e   :  { %3213 = vperm.xlu1 %8270, %v9999_v55   ;;  %v10002_v25 = vpop.permute.xlu1 %2812 }
 0x25f   :  { %15523 = vst [vmem:[#allocation62_spill] sm:$0xff] %v10002_v25 }
 0x262   :  { %8271 = vset.pattern.permute.xlu1 %v15524_v29  ;;  %v10005_v47 = vpop.permute.xlu1 %2818 }
 0x263   :  { %15525 = vst [vmem:[#allocation63_spill] sm:$0xff] %v10005_v47  ;;  %3283 = vperm.xlu1 %8271, %v9755_v34  }
 0x266   :  { %v10008_v27 = vpop.permute.xlu1 %2824 }
 0x267   :  { %15526 = vst [vmem:[#allocation64_spill] sm:$0xff] %v10008_v27  ;;  %3289 = vperm.xlu1 %8271, %v9928_v4  }
 0x26a   :  { %v10011_v49 = vpop.permute.xlu1 %2830 }
 0x26b   :  { %15527 = vst [vmem:[#allocation65_spill] sm:$0xff] %v10011_v49  ;;  %3292 = vperm.xlu1 %8271, %v9771_v3  }
 0x26e   :  { %v10014_v45 = vpop.permute.xlu1 %2836 }
 0x26f   :  { %15528 = vst [vmem:[#allocation66_spill] sm:$0xff] %v10014_v45  ;;  %3298 = vperm.xlu1 %8271, %v9781_v19  }
 0x272   :  { %v10017_v63 = vpop.permute.xlu1 %2842 }
 0x273   :  { %15529 = vst [vmem:[#allocation67_spill] sm:$0xff] %v10017_v63  ;;  %3304 = vperm.xlu1 %8271, %v9791_v18  }
 0x276   :  { %v10020_v21 = vpop.permute.xlu1 %2848 }
 0x277   :  { %15530 = vst [vmem:[#allocation68_spill] sm:$0xff] %v10020_v21  ;;  %3310 = vperm.xlu1 %8271, %v9801_v13  }
 0x27b   :  { %3316 = vperm.xlu1 %8271, %v9812_v51   ;;  %v10024_v16 = vpop.permute.xlu1 %2918 }
 0x27c   :  { %15531 = vst [vmem:[#allocation69_spill] sm:$0xff] %v10024_v16 }
 0x27f   :  { %3322 = vperm.xlu1 %8271, %v9819_v31   ;;  %v10027_v5 = vpop.permute.xlu1 %2921 }
 0x280   :  { %15532 = vst [vmem:[#allocation70_spill] sm:$0xff] %v10027_v5 }
 0x283   :  { %3328 = vperm.xlu1 %8271, %v9826_v38   ;;  %v10030_v2 = vpop.permute.xlu1 %2927 }
 0x284   :  { %15533 = vst [vmem:[#allocation71_spill] sm:$0xff] %v10030_v2  ;;  %v15543_v2 = vmov 4  }
 0x287   :  { %8272 = vset.pattern.permute.xlu1 %v15534_v7  ;;  %v10033_v0 = vpop.permute.xlu1 %2933 }
 0x288   :  { %15535 = vst [vmem:[#allocation72_spill] sm:$0xff] %v10033_v0  ;;  %3398 = vperm.xlu1 %8272, %v9955_v11  }
 0x28b   :  { %v10036_v40 = vpop.permute.xlu1 %2939 }
 0x28c   :  { %15536 = vst [vmem:[#allocation73_spill] sm:$0xff] %v10036_v40  ;;  %3401 = vperm.xlu1 %8272, %v9928_v4  }
 0x28f   :  { %v10039_v21 = vpop.permute.xlu1 %2945 }
 0x290   :  { %15537 = vst [vmem:[#allocation74_spill] sm:$0xff] %v10039_v21  ;;  %3407 = vperm.xlu1 %8272, %v9965_v26  }
 0x293   :  { %v10042_v16 = vpop.permute.xlu1 %2951 }
 0x294   :  { %15538 = vst [vmem:[#allocation75_spill] sm:$0xff] %v10042_v16  ;;  %3413 = vperm.xlu1 %8272, %v9971_v14  }
 0x297   :  { %v10045_v63 = vpop.permute.xlu1 %2957 }
 0x298   :  { %15539 = vst [vmem:[#allocation76_spill] sm:$0xff] %v10045_v63  ;;  %3419 = vperm.xlu1 %8272, %v9977_v8  }
 0x29c   :  { %3425 = vperm.xlu1 %8272, %v9985_v60   ;;  %v10049_v0 = vpop.permute.xlu1 %3059 }
 0x29d   :  { %15540 = vst [vmem:[#allocation77_spill] sm:$0xff] %v10049_v0 }
 0x2a0   :  { %3431 = vperm.xlu1 %8272, %v9993_v10   ;;  %v10052_v40 = vpop.permute.xlu1 %3065 }
 0x2a1   :  { %15541 = vst [vmem:[#allocation78_spill] sm:$0xff] %v10052_v40 }
 0x2a4   :  { %3437 = vperm.xlu1 %8272, %v9999_v55   ;;  %v10055_v21 = vpop.permute.xlu1 %3068 }
 0x2a5   :  { %15542 = vst [vmem:[#allocation79_spill] sm:$0xff] %v10055_v21  ;;  %v10073_v21 = vld [vmem:[%s15232_s6] ss:$0 sm:$0xff] }
 0x2a8   :  { %8273 = vset.pattern.permute.xlu1 %v15543_v2  ;;  %v10058_v16 = vpop.permute.xlu1 %3074 }
 0x2a9   :  { %15544 = vst [vmem:[#allocation80_spill] sm:$0xff] %v10058_v16  ;;  %3507 = vperm.xlu1 %8273, %v9755_v34  }
 0x2ac   :  { %v10061_v63 = vpop.permute.xlu1 %3080 }
 0x2ad   :  { %15545 = vst [vmem:[#allocation81_spill] sm:$0xff] %v10061_v63  ;;  %3513 = vperm.xlu1 %8273, %v9928_v4  }
 0x2b0   :  { %v10064_v45 = vpop.permute.xlu1 %3086 }
 0x2b1   :  { %15546 = vst [vmem:[#allocation82_spill] sm:$0xff] %v10064_v45  ;;  %3516 = vperm.xlu1 %8273, %v9771_v3  }
 0x2b4   :  { %v10067_v5 = vpop.permute.xlu1 %3092 }
 0x2b5   :  { %15547 = vst [vmem:[#allocation83_spill] sm:$0xff] %v10067_v5  ;;  %3522 = vperm.xlu1 %8273, %v9781_v19  }
 0x2b7   :  { %v7772_v40 = vpop.f32.mrb[16].mxu1 }
 0x2b8   :  { %v10075_v16 = vpop.permute.xlu1 %3098  ;;  %v10079_v63 = vadd.f32 %v7772_v40, %v10073_v21  ;;  %v1937_v45 = vpop.f32.mrb[17].mxu1 }
 0x2b9   :  { %15548 = vst [vmem:[#allocation84_spill] sm:$0xff] %v10075_v16  ;;  %3528 = vperm.xlu1 %8273, %v9791_v18   ;;  %v7773_v49 = vpop.f32.mrb[18].mxu1  ;;  %v10082_v27 = vadd.f32 %v10073_v21, %v1937_v45  ;;  %v10091_v16 = vpop.permute.xlu0 %2691 }
 0x2ba   :  { %v10084_v5 = vpop.f32.mrb[19].mxu1  ;;  %v2002_v47 = vmul.f32 %v10079_v63, %v10079_v63  ;;  %15550 = vst [vmem:[#allocation86_spill] sm:$0xff] %v10091_v16  ;;  %v10094_v40 = vadd.f32 %v7773_v49, %v10073_v21 }
 0x2bb   :  { %v2000_v61 = vmul.f32 %v10082_v27, %v10082_v27 }
 0x2bc   :  { %v10088_v25 = vpop.permute.xlu1 %3104  ;;  %2020 = vadd.xlane.f32.xlu0 %v2002_v47  ;;  %v2003_v49 = vmul.f32 %v10094_v40, %v10094_v40 }
 0x2bd   :  { %15549 = vst [vmem:[#allocation85_spill] sm:$0xff] %v10088_v25  ;;  %3534 = vperm.xlu1 %8273, %v9801_v13   ;;  %v10110_v20 = vpop.permute.xlu0 %2700 }
 0x2be   :  { %15552 = vst [vmem:[#allocation88_spill] sm:$0xff] %v10110_v20 }
 0x2bf   :  { %v10098_v45 = vpop.f32.mrb[20].mxu1 }
 0x2c0   :  { %v10103_v33 = vpop.f32.mrb[21].mxu1  ;;  %2016 = vadd.xlane.f32.xlu0 %v2000_v61 }
 0x2c1   :  { %3540 = vperm.xlu1 %8273, %v9812_v51   ;;  %v10101_v23 = vpop.permute.xlu1 %3174  ;;  %v7777_v25 = vpop.f32.mrb[22].mxu1 }
 0x2c2   :  { %15551 = vst [vmem:[#allocation87_spill] sm:$0xff] %v10101_v23  ;;  %v10106_v47 = vadd.f32 %v7777_v25, %v10073_v21  ;;  %v1956_v16 = vpop.f32.mrb[23].mxu1  ;;  %v10123_v56 = vpop.permute.xlu0 %2706 }
 0x2c3   :  { %v10116_v23 = vadd.f32 %v10073_v21, %v1956_v16  ;;  %15555 = vst [vmem:[#allocation91_spill] sm:$0xff] %v10123_v56 }
 0x2c4   :  { %2022 = vadd.xlane.f32.xlu0 %v2003_v49  ;;  %v2007_v61 = vmul.f32 %v10106_v47, %v10106_v47 }
 0x2c5   :  { %3546 = vperm.xlu1 %8273, %v9819_v31   ;;  %v10113_v6 = vpop.permute.xlu1 %3177  ;;  %v2005_v20 = vmul.f32 %v10116_v23, %v10116_v23 }
 0x2c6   :  { %15553 = vst [vmem:[#allocation89_spill] sm:$0xff] %v10113_v6  ;;  %v10131_v16 = vpop.permute.xlu0 %2712 }
 0x2c7   :  { %15558 = vst [vmem:[#allocation93_spill] sm:$0xff] %v10131_v16 }
 0x2c8   :  { %2030 = vadd.xlane.f32.xlu0 %v2007_v61 }
 0x2c9   :  { %3552 = vperm.xlu1 %8273, %v9826_v38   ;;  %v10121_v25 = vpop.permute.xlu1 %3183 }
 0x2ca   :  { %15554 = vst [vmem:[#allocation90_spill] sm:$0xff] %v10121_v25  ;;  %v10139_v61 = vpop.permute.xlu0 %2718 }
 0x2cb   :  { %15561 = vst [vmem:[#allocation96_spill] sm:$0xff] %v10139_v61 }
 0x2cc   :  { %2026 = vadd.xlane.f32.xlu0 %v2005_v20 }
 0x2cd   :  { %8274 = vset.pattern.permute.xlu1 %v15556_v15  ;;  %v10128_v6 = vpop.permute.xlu1 %3189 }
 0x2ce   :  { %15557 = vst [vmem:[#allocation92_spill] sm:$0xff] %v10128_v6  ;;  %3622 = vperm.xlu1 %8274, %v9955_v11   ;;  %v10144_v6 = vpop.permute.xlu0 %2724 }
 0x2cf   :  { %15563 = vst [vmem:[#allocation98_spill] sm:$0xff] %v10144_v6  ;;  %v15570_v6 = vmov 6  }
 0x2d1   :  { %v10133_v49 = vpop.permute.xlu1 %3195 }
 0x2d2   :  { %15559 = vst [vmem:[#allocation94_spill] sm:$0xff] %v10133_v49  ;;  %3625 = vperm.xlu1 %8274, %v9928_v4   ;;  %v10152_v16 = vpop.permute.xlu0 %2730 }
 0x2d3   :  { %15566 = vst [vmem:[#allocation101_spill] sm:$0xff] %v10152_v16 }
 0x2d5   :  { %v10136_v25 = vpop.permute.xlu1 %3201 }
 0x2d6   :  { %15560 = vst [vmem:[#allocation95_spill] sm:$0xff] %v10136_v25  ;;  %3631 = vperm.xlu1 %8274, %v9965_v26   ;;  %v10157_v61 = vpop.permute.xlu0 %2736 }
 0x2d7   :  { %15568 = vst [vmem:[#allocation103_spill] sm:$0xff] %v10157_v61 }
 0x2d9   :  { %v10141_v56 = vpop.permute.xlu1 %3207 }
 0x2da   :  { %15562 = vst [vmem:[#allocation97_spill] sm:$0xff] %v10141_v56  ;;  %3637 = vperm.xlu1 %8274, %v9971_v14   ;;  %v10165_v43 = vpop.permute.xlu0 %3619 }
 0x2db   :  { %15572 = vst [vmem:[#allocation106_spill] sm:$0xff] %v10165_v43 }
 0x2dd   :  { %v10146_v20 = vpop.permute.xlu1 %3213 }
 0x2de   :  { %15564 = vst [vmem:[#allocation99_spill] sm:$0xff] %v10146_v20  ;;  %3643 = vperm.xlu1 %8274, %v9977_v8  }
 0x2e2   :  { %3649 = vperm.xlu1 %8274, %v9985_v60   ;;  %v10150_v49 = vpop.permute.xlu1 %3283 }
 0x2e3   :  { %15565 = vst [vmem:[#allocation100_spill] sm:$0xff] %v10150_v49 }
 0x2e6   :  { %3655 = vperm.xlu1 %8274, %v9993_v10   ;;  %v10155_v25 = vpop.permute.xlu1 %3289 }
 0x2e7   :  { %15567 = vst [vmem:[#allocation102_spill] sm:$0xff] %v10155_v25 }
 0x2ea   :  { %3661 = vperm.xlu1 %8274, %v9999_v55   ;;  %v10160_v56 = vpop.permute.xlu1 %3292 }
 0x2eb   :  { %15569 = vst [vmem:[#allocation104_spill] sm:$0xff] %v10160_v56  ;;  %v10174_v56 = vpop.permute.xlu0 %3628 }
 0x2ec   :  { %15574 = vst [vmem:[#allocation108_spill] sm:$0xff] %v10174_v56 }
 0x2ee   :  { %8276 = vset.pattern.permute.xlu1 %v15570_v6  ;;  %v10163_v20 = vpop.permute.xlu1 %3298 }
 0x2ef   :  { %15571 = vst [vmem:[#allocation105_spill] sm:$0xff] %v10163_v20  ;;  %3731 = vperm.xlu1 %8276, %v9755_v34  }
 0x2f0   :  { %v7780_v41 = vpop.f32.mrb[24].mxu1 }
 0x2f1   :  { %v1969_v16 = vpop.f32.mrb[25].mxu1 }
 0x2f2   :  { %v10168_v52 = vpop.permute.xlu1 %3304  ;;  %v7781_v37 = vpop.f32.mrb[26].mxu1 }
 0x2f3   :  { %15573 = vst [vmem:[#allocation107_spill] sm:$0xff] %v10168_v52  ;;  %3737 = vperm.xlu1 %8276, %v9928_v4   ;;  %v10172_v25 = vadd.f32 %v7781_v37, %v10073_v21  ;;  %v1972_v61 = vpop.f32.mrb[27].mxu1  ;;  %v10188_v37 = vpop.permute.xlu0 %3634 }
 0x2f4   :  { %v10177_v32 = vadd.f32 %v10073_v21, %v1972_v61  ;;  %15577 = vst [vmem:[#allocation111_spill] sm:$0xff] %v10188_v37 }
 0x2f5   :  { %v2011_v20 = vmul.f32 %v10172_v25, %v10172_v25 }
 0x2f6   :  { %v10181_v42 = vpop.permute.xlu1 %3310  ;;  %v2009_v52 = vmul.f32 %v10177_v32, %v10177_v32 }
 0x2f7   :  { %15575 = vst [vmem:[#allocation109_spill] sm:$0xff] %v10181_v42  ;;  %3740 = vperm.xlu1 %8276, %v9771_v3   ;;  %2038 = vadd.xlane.f32.xlu0 %v2011_v20  ;;  %v10193_v56 = vpop.permute.xlu0 %3640 }
 0x2f8   :  { %15579 = vst [vmem:[#allocation113_spill] sm:$0xff] %v10193_v56 }
 0x2fa   :  { %v10186_v30 = vpop.permute.xlu1 %3316 }
 0x2fb   :  { %15576 = vst [vmem:[#allocation110_spill] sm:$0xff] %v10186_v30  ;;  %3746 = vperm.xlu1 %8276, %v9781_v19   ;;  %2034 = vadd.xlane.f32.xlu0 %v2009_v52  ;;  %v10197_v42 = vpop.permute.xlu0 %3646 }
 0x2fc   :  { %15581 = vst [vmem:[#allocation115_spill] sm:$0xff] %v10197_v42 }
 0x2fe   :  { %v10191_v61 = vpop.permute.xlu1 %3322 }
 0x2ff   :  { %15578 = vst [vmem:[#allocation112_spill] sm:$0xff] %v10191_v61  ;;  %v10203_v44 = vpop.permute.xlu0 %3652 }
 0x300   :  { %15584 = vst [vmem:[#allocation118_spill] sm:$0xff] %v10203_v44  ;;  %v10255_v44 = vadd.f32 %v10073_v21, %v1969_v16 }
 0x302   :  { %v10195_v9 = vpop.permute.xlu1 %3328 }
 0x303   :  { %15580 = vst [vmem:[#allocation114_spill] sm:$0xff] %v10195_v9  ;;  %v10208_v37 = vpop.permute.xlu0 %3658 }
 0x304   :  { %15586 = vst [vmem:[#allocation120_spill] sm:$0xff] %v10208_v37 }
 0x307   :  { %v10199_v50 = vpop.permute.xlu1 %3398  ;;  %v10215_v9 = vpop.permute.xlu0 %3664 }
 0x308   :  { %15582 = vst [vmem:[#allocation116_spill] sm:$0xff] %v10199_v50  ;;  %15589 = vst [vmem:[#allocation123_spill] sm:$0xff] %v10215_v9  ;;  %v10219_v50 = vadd.f32 %v10073_v21, %v10084_v5  ;;  %v10237_v9 = vadd.f32 %v10073_v21, %v10103_v33 }
 0x30b   :  { %v10201_v20 = vpop.permute.xlu1 %3401 }
 0x30c   :  { %15583 = vst [vmem:[#allocation117_spill] sm:$0xff] %v10201_v20  ;;  %v10222_v20 = vpop.permute.xlu0 %2915 }
 0x30d   :  { %15590 = vst [vmem:[#allocation124_spill] sm:$0xff] %v10222_v20 }
 0x30f   :  { %v10205_v30 = vpop.permute.xlu1 %3407 }
 0x310   :  { %15585 = vst [vmem:[#allocation119_spill] sm:$0xff] %v10205_v30  ;;  %v2001_v30 = vmul.f32 %v10219_v50, %v10219_v50  ;;  %v10240_v20 = vpop.permute.xlu0 %2924 }
 0x311   :  { %3843 = vperm.xlu0 %8275, %v9755_v34   ;;  %15592 = vst [vmem:[#allocation126_spill] sm:$0xff] %v10240_v20 }
 0x313   :  { %v10210_v52 = vpop.permute.xlu1 %3413 }
 0x314   :  { %15587 = vst [vmem:[#allocation121_spill] sm:$0xff] %v10210_v52  ;;  %v10228_v52 = vadd.f32 %v10098_v45, %v10073_v21  ;;  %v2004_v45 = vmul.f32 %v10237_v9, %v10237_v9 }
 0x315   :  { %3852 = vperm.xlu0 %8275, %v9771_v3  }
 0x316   :  { %v2006_v5 = vmul.f32 %v10228_v52, %v10228_v52 }
 0x317   :  { %v10213_v61 = vpop.permute.xlu1 %3419 }
 0x318   :  { %15588 = vst [vmem:[#allocation122_spill] sm:$0xff] %v10213_v61 }
 0x319   :  { %3858 = vperm.xlu0 %8275, %v9781_v19  }
 0x31b   :  { %v10231_v61 = vpop.permute.xlu1 %3425 }
 0x31c   :  { %15591 = vst [vmem:[#allocation125_spill] sm:$0xff] %v10231_v61  ;;  %v10247_v61 = vadd.f32 %v7780_v41, %v10073_v21  ;;  %v2008_v41 = vmul.f32 %v10255_v44, %v10255_v44 }
 0x31d   :  { %3864 = vperm.xlu0 %8275, %v9791_v18  }
 0x31e   :  { %v2010_v33 = vmul.f32 %v10247_v61, %v10247_v61 }
 0x31f   :  { %2018 = vadd.xlane.f32.xlu1 %v2001_v30  ;;  %v10242_v37 = vpop.permute.xlu1 %3431  ;;  %v10250_v30 = vpop.permute.xlu0 %2930 }
 0x320   :  { %15593 = vst [vmem:[#allocation127_spill] sm:$0xff] %v10242_v37  ;;  %15594 = vst [vmem:[#allocation128_spill] sm:$0xff] %v10250_v30 }
 0x321   :  { %3870 = vperm.xlu0 %8275, %v9801_v13  }
 0x323   :  { %2028 = vadd.xlane.f32.xlu1 %v2006_v5  ;;  %v10258_v5 = vpop.permute.xlu1 %3437  ;;  %v10271_v30 = vpop.permute.xlu0 %2936 }
 0x324   :  { %15595 = vst [vmem:[#allocation129_spill] sm:$0xff] %v10258_v5  ;;  %15596 = vst [vmem:[#allocation130_spill] sm:$0xff] %v10271_v30  ;;  %v10289_v30 = vadd.s32 4294967040, %v9660_v12  ;;  %v10310_v12 = vld [vmem:[%s15229_s1 + $0x30] sm:$0xff] }
 0x325   :  { %3876 = vperm.xlu0 %8275, %v9812_v51  }
 0x327   :  { %2024 = vadd.xlane.f32.xlu1 %v2004_v45  ;;  %v10266_v45 = vld [vmem:[%s15229_s1] sm:$0xff] }
 0x328   :  { %v10269_v37 = vadd.s32 4294967040, %v10266_v45  ;;  %v10278_v42 = vpop.permute.xlu1 %3507 }
 0x329   :  { %3882 = vperm.xlu0 %8275, %v9819_v31   ;;  %15597 = vst [vmem:[#allocation131_spill] sm:$0xff] %v10278_v42 }
 0x32b   :  { %2036 = vadd.xlane.f32.xlu1 %v2010_v33 }
 0x32c   :  { %v10304_v17 = vpop.permute.xlu1 %3513 }
 0x32d   :  { %3888 = vperm.xlu0 %8275, %v9826_v38   ;;  %15599 = vst [vmem:[#allocation133_spill] sm:$0xff] %v10304_v17 }
 0x32e   :  { %v7784_v16 = vpop.f32.mrb[28].mxu1 }
 0x32f   :  { %v10274_v20 = vadd.f32 %v7784_v16, %v10073_v21  ;;  %v1985_v33 = vpop.f32.mrb[29].mxu1  ;;  %2032 = vadd.xlane.f32.xlu1 %v2008_v41  ;;  %v10291_v16 = vpop.permute.xlu0 %2942 }
 0x330   :  { %v10276_v5 = vpop.f32.mrb[30].mxu1  ;;  %v10283_v1 = vadd.f32 %v10073_v21, %v1985_v33  ;;  %15598 = vst [vmem:[#allocation132_spill] sm:$0xff] %v10291_v16  ;;  %v10299_v33 = vld [vmem:[%s15229_s1 + $0x18] sm:$0xff]  ;;  %v10317_v54 = vpop.permute.xlu1 %3516 }
 0x331   :  { %v2014_v56 = vmul.f32 %v10274_v20, %v10274_v20  ;;  %v10285_v58 = vpop.f32.mrb[31].mxu1  ;;  %5061 = vperm.xlu0 %8275, %v10269_v37   ;;  %v10302_v22 = vadd.s32 4294967040, %v10299_v33  ;;  %15602 = vst [vmem:[#allocation136_spill] sm:$0xff] %v10317_v54 }
 0x332   :  { %v2012_v41 = vmul.f32 %v10283_v1, %v10283_v1 }
 0x333   :  { %2044 = vadd.xlane.f32.xlu1 %v2014_v56  ;;  %v10313_v56 = vadd.s32 4294967040, %v10310_v12  ;;  %v10315_v16 = vpop.permute.xlu0 %2948 }
 0x334   :  { %15601 = vst [vmem:[#allocation135_spill] sm:$0xff] %v10315_v16  ;;  %v10334_v16 = vld [vmem:[%s15229_s1 + $0x48] sm:$0xff]  ;;  %v10339_v57 = vpop.permute.xlu1 %3522 }
 0x335   :  { %5064 = vperm.xlu0 %8275, %v10289_v30   ;;  %15600 = vst [vmem:[#allocation134_spill] sm:$0xff] %v10313_v56  ;;  %v10337_v54 = vadd.s32 4294967040, %v10334_v16  ;;  %15605 = vst [vmem:[#allocation139_spill] sm:$0xff] %v10339_v57 }
 0x337   :  { %2040 = vadd.xlane.f32.xlu1 %v2012_v41  ;;  %v10323_v41 = vld [vmem:[%s15229_s1 + $0x38] sm:$0xff]  ;;  %v10328_v46 = vpop.permute.xlu0 %2954 }
 0x338   :  { %v10326_v17 = vadd.s32 4294967040, %v10323_v41  ;;  %15604 = vst [vmem:[#allocation138_spill] sm:$0xff] %v10328_v46  ;;  %v10344_v28 = vpop.permute.xlu1 %3528  ;;  %v10351_v46 = vld [vmem:[%s15229_s1 + $0x8] sm:$0xff] }
 0x339   :  { %5070 = vperm.xlu0 %8275, %v10302_v22   ;;  %15607 = vst [vmem:[#allocation141_spill] sm:$0xff] %v10344_v28  ;;  %v10360_v28 = vld [vmem:[%s15229_s1 + $0x20] sm:$0xff] }
 0x33a   :  { %15603 = vst [vmem:[#allocation137_spill] sm:$0xff] %v10326_v17  ;;  %15609 = vst [vmem:[#allocation143_spill] sm:$0xff] %v10360_v28 }
 0x33b   :  { %v10342_v35 = vpop.permute.xlu0 %2960 }
 0x33c   :  { %15606 = vst [vmem:[#allocation140_spill] sm:$0xff] %v10342_v35  ;;  %v10355_v57 = vpop.permute.xlu1 %3534 }
 0x33d   :  { %5079 = vperm.xlu0 %8275, %v10313_v56   ;;  %15608 = vst [vmem:[#allocation142_spill] sm:$0xff] %v10355_v57 }
 0x340   :  { %v10365_v43 = vpop.permute.xlu1 %3540 }
 0x341   :  { %5082 = vperm.xlu0 %8275, %v10326_v17   ;;  %15610 = vst [vmem:[#allocation144_spill] sm:$0xff] %v10365_v43 }
 0x345   :  { %5088 = vperm.xlu0 %8275, %v10337_v54  }
 0x348   :  { %3752 = vperm.xlu1 %8276, %v9791_v18  }
 0x349   :  { %8312 = vset.pattern.permute.xlu0 %v15543_v2  ;;  %v2021_v36 = vpop.xlane.xlu0 %2020 }
 0x34a   :  { %2582 = vperm.xlu0 %8312, %v10351_v46   ;;  %v2050_v24 = vmax.f32 %v2021_v36, 1e-24 }
 0x34c   :  { %3758 = vperm.xlu1 %8276, %v9801_v13   ;;  %8444 = vrsqrt.f32 %v2050_v24  ;;  %v10371_v24 = vld [vmem:[%s15229_s1 + $0x40] sm:$0xff] }
 0x34d   :  { %v2017_v35 = vpop.xlane.xlu0 %2016 }
 0x34e   :  { %2591 = vperm.xlu0 %8312, %v10360_v28   ;;  %v2048_v59 = vmax.f32 %v2017_v35, 1e-24 }
 0x350   :  { %3764 = vperm.xlu1 %8276, %v9812_v51   ;;  %8446 = vrsqrt.f32 %v2048_v59 }
 0x351   :  { %v2023_v36 = vpop.xlane.xlu0 %2022 }
 0x352   :  { %2597 = vperm.xlu0 %8312, %v10310_v12   ;;  %v2051_v48 = vmax.f32 %v2023_v36, 1e-24  ;;  %v10376_v36 = vpop.permute.xlu1 %3546 }
 0x353   :  { %15611 = vst [vmem:[#allocation145_spill] sm:$0xff] %v10376_v36 }
 0x354   :  { %3770 = vperm.xlu1 %8276, %v9819_v31   ;;  %8448 = vrsqrt.f32 %v2051_v48  ;;  %v10381_v48 = vld [vmem:[%s15229_s1 + $0x50] sm:$0xff] }
 0x355   :  { %v2031_v35 = vpop.xlane.xlu0 %2030 }
 0x356   :  { %2603 = vperm.xlu0 %8312, %v10371_v24   ;;  %v8445_v57 = vpop.eup %8444  ;;  %v2055_v42 = vmax.f32 %v2031_v35, 1e-24 }
 0x357   :  { %v2082_v59 = vmul.f32 %v8445_v57, %v10079_v63 }
 0x358   :  { %3776 = vperm.xlu1 %8276, %v9826_v38   ;;  %8450 = vrsqrt.f32 %v2055_v42  ;;  %v10393_v42 = vld [vmem:[%s15229_s1 + $0x60] sm:$0xff] }
 0x359   :  { %2098 = vst [vmem:[%s15233_s11 + $0x10] sm:$0xff] %v2082_v59  ;;  %v2027_v43 = vpop.xlane.xlu0 %2026 }
 0x35a   :  { %2609 = vperm.xlu0 %8312, %v10381_v48   ;;  %v8447_v35 = vpop.eup %8446  ;;  %v2053_v49 = vmax.f32 %v2027_v43, 1e-24  ;;  %v10399_v43 = vpop.permute.xlu1 %3552 }
 0x35b   :  { %v2080_v57 = vmul.f32 %v8447_v35, %v10082_v27  ;;  %15612 = vst [vmem:[#allocation146_spill] sm:$0xff] %v10399_v43  ;;  %v10406_v27 = vld [vmem:[%s15229_s1 + $0x70] sm:$0xff] }
 0x35c   :  { %8277 = vset.pattern.permute.xlu1 %v15495_v39  ;;  %8452 = vrsqrt.f32 %v2053_v49 }
 0x35d   :  { %3846 = vperm.xlu1 %8277, %v9955_v11   ;;  %2096 = vst [vmem:[%s15233_s11] sm:$0xff] %v2080_v57 }
 0x35e   :  { %2615 = vperm.xlu0 %8312, %v10393_v42   ;;  %v8449_v63 = vpop.eup %8448  ;;  %v10414_v57 = vpop.permute.xlu1 %3622 }
 0x35f   :  { %v2083_v59 = vmul.f32 %v8449_v63, %v10094_v40  ;;  %15613 = vst [vmem:[#allocation147_spill] sm:$0xff] %v10414_v57  ;;  %v10465_v57 = vadd.s32 4294967040, %v10371_v24 }
 0x361   :  { %3849 = vperm.xlu1 %8277, %v9928_v4   ;;  %2099 = vst [vmem:[%s15233_s11 + $0x18] sm:$0xff] %v2083_v59 }
 0x362   :  { %2621 = vperm.xlu0 %8312, %v10406_v27   ;;  %v8451_v49 = vpop.eup %8450 }
 0x363   :  { %v2087_v35 = vmul.f32 %v8451_v49, %v10106_v47  ;;  %v10426_v47 = vpop.permute.xlu1 %3625  ;;  %v8519_v49 = vld [vmem:[%s15229_s1 + $0x10] sm:$0xff] }
 0x364   :  { %15614 = vst [vmem:[#allocation148_spill] sm:$0xff] %v10426_v47  ;;  %v10476_v47 = vadd.s32 4294966912, %v8519_v49 }
 0x365   :  { %3855 = vperm.xlu1 %8277, %v9965_v26   ;;  %2103 = vst [vmem:[%s15233_s11 + $0x38] sm:$0xff] %v2087_v35  ;;  %v10447_v35 = vadd.s32 4294967040, %v8519_v49  ;;  %v10494_v49 = vadd.s32 4294966912, %v10299_v33 }
 0x366   :  { %3510 = vperm.xlu0 %8312, %v9955_v11   ;;  %v8453_v4 = vpop.eup %8452  ;;  %15621 = vst [vmem:[#allocation155_spill] sm:$0xff] %v10476_v47 }
 0x367   :  { %v2085_v40 = vmul.f32 %v8453_v4, %v10116_v23  ;;  %v10431_v63 = vpop.permute.xlu1 %3631 }
 0x368   :  { %15615 = vst [vmem:[#allocation149_spill] sm:$0xff] %v10431_v63 }
 0x369   :  { %3861 = vperm.xlu1 %8277, %v9971_v14   ;;  %2101 = vst [vmem:[%s15233_s11 + $0x28] sm:$0xff] %v2085_v40 }
 0x36a   :  { %3519 = vperm.xlu0 %8312, %v9965_v26  }
 0x36b   :  { %v10436_v23 = vpop.permute.xlu1 %3637 }
 0x36c   :  { %15616 = vst [vmem:[#allocation150_spill] sm:$0xff] %v10436_v23 }
 0x36d   :  { %3867 = vperm.xlu1 %8277, %v9977_v8  }
 0x36e   :  { %3525 = vperm.xlu0 %8312, %v9971_v14  }
 0x36f   :  { %v10441_v59 = vpop.permute.xlu1 %3643 }
 0x370   :  { %15617 = vst [vmem:[#allocation151_spill] sm:$0xff] %v10441_v59  ;;  %v10458_v59 = vld [vmem:[%s15229_s1 + $0x28] sm:$0xff] }
 0x371   :  { %3873 = vperm.xlu1 %8277, %v9985_v60   ;;  %v10461_v63 = vadd.s32 4294967040, %v10458_v59 }
 0x372   :  { %3531 = vperm.xlu0 %8312, %v9977_v8  }
 0x373   :  { %v10452_v4 = vpop.permute.xlu1 %3649 }
 0x374   :  { %15618 = vst [vmem:[#allocation152_spill] sm:$0xff] %v10452_v4 }
 0x375   :  { %3879 = vperm.xlu1 %8277, %v9993_v10  }
 0x376   :  { %3537 = vperm.xlu0 %8312, %v9985_v60  }
 0x377   :  { %v10467_v36 = vpop.permute.xlu1 %3655 }
 0x378   :  { %15619 = vst [vmem:[#allocation153_spill] sm:$0xff] %v10467_v36  ;;  %v10486_v36 = vld [vmem:[%s15229_s1 + $0x58] sm:$0xff] }
 0x379   :  { %3885 = vperm.xlu1 %8277, %v9999_v55  }
 0x37a   :  { %3543 = vperm.xlu0 %8312, %v9993_v10  }
 0x37b   :  { %v10478_v0 = vpop.permute.xlu1 %3661 }
 0x37c   :  { %15622 = vst [vmem:[#allocation156_spill] sm:$0xff] %v10478_v0 }
 0x37d   :  { %8278 = vset.pattern.permute.xlu1 %v15504_v62 }
 0x37e   :  { %4277 = vperm.xlu1 %8278, %v10269_v37   ;;  %3549 = vperm.xlu0 %8312, %v9999_v55  }
 0x382   :  { %4283 = vperm.xlu1 %8278, %v10447_v35   ;;  %4731 = vperm.xlu0 %8312, %v10447_v35  }
 0x384   :  { %v2039_v40 = vpop.xlane.xlu0 %2038 }
 0x385   :  { %v2059_v23 = vmax.f32 %v2039_v40, 1e-24  ;;  %v10472_v40 = vadd.s32 4294966912, %v10351_v46 }
 0x386   :  { %4286 = vperm.xlu1 %8278, %v10302_v22   ;;  %4746 = vperm.xlu0 %8312, %v10326_v17  }
 0x387   :  { %8454 = vrsqrt.f32 %v2059_v23  ;;  %15620 = vst [vmem:[#allocation154_spill] sm:$0xff] %v10472_v40 }
 0x388   :  { %v2035_v43 = vpop.xlane.xlu0 %2034 }
 0x389   :  { %v2057_v4 = vmax.f32 %v2035_v43, 1e-24 }
 0x38a   :  { %4292 = vperm.xlu1 %8278, %v10461_v63   ;;  %4749 = vperm.xlu0 %8312, %v10465_v57  }
 0x38b   :  { %8456 = vrsqrt.f32 %v2057_v4  ;;  %v10489_v4 = vadd.s32 4294967040, %v10486_v36 }
 0x38e   :  { %4298 = vperm.xlu1 %8278, %v10326_v17   ;;  %5817 = vperm.xlu0 %8312, %v10472_v40   ;;  %v10501_v40 = vpop.permute.xlu1 %3731 }
 0x38f   :  { %15625 = vst [vmem:[#allocation159_spill] sm:$0xff] %v10501_v40  ;;  %v10526_v40 = vld [vmem:[%s15229_s1 + $0x78] sm:$0xff] }
 0x390   :  { %v10480_v23 = vpop.permute.xlu0 %3843 }
 0x391   :  { %15623 = vst [vmem:[#allocation157_spill] sm:$0xff] %v10480_v23  ;;  %v8455_v43 = vpop.eup %8454 }
 0x392   :  { %4304 = vperm.xlu1 %8278, %v10337_v54   ;;  %v2091_v38 = vmul.f32 %v8455_v43, %v10172_v25  ;;  %5820 = vperm.xlu0 %8312, %v10476_v47   ;;  %v10507_v25 = vld [vmem:[%s15229_s1 + $0x68] sm:$0xff] }
 0x393   :  { %v10510_v43 = vadd.s32 4294967040, %v10507_v25 }
 0x394   :  { %2107 = vst [vmem:[%s15233_s11 + $0x58] sm:$0xff] %v2091_v38  ;;  %v10499_v0 = vpop.permute.xlu0 %3852  ;;  %v10515_v38 = vadd.s32 4294966912, %v10371_v24  ;;  %v10533_v24 = vadd.s32 4294966912, %v10334_v16 }
 0x395   :  { %15624 = vst [vmem:[#allocation158_spill] sm:$0xff] %v10499_v0  ;;  %v8457_v23 = vpop.eup %8456  ;;  %15626 = vst [vmem:[#allocation160_spill] sm:$0xff] %v10510_v43 }
 0x396   :  { %4310 = vperm.xlu1 %8278, %v10489_v4   ;;  %v2089_v47 = vmul.f32 %v8457_v23, %v10177_v32  ;;  %5823 = vperm.xlu0 %8312, %v10494_v49   ;;  %15627 = vst [vmem:[#allocation161_spill] sm:$0xff] %v10515_v38  ;;  %v10529_v32 = vadd.s32 4294967040, %v10526_v40  ;;  %15630 = vst [vmem:[#allocation164_spill] sm:$0xff] %v10533_v24  ;;  %v10535_v23 = vpop.permute.xlu1 %3737 }
 0x397   :  { %15631 = vst [vmem:[#allocation165_spill] sm:$0xff] %v10535_v23 }
 0x398   :  { %2105 = vst [vmem:[%s15233_s11 + $0x48] sm:$0xff] %v2089_v47  ;;  %v10520_v0 = vpop.permute.xlu0 %3858  ;;  %15629 = vst [vmem:[#allocation163_spill] sm:$0xff] %v10529_v32 }
 0x399   :  { %15628 = vst [vmem:[#allocation162_spill] sm:$0xff] %v10520_v0 }
 0x39a   :  { %4316 = vperm.xlu1 %8278, %v10510_v43   ;;  %5838 = vperm.xlu0 %8312, %v10515_v38   ;;  %v10543_v31 = vpop.permute.xlu1 %3740 }
 0x39b   :  { %15634 = vst [vmem:[#allocation168_spill] sm:$0xff] %v10543_v31 }
 0x39c   :  { %v10537_v47 = vpop.permute.xlu0 %3864 }
 0x39d   :  { %15632 = vst [vmem:[#allocation166_spill] sm:$0xff] %v10537_v47  ;;  %v10553_v47 = vadd.s32 4294967040, %v10360_v28 }
 0x39e   :  { %4322 = vperm.xlu1 %8278, %v10529_v32   ;;  %5841 = vperm.xlu0 %8312, %v10533_v24  }
 0x3a0   :  { %v10541_v0 = vpop.permute.xlu0 %3870 }
 0x3a1   :  { %15633 = vst [vmem:[#allocation167_spill] sm:$0xff] %v10541_v0  ;;  %v10556_v0 = vpop.permute.xlu1 %3746 }
 0x3a2   :  { %8279 = vset.pattern.permute.xlu1 %v15514_v53  ;;  %8378 = vset.pattern.permute.xlu0 %v15504_v62  ;;  %15636 = vst [vmem:[#allocation170_spill] sm:$0xff] %v10556_v0 }
 0x3a3   :  { %4392 = vperm.xlu1 %8279, %v10289_v30   ;;  %2134 = vperm.xlu0 %8378, %v10351_v46  }
 0x3a4   :  { %v10549_v38 = vpop.permute.xlu0 %3876 }
 0x3a5   :  { %15635 = vst [vmem:[#allocation169_spill] sm:$0xff] %v10549_v38 }
 0x3a7   :  { %4395 = vperm.xlu1 %8279, %v10447_v35   ;;  %2161 = vperm.xlu0 %8378, %v10381_v48  }
 0x3a8   :  { %v10558_v31 = vpop.permute.xlu0 %3882 }
 0x3a9   :  { %15637 = vst [vmem:[#allocation171_spill] sm:$0xff] %v10558_v31  ;;  %v10570_v31 = vadd.s32 4294967040, %v10381_v48 }
 0x3ab   :  { %4401 = vperm.xlu1 %8279, %v10553_v47   ;;  %2167 = vperm.xlu0 %8378, %v10393_v42  }
 0x3ac   :  { %v2019_v23 = vpop.xlane.xlu1 %2018  ;;  %v10562_v24 = vpop.permute.xlu0 %3888 }
 0x3ad   :  { %15638 = vst [vmem:[#allocation172_spill] sm:$0xff] %v10562_v24  ;;  %v2049_v46 = vmax.f32 %v2019_v23, 1e-24 }
 0x3af   :  { %8458 = vrsqrt.f32 %v2049_v46  ;;  %4407 = vperm.xlu1 %8279, %v10313_v56   ;;  %2173 = vperm.xlu0 %8378, %v10406_v27   ;;  %v10577_v46 = vadd.s32 4294967040, %v10393_v42 }
 0x3b0   :  { %v2029_v38 = vpop.xlane.xlu1 %2028  ;;  %v10566_v62 = vpop.permute.xlu0 %5061 }
 0x3b1   :  { %15639 = vst [vmem:[#allocation173_spill] sm:$0xff] %v10566_v62  ;;  %v2054_v28 = vmax.f32 %v2029_v38, 1e-24  ;;  %15641 = vst [vmem:[#allocation175_spill] sm:$0xff] %v10577_v46 }
 0x3b3   :  { %8460 = vrsqrt.f32 %v2054_v28  ;;  %4413 = vperm.xlu1 %8279, %v10465_v57   ;;  %3062 = vperm.xlu0 %8378, %v9955_v11  }
 0x3b4   :  { %v2025_v0 = vpop.xlane.xlu1 %2024  ;;  %v10573_v24 = vpop.permute.xlu0 %5064 }
 0x3b5   :  { %15640 = vst [vmem:[#allocation174_spill] sm:$0xff] %v10573_v24  ;;  %v2052_v23 = vmax.f32 %v2025_v0, 1e-24  ;;  %v10585_v0 = vadd.s32 4294967040, %v10406_v27 }
 0x3b7   :  { %8462 = vrsqrt.f32 %v2052_v23  ;;  %4419 = vperm.xlu1 %8279, %v10570_v31   ;;  %3071 = vperm.xlu0 %8378, %v9965_v26  }
 0x3b8   :  { %v2037_v28 = vpop.xlane.xlu1 %2036  ;;  %v10580_v38 = vpop.permute.xlu0 %5070 }
 0x3b9   :  { %15642 = vst [vmem:[#allocation176_spill] sm:$0xff] %v10580_v38  ;;  %v8459_v62 = vpop.eup %8458  ;;  %v2058_v48 = vmax.f32 %v2037_v28, 1e-24 }
 0x3ba   :  { %v2081_v32 = vmul.f32 %v8459_v62, %v10219_v50 }
 0x3bb   :  { %8464 = vrsqrt.f32 %v2058_v48  ;;  %4425 = vperm.xlu1 %8279, %v10577_v46   ;;  %3077 = vperm.xlu0 %8378, %v9971_v14  }
 0x3bc   :  { %2097 = vst [vmem:[%s15233_s11 + $0x8] sm:$0xff] %v2081_v32  ;;  %v2033_v23 = vpop.xlane.xlu1 %2032  ;;  %v10591_v24 = vpop.permute.xlu0 %5079 }
 0x3bd   :  { %15643 = vst [vmem:[#allocation177_spill] sm:$0xff] %v10591_v24  ;;  %v8461_v38 = vpop.eup %8460  ;;  %v2056_v26 = vmax.f32 %v2033_v23, 1e-24 }
 0x3be   :  { %v2086_v28 = vmul.f32 %v8461_v38, %v10228_v52 }
 0x3bf   :  { %8466 = vrsqrt.f32 %v2056_v26  ;;  %4431 = vperm.xlu1 %8279, %v10585_v0   ;;  %3083 = vperm.xlu0 %8378, %v9977_v8  }
 0x3c0   :  { %2102 = vst [vmem:[%s15233_s11 + $0x30] sm:$0xff] %v2086_v28  ;;  %v2045_v50 = vpop.xlane.xlu1 %2044  ;;  %v10599_v62 = vpop.permute.xlu0 %5082 }
 0x3c1   :  { %v8463_v32 = vpop.eup %8462  ;;  %v2062_v48 = vmax.f32 %v2045_v50, 1e-24 }
 0x3c2   :  { %v2084_v24 = vmul.f32 %v8463_v32, %v10237_v9 }
 0x3c3   :  { %8468 = vrsqrt.f32 %v2062_v48  ;;  %8280 = vset.pattern.permute.xlu1 %v15524_v29  ;;  %3089 = vperm.xlu0 %8378, %v9985_v60  }
 0x3c4   :  { %2100 = vst [vmem:[%s15233_s11 + $0x20] sm:$0xff] %v2084_v24  ;;  %4501 = vperm.xlu1 %8280, %v10269_v37   ;;  %v2041_v26 = vpop.xlane.xlu1 %2040  ;;  %v10608_v52 = vpop.permute.xlu0 %5088 }
 0x3c5   :  { %v8465_v38 = vpop.eup %8464  ;;  %v2060_v23 = vmax.f32 %v2041_v26, 1e-24 }
 0x3c6   :  { %v2090_v28 = vmul.f32 %v8465_v38, %v10247_v61 }
 0x3c7   :  { %8470 = vrsqrt.f32 %v2060_v23  ;;  %3095 = vperm.xlu0 %8378, %v9993_v10  }
 0x3c8   :  { %2106 = vst [vmem:[%s15233_s11 + $0x50] sm:$0xff] %v2090_v28  ;;  %4507 = vperm.xlu1 %8280, %v10447_v35   ;;  %v10616_v9 = vpop.permute.xlu1 %3752 }
 0x3c9   :  { %v8467_v24 = vpop.eup %8466  ;;  %v10618_v50 = vpop.permute.xlu0 %2582 }
 0x3ca   :  { %v2088_v32 = vmul.f32 %v8467_v24, %v10255_v44 }
 0x3cb   :  { %3101 = vperm.xlu0 %8378, %v9999_v55  }
 0x3cc   :  { %2104 = vst [vmem:[%s15233_s11 + $0x40] sm:$0xff] %v2088_v32  ;;  %4510 = vperm.xlu1 %8280, %v10302_v22   ;;  %v10626_v61 = vpop.permute.xlu1 %3758 }
 0x3cd   :  { %v8469_v48 = vpop.eup %8468  ;;  %v10628_v26 = vpop.permute.xlu0 %2591 }
 0x3ce   :  { %15644 = vst [vmem:[#allocation178_spill] sm:$0xff] %v10628_v26  ;;  %v2094_v38 = vmul.f32 %v8469_v48, %v10274_v20 }
 0x3cf   :  { %4280 = vperm.xlu0 %8378, %v10289_v30  }
 0x3d0   :  { %2110 = vst [vmem:[%s15233_s11 + $0x70] sm:$0xff] %v2094_v38  ;;  %4516 = vperm.xlu1 %8280, %v10461_v63   ;;  %v10636_v44 = vpop.permute.xlu1 %3764 }
 0x3d1   :  { %15645 = vst [vmem:[#allocation179_spill] sm:$0xff] %v10636_v44  ;;  %v8471_v23 = vpop.eup %8470  ;;  %v10638_v28 = vpop.permute.xlu0 %2597 }
 0x3d2   :  { %15646 = vst [vmem:[#allocation180_spill] sm:$0xff] %v10638_v28  ;;  %v2092_v24 = vmul.f32 %v8471_v23, %v10283_v1 }
 0x3d3   :  { %4289 = vperm.xlu0 %8378, %v10553_v47  }
 0x3d4   :  { %2108 = vst [vmem:[%s15233_s11 + $0x60] sm:$0xff] %v2092_v24  ;;  %4522 = vperm.xlu1 %8280, %v10326_v17   ;;  %v10646_v20 = vpop.permute.xlu1 %3770 }
 0x3d5   :  { %15647 = vst [vmem:[#allocation181_spill] sm:$0xff] %v10646_v20  ;;  %v10648_v32 = vpop.permute.xlu0 %2603 }
 0x3d6   :  { %15648 = vst [vmem:[#allocation182_spill] sm:$0xff] %v10648_v32 }
 0x3d7   :  { %4295 = vperm.xlu0 %8378, %v10313_v56  }
 0x3d8   :  { %4528 = vperm.xlu1 %8280, %v10337_v54   ;;  %v10652_v48 = vpop.permute.xlu1 %3776 }
 0x3d9   :  { %15649 = vst [vmem:[#allocation183_spill] sm:$0xff] %v10652_v48  ;;  %v10654_v38 = vpop.permute.xlu0 %2609 }
 0x3da   :  { %15650 = vst [vmem:[#allocation184_spill] sm:$0xff] %v10654_v38 }
 0x3db   :  { %4301 = vperm.xlu0 %8378, %v10465_v57  }
 0x3dc   :  { %4534 = vperm.xlu1 %8280, %v10489_v4   ;;  %v10658_v1 = vpop.permute.xlu1 %3846 }
 0x3dd   :  { %15651 = vst [vmem:[#allocation185_spill] sm:$0xff] %v10658_v1  ;;  %v10660_v23 = vpop.permute.xlu0 %2615 }
 0x3de   :  { %15652 = vst [vmem:[#allocation186_spill] sm:$0xff] %v10660_v23  ;;  %v10677_v23 = vadd.s32 4294966912, %v10266_v45 }
 0x3df   :  { %4307 = vperm.xlu0 %8378, %v10570_v31  }
 0x3e0   :  { %4540 = vperm.xlu1 %8280, %v10510_v43   ;;  %v10664_v24 = vpop.permute.xlu1 %3849 }
 0x3e1   :  { %v10666_v32 = vpop.permute.xlu0 %2621 }
 0x3e2   :  { %15653 = vst [vmem:[#allocation187_spill] sm:$0xff] %v10666_v32 }
 0x3e3   :  { %4313 = vperm.xlu0 %8378, %v10577_v46  }
 0x3e4   :  { %8281 = vset.pattern.permute.xlu1 %v15534_v7  ;;  %v10670_v38 = vpop.permute.xlu1 %3855 }
 0x3e5   :  { %15654 = vst [vmem:[#allocation188_spill] sm:$0xff] %v10670_v38  ;;  %4613 = vperm.xlu1 %8281, %v10269_v37   ;;  %v10673_v48 = vpop.permute.xlu0 %3510 }
 0x3e6   :  { %15655 = vst [vmem:[#allocation189_spill] sm:$0xff] %v10673_v48  ;;  %v10693_v48 = vadd.s32 4294966912, %v10310_v12  ;;  %v10712_v12 = vadd.s32 4294966912, %v10393_v42 }
 0x3e7   :  { %4319 = vperm.xlu0 %8378, %v10585_v0  }
 0x3e8   :  { %v10679_v1 = vpop.permute.xlu1 %3861  ;;  %15665 = vst [vmem:[#allocation199_spill] sm:$0xff] %v10712_v12 }
 0x3e9   :  { %15656 = vst [vmem:[#allocation190_spill] sm:$0xff] %v10679_v1  ;;  %8282 = vset.pattern.permute.xlu1 %v15543_v2  ;;  %v10682_v32 = vpop.permute.xlu0 %3519 }
 0x3ea   :  { %15657 = vst [vmem:[#allocation191_spill] sm:$0xff] %v10682_v32  ;;  %4725 = vperm.xlu1 %8282, %v10269_v37   ;;  %v10703_v32 = vadd.s32 4294966912, %v10486_v36 }
 0x3eb   :  { %5366 = vperm.xlu0 %8378, %v10677_v23  }
 0x3ec   :  { %v10686_v38 = vpop.permute.xlu1 %3867  ;;  %15662 = vst [vmem:[#allocation196_spill] sm:$0xff] %v10703_v32 }
 0x3ed   :  { %15658 = vst [vmem:[#allocation192_spill] sm:$0xff] %v10686_v38  ;;  %v10688_v28 = vpop.permute.xlu0 %3525 }
 0x3ee   :  { %15659 = vst [vmem:[#allocation193_spill] sm:$0xff] %v10688_v28  ;;  %4728 = vperm.xlu1 %8282, %v10289_v30  }
 0x3ef   :  { %5375 = vperm.xlu0 %8378, %v10494_v49  }
 0x3f0   :  { %v10695_v1 = vpop.permute.xlu1 %3873 }
 0x3f1   :  { %15660 = vst [vmem:[#allocation194_spill] sm:$0xff] %v10695_v1  ;;  %v10697_v20 = vpop.permute.xlu0 %3531 }
 0x3f2   :  { %15661 = vst [vmem:[#allocation195_spill] sm:$0xff] %v10697_v20  ;;  %8283 = vset.pattern.permute.xlu1 %v15556_v15 }
 0x3f3   :  { %4837 = vperm.xlu1 %8283, %v10269_v37   ;;  %5384 = vperm.xlu0 %8378, %v10693_v48  }
 0x3f4   :  { %v10705_v28 = vpop.permute.xlu1 %3879 }
 0x3f5   :  { %15663 = vst [vmem:[#allocation197_spill] sm:$0xff] %v10705_v28  ;;  %v10707_v38 = vpop.permute.xlu0 %3537 }
 0x3f6   :  { %15664 = vst [vmem:[#allocation198_spill] sm:$0xff] %v10707_v38 }
 0x3f7   :  { %4840 = vperm.xlu1 %8283, %v10289_v30   ;;  %5399 = vperm.xlu0 %8378, %v10703_v32  }
 0x3f8   :  { %v10714_v20 = vpop.permute.xlu1 %3885 }
 0x3f9   :  { %15666 = vst [vmem:[#allocation200_spill] sm:$0xff] %v10714_v20  ;;  %v10716_v1 = vpop.permute.xlu0 %3543 }
 0x3fa   :  { %15667 = vst [vmem:[#allocation201_spill] sm:$0xff] %v10716_v1 }
 0x3fb   :  { %8284 = vset.pattern.permute.xlu1 %v15570_v6  ;;  %5402 = vperm.xlu0 %8378, %v10712_v12  }
 0x3fc   :  { %4949 = vperm.xlu1 %8284, %v10269_v37  }
 0x3fd   :  { %v10721_v28 = vpop.permute.xlu1 %4277  ;;  %v10723_v38 = vpop.permute.xlu0 %3549 }
 0x3fe   :  { %15668 = vst [vmem:[#allocation202_spill] sm:$0xff] %v10721_v28  ;;  %15669 = vst [vmem:[#allocation203_spill] sm:$0xff] %v10723_v38 }
 0x3ff   :  { %8380 = vset.pattern.permute.xlu0 %v15514_v53 }
 0x400   :  { %8285 = vset.pattern.permute.xlu1 %v15543_v2  ;;  %2243 = vperm.xlu0 %8380, %v10266_v45  }
 0x401   :  { %4734 = vperm.xlu1 %8285, %v10302_v22   ;;  %v10729_v42 = vpop.permute.xlu1 %4283  ;;  %v10731_v32 = vpop.permute.xlu0 %4731 }
 0x402   :  { %15670 = vst [vmem:[#allocation204_spill] sm:$0xff] %v10729_v42  ;;  %15671 = vst [vmem:[#allocation205_spill] sm:$0xff] %v10731_v32 }
 0x404   :  { %2252 = vperm.xlu0 %8380, %v10299_v33  }
 0x405   :  { %8286 = vset.pattern.permute.xlu1 %v15534_v7  ;;  %v10735_v12 = vpop.permute.xlu1 %4286  ;;  %v10737_v28 = vpop.permute.xlu0 %4746 }
 0x406   :  { %15672 = vst [vmem:[#allocation206_spill] sm:$0xff] %v10735_v12  ;;  %15673 = vst [vmem:[#allocation207_spill] sm:$0xff] %v10737_v28  ;;  %4625 = vperm.xlu1 %8286, %v10553_v47  }
 0x408   :  { %2258 = vperm.xlu0 %8380, %v10458_v59  }
 0x409   :  { %v10741_v38 = vpop.permute.xlu1 %4292  ;;  %v10743_v1 = vpop.permute.xlu0 %4749 }
 0x40a   :  { %15674 = vst [vmem:[#allocation208_spill] sm:$0xff] %v10741_v38  ;;  %15675 = vst [vmem:[#allocation209_spill] sm:$0xff] %v10743_v1  ;;  %8287 = vset.pattern.permute.xlu1 %v15556_v15 }
 0x40b   :  { %4843 = vperm.xlu1 %8287, %v10447_v35  }
 0x40c   :  { %2264 = vperm.xlu0 %8380, %v10323_v41  }
 0x40d   :  { %v10748_v32 = vpop.permute.xlu1 %4298  ;;  %v10750_v42 = vpop.permute.xlu0 %5817 }
 0x40e   :  { %15676 = vst [vmem:[#allocation210_spill] sm:$0xff] %v10748_v32  ;;  %15677 = vst [vmem:[#allocation211_spill] sm:$0xff] %v10750_v42 }
 0x40f   :  { %8288 = vset.pattern.permute.xlu1 %v15534_v7 }
 0x410   :  { %4628 = vperm.xlu1 %8288, %v10461_v63   ;;  %2270 = vperm.xlu0 %8380, %v10334_v16  }
 0x411   :  { %v10755_v28 = vpop.permute.xlu1 %4304  ;;  %v10757_v38 = vpop.permute.xlu0 %5820 }
 0x412   :  { %15678 = vst [vmem:[#allocation212_spill] sm:$0xff] %v10755_v28  ;;  %15679 = vst [vmem:[#allocation213_spill] sm:$0xff] %v10757_v38 }
 0x414   :  { %8289 = vset.pattern.permute.xlu1 %v15556_v15  ;;  %2276 = vperm.xlu0 %8380, %v10486_v36  }
 0x415   :  { %4846 = vperm.xlu1 %8289, %v10302_v22   ;;  %v10762_v1 = vpop.permute.xlu1 %4310  ;;  %v10764_v32 = vpop.permute.xlu0 %5823 }
 0x416   :  { %15680 = vst [vmem:[#allocation214_spill] sm:$0xff] %v10762_v1  ;;  %15681 = vst [vmem:[#allocation215_spill] sm:$0xff] %v10764_v32 }
 0x418   :  { %2282 = vperm.xlu0 %8380, %v10507_v25  }
 0x419   :  { %8290 = vset.pattern.permute.xlu1 %v15543_v2  ;;  %v10768_v42 = vpop.permute.xlu1 %4316  ;;  %v10770_v12 = vpop.permute.xlu0 %5838 }
 0x41a   :  { %15682 = vst [vmem:[#allocation216_spill] sm:$0xff] %v10768_v42  ;;  %15683 = vst [vmem:[#allocation217_spill] sm:$0xff] %v10770_v12  ;;  %4737 = vperm.xlu1 %8290, %v10553_v47  }
 0x41c   :  { %2288 = vperm.xlu0 %8380, %v10526_v40  }
 0x41d   :  { %v10774_v38 = vpop.permute.xlu1 %4322  ;;  %v10776_v28 = vpop.permute.xlu0 %5841 }
 0x41e   :  { %15684 = vst [vmem:[#allocation218_spill] sm:$0xff] %v10774_v38  ;;  %15685 = vst [vmem:[#allocation219_spill] sm:$0xff] %v10776_v28  ;;  %4740 = vperm.xlu1 %8290, %v10461_v63  }
 0x420   :  { %3171 = vperm.xlu0 %8380, %v9755_v34  }
 0x422   :  { %8291 = vset.pattern.permute.xlu1 %v15570_v6  ;;  %v10781_v32 = vpop.permute.xlu1 %4392  ;;  %v10783_v1 = vpop.permute.xlu0 %2134 }
 0x423   :  { %15686 = vst [vmem:[#allocation220_spill] sm:$0xff] %v10781_v32  ;;  %15687 = vst [vmem:[#allocation221_spill] sm:$0xff] %v10783_v1  ;;  %4958 = vperm.xlu1 %8291, %v10302_v22  }
 0x424   :  { %3180 = vperm.xlu0 %8380, %v9771_v3  }
 0x426   :  { %v10787_v12 = vpop.permute.xlu1 %4395  ;;  %v10789_v42 = vpop.permute.xlu0 %2161 }
 0x427   :  { %15688 = vst [vmem:[#allocation222_spill] sm:$0xff] %v10787_v12  ;;  %15689 = vst [vmem:[#allocation223_spill] sm:$0xff] %v10789_v42  ;;  %8292 = vset.pattern.permute.xlu1 %v15556_v15 }
 0x428   :  { %4849 = vperm.xlu1 %8292, %v10553_v47   ;;  %3186 = vperm.xlu0 %8380, %v9781_v19  }
 0x42a   :  { %v10794_v28 = vpop.permute.xlu1 %4401  ;;  %v10796_v38 = vpop.permute.xlu0 %2167 }
 0x42b   :  { %15690 = vst [vmem:[#allocation224_spill] sm:$0xff] %v10794_v28  ;;  %15691 = vst [vmem:[#allocation225_spill] sm:$0xff] %v10796_v38 }
 0x42c   :  { %8293 = vset.pattern.permute.xlu1 %v15495_v39 }
 0x42d   :  { %5067 = vperm.xlu1 %8293, %v10447_v35  }
 0x42e   :  { %v10800_v32 = vpop.permute.xlu1 %4407  ;;  %v10802_v1 = vpop.permute.xlu0 %2173 }
 0x42f   :  { %15692 = vst [vmem:[#allocation226_spill] sm:$0xff] %v10800_v32  ;;  %15693 = vst [vmem:[#allocation227_spill] sm:$0xff] %v10802_v1 }
 0x431   :  { %8294 = vset.pattern.permute.xlu1 %v15556_v15 }
 0x432   :  { %4852 = vperm.xlu1 %8294, %v10461_v63   ;;  %v10806_v42 = vpop.permute.xlu1 %4413  ;;  %v10808_v12 = vpop.permute.xlu0 %3062 }
 0x433   :  { %15694 = vst [vmem:[#allocation228_spill] sm:$0xff] %v10806_v42  ;;  %15695 = vst [vmem:[#allocation229_spill] sm:$0xff] %v10808_v12 }
 0x436   :  { %8295 = vset.pattern.permute.xlu1 %v15543_v2  ;;  %v10811_v28 = vpop.permute.xlu1 %4419  ;;  %v10813_v38 = vpop.permute.xlu0 %3071 }
 0x437   :  { %15696 = vst [vmem:[#allocation230_spill] sm:$0xff] %v10811_v28  ;;  %15697 = vst [vmem:[#allocation231_spill] sm:$0xff] %v10813_v38  ;;  %4743 = vperm.xlu1 %8295, %v10313_v56   ;;  %v10829_v28 = vadd.f32 %v10276_v5, %v10073_v21 }
 0x43a   :  { %v10816_v20 = vpop.permute.xlu1 %4425  ;;  %v10818_v32 = vpop.permute.xlu0 %3077 }
 0x43b   :  { %15698 = vst [vmem:[#allocation232_spill] sm:$0xff] %v10816_v20  ;;  %15699 = vst [vmem:[#allocation233_spill] sm:$0xff] %v10818_v32  ;;  %8296 = vset.pattern.permute.xlu1 %v15570_v6  ;;  %v2015_v20 = vmul.f32 %v10829_v28, %v10829_v28 }
 0x43c   :  { %4961 = vperm.xlu1 %8296, %v10553_v47  }
 0x43e   :  { %v10822_v1 = vpop.permute.xlu1 %4431  ;;  %v10824_v42 = vpop.permute.xlu0 %3083 }
 0x43f   :  { %15700 = vst [vmem:[#allocation234_spill] sm:$0xff] %v10822_v1  ;;  %15701 = vst [vmem:[#allocation235_spill] sm:$0xff] %v10824_v42  ;;  %v10840_v1 = vadd.f32 %v10073_v21, %v10285_v58 }
 0x440   :  { %4964 = vperm.xlu1 %8296, %v10461_v63  }
 0x441   :  { %v2013_v5 = vmul.f32 %v10840_v1, %v10840_v1 }
 0x442   :  { %v10831_v38 = vpop.permute.xlu0 %3089 }
 0x443   :  { %15702 = vst [vmem:[#allocation236_spill] sm:$0xff] %v10831_v38  ;;  %v10833_v12 = vpop.permute.xlu1 %4501 }
 0x444   :  { %15703 = vst [vmem:[#allocation237_spill] sm:$0xff] %v10833_v12  ;;  %8297 = vset.pattern.permute.xlu1 %v15534_v7 }
 0x445   :  { %4637 = vperm.xlu1 %8297, %v10465_v57  }
 0x446   :  { %v10843_v42 = vpop.permute.xlu0 %3095 }
 0x447   :  { %15704 = vst [vmem:[#allocation238_spill] sm:$0xff] %v10843_v42  ;;  %v10845_v32 = vpop.permute.xlu1 %4507  ;;  %2046 = vadd.xlane.f32.xlu0 %v2015_v20 }
 0x448   :  { %15705 = vst [vmem:[#allocation239_spill] sm:$0xff] %v10845_v32 }
 0x449   :  { %8298 = vset.pattern.permute.xlu1 %v15495_v39 }
 0x44a   :  { %5073 = vperm.xlu1 %8298, %v10553_v47   ;;  %v10851_v12 = vpop.permute.xlu0 %3101 }
 0x44b   :  { %15706 = vst [vmem:[#allocation240_spill] sm:$0xff] %v10851_v12  ;;  %v10853_v38 = vpop.permute.xlu1 %4510  ;;  %2042 = vadd.xlane.f32.xlu0 %v2013_v5 }
 0x44c   :  { %15707 = vst [vmem:[#allocation241_spill] sm:$0xff] %v10853_v38 }
 0x44e   :  { %8299 = vset.pattern.permute.xlu1 %v15534_v7  ;;  %v10856_v58 = vpop.permute.xlu0 %4280 }
 0x44f   :  { %15708 = vst [vmem:[#allocation242_spill] sm:$0xff] %v10856_v58  ;;  %4640 = vperm.xlu1 %8299, %v10337_v54   ;;  %v10859_v21 = vpop.permute.xlu1 %4516 }
 0x450   :  { %15709 = vst [vmem:[#allocation243_spill] sm:$0xff] %v10859_v21 }
 0x452   :  { %v10861_v20 = vpop.permute.xlu0 %4289 }
 0x453   :  { %15710 = vst [vmem:[#allocation244_spill] sm:$0xff] %v10861_v20  ;;  %8300 = vset.pattern.permute.xlu1 %v15495_v39  ;;  %v10864_v42 = vpop.permute.xlu1 %4522 }
 0x454   :  { %15711 = vst [vmem:[#allocation245_spill] sm:$0xff] %v10864_v42  ;;  %5076 = vperm.xlu1 %8300, %v10461_v63  }
 0x456   :  { %v10870_v5 = vpop.permute.xlu0 %4295 }
 0x457   :  { %v10867_v12 = vpop.permute.xlu1 %4528  ;;  %15713 = vst [vmem:[#allocation247_spill] sm:$0xff] %v10870_v5  ;;  %v15724_v5 = vld [vmem:[#allocation22_spill] sm:$0xff] }
 0x458   :  { %15712 = vst [vmem:[#allocation246_spill] sm:$0xff] %v10867_v12  ;;  %8301 = vset.pattern.permute.xlu1 %v15570_v6 }
 0x459   :  { %4967 = vperm.xlu1 %8301, %v10313_v56  }
 0x45a   :  { %v10877_v21 = vpop.permute.xlu0 %4301 }
 0x45b   :  { %v10873_v58 = vpop.permute.xlu1 %4534  ;;  %15715 = vst [vmem:[#allocation249_spill] sm:$0xff] %v10877_v21 }
 0x45c   :  { %15714 = vst [vmem:[#allocation248_spill] sm:$0xff] %v10873_v58 }
 0x45d   :  { %8302 = vset.pattern.permute.xlu1 %v15543_v2 }
 0x45e   :  { %4752 = vperm.xlu1 %8302, %v10337_v54   ;;  %v10886_v42 = vpop.permute.xlu0 %4307 }
 0x45f   :  { %v10879_v20 = vpop.permute.xlu1 %4540  ;;  %15718 = vst [vmem:[#allocation252_spill] sm:$0xff] %v10886_v42 }
 0x460   :  { %15716 = vst [vmem:[#allocation250_spill] sm:$0xff] %v10879_v20 }
 0x461   :  { %3192 = vperm.xlu0 %8380, %v9791_v18  }
 0x462   :  { %8303 = vset.pattern.permute.xlu1 %v15534_v7  ;;  %v10894_v20 = vpop.permute.xlu0 %4313 }
 0x463   :  { %4643 = vperm.xlu1 %8303, %v10570_v31   ;;  %15720 = vst [vmem:[#allocation254_spill] sm:$0xff] %v10894_v20 }
 0x464   :  { %v10884_v12 = vpop.permute.xlu1 %4613 }
 0x465   :  { %15717 = vst [vmem:[#allocation251_spill] sm:$0xff] %v10884_v12  ;;  %3198 = vperm.xlu0 %8380, %v9801_v13   ;;  %v15722_v12 = vld [vmem:[#allocation20_spill] sm:$0xff] }
 0x466   :  { %v10901_v42 = vpop.permute.xlu0 %4319 }
 0x467   :  { %8304 = vset.pattern.permute.xlu1 %v15556_v15  ;;  %15723 = vst [vmem:[#allocation20_spill] sm:$0xff] %v10901_v42 }
 0x468   :  { %4861 = vperm.xlu1 %8304, %v10465_v57  }
 0x469   :  { %v10891_v58 = vpop.permute.xlu1 %4725  ;;  %3204 = vperm.xlu0 %8380, %v9812_v51  }
 0x46a   :  { %15719 = vst [vmem:[#allocation253_spill] sm:$0xff] %v10891_v58  ;;  %v10912_v38 = vpop.permute.xlu0 %5366 }
 0x46b   :  { %15727 = vst [vmem:[#allocation257_spill] sm:$0xff] %v10912_v38 }
 0x46c   :  { %8305 = vset.pattern.permute.xlu1 %v15534_v7 }
 0x46d   :  { %4646 = vperm.xlu1 %8305, %v10489_v4   ;;  %v10898_v21 = vpop.permute.xlu1 %4728  ;;  %3210 = vperm.xlu0 %8380, %v15722_v12  }
 0x46e   :  { %15721 = vst [vmem:[#allocation255_spill] sm:$0xff] %v10898_v21  ;;  %v10919_v42 = vpop.permute.xlu0 %5375 }
 0x46f   :  { %15729 = vst [vmem:[#allocation259_spill] sm:$0xff] %v10919_v42  ;;  %v15741_v42 = vld [vmem:[#allocation143_spill] sm:$0xff] }
 0x470   :  { %v10957_v38 = vadd.s32 4294966912, %v15741_v42 }
 0x471   :  { %8306 = vset.pattern.permute.xlu1 %v15556_v15  ;;  %3216 = vperm.xlu0 %8380, %v15724_v5  }
 0x472   :  { %4864 = vperm.xlu1 %8306, %v10337_v54   ;;  %v10906_v58 = vpop.permute.xlu1 %4837 }
 0x473   :  { %15725 = vst [vmem:[#allocation22_spill] sm:$0xff] %v10906_v58 }
 0x475   :  { %4389 = vperm.xlu0 %8380, %v10269_v37  }
 0x476   :  { %8307 = vset.pattern.permute.xlu1 %v15543_v2  ;;  %v10910_v20 = vpop.permute.xlu1 %4840 }
 0x477   :  { %15726 = vst [vmem:[#allocation256_spill] sm:$0xff] %v10910_v20  ;;  %4755 = vperm.xlu1 %8307, %v10570_v31   ;;  %v10927_v20 = vpop.permute.xlu0 %5384 }
 0x478   :  { %15731 = vst [vmem:[#allocation261_spill] sm:$0xff] %v10927_v20 }
 0x479   :  { %4398 = vperm.xlu0 %8380, %v10302_v22  }
 0x47b   :  { %4758 = vperm.xlu1 %8307, %v10489_v4   ;;  %v10917_v21 = vpop.permute.xlu1 %4949 }
 0x47c   :  { %15728 = vst [vmem:[#allocation258_spill] sm:$0xff] %v10917_v21  ;;  %v10934_v21 = vpop.permute.xlu0 %5399 }
 0x47d   :  { %4404 = vperm.xlu0 %8380, %v10461_v63   ;;  %15733 = vst [vmem:[#allocation263_spill] sm:$0xff] %v10934_v21 }
 0x47f   :  { %8308 = vset.pattern.permute.xlu1 %v15570_v6 }
 0x480   :  { %4976 = vperm.xlu1 %8308, %v10337_v54   ;;  %v10924_v37 = vpop.permute.xlu1 %4734 }
 0x481   :  { %15730 = vst [vmem:[#allocation260_spill] sm:$0xff] %v10924_v37  ;;  %4410 = vperm.xlu0 %8380, %v10326_v17   ;;  %v10943_v37 = vpop.permute.xlu0 %5402 }
 0x482   :  { %15735 = vst [vmem:[#allocation265_spill] sm:$0xff] %v10943_v37  ;;  %v10965_v37 = vadd.s32 4294966912, %v10323_v41 }
 0x484   :  { %8309 = vset.pattern.permute.xlu1 %v15556_v15 }
 0x485   :  { %4867 = vperm.xlu1 %8309, %v10570_v31   ;;  %v10931_v58 = vpop.permute.xlu1 %4625  ;;  %4416 = vperm.xlu0 %8380, %v10337_v54   ;;  %v15737_v54 = vld [vmem:[#allocation163_spill] sm:$0xff]  ;;  %v10953_v20 = vpop.permute.xlu0 %2243 }
 0x486   :  { %15732 = vst [vmem:[#allocation262_spill] sm:$0xff] %v10931_v58  ;;  %15739 = vst [vmem:[#allocation268_spill] sm:$0xff] %v10953_v20  ;;  %v15746_v20 = vld [vmem:[#allocation161_spill] sm:$0xff] }
 0x489   :  { %8310 = vset.pattern.permute.xlu1 %v15495_v39  ;;  %4422 = vperm.xlu0 %8380, %v10489_v4   ;;  %v10967_v32 = vpop.permute.xlu0 %2252 }
 0x48a   :  { %5085 = vperm.xlu1 %8310, %v10465_v57   ;;  %v10939_v63 = vpop.permute.xlu1 %4843  ;;  %15743 = vst [vmem:[#allocation269_spill] sm:$0xff] %v10967_v32 }
 0x48b   :  { %15734 = vst [vmem:[#allocation264_spill] sm:$0xff] %v10939_v63  ;;  %v15740_v63 = vld [vmem:[#allocation154_spill] sm:$0xff] }
 0x48d   :  { %4428 = vperm.xlu0 %8380, %v10510_v43   ;;  %v10974_v42 = vpop.permute.xlu0 %2258 }
 0x48e   :  { %8311 = vset.pattern.permute.xlu1 %v15556_v15  ;;  %15745 = vst [vmem:[#allocation271_spill] sm:$0xff] %v10974_v42 }
 0x48f   :  { %4870 = vperm.xlu1 %8311, %v10489_v4   ;;  %v10946_v58 = vpop.permute.xlu1 %4628 }
 0x490   :  { %15736 = vst [vmem:[#allocation266_spill] sm:$0xff] %v10946_v58 }
 0x491   :  { %4434 = vperm.xlu0 %8380, %v15737_v54   ;;  %v10988_v32 = vpop.permute.xlu0 %2264 }
 0x492   :  { %15750 = vst [vmem:[#allocation275_spill] sm:$0xff] %v10988_v32 }
 0x493   :  { %8313 = vset.pattern.permute.xlu1 %v15543_v2 }
 0x494   :  { %4761 = vperm.xlu1 %8313, %v10577_v46   ;;  %v10951_v21 = vpop.permute.xlu1 %4846 }
 0x495   :  { %15738 = vst [vmem:[#allocation267_spill] sm:$0xff] %v10951_v21  ;;  %5481 = vperm.xlu0 %8380, %v15740_v63   ;;  %v10998_v26 = vpop.permute.xlu0 %2270 }
 0x496   :  { %15753 = vst [vmem:[#allocation278_spill] sm:$0xff] %v10998_v26 }
 0x498   :  { %8314 = vset.pattern.permute.xlu1 %v15570_v6 }
 0x499   :  { %4979 = vperm.xlu1 %8314, %v10570_v31   ;;  %v10961_v58 = vpop.permute.xlu1 %4737  ;;  %5490 = vperm.xlu0 %8380, %v10957_v38  }
 0x49a   :  { %15742 = vst [vmem:[#allocation143_spill] sm:$0xff] %v10961_v58  ;;  %v10978_v58 = vadd.s32 4294966912, %v10507_v25 }
 0x49c   :  { %15747 = vst [vmem:[#allocation272_spill] sm:$0xff] %v10978_v58 }
 0x49d   :  { %8315 = vset.pattern.permute.xlu1 %v15543_v2  ;;  %v10970_v21 = vpop.permute.xlu1 %4740  ;;  %5499 = vperm.xlu0 %8380, %v10965_v37  }
 0x49e   :  { %15744 = vst [vmem:[#allocation270_spill] sm:$0xff] %v10970_v21  ;;  %4764 = vperm.xlu1 %8315, %v10510_v43   ;;  %v10986_v21 = vadd.s32 4294966912, %v10406_v27 }
 0x4a0   :  { %15749 = vst [vmem:[#allocation274_spill] sm:$0xff] %v10986_v21 }
 0x4a1   :  { %5502 = vperm.xlu0 %8380, %v15746_v20  }
 0x4a2   :  { %8316 = vset.pattern.permute.xlu1 %v15570_v6  ;;  %v10981_v44 = vpop.permute.xlu1 %4958 }
 0x4a3   :  { %15748 = vst [vmem:[#allocation273_spill] sm:$0xff] %v10981_v44  ;;  %4982 = vperm.xlu1 %8316, %v10489_v4  }
 0x4a5   :  { %5517 = vperm.xlu0 %8380, %v10978_v58  }
 0x4a7   :  { %8317 = vset.pattern.permute.xlu1 %v15556_v15  ;;  %v10991_v42 = vpop.permute.xlu1 %4849 }
 0x4a8   :  { %15751 = vst [vmem:[#allocation276_spill] sm:$0xff] %v10991_v42  ;;  %4873 = vperm.xlu1 %8317, %v10577_v46   ;;  %v11007_v42 = vpop.permute.xlu0 %2276 }
 0x4a9   :  { %5520 = vperm.xlu0 %8380, %v10986_v21   ;;  %15755 = vst [vmem:[#allocation280_spill] sm:$0xff] %v11007_v42  ;;  %v15852_v42 = vld [vmem:[#allocation15_spill] sm:$0xff] }
 0x4ac   :  { %8318 = vset.pattern.permute.xlu1 %v15495_v39  ;;  %v10996_v44 = vpop.permute.xlu1 %5067  ;;  %v11015_v26 = vpop.permute.xlu0 %2282 }
 0x4ad   :  { %15752 = vst [vmem:[#allocation277_spill] sm:$0xff] %v10996_v44  ;;  %5091 = vperm.xlu1 %8318, %v10570_v31   ;;  %8392 = vset.pattern.permute.xlu0 %v15534_v7  ;;  %15757 = vst [vmem:[#allocation282_spill] sm:$0xff] %v11015_v26 }
 0x4ae   :  { %2467 = vperm.xlu0 %8392, %v10266_v45  }
 0x4b1   :  { %8319 = vset.pattern.permute.xlu1 %v15514_v53  ;;  %v11004_v27 = vpop.permute.xlu1 %4852 }
 0x4b2   :  { %15754 = vst [vmem:[#allocation279_spill] sm:$0xff] %v11004_v27  ;;  %5478 = vperm.xlu1 %8319, %v10677_v23   ;;  %2476 = vperm.xlu0 %8392, %v10299_v33   ;;  %v11022_v27 = vpop.permute.xlu0 %2288 }
 0x4b3   :  { %15759 = vst [vmem:[#allocation284_spill] sm:$0xff] %v11022_v27  ;;  %v15843_v27 = vld [vmem:[#allocation10_spill] sm:$0xff] }
 0x4b6   :  { %8320 = vset.pattern.permute.xlu1 %v15534_v7  ;;  %v11011_v44 = vpop.permute.xlu1 %4743  ;;  %2482 = vperm.xlu0 %8392, %v10458_v59  }
 0x4b7   :  { %15756 = vst [vmem:[#allocation281_spill] sm:$0xff] %v11011_v44  ;;  %4658 = vperm.xlu1 %8320, %v15737_v54   ;;  %v15761_v44 = vmov 0  }
 0x4ba   :  { %2488 = vperm.xlu0 %8392, %v10323_v41   ;;  %v11032_v41 = vpop.permute.xlu0 %3171 }
 0x4bb   :  { %8321 = vset.pattern.permute.xlu1 %v15495_v39  ;;  %v11019_v45 = vpop.permute.xlu1 %4961 }
 0x4bc   :  { %15758 = vst [vmem:[#allocation283_spill] sm:$0xff] %v11019_v45  ;;  %5094 = vperm.xlu1 %8321, %v10489_v4   ;;  %v15819_v45 = vld [vmem:[#allocation77_spill] sm:$0xff] }
 0x4be   :  { %2494 = vperm.xlu0 %8392, %v10334_v16   ;;  %v11040_v16 = vpop.permute.xlu0 %3180 }
 0x4bf   :  { %v11025_v33 = vpop.permute.xlu1 %4964  ;;  %15764 = vst [vmem:[#allocation288_spill] sm:$0xff] %v11040_v16 }
 0x4c0   :  { %15760 = vst [vmem:[#allocation285_spill] sm:$0xff] %v11025_v33  ;;  %8322 = vset.pattern.permute.xlu1 %v15761_v44 }
 0x4c1   :  { %5369 = vperm.xlu1 %8322, %v15740_v63  }
 0x4c2   :  { %2500 = vperm.xlu0 %8392, %v10486_v36  }
 0x4c4   :  { %v11030_v26 = vpop.permute.xlu1 %4637 }
 0x4c5   :  { %15762 = vst [vmem:[#allocation286_spill] sm:$0xff] %v11030_v26  ;;  %8323 = vset.pattern.permute.xlu1 %v15543_v2  ;;  %v11049_v26 = vpop.permute.xlu0 %3186 }
 0x4c6   :  { %4767 = vperm.xlu1 %8323, %v10585_v0   ;;  %2506 = vperm.xlu0 %8392, %v10507_v25   ;;  %15766 = vst [vmem:[#allocation290_spill] sm:$0xff] %v11049_v26 }
 0x4c9   :  { %v11037_v4 = vpop.permute.xlu1 %5073 }
 0x4ca   :  { %15763 = vst [vmem:[#allocation287_spill] sm:$0xff] %v11037_v4  ;;  %8324 = vset.pattern.permute.xlu1 %v15570_v6  ;;  %2512 = vperm.xlu0 %8392, %v10526_v40  }
 0x4cb   :  { %4985 = vperm.xlu1 %8324, %v10577_v46  }
 0x4ce   :  { %v11044_v36 = vpop.permute.xlu1 %4640  ;;  %3395 = vperm.xlu0 %8392, %v9755_v34  }
 0x4cf   :  { %15765 = vst [vmem:[#allocation289_spill] sm:$0xff] %v11044_v36  ;;  %8325 = vset.pattern.permute.xlu1 %v15543_v2 }
 0x4d0   :  { %4770 = vperm.xlu1 %8325, %v15737_v54  }
 0x4d2   :  { %3404 = vperm.xlu0 %8392, %v9771_v3  }
 0x4d3   :  { %v11052_v25 = vpop.permute.xlu1 %5076 }
 0x4d4   :  { %15767 = vst [vmem:[#allocation291_spill] sm:$0xff] %v11052_v25  ;;  %8326 = vset.pattern.permute.xlu1 %v15570_v6  ;;  %v2047_v4 = vpop.xlane.xlu0 %2046 }
 0x4d5   :  { %4988 = vperm.xlu1 %8326, %v10510_v43   ;;  %v2063_v40 = vmax.f32 %v2047_v4, 1e-24  ;;  %v15770_v4 = vld [vmem:[#allocation155_spill] sm:$0xff] }
 0x4d6   :  { %3410 = vperm.xlu0 %8392, %v9781_v19  }
 0x4d7   :  { %8472 = vrsqrt.f32 %v2063_v40 }
 0x4d8   :  { %v11057_v34 = vpop.permute.xlu1 %4967  ;;  %v2043_v36 = vpop.xlane.xlu0 %2042 }
 0x4d9   :  { %15768 = vst [vmem:[#allocation292_spill] sm:$0xff] %v11057_v34  ;;  %8327 = vset.pattern.permute.xlu1 %v15556_v15  ;;  %v2061_v33 = vmax.f32 %v2043_v36, 1e-24 }
 0x4da   :  { %4879 = vperm.xlu1 %8327, %v10585_v0   ;;  %3416 = vperm.xlu0 %8392, %v9791_v18  }
 0x4db   :  { %8474 = vrsqrt.f32 %v2061_v33 }
 0x4dd   :  { %v11062_v3 = vpop.permute.xlu1 %4752 }
 0x4de   :  { %15769 = vst [vmem:[#allocation293_spill] sm:$0xff] %v11062_v3  ;;  %8328 = vset.pattern.permute.xlu1 %v15761_v44  ;;  %3422 = vperm.xlu0 %8392, %v9801_v13  }
 0x4df   :  { %5372 = vperm.xlu1 %8328, %v15770_v4  }
 0x4e0   :  { %v11067_v19 = vpop.permute.xlu0 %3192 }
 0x4e1   :  { %15771 = vst [vmem:[#allocation294_spill] sm:$0xff] %v11067_v19  ;;  %v8473_v40 = vpop.eup %8472  ;;  %v15816_v19 = vld [vmem:[#allocation56_spill] sm:$0xff] }
 0x4e2   :  { %v11069_v34 = vpop.permute.xlu1 %4643  ;;  %v2095_v36 = vmul.f32 %v8473_v40, %v10829_v28  ;;  %3428 = vperm.xlu0 %8392, %v9812_v51  }
 0x4e3   :  { %15772 = vst [vmem:[#allocation295_spill] sm:$0xff] %v11069_v34  ;;  %8329 = vset.pattern.permute.xlu1 %v15514_v53 }
 0x4e4   :  { %5484 = vperm.xlu1 %8329, %v15770_v4   ;;  %2111 = vst [vmem:[%s15233_s11 + $0x78] sm:$0xff] %v2095_v36  ;;  %v11078_v18 = vpop.permute.xlu0 %3198 }
 0x4e5   :  { %15773 = vst [vmem:[#allocation296_spill] sm:$0xff] %v11078_v18  ;;  %v8475_v13 = vpop.eup %8474  ;;  %v2128_v18 = vlaneseq }
 0x4e6   :  { %v2093_v33 = vmul.f32 %v8475_v13, %v10840_v1  ;;  %3434 = vperm.xlu0 %8392, %v15722_v12  }
 0x4e7   :  { %v11082_v34 = vpop.permute.xlu1 %4861 }
 0x4e8   :  { %15774 = vst [vmem:[#allocation297_spill] sm:$0xff] %v11082_v34  ;;  %8330 = vset.pattern.permute.xlu1 %v15556_v15  ;;  %2109 = vst [vmem:[%s15233_s11 + $0x68] sm:$0xff] %v2093_v33  ;;  %v11088_v51 = vpop.permute.xlu0 %3204 }
 0x4e9   :  { %15775 = vst [vmem:[#allocation298_spill] sm:$0xff] %v11088_v51  ;;  %4882 = vperm.xlu1 %8330, %v15737_v54  }
 0x4ea   :  { %3440 = vperm.xlu0 %8392, %v15724_v5  }
 0x4ec   :  { %v11092_v28 = vpop.permute.xlu1 %4646  ;;  %v11094_v40 = vpop.permute.xlu0 %3210 }
 0x4ed   :  { %15776 = vst [vmem:[#allocation299_spill] sm:$0xff] %v11092_v28  ;;  %15777 = vst [vmem:[#allocation300_spill] sm:$0xff] %v11094_v40  ;;  %8331 = vset.pattern.permute.xlu1 %v15495_v39 }
 0x4ee   :  { %5100 = vperm.xlu1 %8331, %v10510_v43   ;;  %4616 = vperm.xlu0 %8392, %v10289_v30  }
 0x4f0   :  { %v11099_v1 = vpop.permute.xlu0 %3216 }
 0x4f1   :  { %15778 = vst [vmem:[#allocation301_spill] sm:$0xff] %v11099_v1  ;;  %v11101_v12 = vpop.permute.xlu1 %4864 }
 0x4f2   :  { %15779 = vst [vmem:[#allocation302_spill] sm:$0xff] %v11101_v12  ;;  %8332 = vset.pattern.permute.xlu1 %v15514_v53  ;;  %4619 = vperm.xlu0 %8392, %v10447_v35  }
 0x4f3   :  { %5487 = vperm.xlu1 %8332, %v10494_v49  }
 0x4f4   :  { %v11106_v5 = vpop.permute.xlu0 %4389 }
 0x4f5   :  { %15780 = vst [vmem:[#allocation303_spill] sm:$0xff] %v11106_v5  ;;  %v15823_v5 = vld [vmem:[#allocation131_spill] sm:$0xff] }
 0x4f6   :  { %v11108_v36 = vpop.permute.xlu1 %4755  ;;  %4622 = vperm.xlu0 %8392, %v10302_v22  }
 0x4f7   :  { %15781 = vst [vmem:[#allocation304_spill] sm:$0xff] %v11108_v36  ;;  %8333 = vset.pattern.permute.xlu1 %v15534_v7 }
 0x4f8   :  { %5705 = vperm.xlu1 %8333, %v15740_v63   ;;  %v11113_v13 = vpop.permute.xlu0 %4398 }
 0x4f9   :  { %15782 = vst [vmem:[#allocation305_spill] sm:$0xff] %v11113_v13 }
 0x4fa   :  { %v11115_v33 = vpop.permute.xlu1 %4758  ;;  %4631 = vperm.xlu0 %8392, %v10313_v56  }
 0x4fb   :  { %15783 = vst [vmem:[#allocation306_spill] sm:$0xff] %v11115_v33 }
 0x4fc   :  { %8334 = vset.pattern.permute.xlu1 %v15524_v29  ;;  %v11119_v12 = vpop.permute.xlu0 %4404 }
 0x4fd   :  { %15784 = vst [vmem:[#allocation307_spill] sm:$0xff] %v11119_v12  ;;  %5596 = vperm.xlu1 %8334, %v15770_v4  }
 0x4fe   :  { %4634 = vperm.xlu0 %8392, %v10326_v17   ;;  %v15867_v17 = vmov 0.0  }
 0x4ff   :  { %v11123_v36 = vpop.permute.xlu1 %4976 }
 0x500   :  { %15785 = vst [vmem:[#allocation308_spill] sm:$0xff] %v11123_v36  ;;  %v11125_v22 = vpop.permute.xlu0 %4410 }
 0x501   :  { %15786 = vst [vmem:[#allocation309_spill] sm:$0xff] %v11125_v22  ;;  %8335 = vset.pattern.permute.xlu1 %v15543_v2 }
 0x502   :  { %5814 = vperm.xlu1 %8335, %v10677_v23   ;;  %4649 = vperm.xlu0 %8392, %v10577_v46  }
 0x504   :  { %v11130_v33 = vpop.permute.xlu1 %4867  ;;  %v11132_v28 = vpop.permute.xlu0 %4416 }
 0x505   :  { %15787 = vst [vmem:[#allocation310_spill] sm:$0xff] %v11130_v33  ;;  %15788 = vst [vmem:[#allocation311_spill] sm:$0xff] %v11132_v28 }
 0x506   :  { %8336 = vset.pattern.permute.xlu1 %v15524_v29  ;;  %4652 = vperm.xlu0 %8392, %v10510_v43  }
 0x507   :  { %5599 = vperm.xlu1 %8336, %v10494_v49  }
 0x508   :  { %v11137_v13 = vpop.permute.xlu0 %4422 }
 0x509   :  { %15789 = vst [vmem:[#allocation312_spill] sm:$0xff] %v11137_v13  ;;  %v11139_v36 = vpop.permute.xlu1 %5085 }
 0x50a   :  { %15790 = vst [vmem:[#allocation313_spill] sm:$0xff] %v11139_v36  ;;  %4655 = vperm.xlu0 %8392, %v10585_v0  }
 0x50b   :  { %8337 = vset.pattern.permute.xlu1 %v15495_v39 }
 0x50c   :  { %5103 = vperm.xlu1 %8337, %v10585_v0   ;;  %v11144_v22 = vpop.permute.xlu0 %4428 }
 0x50d   :  { %15791 = vst [vmem:[#allocation314_spill] sm:$0xff] %v11144_v22 }
 0x50e   :  { %v11146_v33 = vpop.permute.xlu1 %4870  ;;  %5702 = vperm.xlu0 %8392, %v10677_v23  }
 0x50f   :  { %15792 = vst [vmem:[#allocation315_spill] sm:$0xff] %v11146_v33 }
 0x510   :  { %8338 = vset.pattern.permute.xlu1 %v15761_v44  ;;  %v11150_v43 = vpop.permute.xlu0 %4434 }
 0x511   :  { %15793 = vst [vmem:[#allocation316_spill] sm:$0xff] %v11150_v43  ;;  %5378 = vperm.xlu1 %8338, %v10957_v38  }
 0x512   :  { %5711 = vperm.xlu0 %8392, %v10494_v49  }
 0x513   :  { %v11154_v36 = vpop.permute.xlu1 %4761 }
 0x514   :  { %15794 = vst [vmem:[#allocation317_spill] sm:$0xff] %v11154_v36  ;;  %v11156_v34 = vpop.permute.xlu0 %5481  ;;  %v11169_v36 = vadd.s32 4294966912, %v10458_v59  ;;  %v11186_v59 = vld [vmem:[%s15229_s1 + $0x8] sm:$0xff] }
 0x515   :  { %15795 = vst [vmem:[#allocation318_spill] sm:$0xff] %v11156_v34  ;;  %8339 = vset.pattern.permute.xlu1 %v15534_v7 }
 0x516   :  { %5708 = vperm.xlu1 %8339, %v15770_v4   ;;  %5723 = vperm.xlu0 %8392, %v10965_v37  }
 0x518   :  { %v11161_v33 = vpop.permute.xlu1 %4979  ;;  %v11163_v22 = vpop.permute.xlu0 %5490 }
 0x519   :  { %15796 = vst [vmem:[#allocation319_spill] sm:$0xff] %v11161_v33  ;;  %15797 = vst [vmem:[#allocation320_spill] sm:$0xff] %v11163_v22 }
 0x51a   :  { %8340 = vset.pattern.permute.xlu1 %v15556_v15  ;;  %5726 = vperm.xlu0 %8392, %v15746_v20  }
 0x51b   :  { %5926 = vperm.xlu1 %8340, %v10677_v23  }
 0x51c   :  { %v11171_v34 = vpop.permute.xlu0 %5499 }
 0x51d   :  { %15798 = vst [vmem:[#allocation321_spill] sm:$0xff] %v11171_v34  ;;  %v11173_v43 = vpop.permute.xlu1 %4764 }
 0x51e   :  { %15799 = vst [vmem:[#allocation322_spill] sm:$0xff] %v11173_v43  ;;  %5741 = vperm.xlu0 %8392, %v10978_v58  }
 0x51f   :  { %8341 = vset.pattern.permute.xlu1 %v15761_v44 }
 0x520   :  { %5381 = vperm.xlu1 %8341, %v11169_v36   ;;  %v11178_v22 = vpop.permute.xlu0 %5502 }
 0x521   :  { %15800 = vst [vmem:[#allocation323_spill] sm:$0xff] %v11178_v22 }
 0x522   :  { %v11180_v33 = vpop.permute.xlu1 %4982  ;;  %8397 = vset.pattern.permute.xlu0 %v15524_v29 }
 0x523   :  { %15801 = vst [vmem:[#allocation324_spill] sm:$0xff] %v11180_v33  ;;  %2358 = vperm.xlu0 %8397, %v11186_v59   ;;  %v11198_v33 = vld [vmem:[%s15229_s1 + $0x20] sm:$0xff] }
 0x524   :  { %8342 = vset.pattern.permute.xlu1 %v15514_v53  ;;  %v11190_v34 = vpop.permute.xlu0 %5517 }
 0x525   :  { %15802 = vst [vmem:[#allocation325_spill] sm:$0xff] %v11190_v34  ;;  %5493 = vperm.xlu1 %8342, %v11169_v36   ;;  %v11208_v34 = vld [vmem:[%s15229_s1 + $0x30] sm:$0xff] }
 0x527   :  { %v11193_v43 = vpop.permute.xlu1 %4873  ;;  %2367 = vperm.xlu0 %8397, %v11198_v33  }
 0x528   :  { %15803 = vst [vmem:[#allocation326_spill] sm:$0xff] %v11193_v43  ;;  %v11201_v22 = vpop.permute.xlu0 %5520 }
 0x529   :  { %15804 = vst [vmem:[#allocation327_spill] sm:$0xff] %v11201_v22  ;;  %8343 = vset.pattern.permute.xlu1 %v15556_v15  ;;  %v11220_v22 = vld [vmem:[%s15229_s1 + $0x40] sm:$0xff] }
 0x52a   :  { %5929 = vperm.xlu1 %8343, %v15740_v63  }
 0x52b   :  { %2373 = vperm.xlu0 %8397, %v11208_v34  }
 0x52c   :  { %v11211_v43 = vpop.permute.xlu1 %5091 }
 0x52d   :  { %15805 = vst [vmem:[#allocation328_spill] sm:$0xff] %v11211_v43  ;;  %v11213_v1 = vpop.permute.xlu0 %2467  ;;  %v11231_v43 = vld [vmem:[%s15229_s1 + $0x50] sm:$0xff] }
 0x52e   :  { %15806 = vst [vmem:[#allocation329_spill] sm:$0xff] %v11213_v1  ;;  %8344 = vset.pattern.permute.xlu1 %v15524_v29 }
 0x52f   :  { %5602 = vperm.xlu1 %8344, %v10957_v38   ;;  %2379 = vperm.xlu0 %8397, %v11220_v22  }
 0x531   :  { %v11223_v3 = vpop.permute.xlu1 %5478  ;;  %v11225_v13 = vpop.permute.xlu0 %2476 }
 0x532   :  { %15807 = vst [vmem:[#allocation330_spill] sm:$0xff] %v11223_v3  ;;  %15808 = vst [vmem:[#allocation331_spill] sm:$0xff] %v11225_v13  ;;  %v11242_v3 = vld [vmem:[%s15229_s1 + $0x60] sm:$0xff] }
 0x533   :  { %8345 = vset.pattern.permute.xlu1 %v15570_v6  ;;  %2385 = vperm.xlu0 %8397, %v11231_v43  }
 0x534   :  { %6038 = vperm.xlu1 %8345, %v10677_v23  }
 0x535   :  { %v11235_v1 = vpop.permute.xlu0 %2482 }
 0x536   :  { %15809 = vst [vmem:[#allocation332_spill] sm:$0xff] %v11235_v1  ;;  %v11237_v40 = vpop.permute.xlu1 %4658  ;;  %v11254_v1 = vld [vmem:[%s15229_s1 + $0x70] sm:$0xff] }
 0x537   :  { %15810 = vst [vmem:[#allocation333_spill] sm:$0xff] %v11237_v40  ;;  %2391 = vperm.xlu0 %8397, %v11242_v3  }
 0x538   :  { %8346 = vset.pattern.permute.xlu1 %v15524_v29 }
 0x539   :  { %5605 = vperm.xlu1 %8346, %v11169_v36   ;;  %v11247_v13 = vpop.permute.xlu0 %2488 }
 0x53a   :  { %15811 = vst [vmem:[#allocation334_spill] sm:$0xff] %v11247_v13 }
 0x53b   :  { %v11249_v51 = vpop.permute.xlu1 %5094  ;;  %2397 = vperm.xlu0 %8397, %v11254_v1  }
 0x53c   :  { %15812 = vst [vmem:[#allocation335_spill] sm:$0xff] %v11249_v51  ;;  %v11266_v51 = vand.u32 127, %v2128_v18 }
 0x53d   :  { %8347 = vset.pattern.permute.xlu1 %v15570_v6  ;;  %v11258_v40 = vpop.permute.xlu0 %2494 }
 0x53e   :  { %15813 = vst [vmem:[#allocation336_spill] sm:$0xff] %v11258_v40  ;;  %6041 = vperm.xlu1 %8347, %v15740_v63   ;;  %vm3218_vm8 = vcmp.eq.s32.totalorder %v11032_v41, %v11266_v51  ;;  %vm3106_vm9 = vcmp.eq.s32.totalorder %v15819_v45, %v11266_v51  ;;  %v15821_v41 = vld [vmem:[#allocation100_spill] sm:$0xff]  ;;  %vm3554_vm11 = vcmp.eq.s32.totalorder %v15823_v5, %v11266_v51 }
 0x53f   :  { %3286 = vperm.xlu0 %8397, %v9955_v11   ;;  %vm3330_vm10 = vcmp.eq.s32.totalorder %v15821_v41, %v11266_v51  ;;  %vm2186_vm7 = vcmp.eq.s32.totalorder %v15843_v27, %v11266_v51 }
 0x540   :  { %v11262_v25 = vpop.permute.xlu1 %5369 }
 0x541   :  { %15814 = vst [vmem:[#allocation337_spill] sm:$0xff] %v11262_v25  ;;  %v11264_v13 = vpop.permute.xlu0 %2500  ;;  %v15374_v25 = vmov 0.0  }
 0x542   :  { %15815 = vst [vmem:[#allocation338_spill] sm:$0xff] %v11264_v13  ;;  %8348 = vset.pattern.permute.xlu1 %v15514_v53  ;;  %v7124_v18 = vsel %vm3218_vm8, 1.0, %v15374_v25  ;;  %v7108_v13 = vsel %vm3106_vm9, 1.0, %v15374_v25  ;;  %v7140_v45 = vsel %vm3330_vm10, 1.0, %v15374_v25 }
 0x543   :  { %5496 = vperm.xlu1 %8348, %v10693_v48   ;;  %3295 = vperm.xlu0 %8397, %v15816_v19  }
 0x545   :  { %v11273_v40 = vpop.permute.xlu1 %4767  ;;  %v11275_v28 = vpop.permute.xlu0 %2506 }
 0x546   :  { %15817 = vst [vmem:[#allocation56_spill] sm:$0xff] %v11273_v40  ;;  %15818 = vst [vmem:[#allocation339_spill] sm:$0xff] %v11275_v28  ;;  %v3266_v40 = vadd.f32 %v7124_v18, %v7108_v13  ;;  %v15825_v18 = vld [vmem:[#allocation106_spill] sm:$0xff] }
 0x547   :  { %8349 = vset.pattern.permute.xlu1 %v15534_v7  ;;  %3301 = vperm.xlu0 %8397, %v9971_v14   ;;  %vm3666_vm13 = vcmp.eq.s32.totalorder %v15825_v18, %v11266_v51  ;;  %v15830_v18 = vld [vmem:[#allocation3_spill] sm:$0xff] }
 0x548   :  { %5714 = vperm.xlu1 %8349, %v10957_v38   ;;  %v3378_v26 = vadd.f32 %v7140_v45, %v3266_v40  ;;  %v15827_v40 = vld [vmem:[#allocation159_spill] sm:$0xff]  ;;  %v7188_v5 = vsel %vm3666_vm13, 1.0, %v15374_v25  ;;  %v15828_v45 = vld [vmem:[#allocation157_spill] sm:$0xff]  ;;  %vm2178_vm0 = vcmp.eq.s32.totalorder %v15830_v18, %v11266_v51 }
 0x549   :  { %v11284_v58 = vpop.permute.xlu0 %2512  ;;  %vm3778_vm14 = vcmp.eq.s32.totalorder %v15827_v40, %v11266_v51  ;;  %vm3890_vm15 = vcmp.eq.s32.totalorder %v15828_v45, %v11266_v51  ;;  %v15835_v45 = vld [vmem:[#allocation7_spill] sm:$0xff] }
 0x54a   :  { %15820 = vst [vmem:[#allocation77_spill] sm:$0xff] %v11284_v58  ;;  %v11288_v28 = vpop.permute.xlu1 %4985  ;;  %v7204_v40 = vsel %vm3778_vm14, 1.0, %v15374_v25  ;;  %vm2183_vm4 = vcmp.eq.s32.totalorder %v15835_v45, %v11266_v51 }
 0x54b   :  { %15822 = vst [vmem:[#allocation100_spill] sm:$0xff] %v11288_v28  ;;  %3307 = vperm.xlu0 %8397, %v9977_v8   ;;  %v7172_v28 = vsel %vm3554_vm11, 1.0, %v15374_v25 }
 0x54c   :  { %8350 = vset.pattern.permute.xlu1 %v15495_v39 }
 0x54d   :  { %6150 = vperm.xlu1 %8350, %v10677_v23   ;;  %v3396_v12 = vpop.permute.xlu0 %3395 }
 0x54e   :  { %vm3442_vm12 = vcmp.eq.s32.totalorder %v3396_v12, %v11266_v51 }
 0x54f   :  { %v11297_v58 = vpop.permute.xlu1 %4770  ;;  %v7156_v13 = vsel %vm3442_vm12, 1.0, %v15374_v25  ;;  %3313 = vperm.xlu0 %8397, %v9985_v60  }
 0x550   :  { %15824 = vst [vmem:[#allocation131_spill] sm:$0xff] %v11297_v58  ;;  %v3490_v41 = vadd.f32 %v7156_v13, %v3378_v26  ;;  %v15831_v58 = vld [vmem:[#allocation4_spill] sm:$0xff] }
 0x551   :  { %8351 = vset.pattern.permute.xlu1 %v15761_v44  ;;  %v11305_v4 = vpop.permute.xlu0 %3404  ;;  %vm2180_vm1 = vcmp.eq.s32.totalorder %v15831_v58, %v11266_v51  ;;  %v7220_v58 = vsel %vm3890_vm15, 1.0, %v15374_v25  ;;  %vm2291_vm15 = vcmp.eq.s32.totalorder %v15852_v42, %v11266_v51 }
 0x552   :  { %15826 = vst [vmem:[#allocation106_spill] sm:$0xff] %v11305_v4  ;;  %5387 = vperm.xlu1 %8351, %v10965_v37   ;;  %v3602_v12 = vadd.f32 %v7172_v28, %v3490_v41  ;;  %v15833_v28 = vld [vmem:[#allocation5_spill] sm:$0xff]  ;;  %v15834_v41 = vld [vmem:[#allocation6_spill] sm:$0xff]  ;;  %v6966_v18 = vsel %vm2180_vm1, 1.0, %v15374_v25 }
 0x553   :  { %3319 = vperm.xlu0 %8397, %v9993_v10   ;;  %vm2181_vm2 = vcmp.eq.s32.totalorder %v15833_v28, %v11266_v51  ;;  %vm2182_vm3 = vcmp.eq.s32.totalorder %v15834_v41, %v11266_v51  ;;  %v15837_v28 = vld [vmem:[#allocation8_spill] sm:$0xff] }
 0x554   :  { %v11314_v26 = vpop.permute.xlu1 %4988  ;;  %v3714_v13 = vadd.f32 %v7188_v5, %v3602_v12  ;;  %v11334_v5 = vsel %vm2178_vm0, 1.0, %v15374_v25  ;;  %vm2184_vm5 = vcmp.eq.s32.totalorder %v15837_v28, %v11266_v51  ;;  %v11340_v45 = vsel %vm2181_vm2, 1.0, %v15374_v25  ;;  %v15846_v28 = vld [vmem:[#allocation17_spill] sm:$0xff] }
 0x555   :  { %15829 = vst [vmem:[#allocation159_spill] sm:$0xff] %v11314_v26  ;;  %v11321_v4 = vpop.permute.xlu0 %3410  ;;  %15836 = vst [vmem:[#allocation3_spill] sm:$0xff] %v11334_v5  ;;  %v15840_v26 = vld [vmem:[#allocation9_spill] sm:$0xff]  ;;  %vm2294_vm10 = vcmp.eq.s32.totalorder %v15846_v28, %v11266_v51  ;;  %v11414_v28 = vsel %vm2291_vm15, 1.0, %v15374_v25 }
 0x556   :  { %15832 = vst [vmem:[#allocation157_spill] sm:$0xff] %v11321_v4  ;;  %8352 = vset.pattern.permute.xlu1 %v15534_v7  ;;  %v3826_v12 = vadd.f32 %v7204_v40, %v3714_v13  ;;  %15838 = vst [vmem:[#allocation4_spill] sm:$0xff] %v11340_v45  ;;  %v6968_v13 = vsel %vm2182_vm3, 1.0, %v15374_v25  ;;  %v11344_v40 = vsel %vm2183_vm4, 1.0, %v15374_v25  ;;  %vm2185_vm6 = vcmp.eq.s32.totalorder %v15840_v26, %v11266_v51  ;;  %v15847_v26 = vld [vmem:[#allocation12_spill] sm:$0xff] }
 0x557   :  { %5717 = vperm.xlu1 %8352, %v11169_v36   ;;  %3325 = vperm.xlu0 %8397, %v9999_v55   ;;  %15839 = vst [vmem:[#allocation5_spill] sm:$0xff] %v11344_v40  ;;  %v6970_v40 = vsel %vm2184_vm5, 1.0, %v15374_v25  ;;  %vm2189_vm11 = vcmp.eq.s32.totalorder %v15847_v26, %v11266_v51  ;;  %v11370_v45 = vsel %vm2185_vm6, 1.0, %v15374_v25  ;;  %v15853_v26 = vld [vmem:[#allocation19_spill] sm:$0xff] }
 0x558   :  { %v3938_v41 = vadd.f32 %v7220_v58, %v3826_v12  ;;  %v15844_v12 = vld [vmem:[#allocation11_spill] sm:$0xff]  ;;  %v15845_v58 = vld [vmem:[#allocation16_spill] sm:$0xff]  ;;  %15850 = vst [vmem:[#allocation8_spill] sm:$0xff] %v11370_v45  ;;  %vm2298_vm0 = vcmp.eq.s32.totalorder %v15853_v26, %v11266_v51  ;;  %v11400_v27 = vsel %vm2189_vm11, 1.0, %v15374_v25 }
 0x559   :  { %v11348_v4 = vpop.permute.xlu1 %4879  ;;  %v11350_v16 = vpop.permute.xlu0 %3416  ;;  %vm2187_vm8 = vcmp.eq.s32.totalorder %v15844_v12, %v11266_v51  ;;  %vm2292_vm9 = vcmp.eq.s32.totalorder %v15845_v58, %v11266_v51  ;;  %15856 = vst [vmem:[#allocation11_spill] sm:$0xff] %v11400_v27  ;;  %v15861_v27 = vld [vmem:[#allocation21_spill] sm:$0xff] }
 0x55a   :  { %15841 = vst [vmem:[#allocation6_spill] sm:$0xff] %v11348_v4  ;;  %15842 = vst [vmem:[#allocation7_spill] sm:$0xff] %v11350_v16  ;;  %7818 = vmatprep.mubr.f32.mxu0 %v3938_v41  ;;  %v15848_v4 = vld [vmem:[#allocation13_spill] sm:$0xff]  ;;  %v15849_v16 = vld [vmem:[#allocation18_spill] sm:$0xff]  ;;  %v6982_v42 = vsel %vm2292_vm9, 1.0, %v15374_v25  ;;  %vm2300_vm2 = vcmp.eq.s32.totalorder %v15861_v27, %v11266_v51 }
 0x55b   :  { %vm2191_vm12 = vcmp.eq.s32.totalorder %v15848_v4, %v11266_v51  ;;  %vm2296_vm13 = vcmp.eq.s32.totalorder %v15849_v16, %v11266_v51  ;;  %8353 = vset.pattern.permute.xlu1 %v15556_v15  ;;  %4504 = vperm.xlu0 %8397, %v10289_v30   ;;  %v15851_v41 = vld [vmem:[#allocation14_spill] sm:$0xff]  ;;  %v6972_v16 = vsel %vm2186_vm7, 1.0, %v15374_v25  ;;  %v11387_v4 = vsel %vm2187_vm8, 1.0, %v15374_v25 }
 0x55c   :  { %vm2193_vm14 = vcmp.eq.s32.totalorder %v15851_v41, %v11266_v51  ;;  %5935 = vperm.xlu1 %8353, %v10494_v49   ;;  %15854 = vst [vmem:[#allocation9_spill] sm:$0xff] %v11387_v4  ;;  %v6984_v41 = vsel %vm2294_vm10, 1.0, %v15374_v25  ;;  %v11403_v45 = vsel %vm2191_vm12, 1.0, %v15374_v25  ;;  %v6986_v12 = vsel %vm2296_vm13, 1.0, %v15374_v25  ;;  %v15858_v4 = vld [vmem:[#allocation26_spill] sm:$0xff] }
 0x55d   :  { %v11397_v26 = vpop.permute.xlu0 %3422  ;;  %15857 = vst [vmem:[#allocation16_spill] sm:$0xff] %v11403_v45  ;;  %vm2404_vm1 = vcmp.eq.s32.totalorder %v15858_v4, %v11266_v51  ;;  %v11411_v5 = vsel %vm2193_vm14, 1.0, %v15374_v25  ;;  %v2340_v45 = vadd.f32 %v6982_v42, %v6966_v18  ;;  %v11420_v32 = vadd.f32 %v6984_v41, %v6968_v13  ;;  %v15863_v4 = vld [vmem:[#allocation23_spill] sm:$0xff]  ;;  %v15872_v41 = vld [vmem:[#allocation29_spill] sm:$0xff] }
 0x55e   :  { %15855 = vst [vmem:[#allocation10_spill] sm:$0xff] %v11397_v26  ;;  %v11408_v58 = vpop.permute.xlu1 %5372  ;;  %15860 = vst [vmem:[#allocation12_spill] sm:$0xff] %v11411_v5  ;;  %v6988_v26 = vsel %vm2298_vm0, 1.0, %v15374_v25  ;;  %vm2302_vm3 = vcmp.eq.s32.totalorder %v15863_v4, %v11266_v51  ;;  %v11427_v5 = vadd.f32 %v6986_v12, %v6970_v40  ;;  %v15866_v25 = vld [vmem:[#allocation25_spill] sm:$0xff]  ;;  %v6998_v27 = vsel %vm2404_vm1, 1.0, %v15867_v17  ;;  %v15871_v40 = vld [vmem:[#allocation28_spill] sm:$0xff] }
 0x55f   :  { %15859 = vst [vmem:[#allocation17_spill] sm:$0xff] %v11408_v58  ;;  %4513 = vperm.xlu0 %8397, %v10553_v47   ;;  %15862 = vst [vmem:[#allocation13_spill] sm:$0xff] %v11420_v32  ;;  %v15864_v58 = vld [vmem:[#allocation24_spill] sm:$0xff]  ;;  %vm2402_vm5 = vcmp.eq.s32.totalorder %v15866_v25, %v11266_v51  ;;  %v15868_v47 = vld [vmem:[#allocation27_spill] sm:$0xff]  ;;  %v11437_v13 = vadd.f32 %v6988_v26, %v6972_v16  ;;  %v11440_v42 = vsel %vm2300_vm2, 1.0, %v15867_v17  ;;  %v11447_v25 = vsel %vm2302_vm3, 1.0, %v15867_v17 }
 0x560   :  { %vm2304_vm4 = vcmp.eq.s32.totalorder %v15864_v58, %v11266_v51  ;;  %8354 = vset.pattern.permute.xlu1 %v15524_v29  ;;  %15865 = vst [vmem:[#allocation18_spill] sm:$0xff] %v11427_v5  ;;  %vm2405_vm6 = vcmp.eq.s32.totalorder %v15868_v47, %v11266_v51  ;;  %vm2407_vm7 = vcmp.eq.s32.totalorder %v15871_v40, %v11266_v51  ;;  %v15873_v58 = vld [vmem:[#allocation30_spill] sm:$0xff]  ;;  %v15874_v16 = vld [vmem:[#allocation35_spill] sm:$0xff]  ;;  %v11460_v4 = vsel %vm2402_vm5, 1.0, %v15867_v17  ;;  %v15880_v5 = vld [vmem:[#allocation33_spill] sm:$0xff] }
 0x561   :  { %5608 = vperm.xlu1 %8354, %v10693_v48   ;;  %v11435_v18 = vpop.permute.xlu0 %3428  ;;  %15870 = vst [vmem:[#allocation15_spill] sm:$0xff] %v11437_v13  ;;  %vm2409_vm8 = vcmp.eq.s32.totalorder %v15872_v41, %v11266_v51  ;;  %v11450_v12 = vsel %vm2304_vm4, 1.0, %v15867_v17  ;;  %vm2411_vm9 = vcmp.eq.s32.totalorder %v15873_v58, %v11266_v51  ;;  %vm2516_vm10 = vcmp.eq.s32.totalorder %v15874_v16, %v11266_v51  ;;  %v15876_v41 = vld [vmem:[#allocation31_spill] sm:$0xff]  ;;  %v15879_v16 = vld [vmem:[#allocation32_spill] sm:$0xff] }
 0x562   :  { %15869 = vst [vmem:[#allocation14_spill] sm:$0xff] %v11435_v18  ;;  %v2452_v47 = vadd.f32 %v6998_v27, %v2340_v45  ;;  %v11463_v40 = vsel %vm2405_vm6, 1.0, %v15867_v17  ;;  %vm2413_vm11 = vcmp.eq.s32.totalorder %v15876_v41, %v11266_v51  ;;  %v11468_v13 = vsel %vm2407_vm7, 1.0, %v15867_v17  ;;  %v15883_v41 = vld [vmem:[#allocation34_spill] sm:$0xff]  ;;  %v15888_v18 = vld [vmem:[#allocation43_spill] sm:$0xff] }
 0x563   :  { %v11456_v26 = vpop.permute.xlu1 %5484  ;;  %4519 = vperm.xlu0 %8397, %v10313_v56   ;;  %15877 = vst [vmem:[#allocation26_spill] sm:$0xff] %v11468_v13  ;;  %v11471_v58 = vsel %vm2409_vm8, 1.0, %v15867_v17  ;;  %vm2415_vm12 = vcmp.eq.s32.totalorder %v15879_v16, %v11266_v51  ;;  %vm2417_vm13 = vcmp.eq.s32.totalorder %v15880_v5, %v11266_v51  ;;  %v11481_v27 = vsel %vm2411_vm9, 1.0, %v15867_v17  ;;  %v15886_v5 = vld [vmem:[#allocation37_spill] sm:$0xff]  ;;  %v15891_v56 = vld [vmem:[#allocation39_spill] sm:$0xff] }
 0x564   :  { %15875 = vst [vmem:[#allocation19_spill] sm:$0xff] %v11456_v26  ;;  %15878 = vst [vmem:[#allocation21_spill] sm:$0xff] %v11471_v58  ;;  %vm2515_vm14 = vcmp.eq.s32.totalorder %v15883_v41, %v11266_v51  ;;  %v7014_v32 = vsel %vm2516_vm10, 1.0, %v15867_v17  ;;  %v15884_v26 = vld [vmem:[#allocation36_spill] sm:$0xff]  ;;  %v11490_v16 = vsel %vm2413_vm11, 1.0, %v15867_v17  ;;  %vm2520_vm0 = vcmp.eq.s32.totalorder %v15886_v5, %v11266_v51 }
 0x565   :  { %8355 = vset.pattern.permute.xlu1 %v15543_v2  ;;  %v11478_v45 = vpop.permute.xlu0 %3434  ;;  %15882 = vst [vmem:[#allocation24_spill] sm:$0xff] %v11481_v27  ;;  %vm2518_vm15 = vcmp.eq.s32.totalorder %v15884_v26, %v11266_v51  ;;  %15885 = vst [vmem:[#allocation25_spill] sm:$0xff] %v11490_v16  ;;  %vm2628_vm2 = vcmp.eq.s32.totalorder %v15888_v18, %v11266_v51  ;;  %v11500_v41 = vsel %vm2415_vm12, 1.0, %v15867_v17  ;;  %v11503_v26 = vsel %vm2417_vm13, 1.0, %v15867_v17  ;;  %v15892_v16 = vld [vmem:[#allocation40_spill] sm:$0xff] }
 0x566   :  { %15881 = vst [vmem:[#allocation23_spill] sm:$0xff] %v11478_v45  ;;  %5826 = vperm.xlu1 %8355, %v10957_v38   ;;  %v15887_v45 = vld [vmem:[#allocation38_spill] sm:$0xff]  ;;  %15889 = vst [vmem:[#allocation27_spill] sm:$0xff] %v11500_v41  ;;  %vm2524_vm3 = vcmp.eq.s32.totalorder %v15891_v56, %v11266_v51  ;;  %vm2526_vm4 = vcmp.eq.s32.totalorder %v15892_v16, %v11266_v51  ;;  %v2564_v18 = vadd.f32 %v7014_v32, %v2452_v47  ;;  %v15896_v41 = vld [vmem:[#allocation41_spill] sm:$0xff] }
 0x567   :  { %vm2522_vm1 = vcmp.eq.s32.totalorder %v15887_v45, %v11266_v51  ;;  %4525 = vperm.xlu0 %8397, %v10465_v57   ;;  %15890 = vst [vmem:[#allocation28_spill] sm:$0xff] %v11503_v26  ;;  %v11512_v45 = vsel %vm2515_vm14, 1.0, %v15867_v17  ;;  %v11515_v27 = vsel %vm2518_vm15, 1.0, %v15867_v17  ;;  %vm2528_vm5 = vcmp.eq.s32.totalorder %v15896_v41, %v11266_v51  ;;  %v15900_v16 = vld [vmem:[#allocation42_spill] sm:$0xff]  ;;  %v15903_v41 = vld [vmem:[#allocation44_spill] sm:$0xff] }
 0x568   :  { %v11509_v5 = vpop.permute.xlu1 %4882  ;;  %15894 = vst [vmem:[#allocation30_spill] sm:$0xff] %v11512_v45  ;;  %15895 = vst [vmem:[#allocation35_spill] sm:$0xff] %v11515_v27  ;;  %v11522_v26 = vsel %vm2520_vm0, 1.0, %v15867_v17  ;;  %v11525_v56 = vsel %vm2522_vm1, 1.0, %v15867_v17  ;;  %vm2626_vm6 = vcmp.eq.s32.totalorder %v15900_v16, %v11266_v51  ;;  %v7030_v45 = vsel %vm2628_vm2, 1.0, %v15867_v17 }
 0x569   :  { %15893 = vst [vmem:[#allocation29_spill] sm:$0xff] %v11509_v5  ;;  %v11519_v58 = vpop.permute.xlu0 %3440  ;;  %15898 = vst [vmem:[#allocation32_spill] sm:$0xff] %v11522_v26  ;;  %v11532_v32 = vsel %vm2524_vm3, 1.0, %v15867_v17  ;;  %v11535_v47 = vsel %vm2526_vm4, 1.0, %v15867_v17  ;;  %vm2629_vm7 = vcmp.eq.s32.totalorder %v15903_v41, %v11266_v51  ;;  %v15904_v26 = vld [vmem:[#allocation52_spill] sm:$0xff]  ;;  %v11544_v16 = vsel %vm2528_vm5, 1.0, %v15867_v17 }
 0x56a   :  { %15897 = vst [vmem:[#allocation31_spill] sm:$0xff] %v11519_v58  ;;  %15899 = vst [vmem:[#allocation33_spill] sm:$0xff] %v11525_v56  ;;  %8356 = vset.pattern.permute.xlu1 %v15524_v29  ;;  %vm2740_vm8 = vcmp.eq.s32.totalorder %v15904_v26, %v11266_v51  ;;  %v15906_v56 = vld [vmem:[#allocation45_spill] sm:$0xff]  ;;  %v11553_v41 = vsel %vm2626_vm6, 1.0, %v15867_v17  ;;  %v2676_v27 = vadd.f32 %v7030_v45, %v2564_v18  ;;  %v15910_v5 = vld [vmem:[#allocation48_spill] sm:$0xff] }
 0x56b   :  { %15901 = vst [vmem:[#allocation34_spill] sm:$0xff] %v11532_v32  ;;  %15902 = vst [vmem:[#allocation36_spill] sm:$0xff] %v11535_v47  ;;  %5611 = vperm.xlu1 %8356, %v10965_v37   ;;  %4531 = vperm.xlu0 %8397, %v10570_v31   ;;  %vm2631_vm9 = vcmp.eq.s32.totalorder %v15906_v56, %v11266_v51  ;;  %v15907_v32 = vld [vmem:[#allocation46_spill] sm:$0xff]  ;;  %v15908_v47 = vld [vmem:[#allocation47_spill] sm:$0xff]  ;;  %vm2637_vm12 = vcmp.eq.s32.totalorder %v15910_v5, %v11266_v51  ;;  %v11564_v56 = vsel %vm2629_vm7, 1.0, %v15867_v17 }
 0x56c   :  { %15905 = vst [vmem:[#allocation37_spill] sm:$0xff] %v11544_v16  ;;  %vm2633_vm10 = vcmp.eq.s32.totalorder %v15907_v32, %v11266_v51  ;;  %vm2635_vm11 = vcmp.eq.s32.totalorder %v15908_v47, %v11266_v51  ;;  %15909 = vst [vmem:[#allocation38_spill] sm:$0xff] %v11553_v41  ;;  %v15911_v31 = vld [vmem:[#allocation49_spill] sm:$0xff]  ;;  %v15915_v32 = vld [vmem:[#allocation50_spill] sm:$0xff]  ;;  %v7046_v5 = vsel %vm2740_vm8, 1.0, %v15867_v17  ;;  %v11575_v45 = vsel %vm2631_vm9, 1.0, %v15867_v17 }
 0x56d   :  { %vm2639_vm13 = vcmp.eq.s32.totalorder %v15911_v31, %v11266_v51  ;;  %v11559_v16 = vpop.permute.xlu1 %5100  ;;  %v11561_v58 = vpop.permute.xlu0 %4616  ;;  %15914 = vst [vmem:[#allocation40_spill] sm:$0xff] %v11564_v56  ;;  %vm2641_vm14 = vcmp.eq.s32.totalorder %v15915_v32, %v11266_v51  ;;  %v15916_v47 = vld [vmem:[#allocation51_spill] sm:$0xff]  ;;  %15917 = vst [vmem:[#allocation41_spill] sm:$0xff] %v11575_v45  ;;  %v11578_v18 = vsel %vm2633_vm10, 1.0, %v15867_v17  ;;  %v11581_v31 = vsel %vm2635_vm11, 1.0, %v15867_v17 }
 0x56e   :  { %15912 = vst [vmem:[#allocation43_spill] sm:$0xff] %v11559_v16  ;;  %15913 = vst [vmem:[#allocation39_spill] sm:$0xff] %v11561_v58  ;;  %vm2739_vm15 = vcmp.eq.s32.totalorder %v15916_v47, %v11266_v51  ;;  %v15920_v58 = vld [vmem:[#allocation53_spill] sm:$0xff]  ;;  %v11588_v32 = vsel %vm2637_vm12, 1.0, %v15867_v17  ;;  %v11591_v26 = vsel %vm2639_vm13, 1.0, %v15867_v17  ;;  %v15923_v47 = vld [vmem:[#allocation54_spill] sm:$0xff] }
 0x56f   :  { %15918 = vst [vmem:[#allocation42_spill] sm:$0xff] %v11578_v18  ;;  %15919 = vst [vmem:[#allocation44_spill] sm:$0xff] %v11581_v31  ;;  %vm2742_vm0 = vcmp.eq.s32.totalorder %v15920_v58, %v11266_v51  ;;  %8357 = vset.pattern.permute.xlu1 %v15543_v2  ;;  %4537 = vperm.xlu0 %8397, %v10577_v46   ;;  %vm2744_vm1 = vcmp.eq.s32.totalorder %v15923_v47, %v11266_v51  ;;  %v15924_v16 = vld [vmem:[#allocation61_spill] sm:$0xff]  ;;  %v11599_v58 = vsel %vm2641_vm14, 1.0, %v15867_v17 }
 0x570   :  { %15921 = vst [vmem:[#allocation52_spill] sm:$0xff] %v11588_v32  ;;  %15922 = vst [vmem:[#allocation45_spill] sm:$0xff] %v11591_v26  ;;  %vm2852_vm2 = vcmp.eq.s32.totalorder %v15924_v16, %v11266_v51  ;;  %5829 = vperm.xlu1 %8357, %v11169_v36   ;;  %v11602_v31 = vsel %vm2739_vm15, 1.0, %v15867_v17  ;;  %v2788_v46 = vadd.f32 %v7046_v5, %v2676_v27  ;;  %v15927_v32 = vld [vmem:[#allocation55_spill] sm:$0xff]  ;;  %v11609_v26 = vsel %vm2742_vm0, 1.0, %v15867_v17  ;;  %v15930_v47 = vld [vmem:[#allocation57_spill] sm:$0xff] }
 0x571   :  { %15925 = vst [vmem:[#allocation46_spill] sm:$0xff] %v11599_v58  ;;  %15926 = vst [vmem:[#allocation47_spill] sm:$0xff] %v11602_v31  ;;  %vm2746_vm3 = vcmp.eq.s32.totalorder %v15927_v32, %v11266_v51  ;;  %v11606_v18 = vpop.permute.xlu0 %4619  ;;  %vm2748_vm4 = vcmp.eq.s32.totalorder %v15930_v47, %v11266_v51  ;;  %v15931_v16 = vld [vmem:[#allocation58_spill] sm:$0xff]  ;;  %v15932_v58 = vld [vmem:[#allocation59_spill] sm:$0xff]  ;;  %v11620_v27 = vsel %vm2744_vm1, 1.0, %v15867_v17  ;;  %v7062_v32 = vsel %vm2852_vm2, 1.0, %v15867_v17 }
 0x572   :  { %15928 = vst [vmem:[#allocation48_spill] sm:$0xff] %v11606_v18  ;;  %15929 = vst [vmem:[#allocation49_spill] sm:$0xff] %v11609_v26  ;;  %vm2750_vm5 = vcmp.eq.s32.totalorder %v15931_v16, %v11266_v51  ;;  %vm2752_vm6 = vcmp.eq.s32.totalorder %v15932_v58, %v11266_v51  ;;  %v11617_v45 = vpop.permute.xlu1 %5487  ;;  %v15935_v5 = vld [vmem:[#allocation60_spill] sm:$0xff]  ;;  %v15936_v26 = vld [vmem:[#allocation86_spill] sm:$0xff]  ;;  %v11629_v47 = vsel %vm2746_vm3, 1.0, %v15867_v17 }
 0x573   :  { %15933 = vst [vmem:[#allocation50_spill] sm:$0xff] %v11617_v45  ;;  %15934 = vst [vmem:[#allocation51_spill] sm:$0xff] %v11620_v27  ;;  %vm2850_vm7 = vcmp.eq.s32.totalorder %v15935_v5, %v11266_v51  ;;  %vm2738_vm8 = vcmp.eq.s32.totalorder %v15936_v26, %v11266_v51  ;;  %4543 = vperm.xlu0 %8397, %v10585_v0   ;;  %v15938_v58 = vld [vmem:[#allocation62_spill] sm:$0xff]  ;;  %v15939_v16 = vld [vmem:[#allocation63_spill] sm:$0xff]  ;;  %v11639_v5 = vsel %vm2748_vm4, 1.0, %v15867_v17  ;;  %v11642_v31 = vsel %vm2750_vm5, 1.0, %v15867_v17 }
 0x574   :  { %15937 = vst [vmem:[#allocation53_spill] sm:$0xff] %v11629_v47  ;;  %vm2853_vm9 = vcmp.eq.s32.totalorder %v15938_v58, %v11266_v51  ;;  %vm2855_vm10 = vcmp.eq.s32.totalorder %v15939_v16, %v11266_v51  ;;  %v15940_v27 = vld [vmem:[#allocation88_spill] sm:$0xff]  ;;  %8358 = vset.pattern.permute.xlu1 %v15761_v44  ;;  %15941 = vst [vmem:[#allocation54_spill] sm:$0xff] %v11639_v5  ;;  %v11645_v45 = vsel %vm2752_vm6, 1.0, %v15867_v17  ;;  %v15944_v47 = vld [vmem:[#allocation91_spill] sm:$0xff] }
 0x575   :  { %vm2741_vm11 = vcmp.eq.s32.totalorder %v15940_v27, %v11266_v51  ;;  %15942 = vst [vmem:[#allocation61_spill] sm:$0xff] %v11642_v31  ;;  %15943 = vst [vmem:[#allocation55_spill] sm:$0xff] %v11645_v45  ;;  %vm2743_vm12 = vcmp.eq.s32.totalorder %v15944_v47, %v11266_v51  ;;  %5390 = vperm.xlu1 %8358, %v15746_v20   ;;  %v11650_v58 = vpop.permute.xlu0 %4622  ;;  %v11653_v27 = vsel %vm2850_vm7, 1.0, %v15867_v17  ;;  %v15947_v18 = vld [vmem:[#allocation64_spill] sm:$0xff]  ;;  %v11661_v31 = vsel %vm2738_vm8, 1.0, %v15867_v17  ;;  %v15955_v26 = vld [vmem:[#allocation70_spill] sm:$0xff] }
 0x576   :  { %15945 = vst [vmem:[#allocation57_spill] sm:$0xff] %v11650_v58  ;;  %15946 = vst [vmem:[#allocation58_spill] sm:$0xff] %v11653_v27  ;;  %v2900_v16 = vadd.f32 %v7062_v32, %v2788_v46  ;;  %vm2857_vm13 = vcmp.eq.s32.totalorder %v15947_v18, %v11266_v51  ;;  %v11664_v45 = vsel %vm2853_vm9, 1.0, %v15867_v17  ;;  %v11667_v47 = vsel %vm2855_vm10, 1.0, %v15867_v17  ;;  %v15952_v46 = vld [vmem:[#allocation93_spill] sm:$0xff] }
 0x577   :  { %15948 = vst [vmem:[#allocation59_spill] sm:$0xff] %v11661_v31  ;;  %15949 = vst [vmem:[#allocation60_spill] sm:$0xff] %v11664_v45  ;;  %v11670_v5 = vsel %vm2741_vm11, 1.0, %v15867_v17  ;;  %vm2745_vm14 = vcmp.eq.s32.totalorder %v15952_v46, %v11266_v51  ;;  %v11674_v32 = vpop.permute.xlu1 %5705  ;;  %4546 = vperm.xlu0 %8397, %v15737_v54   ;;  %v15954_v18 = vld [vmem:[#allocation65_spill] sm:$0xff]  ;;  %vm2964_vm0 = vcmp.eq.s32.totalorder %v15955_v26, %v11266_v51  ;;  %v11682_v58 = vsel %vm2743_vm12, 1.0, %v15867_v17  ;;  %v15959_v46 = vld [vmem:[#allocation66_spill] sm:$0xff] }
 0x578   :  { %15950 = vst [vmem:[#allocation86_spill] sm:$0xff] %v11667_v47  ;;  %15951 = vst [vmem:[#allocation62_spill] sm:$0xff] %v11670_v5  ;;  %vm2859_vm15 = vcmp.eq.s32.totalorder %v15954_v18, %v11266_v51  ;;  %v15957_v47 = vld [vmem:[#allocation96_spill] sm:$0xff]  ;;  %v11687_v45 = vsel %vm2857_vm13, 1.0, %v15867_v17  ;;  %vm2861_vm2 = vcmp.eq.s32.totalorder %v15959_v46, %v11266_v51  ;;  %v15961_v18 = vld [vmem:[#allocation98_spill] sm:$0xff] }
 0x579   :  { %15953 = vst [vmem:[#allocation63_spill] sm:$0xff] %v11674_v32  ;;  %15956 = vst [vmem:[#allocation88_spill] sm:$0xff] %v11682_v58  ;;  %vm2747_vm1 = vcmp.eq.s32.totalorder %v15957_v47, %v11266_v51  ;;  %v15960_v32 = vld [vmem:[#allocation67_spill] sm:$0xff]  ;;  %vm2749_vm4 = vcmp.eq.s32.totalorder %v15961_v18, %v11266_v51  ;;  %8359 = vset.pattern.permute.xlu1 %v15534_v7  ;;  %v11696_v27 = vpop.permute.xlu0 %4631  ;;  %v15963_v58 = vld [vmem:[#allocation68_spill] sm:$0xff]  ;;  %v11701_v47 = vsel %vm2745_vm14, 1.0, %v15867_v17 }
 0x57a   :  { %15958 = vst [vmem:[#allocation91_spill] sm:$0xff] %v11687_v45  ;;  %vm2863_vm3 = vcmp.eq.s32.totalorder %v15960_v32, %v11266_v51  ;;  %15962 = vst [vmem:[#allocation64_spill] sm:$0xff] %v11696_v27  ;;  %vm2865_vm5 = vcmp.eq.s32.totalorder %v15963_v58, %v11266_v51  ;;  %v15965_v45 = vld [vmem:[#allocation101_spill] sm:$0xff]  ;;  %v15966_v46 = vld [vmem:[#allocation103_spill] sm:$0xff]  ;;  %5720 = vperm.xlu1 %8359, %v10693_v48   ;;  %v11709_v32 = vsel %vm2859_vm15, 1.0, %v15867_v17  ;;  %v7078_v58 = vsel %vm2964_vm0, 1.0, %v15867_v17 }
 0x57b   :  { %15964 = vst [vmem:[#allocation93_spill] sm:$0xff] %v11701_v47  ;;  %vm2751_vm6 = vcmp.eq.s32.totalorder %v15965_v45, %v11266_v51  ;;  %vm2753_vm7 = vcmp.eq.s32.totalorder %v15966_v46, %v11266_v51  ;;  %15967 = vst [vmem:[#allocation65_spill] sm:$0xff] %v11709_v32  ;;  %v15968_v18 = vld [vmem:[#allocation69_spill] sm:$0xff]  ;;  %v11718_v27 = vsel %vm2747_vm1, 1.0, %v15867_v17  ;;  %5590 = vperm.xlu0 %8397, %v10677_v23   ;;  %v11722_v45 = vsel %vm2861_vm2, 1.0, %v15867_v17  ;;  %v16030_v5 = vld [vmem:[#allocation128_spill] sm:$0xff] }
 0x57c   :  { %vm2963_vm8 = vcmp.eq.s32.totalorder %v15968_v18, %v11266_v51  ;;  %15969 = vst [vmem:[#allocation70_spill] sm:$0xff] %v11718_v27  ;;  %15970 = vst [vmem:[#allocation96_spill] sm:$0xff] %v11722_v45  ;;  %v11725_v46 = vsel %vm2863_vm3, 1.0, %v15867_v17  ;;  %v11728_v32 = vsel %vm2749_vm4, 1.0, %v15867_v17  ;;  %v15973_v18 = vld [vmem:[#allocation108_spill] sm:$0xff]  ;;  %v11732_v47 = vpop.permute.xlu1 %5596  ;;  %v11735_v26 = vsel %vm2865_vm5, 1.0, %v15867_v17 }
 0x57d   :  { %15971 = vst [vmem:[#allocation66_spill] sm:$0xff] %v11725_v46  ;;  %15972 = vst [vmem:[#allocation67_spill] sm:$0xff] %v11728_v32  ;;  %vm3669_vm9 = vcmp.eq.s32.totalorder %v15973_v18, %v11266_v51  ;;  %v15976_v27 = vld [vmem:[#allocation71_spill] sm:$0xff]  ;;  %v11740_v23 = vsel %vm2751_vm6, 1.0, %v15867_v17  ;;  %v11743_v45 = vsel %vm2753_vm7, 1.0, %v15867_v17  ;;  %v11745_v46 = vpop.permute.xlu0 %4634  ;;  %v11748_v32 = vsel %vm2963_vm8, 1.0, %v15867_v17 }
 0x57e   :  { %15974 = vst [vmem:[#allocation98_spill] sm:$0xff] %v11732_v47  ;;  %15975 = vst [vmem:[#allocation68_spill] sm:$0xff] %v11735_v26  ;;  %vm2966_vm10 = vcmp.eq.s32.totalorder %v15976_v27, %v11266_v51  ;;  %v11750_v18 = vadd.f32 %v7078_v58, %v2900_v16  ;;  %v15982_v47 = vld [vmem:[#allocation72_spill] sm:$0xff]  ;;  %v15983_v26 = vld [vmem:[#allocation111_spill] sm:$0xff]  ;;  %8360 = vset.pattern.permute.xlu1 %v15556_v15 }
 0x57f   :  { %15977 = vst [vmem:[#allocation101_spill] sm:$0xff] %v11740_v23  ;;  %15978 = vst [vmem:[#allocation103_spill] sm:$0xff] %v11743_v45  ;;  %vm2968_vm11 = vcmp.eq.s32.totalorder %v15982_v47, %v11266_v51  ;;  %vm3671_vm12 = vcmp.eq.s32.totalorder %v15983_v26, %v11266_v51  ;;  %v15984_v27 = vld [vmem:[#allocation73_spill] sm:$0xff]  ;;  %v11760_v45 = vsel %vm3669_vm9, 1.0, %v15867_v17  ;;  %v15987_v16 = vld [vmem:[#allocation115_spill] sm:$0xff]  ;;  %5938 = vperm.xlu1 %8360, %v10957_v38   ;;  %5593 = vperm.xlu0 %8397, %v15740_v63  }
 0x580   :  { %15979 = vst [vmem:[#allocation69_spill] sm:$0xff] %v11745_v46  ;;  %15980 = vst [vmem:[#allocation108_spill] sm:$0xff] %v11748_v32  ;;  %vm2970_vm13 = vcmp.eq.s32.totalorder %v15984_v27, %v11266_v51  ;;  %v15986_v46 = vld [vmem:[#allocation113_spill] sm:$0xff]  ;;  %vm3675_vm15 = vcmp.eq.s32.totalorder %v15987_v16, %v11266_v51  ;;  %v11769_v47 = vsel %vm2966_vm10, 1.0, %v15867_v17  ;;  %v15989_v58 = vld [vmem:[#allocation74_spill] sm:$0xff]  ;;  %v11783_v32 = vsel %vm3671_vm12, 1.0, %v15867_v17 }
 0x581   :  { %15981 = vst [vmem:[#allocation71_spill] sm:$0xff] %v11750_v18  ;;  %15985 = vst [vmem:[#allocation72_spill] sm:$0xff] %v11760_v45  ;;  %vm3673_vm14 = vcmp.eq.s32.totalorder %v15986_v46, %v11266_v51  ;;  %vm2972_vm0 = vcmp.eq.s32.totalorder %v15989_v58, %v11266_v51  ;;  %v15990_v26 = vld [vmem:[#allocation75_spill] sm:$0xff]  ;;  %v15991_v18 = vld [vmem:[#allocation118_spill] sm:$0xff]  ;;  %v11778_v46 = vsel %vm2968_vm11, 1.0, %v15867_v17  ;;  %v11787_v63 = vpop.permute.xlu1 %5814  ;;  %v11789_v58 = vpop.permute.xlu0 %4649 }
 0x582   :  { %15988 = vst [vmem:[#allocation111_spill] sm:$0xff] %v11769_v47  ;;  %vm2974_vm1 = vcmp.eq.s32.totalorder %v15990_v26, %v11266_v51  ;;  %vm3677_vm2 = vcmp.eq.s32.totalorder %v15991_v18, %v11266_v51  ;;  %15992 = vst [vmem:[#allocation73_spill] sm:$0xff] %v11778_v46  ;;  %v15993_v16 = vld [vmem:[#allocation76_spill] sm:$0xff]  ;;  %v11795_v18 = vsel %vm2970_vm13, 1.0, %v15867_v17  ;;  %v11798_v26 = vsel %vm3673_vm14, 1.0, %v15867_v17  ;;  %v16001_v46 = vld [vmem:[#allocation123_spill] sm:$0xff] }
 0x583   :  { %vm2976_vm3 = vcmp.eq.s32.totalorder %v15993_v16, %v11266_v51  ;;  %15994 = vst [vmem:[#allocation113_spill] sm:$0xff] %v11783_v32  ;;  %v15995_v47 = vld [vmem:[#allocation120_spill] sm:$0xff]  ;;  %15996 = vst [vmem:[#allocation115_spill] sm:$0xff] %v11787_v63  ;;  %v11801_v16 = vsel %vm3675_vm15, 1.0, %v15867_v17  ;;  %vm3681_vm5 = vcmp.eq.s32.totalorder %v16001_v46, %v11266_v51  ;;  %v11806_v32 = vsel %vm2972_vm0, 1.0, %v15867_v17  ;;  %v16004_v63 = vld [vmem:[#allocation78_spill] sm:$0xff]  ;;  %8361 = vset.pattern.permute.xlu1 %v15761_v44 }
 0x584   :  { %vm3679_vm4 = vcmp.eq.s32.totalorder %v15995_v47, %v11266_v51  ;;  %15997 = vst [vmem:[#allocation74_spill] sm:$0xff] %v11789_v58  ;;  %15998 = vst [vmem:[#allocation75_spill] sm:$0xff] %v11795_v18  ;;  %v11809_v58 = vsel %vm2974_vm1, 1.0, %v15867_v17  ;;  %vm3108_vm6 = vcmp.eq.s32.totalorder %v16004_v63, %v11266_v51  ;;  %v11814_v27 = vsel %vm3677_vm2, 1.0, %v15867_v17  ;;  %5614 = vperm.xlu0 %8397, %v15746_v20   ;;  %v16007_v46 = vld [vmem:[#allocation79_spill] sm:$0xff]  ;;  %v16023_v45 = vld [vmem:[#allocation124_spill] sm:$0xff] }
 0x585   :  { %15999 = vst [vmem:[#allocation118_spill] sm:$0xff] %v11798_v26  ;;  %16000 = vst [vmem:[#allocation76_spill] sm:$0xff] %v11801_v16  ;;  %v11819_v18 = vsel %vm2976_vm3, 1.0, %v15867_v17  ;;  %vm3109_vm7 = vcmp.eq.s32.totalorder %v16007_v46, %v11266_v51  ;;  %v11829_v63 = vsel %vm3679_vm4, 1.0, %v15867_v17  ;;  %v16012_v16 = vld [vmem:[#allocation82_spill] sm:$0xff]  ;;  %v11839_v46 = vsel %vm3681_vm5, 1.0, %v15867_v17 }
 0x586   :  { %16002 = vst [vmem:[#allocation120_spill] sm:$0xff] %v11806_v32  ;;  %16003 = vst [vmem:[#allocation123_spill] sm:$0xff] %v11809_v58  ;;  %v16008_v32 = vld [vmem:[#allocation80_spill] sm:$0xff]  ;;  %vm3115_vm10 = vcmp.eq.s32.totalorder %v16012_v16, %v11266_v51  ;;  %v7110_v47 = vsel %vm3108_vm6, 1.0, %v15867_v17  ;;  %v16017_v26 = vld [vmem:[#allocation85_spill] sm:$0xff]  ;;  %v11850_v16 = vpop.permute.xlu1 %5599  ;;  %vm2962_vm0 = vcmp.eq.s32.totalorder %v16023_v45, %v11266_v51  ;;  %vm2967_vm2 = vcmp.eq.s32.totalorder %v16030_v5, %v11266_v51 }
 0x587   :  { %16005 = vst [vmem:[#allocation78_spill] sm:$0xff] %v11814_v27  ;;  %16006 = vst [vmem:[#allocation340_spill] sm:$0xff] %v11819_v18  ;;  %vm3111_vm8 = vcmp.eq.s32.totalorder %v16008_v32, %v11266_v51  ;;  %v16010_v58 = vld [vmem:[#allocation164_spill] sm:$0xff]  ;;  %v16011_v27 = vld [vmem:[#allocation81_spill] sm:$0xff]  ;;  %v11841_v32 = vpop.permute.xlu0 %4652  ;;  %vm3121_vm13 = vcmp.eq.s32.totalorder %v16017_v26, %v11266_v51  ;;  %v11893_v41 = vsel %vm2962_vm0, 1.0, %v15867_v17 }
 0x588   :  { %16009 = vst [vmem:[#allocation79_spill] sm:$0xff] %v11829_v63  ;;  %5393 = vperm.xlu1 %8361, %v16010_v58   ;;  %vm3113_vm9 = vcmp.eq.s32.totalorder %v16011_v27, %v11266_v51  ;;  %v16013_v18 = vld [vmem:[#allocation83_spill] sm:$0xff]  ;;  %16014 = vst [vmem:[#allocation80_spill] sm:$0xff] %v11839_v46  ;;  %v16016_v63 = vld [vmem:[#allocation84_spill] sm:$0xff]  ;;  %v11856_v46 = vsel %vm3111_vm8, 1.0, %v15867_v17  ;;  %5617 = vperm.xlu0 %8397, %v16010_v58   ;;  %v11879_v45 = vsel %vm3121_vm13, 1.0, %v15867_v17 }
 0x589   :  { %vm3117_vm11 = vcmp.eq.s32.totalorder %v16013_v18, %v11266_v51  ;;  %16015 = vst [vmem:[#allocation81_spill] sm:$0xff] %v11841_v32  ;;  %vm3119_vm12 = vcmp.eq.s32.totalorder %v16016_v63, %v11266_v51  ;;  %v16018_v27 = vld [vmem:[#allocation89_spill] sm:$0xff]  ;;  %16019 = vst [vmem:[#allocation82_spill] sm:$0xff] %v11850_v16  ;;  %v11853_v18 = vsel %vm3109_vm7, 1.0, %v15867_v17  ;;  %v16022_v32 = vld [vmem:[#allocation87_spill] sm:$0xff]  ;;  %v11864_v26 = vsel %vm3113_vm9, 1.0, %v15867_v17 }
 0x58a   :  { %vm3220_vm14 = vcmp.eq.s32.totalorder %v16018_v27, %v11266_v51  ;;  %16020 = vst [vmem:[#allocation83_spill] sm:$0xff] %v11853_v18  ;;  %16021 = vst [vmem:[#allocation84_spill] sm:$0xff] %v11856_v46  ;;  %vm3219_vm15 = vcmp.eq.s32.totalorder %v16022_v32, %v11266_v51  ;;  %v11867_v63 = vsel %vm3115_vm10, 1.0, %v15867_v17  ;;  %v11870_v27 = vsel %vm3117_vm11, 1.0, %v15867_v17  ;;  %v16027_v16 = vld [vmem:[#allocation126_spill] sm:$0xff]  ;;  %v16057_v46 = vld [vmem:[#allocation117_spill] sm:$0xff] }
 0x58b   :  { %16024 = vst [vmem:[#allocation85_spill] sm:$0xff] %v11864_v26  ;;  %16025 = vst [vmem:[#allocation89_spill] sm:$0xff] %v11867_v63  ;;  %vm2965_vm1 = vcmp.eq.s32.totalorder %v16027_v16, %v11266_v51  ;;  %v11876_v32 = vsel %vm3119_vm12, 1.0, %v15867_v17  ;;  %v7126_v23 = vsel %vm3220_vm14, 1.0, %v15867_v17  ;;  %v11885_v31 = vpop.permute.xlu0 %4655  ;;  %v11888_v56 = vsel %vm3219_vm15, 1.0, %v15867_v17  ;;  %v16032_v16 = vld [vmem:[#allocation90_spill] sm:$0xff]  ;;  %v11904_v63 = vpop.permute.xlu1 %5103 }
 0x58c   :  { %16026 = vst [vmem:[#allocation87_spill] sm:$0xff] %v11870_v27  ;;  %8362 = vset.pattern.permute.xlu1 %v15514_v53  ;;  %16028 = vst [vmem:[#allocation124_spill] sm:$0xff] %v11876_v32  ;;  %vm3222_vm3 = vcmp.eq.s32.totalorder %v16032_v16, %v11266_v51  ;;  %v16035_v32 = vld [vmem:[#allocation92_spill] sm:$0xff]  ;;  %v11900_v27 = vsel %vm2965_vm1, 1.0, %v15867_v17  ;;  %5632 = vperm.xlu0 %8397, %v10986_v21   ;;  %v8531_v16 = vld [vmem:[%s15229_s1 + $0x78] sm:$0xff] }
 0x58d   :  { %16029 = vst [vmem:[#allocation126_spill] sm:$0xff] %v11879_v45  ;;  %5505 = vperm.xlu1 %8362, %v16010_v58   ;;  %16031 = vst [vmem:[#allocation128_spill] sm:$0xff] %v11885_v31  ;;  %v16034_v45 = vld [vmem:[#allocation130_spill] sm:$0xff]  ;;  %vm3224_vm5 = vcmp.eq.s32.totalorder %v16035_v32, %v11266_v51  ;;  %v16037_v31 = vld [vmem:[#allocation132_spill] sm:$0xff] }
 0x58e   :  { %16033 = vst [vmem:[#allocation90_spill] sm:$0xff] %v11893_v41  ;;  %vm2969_vm4 = vcmp.eq.s32.totalorder %v16034_v45, %v11266_v51  ;;  %16036 = vst [vmem:[#allocation130_spill] sm:$0xff] %v11900_v27  ;;  %vm2971_vm6 = vcmp.eq.s32.totalorder %v16037_v31, %v11266_v51  ;;  %v11910_v41 = vadd.s32 4294966912, %v8531_v16  ;;  %v3268_v45 = vadd.f32 %v7126_v23, %v7110_v47  ;;  %v16040_v26 = vld [vmem:[#allocation94_spill] sm:$0xff]  ;;  %v16043_v21 = vld [vmem:[#allocation95_spill] sm:$0xff] }
 0x58f   :  { %16038 = vst [vmem:[#allocation92_spill] sm:$0xff] %v11904_v63  ;;  %vm3226_vm7 = vcmp.eq.s32.totalorder %v16040_v26, %v11266_v51  ;;  %v16041_v20 = vld [vmem:[#allocation102_spill] sm:$0xff]  ;;  %v11920_v63 = vsel %vm2967_vm2, 1.0, %v15867_v17  ;;  %v11923_v27 = vsel %vm3222_vm3, 1.0, %v15867_v17  ;;  %vm3228_vm9 = vcmp.eq.s32.totalorder %v16043_v21, %v11266_v51  ;;  %v16045_v47 = vld [vmem:[#allocation135_spill] sm:$0xff]  ;;  %v16047_v26 = vld [vmem:[#allocation97_spill] sm:$0xff] }
 0x590   :  { %16039 = vst [vmem:[#allocation132_spill] sm:$0xff] %v11910_v41  ;;  %vm3332_vm8 = vcmp.eq.s32.totalorder %v16041_v20, %v11266_v51  ;;  %16042 = vst [vmem:[#allocation94_spill] sm:$0xff] %v11920_v63  ;;  %v11928_v23 = vsel %vm2969_vm4, 1.0, %v15867_v17  ;;  %vm2973_vm10 = vcmp.eq.s32.totalorder %v16045_v47, %v11266_v51  ;;  %v11933_v20 = vpop.permute.xlu0 %5702  ;;  %v11939_v5 = vsel %vm3224_vm5, 1.0, %v15867_v17  ;;  %v16049_v16 = vld [vmem:[#allocation138_spill] sm:$0xff]  ;;  %v16050_v32 = vld [vmem:[#allocation99_spill] sm:$0xff]  ;;  %5635 = vperm.xlu0 %8397, %v11910_v41   ;;  %v11974_v63 = vpop.permute.xlu1 %5378 }
 0x591   :  { %16044 = vst [vmem:[#allocation102_spill] sm:$0xff] %v11928_v23  ;;  %8363 = vset.pattern.permute.xlu1 %v15556_v15  ;;  %16046 = vst [vmem:[#allocation95_spill] sm:$0xff] %v11933_v20  ;;  %vm3230_vm11 = vcmp.eq.s32.totalorder %v16047_v26, %v11266_v51  ;;  %v11947_v21 = vsel %vm2971_vm6, 1.0, %v15867_v17  ;;  %vm2975_vm12 = vcmp.eq.s32.totalorder %v16049_v16, %v11266_v51  ;;  %v11953_v20 = vsel %vm3226_vm7, 1.0, %v15867_v17  ;;  %v16051_v26 = vld [vmem:[#allocation140_spill] sm:$0xff]  ;;  %v16056_v41 = vld [vmem:[#allocation107_spill] sm:$0xff] }
 0x592   :  { %16048 = vst [vmem:[#allocation135_spill] sm:$0xff] %v11947_v21  ;;  %5941 = vperm.xlu1 %8363, %v11169_v36   ;;  %vm3232_vm13 = vcmp.eq.s32.totalorder %v16050_v32, %v11266_v51  ;;  %v7142_v23 = vsel %vm3332_vm8, 1.0, %v15867_v17  ;;  %vm2977_vm14 = vcmp.eq.s32.totalorder %v16051_v26, %v11266_v51  ;;  %v11962_v31 = vsel %vm3228_vm9, 1.0, %v15867_v17  ;;  %v16052_v16 = vld [vmem:[#allocation104_spill] sm:$0xff]  ;;  %v16053_v21 = vld [vmem:[#allocation105_spill] sm:$0xff]  ;;  %16055 = vst [vmem:[#allocation138_spill] sm:$0xff] %v11974_v63 }
 0x593   :  { %vm3333_vm15 = vcmp.eq.s32.totalorder %v16052_v16, %v11266_v51  ;;  %vm3335_vm0 = vcmp.eq.s32.totalorder %v16053_v21, %v11266_v51  ;;  %v11972_v32 = vsel %vm2973_vm10, 1.0, %v15867_v17  ;;  %v11977_v26 = vsel %vm3230_vm11, 1.0, %v15867_v17  ;;  %v16060_v63 = vld [vmem:[#allocation109_spill] sm:$0xff] }
 0x594   :  { %16054 = vst [vmem:[#allocation97_spill] sm:$0xff] %v11972_v32  ;;  %vm3337_vm1 = vcmp.eq.s32.totalorder %v16056_v41, %v11266_v51  ;;  %vm3444_vm2 = vcmp.eq.s32.totalorder %v16057_v46, %v11266_v51  ;;  %v11984_v16 = vsel %vm2975_vm12, 1.0, %v15867_v17  ;;  %v11986_v21 = vpop.permute.xlu0 %5711  ;;  %v11989_v47 = vsel %vm3232_vm13, 1.0, %v15867_v17  ;;  %8402 = vset.pattern.permute.xlu0 %v15570_v6 }
 0x595   :  { %16058 = vst [vmem:[#allocation99_spill] sm:$0xff] %v11984_v16  ;;  %16059 = vst [vmem:[#allocation140_spill] sm:$0xff] %v11986_v21  ;;  %v3380_v32 = vadd.f32 %v7142_v23, %v3268_v45  ;;  %vm3339_vm3 = vcmp.eq.s32.totalorder %v16060_v63, %v11266_v51  ;;  %v11994_v18 = vsel %vm2977_vm14, 1.0, %v15867_v17  ;;  %v11998_v41 = vsel %vm3333_vm15, 1.0, %v15867_v17  ;;  %v16063_v21 = vld [vmem:[#allocation110_spill] sm:$0xff]  ;;  %v16064_v16 = vld [vmem:[#allocation112_spill] sm:$0xff]  ;;  %2806 = vperm.xlu0 %8402, %v11186_v59  }
 0x596   :  { %16061 = vst [vmem:[#allocation104_spill] sm:$0xff] %v11994_v18  ;;  %8364 = vset.pattern.permute.xlu1 %v15495_v39  ;;  %v12001_v13 = vsel %vm3335_vm0, 1.0, %v15867_v17  ;;  %vm3341_vm4 = vcmp.eq.s32.totalorder %v16063_v21, %v11266_v51  ;;  %vm3343_vm5 = vcmp.eq.s32.totalorder %v16064_v16, %v11266_v51  ;;  %v12010_v63 = vsel %vm3337_vm1, 1.0, %v15867_v17  ;;  %v16066_v45 = vld [vmem:[#allocation114_spill] sm:$0xff]  ;;  %v16067_v23 = vld [vmem:[#allocation116_spill] sm:$0xff]  ;;  %v16069_v18 = vld [vmem:[#allocation119_spill] sm:$0xff] }
 0x597   :  { %16062 = vst [vmem:[#allocation105_spill] sm:$0xff] %v12001_v13  ;;  %6159 = vperm.xlu1 %8364, %v10494_v49   ;;  %16065 = vst [vmem:[#allocation107_spill] sm:$0xff] %v12010_v63  ;;  %vm3345_vm6 = vcmp.eq.s32.totalorder %v16066_v45, %v11266_v51  ;;  %vm3443_vm7 = vcmp.eq.s32.totalorder %v16067_v23, %v11266_v51  ;;  %v7158_v21 = vsel %vm3444_vm2, 1.0, %v15867_v17  ;;  %v12022_v16 = vsel %vm3339_vm3, 1.0, %v15867_v17  ;;  %v16070_v63 = vld [vmem:[#allocation121_spill] sm:$0xff]  ;;  %v16071_v45 = vld [vmem:[#allocation122_spill] sm:$0xff]  ;;  %v12030_v23 = vpop.permute.xlu1 %5708 }
 0x598   :  { %16068 = vst [vmem:[#allocation117_spill] sm:$0xff] %v12022_v16  ;;  %vm3446_vm8 = vcmp.eq.s32.totalorder %v16069_v18, %v11266_v51  ;;  %vm3448_vm9 = vcmp.eq.s32.totalorder %v16070_v63, %v11266_v51  ;;  %vm3450_vm10 = vcmp.eq.s32.totalorder %v16071_v45, %v11266_v51  ;;  %16072 = vst [vmem:[#allocation109_spill] sm:$0xff] %v12030_v23  ;;  %v12032_v13 = vpop.permute.xlu0 %5723  ;;  %v12035_v46 = vsel %vm3341_vm4, 1.0, %v15867_v17  ;;  %v16075_v16 = vld [vmem:[#allocation125_spill] sm:$0xff] }
 0x599   :  { %16073 = vst [vmem:[#allocation110_spill] sm:$0xff] %v12032_v13  ;;  %v12038_v59 = vsel %vm3343_vm5, 1.0, %v15867_v17  ;;  %vm3452_vm11 = vcmp.eq.s32.totalorder %v16075_v16, %v11266_v51  ;;  %v16076_v18 = vld [vmem:[#allocation133_spill] sm:$0xff]  ;;  %v12045_v63 = vsel %vm3345_vm6, 1.0, %v15867_v17  ;;  %v12048_v45 = vsel %vm3443_vm7, 1.0, %v15867_v17  ;;  %v16079_v13 = vld [vmem:[#allocation127_spill] sm:$0xff]  ;;  %2815 = vperm.xlu0 %8402, %v11198_v33  }
 0x59a   :  { %16074 = vst [vmem:[#allocation112_spill] sm:$0xff] %v12038_v59  ;;  %vm3556_vm12 = vcmp.eq.s32.totalorder %v16076_v18, %v11266_v51  ;;  %16077 = vst [vmem:[#allocation114_spill] sm:$0xff] %v12045_v63  ;;  %v3492_v23 = vadd.f32 %v7158_v21, %v3380_v32  ;;  %vm3454_vm13 = vcmp.eq.s32.totalorder %v16079_v13, %v11266_v51  ;;  %v12054_v59 = vsel %vm3446_vm8, 1.0, %v15867_v17  ;;  %v16083_v63 = vld [vmem:[#allocation129_spill] sm:$0xff]  ;;  %v16085_v21 = vld [vmem:[#allocation136_spill] sm:$0xff] }
 0x59b   :  { %16078 = vst [vmem:[#allocation116_spill] sm:$0xff] %v12048_v45  ;;  %8365 = vset.pattern.permute.xlu1 %v15543_v2  ;;  %16080 = vst [vmem:[#allocation119_spill] sm:$0xff] %v12054_v59  ;;  %v12057_v16 = vsel %vm3448_vm9, 1.0, %v15867_v17  ;;  %v12060_v18 = vsel %vm3450_vm10, 1.0, %v15867_v17  ;;  %vm3456_vm14 = vcmp.eq.s32.totalorder %v16083_v63, %v11266_v51  ;;  %v12067_v13 = vsel %vm3452_vm11, 1.0, %v15867_v17  ;;  %v16089_v63 = vld [vmem:[#allocation141_spill] sm:$0xff]  ;;  %v12085_v45 = vpop.permute.xlu1 %5926 }
 0x59c   :  { %16081 = vst [vmem:[#allocation121_spill] sm:$0xff] %v12057_v16  ;;  %16082 = vst [vmem:[#allocation122_spill] sm:$0xff] %v12060_v18  ;;  %5832 = vperm.xlu1 %8365, %v10693_v48   ;;  %v7174_v32 = vsel %vm3556_vm12, 1.0, %v15867_v17  ;;  %vm3557_vm15 = vcmp.eq.s32.totalorder %v16085_v21, %v11266_v51  ;;  %v16086_v16 = vld [vmem:[#allocation139_spill] sm:$0xff]  ;;  %v12074_v59 = vpop.permute.xlu0 %5726  ;;  %v12077_v18 = vsel %vm3454_vm13, 1.0, %v15867_v17  ;;  %vm3561_vm1 = vcmp.eq.s32.totalorder %v16089_v63, %v11266_v51  ;;  %v16090_v33 = vld [vmem:[#allocation142_spill] sm:$0xff] }
 0x59d   :  { %16084 = vst [vmem:[#allocation125_spill] sm:$0xff] %v12067_v13  ;;  %vm3559_vm0 = vcmp.eq.s32.totalorder %v16086_v16, %v11266_v51  ;;  %16087 = vst [vmem:[#allocation133_spill] sm:$0xff] %v12074_v59  ;;  %vm3563_vm2 = vcmp.eq.s32.totalorder %v16090_v33, %v11266_v51  ;;  %v16091_v13 = vld [vmem:[#allocation148_spill] sm:$0xff]  ;;  %v12088_v21 = vsel %vm3456_vm14, 1.0, %v15867_v17  ;;  %v16095_v59 = vld [vmem:[#allocation145_spill] sm:$0xff]  ;;  %v3604_v63 = vadd.f32 %v7174_v32, %v3492_v23 }
 0x59e   :  { %16088 = vst [vmem:[#allocation127_spill] sm:$0xff] %v12077_v18  ;;  %vm3668_vm3 = vcmp.eq.s32.totalorder %v16091_v13, %v11266_v51  ;;  %16092 = vst [vmem:[#allocation129_spill] sm:$0xff] %v12085_v45  ;;  %v16094_v16 = vld [vmem:[#allocation144_spill] sm:$0xff]  ;;  %vm3567_vm5 = vcmp.eq.s32.totalorder %v16095_v59, %v11266_v51  ;;  %v16096_v18 = vld [vmem:[#allocation146_spill] sm:$0xff]  ;;  %v12097_v33 = vsel %vm3557_vm15, 1.0, %v15867_v17  ;;  %v12100_v13 = vsel %vm3559_vm0, 1.0, %v15867_v17  ;;  %2821 = vperm.xlu0 %8402, %v11208_v34  }
 0x59f   :  { %16093 = vst [vmem:[#allocation136_spill] sm:$0xff] %v12088_v21  ;;  %vm3565_vm4 = vcmp.eq.s32.totalorder %v16094_v16, %v11266_v51  ;;  %vm3569_vm6 = vcmp.eq.s32.totalorder %v16096_v18, %v11266_v51  ;;  %16097 = vst [vmem:[#allocation139_spill] sm:$0xff] %v12097_v33  ;;  %v16099_v45 = vld [vmem:[#allocation147_spill] sm:$0xff]  ;;  %v12107_v16 = vsel %vm3561_vm1, 1.0, %v15867_v17  ;;  %v12110_v59 = vsel %vm3563_vm2, 1.0, %v15867_v17  ;;  %v16102_v18 = vld [vmem:[#allocation149_spill] sm:$0xff] }
 0x5a0   :  { %16098 = vst [vmem:[#allocation141_spill] sm:$0xff] %v12100_v13  ;;  %vm3667_vm7 = vcmp.eq.s32.totalorder %v16099_v45, %v11266_v51  ;;  %8366 = vset.pattern.permute.xlu1 %v15570_v6  ;;  %16100 = vst [vmem:[#allocation142_spill] sm:$0xff] %v12107_v16  ;;  %v7190_v23 = vsel %vm3668_vm3, 1.0, %v15867_v17  ;;  %vm3670_vm8 = vcmp.eq.s32.totalorder %v16102_v18, %v11266_v51  ;;  %v12116_v32 = vpop.permute.xlu0 %5741  ;;  %v12119_v45 = vsel %vm3565_vm4, 1.0, %v15867_v17  ;;  %v16109_v18 = vld [vmem:[#allocation150_spill] sm:$0xff]  ;;  %v12138_v13 = vpop.permute.xlu1 %5381 }
 0x5a1   :  { %16101 = vst [vmem:[#allocation148_spill] sm:$0xff] %v12110_v59  ;;  %6050 = vperm.xlu1 %8366, %v10957_v38   ;;  %16103 = vst [vmem:[#allocation144_spill] sm:$0xff] %v12116_v32  ;;  %v12122_v34 = vsel %vm3567_vm5, 1.0, %v15867_v17  ;;  %v12125_v21 = vsel %vm3569_vm6, 1.0, %v15867_v17  ;;  %v16107_v59 = vld [vmem:[#allocation165_spill] sm:$0xff]  ;;  %v12130_v16 = vsel %vm3667_vm7, 1.0, %v15867_v17  ;;  %vm3672_vm10 = vcmp.eq.s32.totalorder %v16109_v18, %v11266_v51 }
 0x5a2   :  { %16104 = vst [vmem:[#allocation145_spill] sm:$0xff] %v12119_v45  ;;  %16105 = vst [vmem:[#allocation146_spill] sm:$0xff] %v12122_v34  ;;  %vm3780_vm9 = vcmp.eq.s32.totalorder %v16107_v59, %v11266_v51  ;;  %v16110_v32 = vld [vmem:[#allocation151_spill] sm:$0xff]  ;;  %v16111_v45 = vld [vmem:[#allocation152_spill] sm:$0xff]  ;;  %v3716_v34 = vadd.f32 %v7190_v23, %v3604_v63  ;;  %2827 = vperm.xlu0 %8402, %v11220_v22   ;;  %v12157_v23 = vsel %vm3672_vm10, 1.0, %v15867_v17 }
 0x5a3   :  { %16106 = vst [vmem:[#allocation147_spill] sm:$0xff] %v12125_v21  ;;  %16108 = vst [vmem:[#allocation149_spill] sm:$0xff] %v12130_v16  ;;  %vm3674_vm11 = vcmp.eq.s32.totalorder %v16110_v32, %v11266_v51  ;;  %vm3676_vm12 = vcmp.eq.s32.totalorder %v16111_v45, %v11266_v51  ;;  %v12141_v21 = vsel %vm3670_vm8, 1.0, %v15867_v17  ;;  %v16114_v59 = vld [vmem:[#allocation153_spill] sm:$0xff]  ;;  %v16115_v16 = vld [vmem:[#allocation156_spill] sm:$0xff]  ;;  %v7206_v18 = vsel %vm3780_vm9, 1.0, %v15867_v17 }
 0x5a4   :  { %16112 = vst [vmem:[#allocation165_spill] sm:$0xff] %v12138_v13  ;;  %16113 = vst [vmem:[#allocation150_spill] sm:$0xff] %v12141_v21  ;;  %vm3678_vm13 = vcmp.eq.s32.totalorder %v16114_v59, %v11266_v51  ;;  %vm3680_vm14 = vcmp.eq.s32.totalorder %v16115_v16, %v11266_v51  ;;  %v16116_v32 = vld [vmem:[#allocation168_spill] sm:$0xff]  ;;  %v16117_v45 = vld [vmem:[#allocation170_spill] sm:$0xff]  ;;  %v12160_v16 = vsel %vm3674_vm11, 1.0, %v15867_v17  ;;  %v12163_v22 = vsel %vm3676_vm12, 1.0, %v15867_v17 }
 0x5a5   :  { %vm3781_vm15 = vcmp.eq.s32.totalorder %v16116_v32, %v11266_v51  ;;  %vm3783_vm0 = vcmp.eq.s32.totalorder %v16117_v45, %v11266_v51  ;;  %v16118_v63 = vld [vmem:[#allocation158_spill] sm:$0xff]  ;;  %8367 = vset.pattern.permute.xlu1 %v15543_v2  ;;  %16119 = vst [vmem:[#allocation151_spill] sm:$0xff] %v12157_v23  ;;  %16120 = vst [vmem:[#allocation152_spill] sm:$0xff] %v12160_v16  ;;  %v12168_v32 = vpop.permute.xlu0 %2358  ;;  %v12171_v45 = vsel %vm3678_vm13, 1.0, %v15867_v17  ;;  %v12179_v16 = vadd.s32 4294966912, %v11231_v43 }
 0x5a6   :  { %vm3893_vm1 = vcmp.eq.s32.totalorder %v16118_v63, %v11266_v51  ;;  %16121 = vst [vmem:[#allocation153_spill] sm:$0xff] %v12163_v22  ;;  %v16122_v59 = vld [vmem:[#allocation162_spill] sm:$0xff]  ;;  %5835 = vperm.xlu1 %8367, %v10965_v37   ;;  %16123 = vst [vmem:[#allocation156_spill] sm:$0xff] %v12168_v32  ;;  %v12174_v63 = vsel %vm3680_vm14, 1.0, %v15867_v17  ;;  %v12181_v22 = vadd.f32 %v7206_v18, %v3716_v34  ;;  %v12187_v23 = vsel %vm3783_vm0, 1.0, %v15867_v17  ;;  %v16133_v34 = vld [vmem:[#allocation169_spill] sm:$0xff] }
 0x5a7   :  { %vm3895_vm2 = vcmp.eq.s32.totalorder %v16122_v59, %v11266_v51  ;;  %16124 = vst [vmem:[#allocation168_spill] sm:$0xff] %v12171_v45  ;;  %16125 = vst [vmem:[#allocation170_spill] sm:$0xff] %v12174_v63  ;;  %v16126_v13 = vld [vmem:[#allocation166_spill] sm:$0xff]  ;;  %v12184_v59 = vsel %vm3781_vm15, 1.0, %v15867_v17  ;;  %v12190_v32 = vsel %vm3893_vm1, 1.0, %v15867_v17  ;;  %v12192_v45 = vpop.permute.xlu1 %5493  ;;  %2833 = vperm.xlu0 %8402, %v11231_v43   ;;  %v16132_v63 = vld [vmem:[#allocation167_spill] sm:$0xff]  ;;  %vm3901_vm5 = vcmp.eq.s32.totalorder %v16133_v34, %v11266_v51 }
 0x5a8   :  { %vm3897_vm3 = vcmp.eq.s32.totalorder %v16126_v13, %v11266_v51  ;;  %16127 = vst [vmem:[#allocation158_spill] sm:$0xff] %v12184_v59  ;;  %16128 = vst [vmem:[#allocation162_spill] sm:$0xff] %v12187_v23  ;;  %v12196_v13 = vsel %vm3895_vm2, 1.0, %v15867_v17  ;;  %vm3899_vm4 = vcmp.eq.s32.totalorder %v16132_v63, %v11266_v51  ;;  %v16134_v18 = vld [vmem:[#allocation171_spill] sm:$0xff]  ;;  %v16137_v43 = vld [vmem:[#allocation173_spill] sm:$0xff]  ;;  %vm5115_vm12 = vcmp.eq.s32.totalorder %v10599_v62, %v11266_v51 }
 0x5a9   :  { %16129 = vst [vmem:[#allocation166_spill] sm:$0xff] %v12190_v32  ;;  %16130 = vst [vmem:[#allocation341_spill] sm:$0xff] %v12192_v45  ;;  %vm3903_vm6 = vcmp.eq.s32.totalorder %v16134_v18, %v11266_v51  ;;  %v12205_v21 = vsel %vm3897_vm3, 1.0, %v15867_v17  ;;  %v16136_v32 = vld [vmem:[#allocation172_spill] sm:$0xff]  ;;  %vm5108_vm8 = vcmp.eq.s32.totalorder %v16137_v43, %v11266_v51  ;;  %v16138_v45 = vld [vmem:[#allocation174_spill] sm:$0xff]  ;;  %v12214_v63 = vpop.permute.xlu0 %2367  ;;  %vm5117_vm13 = vcmp.eq.s32.totalorder %v10608_v52, %v11266_v51 }
 0x5aa   :  { %16131 = vst [vmem:[#allocation342_spill] sm:$0xff] %v12196_v13  ;;  %16135 = vst [vmem:[#allocation167_spill] sm:$0xff] %v12205_v21  ;;  %vm3905_vm7 = vcmp.eq.s32.totalorder %v16136_v32, %v11266_v51  ;;  %vm5109_vm9 = vcmp.eq.s32.totalorder %v16138_v45, %v11266_v51  ;;  %8368 = vset.pattern.permute.xlu1 %v15761_v44  ;;  %v16140_v34 = vld [vmem:[#allocation176_spill] sm:$0xff]  ;;  %v16141_v18 = vld [vmem:[#allocation177_spill] sm:$0xff]  ;;  %vm3785_vm14 = vcmp.eq.s32.totalorder %v10616_v9, %v11266_v51 }
 0x5ab   :  { %16139 = vst [vmem:[#allocation169_spill] sm:$0xff] %v12214_v63  ;;  %vm5111_vm10 = vcmp.eq.s32.totalorder %v16140_v34, %v11266_v51  ;;  %vm5114_vm11 = vcmp.eq.s32.totalorder %v16141_v18, %v11266_v51  ;;  %5396 = vperm.xlu1 %8368, %v12179_v16   ;;  %v12228_v32 = vsel %vm3899_vm4, 1.0, %v15867_v17  ;;  %v12231_v45 = vsel %vm3901_vm5, 1.0, %v15867_v17  ;;  %2839 = vperm.xlu0 %8402, %v11242_v3   ;;  %v12248_v9 = vpop.permute.xlu1 %5929  ;;  %v16237_v21 = vld [vmem:[#allocation223_spill] sm:$0xff]  ;;  %v3957_v33 = vld [vmem:[%s15234_s2 + $0x98] sm:$0xff] }
 0x5ac   :  { %16142 = vst [vmem:[#allocation171_spill] sm:$0xff] %v12228_v32  ;;  %16143 = vst [vmem:[#allocation172_spill] sm:$0xff] %v12231_v45  ;;  %v12234_v43 = vsel %vm3903_vm6, 1.0, %v15867_v17  ;;  %v12238_v62 = vsel %vm3905_vm7, 1.0, %v15867_v17  ;;  %v12241_v52 = vsel %vm5108_vm8, 1.0, %v15867_v17  ;;  %v12244_v34 = vsel %vm5109_vm9, 1.0, %v15867_v17 }
 0x5ad   :  { %16144 = vst [vmem:[#allocation173_spill] sm:$0xff] %v12234_v43  ;;  %16145 = vst [vmem:[#allocation174_spill] sm:$0xff] %v12238_v62  ;;  %vm2627_vm15 = vcmp.eq.s32.totalorder %v10618_v50, %v11266_v51  ;;  %v12251_v18 = vsel %vm5111_vm10, 1.0, %v15867_v17  ;;  %v12254_v43 = vsel %vm5114_vm11, 1.0, %v15867_v17  ;;  %v12257_v3 = vsel %vm5115_vm12, 1.0, %v15867_v17  ;;  %v12262_v45 = vpop.permute.xlu0 %2373  ;;  %v16154_v50 = vld [vmem:[#allocation178_spill] sm:$0xff] }
 0x5ae   :  { %16146 = vst [vmem:[#allocation176_spill] sm:$0xff] %v12244_v34  ;;  %16147 = vst [vmem:[#allocation177_spill] sm:$0xff] %v12248_v9  ;;  %v12260_v62 = vsel %vm5117_vm13, 1.0, %v15867_v17  ;;  %v12265_v34 = vsel %vm3785_vm14, 1.0, %v15867_v17  ;;  %vm3787_vm0 = vcmp.eq.s32.totalorder %v10626_v61, %v11266_v51  ;;  %vm3892_vm1 = vcmp.eq.s32.totalorder %v10664_v24, %v11266_v51  ;;  %v16156_v9 = vld [vmem:[#allocation181_spill] sm:$0xff]  ;;  %v16159_v61 = vld [vmem:[#allocation183_spill] sm:$0xff] }
 0x5af   :  { %16148 = vst [vmem:[#allocation343_spill] sm:$0xff] %v12251_v18  ;;  %16149 = vst [vmem:[#allocation344_spill] sm:$0xff] %v12254_v43  ;;  %vm2630_vm2 = vcmp.eq.s32.totalorder %v16154_v50, %v11266_v51  ;;  %8369 = vset.pattern.permute.xlu1 %v15514_v53  ;;  %vm3791_vm4 = vcmp.eq.s32.totalorder %v16156_v9, %v11266_v51  ;;  %v12279_v43 = vsel %vm2627_vm15, 1.0, %v15867_v17  ;;  %v16158_v18 = vld [vmem:[#allocation180_spill] sm:$0xff]  ;;  %2845 = vperm.xlu0 %8402, %v11254_v1   ;;  %v16160_v24 = vld [vmem:[#allocation185_spill] sm:$0xff] }
 0x5b0   :  { %16150 = vst [vmem:[#allocation345_spill] sm:$0xff] %v12257_v3  ;;  %16151 = vst [vmem:[#allocation346_spill] sm:$0xff] %v12260_v62  ;;  %v16155_v3 = vld [vmem:[#allocation179_spill] sm:$0xff]  ;;  %vm2632_vm5 = vcmp.eq.s32.totalorder %v16158_v18, %v11266_v51  ;;  %5508 = vperm.xlu1 %8369, %v12179_v16   ;;  %vm3793_vm6 = vcmp.eq.s32.totalorder %v16159_v61, %v11266_v51  ;;  %vm3891_vm7 = vcmp.eq.s32.totalorder %v16160_v24, %v11266_v51  ;;  %v16161_v50 = vld [vmem:[#allocation182_spill] sm:$0xff]  ;;  %v12302_v61 = vpop.permute.xlu1 %5602 }
 0x5b1   :  { %16152 = vst [vmem:[#allocation347_spill] sm:$0xff] %v12262_v45  ;;  %16153 = vst [vmem:[#allocation348_spill] sm:$0xff] %v12265_v34  ;;  %vm3789_vm3 = vcmp.eq.s32.totalorder %v16155_v3, %v11266_v51  ;;  %vm2634_vm8 = vcmp.eq.s32.totalorder %v16161_v50, %v11266_v51  ;;  %v16162_v45 = vld [vmem:[#allocation184_spill] sm:$0xff]  ;;  %v7222_v18 = vsel %vm3892_vm1, 1.0, %v15867_v17  ;;  %v12298_v63 = vsel %vm2630_vm2, 1.0, %v15867_v17  ;;  %v16165_v1 = vld [vmem:[#allocation186_spill] sm:$0xff]  ;;  %v12304_v24 = vpop.permute.xlu0 %2379 }
 0x5b2   :  { %16157 = vst [vmem:[#allocation178_spill] sm:$0xff] %v12279_v43  ;;  %vm2636_vm9 = vcmp.eq.s32.totalorder %v16162_v45, %v11266_v51  ;;  %v12294_v43 = vsel %vm3787_vm0, 1.0, %v15867_v17  ;;  %16164 = vst [vmem:[#allocation181_spill] sm:$0xff] %v12298_v63  ;;  %vm2638_vm10 = vcmp.eq.s32.totalorder %v16165_v1, %v11266_v51  ;;  %v12310_v45 = vsel %vm3789_vm3, 1.0, %v15867_v17  ;;  %v16171_v1 = vld [vmem:[#allocation187_spill] sm:$0xff] }
 0x5b3   :  { %16163 = vst [vmem:[#allocation179_spill] sm:$0xff] %v12294_v43  ;;  %16166 = vst [vmem:[#allocation180_spill] sm:$0xff] %v12302_v61  ;;  %v12316_v50 = vsel %vm3791_vm4, 1.0, %v15867_v17  ;;  %v12319_v63 = vsel %vm2632_vm5, 1.0, %v15867_v17  ;;  %vm2640_vm11 = vcmp.eq.s32.totalorder %v16171_v1, %v11266_v51  ;;  %v12324_v61 = vsel %vm3793_vm6, 1.0, %v15867_v17  ;;  %3734 = vperm.xlu0 %8402, %v9955_v11   ;;  %v16177_v1 = vld [vmem:[#allocation188_spill] sm:$0xff] }
 0x5b4   :  { %16167 = vst [vmem:[#allocation183_spill] sm:$0xff] %v12304_v24  ;;  %16168 = vst [vmem:[#allocation185_spill] sm:$0xff] %v12310_v45  ;;  %v12327_v24 = vsel %vm3891_vm7, 1.0, %v15867_v17  ;;  %v12330_v3 = vsel %vm2634_vm8, 1.0, %v15867_v17  ;;  %v12333_v45 = vsel %vm2636_vm9, 1.0, %v15867_v17  ;;  %8370 = vset.pattern.permute.xlu1 %v15556_v15  ;;  %v12338_v9 = vadd.f32 %v7222_v18, %v12181_v22  ;;  %v16183_v22 = vld [vmem:[#allocation191_spill] sm:$0xff] }
 0x5b5   :  { %16169 = vst [vmem:[#allocation182_spill] sm:$0xff] %v12316_v50  ;;  %16170 = vst [vmem:[#allocation184_spill] sm:$0xff] %v12319_v63  ;;  %vm3894_vm12 = vcmp.eq.s32.totalorder %v16177_v1, %v11266_v51  ;;  %v12343_v63 = vsel %vm2638_vm10, 1.0, %v15867_v17  ;;  %5944 = vperm.xlu1 %8370, %v10693_v48   ;;  %v12353_v11 = vsel %vm2640_vm11, 1.0, %v15867_v17  ;;  %vm3558_vm0 = vcmp.eq.s32.totalorder %v16183_v22, %v11266_v51  ;;  %v12357_v18 = vpop.permute.xlu0 %2385  ;;  %v16185_v1 = vld [vmem:[#allocation194_spill] sm:$0xff]  ;;  %v16191_v22 = vld [vmem:[#allocation200_spill] sm:$0xff] }
 0x5b6   :  { %16172 = vst [vmem:[#allocation186_spill] sm:$0xff] %v12324_v61  ;;  %16173 = vst [vmem:[#allocation187_spill] sm:$0xff] %v12327_v24  ;;  %v16179_v61 = vld [vmem:[#allocation189_spill] sm:$0xff]  ;;  %vm3900_vm1 = vcmp.eq.s32.totalorder %v16185_v1, %v11266_v51  ;;  %vm3904_vm5 = vcmp.eq.s32.totalorder %v16191_v22, %v11266_v51  ;;  %v16193_v1 = vld [vmem:[#allocation198_spill] sm:$0xff] }
 0x5b7   :  { %16174 = vst [vmem:[#allocation349_spill] sm:$0xff] %v12330_v3  ;;  %16175 = vst [vmem:[#allocation350_spill] sm:$0xff] %v12333_v45  ;;  %vm3555_vm13 = vcmp.eq.s32.totalorder %v16179_v61, %v11266_v51  ;;  %v16180_v45 = vld [vmem:[#allocation190_spill] sm:$0xff]  ;;  %v16181_v3 = vld [vmem:[#allocation192_spill] sm:$0xff]  ;;  %vm3564_vm6 = vcmp.eq.s32.totalorder %v16193_v1, %v11266_v51  ;;  %3743 = vperm.xlu0 %8402, %v15816_v19   ;;  %v12393_v22 = vsel %vm3900_vm1, 1.0, %v15867_v17 }
 0x5b8   :  { %16176 = vst [vmem:[#allocation351_spill] sm:$0xff] %v12338_v9  ;;  %16178 = vst [vmem:[#allocation188_spill] sm:$0xff] %v12343_v63  ;;  %vm3896_vm14 = vcmp.eq.s32.totalorder %v16180_v45, %v11266_v51  ;;  %vm3898_vm15 = vcmp.eq.s32.totalorder %v16181_v3, %v11266_v51  ;;  %v16186_v61 = vld [vmem:[#allocation197_spill] sm:$0xff]  ;;  %v16188_v45 = vld [vmem:[#allocation195_spill] sm:$0xff]  ;;  %v12367_v3 = vpop.permute.xlu1 %6038 }
 0x5b9   :  { %16182 = vst [vmem:[#allocation189_spill] sm:$0xff] %v12353_v11  ;;  %16184 = vst [vmem:[#allocation190_spill] sm:$0xff] %v12357_v18  ;;  %vm3902_vm2 = vcmp.eq.s32.totalorder %v16186_v61, %v11266_v51  ;;  %v16187_v63 = vld [vmem:[#allocation193_spill] sm:$0xff]  ;;  %vm3562_vm4 = vcmp.eq.s32.totalorder %v16188_v45, %v11266_v51  ;;  %v12370_v11 = vsel %vm3894_vm12, 1.0, %v15867_v17  ;;  %v12375_v18 = vsel %vm3555_vm13, 1.0, %v15867_v17  ;;  %8371 = vset.pattern.permute.xlu1 %v15495_v39  ;;  %v16207_v9 = vld [vmem:[#allocation204_spill] sm:$0xff] }
 0x5ba   :  { %vm3560_vm3 = vcmp.eq.s32.totalorder %v16187_v63, %v11266_v51  ;;  %16189 = vst [vmem:[#allocation192_spill] sm:$0xff] %v12367_v3  ;;  %16190 = vst [vmem:[#allocation191_spill] sm:$0xff] %v12370_v11  ;;  %v12381_v63 = vsel %vm3896_vm14, 1.0, %v15867_v17  ;;  %v12384_v61 = vsel %vm3898_vm15, 1.0, %v15867_v17  ;;  %v12387_v45 = vsel %vm3558_vm0, 1.0, %v15867_v17  ;;  %v16197_v3 = vld [vmem:[#allocation201_spill] sm:$0xff]  ;;  %6162 = vperm.xlu1 %8371, %v10957_v38  }
 0x5bb   :  { %16192 = vst [vmem:[#allocation194_spill] sm:$0xff] %v12375_v18  ;;  %16194 = vst [vmem:[#allocation197_spill] sm:$0xff] %v12381_v63  ;;  %vm3566_vm7 = vcmp.eq.s32.totalorder %v16197_v3, %v11266_v51  ;;  %v12396_v1 = vsel %vm3902_vm2, 1.0, %v15867_v17  ;;  %v12399_v19 = vsel %vm3560_vm3, 1.0, %v15867_v17  ;;  %v12402_v63 = vsel %vm3562_vm4, 1.0, %v15867_v17  ;;  %v16204_v11 = vld [vmem:[#allocation202_spill] sm:$0xff]  ;;  %3749 = vperm.xlu0 %8402, %v9971_v14  }
 0x5bc   :  { %16195 = vst [vmem:[#allocation193_spill] sm:$0xff] %v12384_v61  ;;  %16196 = vst [vmem:[#allocation195_spill] sm:$0xff] %v12387_v45  ;;  %v12405_v61 = vpop.permute.xlu0 %2391  ;;  %v12408_v3 = vsel %vm3904_vm5, 1.0, %v15867_v17  ;;  %vm4324_vm8 = vcmp.eq.s32.totalorder %v16204_v11, %v11266_v51  ;;  %vm4326_vm10 = vcmp.eq.s32.totalorder %v16207_v9, %v11266_v51  ;;  %v12422_v38 = vsel %vm3566_vm7, 1.0, %v15867_v17  ;;  %v16212_v11 = vld [vmem:[#allocation208_spill] sm:$0xff]  ;;  %v16215_v50 = vld [vmem:[#allocation209_spill] sm:$0xff] }
 0x5bd   :  { %16198 = vst [vmem:[#allocation200_spill] sm:$0xff] %v12393_v22  ;;  %16199 = vst [vmem:[#allocation198_spill] sm:$0xff] %v12396_v1  ;;  %v12413_v22 = vsel %vm3564_vm6, 1.0, %v15867_v17  ;;  %v16206_v1 = vld [vmem:[#allocation203_spill] sm:$0xff]  ;;  %vm4329_vm13 = vcmp.eq.s32.totalorder %v16212_v11, %v11266_v51  ;;  %vm4780_vm0 = vcmp.eq.s32.totalorder %v16215_v50, %v11266_v51  ;;  %v7254_v50 = vsel %vm4326_vm10, 1.0, %v15867_v17  ;;  %v16232_v45 = vld [vmem:[#allocation217_spill] sm:$0xff] }
 0x5be   :  { %16200 = vst [vmem:[#allocation201_spill] sm:$0xff] %v12399_v19  ;;  %16201 = vst [vmem:[#allocation352_spill] sm:$0xff] %v12402_v63  ;;  %vm3568_vm9 = vcmp.eq.s32.totalorder %v16206_v1, %v11266_v51  ;;  %v16208_v63 = vld [vmem:[#allocation206_spill] sm:$0xff]  ;;  %v16218_v11 = vld [vmem:[#allocation211_spill] sm:$0xff]  ;;  %8372 = vset.pattern.permute.xlu1 %v15514_v53 }
 0x5bf   :  { %16202 = vst [vmem:[#allocation353_spill] sm:$0xff] %v12405_v61  ;;  %16203 = vst [vmem:[#allocation354_spill] sm:$0xff] %v12408_v3  ;;  %vm4327_vm11 = vcmp.eq.s32.totalorder %v16208_v63, %v11266_v51  ;;  %v16210_v61 = vld [vmem:[#allocation205_spill] sm:$0xff]  ;;  %v12426_v3 = vpop.permute.xlu1 %5605  ;;  %v16213_v1 = vld [vmem:[#allocation210_spill] sm:$0xff]  ;;  %v12443_v14 = vsel %vm3568_vm9, 1.0, %v15867_v17  ;;  %vm5862_vm2 = vcmp.eq.s32.totalorder %v16218_v11, %v11266_v51  ;;  %v12476_v63 = vsel %vm4780_vm0, 1.0, %v15867_v17  ;;  %3755 = vperm.xlu0 %8402, %v9977_v8  }
 0x5c0   :  { %16205 = vst [vmem:[#allocation202_spill] sm:$0xff] %v12413_v22  ;;  %16209 = vst [vmem:[#allocation203_spill] sm:$0xff] %v12422_v38  ;;  %vm4774_vm12 = vcmp.eq.s32.totalorder %v16210_v61, %v11266_v51  ;;  %vm4331_vm14 = vcmp.eq.s32.totalorder %v16213_v1, %v11266_v51  ;;  %v16214_v22 = vld [vmem:[#allocation207_spill] sm:$0xff]  ;;  %v12438_v38 = vsel %vm4324_vm8, 1.0, %v15867_v17  ;;  %v16216_v61 = vld [vmem:[#allocation212_spill] sm:$0xff]  ;;  %v12448_v1 = vpop.permute.xlu0 %2397  ;;  %v12485_v24 = vsel %vm5862_vm2, 1.0, %v15867_v17 }
 0x5c1   :  { %16211 = vst [vmem:[#allocation204_spill] sm:$0xff] %v12426_v3  ;;  %vm4779_vm15 = vcmp.eq.s32.totalorder %v16214_v22, %v11266_v51  ;;  %vm4333_vm1 = vcmp.eq.s32.totalorder %v16216_v61, %v11266_v51  ;;  %16217 = vst [vmem:[#allocation206_spill] sm:$0xff] %v12443_v14  ;;  %v12458_v22 = vsel %vm4327_vm11, 1.0, %v15867_v17  ;;  %v12461_v61 = vsel %vm4774_vm12, 1.0, %v15867_v17  ;;  %v16221_v11 = vld [vmem:[#allocation213_spill] sm:$0xff]  ;;  %v16222_v3 = vld [vmem:[#allocation196_spill] sm:$0xff] }
 0x5c2   :  { %16219 = vst [vmem:[#allocation205_spill] sm:$0xff] %v12448_v1  ;;  %16220 = vst [vmem:[#allocation208_spill] sm:$0xff] %v12461_v61  ;;  %vm5863_vm3 = vcmp.eq.s32.totalorder %v16221_v11, %v11266_v51  ;;  %5511 = vperm.xlu1 %8372, %v16222_v3   ;;  %v12467_v1 = vsel %vm4329_vm13, 1.0, %v15867_v17  ;;  %v12470_v9 = vsel %vm4331_vm14, 1.0, %v15867_v17  ;;  %v12473_v14 = vsel %vm4779_vm15, 1.0, %v15867_v17  ;;  %v16225_v11 = vld [vmem:[#allocation214_spill] sm:$0xff] }
 0x5c3   :  { %16223 = vst [vmem:[#allocation210_spill] sm:$0xff] %v12473_v14  ;;  %16224 = vst [vmem:[#allocation207_spill] sm:$0xff] %v12476_v63  ;;  %v12480_v61 = vsel %vm4333_vm1, 1.0, %v15867_v17  ;;  %vm4335_vm4 = vcmp.eq.s32.totalorder %v16225_v11, %v11266_v51  ;;  %v16227_v19 = vld [vmem:[#allocation221_spill] sm:$0xff]  ;;  %v12489_v32 = vpop.permute.xlu1 %6041  ;;  %v16229_v14 = vld [vmem:[#allocation216_spill] sm:$0xff]  ;;  %v12494_v63 = vsel %vm5863_vm3, 1.0, %v15867_v17  ;;  %vm5869_vm8 = vcmp.eq.s32.totalorder %v16232_v45, %v11266_v51  ;;  %3761 = vperm.xlu0 %8402, %v9985_v60  }
 0x5c4   :  { %16226 = vst [vmem:[#allocation209_spill] sm:$0xff] %v12485_v24  ;;  %vm2179_vm5 = vcmp.eq.s32.totalorder %v16227_v19, %v11266_v51  ;;  %16228 = vst [vmem:[#allocation212_spill] sm:$0xff] %v12489_v32  ;;  %vm4337_vm6 = vcmp.eq.s32.totalorder %v16229_v14, %v11266_v51  ;;  %v16231_v8 = vld [vmem:[#allocation215_spill] sm:$0xff]  ;;  %v12500_v11 = vpop.permute.xlu0 %3286  ;;  %v16234_v24 = vld [vmem:[#allocation218_spill] sm:$0xff]  ;;  %vm2188_vm12 = vcmp.eq.s32.totalorder %v16237_v21, %v11266_v51  ;;  %v12539_v60 = vsel %vm5869_vm8, 1.0, %v15867_v17 }
 0x5c5   :  { %16230 = vst [vmem:[#allocation211_spill] sm:$0xff] %v12494_v63  ;;  %vm5864_vm7 = vcmp.eq.s32.totalorder %v16231_v8, %v11266_v51  ;;  %16233 = vst [vmem:[#allocation213_spill] sm:$0xff] %v12500_v11  ;;  %vm4339_vm9 = vcmp.eq.s32.totalorder %v16234_v24, %v11266_v51  ;;  %v16235_v19 = vld [vmem:[#allocation222_spill] sm:$0xff]  ;;  %v16236_v32 = vld [vmem:[#allocation219_spill] sm:$0xff]  ;;  %v12512_v63 = vsel %vm4335_vm4, 1.0, %v15867_v17  ;;  %v6965_v13 = vsel %vm2179_vm5, 1.0, %v15867_v17 }
 0x5c6   :  { %vm4438_vm10 = vcmp.eq.s32.totalorder %v16235_v19, %v11266_v51  ;;  %vm5870_vm11 = vcmp.eq.s32.totalorder %v16236_v32, %v11266_v51  ;;  %8373 = vset.pattern.permute.xlu1 %v15534_v7  ;;  %v16238_v43 = vld [vmem:[#allocation225_spill] sm:$0xff]  ;;  %v16239_v24 = vld [vmem:[#allocation227_spill] sm:$0xff]  ;;  %v12525_v21 = vsel %vm4337_vm6, 1.0, %v15867_v17  ;;  %v16240_v32 = vld [vmem:[#allocation220_spill] sm:$0xff]  ;;  %v12533_v19 = vsel %vm5864_vm7, 1.0, %v15867_v17  ;;  %16242 = vst [vmem:[#allocation214_spill] sm:$0xff] %v12539_v60 }
 0x5c7   :  { %vm2190_vm13 = vcmp.eq.s32.totalorder %v16238_v43, %v11266_v51  ;;  %vm2192_vm14 = vcmp.eq.s32.totalorder %v16239_v24, %v11266_v51  ;;  %5729 = vperm.xlu1 %8373, %v16010_v58   ;;  %vm4437_vm15 = vcmp.eq.s32.totalorder %v16240_v32, %v11266_v51  ;;  %16241 = vst [vmem:[#allocation196_spill] sm:$0xff] %v12533_v19  ;;  %v12542_v18 = vsel %vm4339_vm9, 1.0, %v15867_v17  ;;  %v12549_v59 = vpop.permute.xlu1 %5496  ;;  %v16247_v19 = vld [vmem:[#allocation224_spill] sm:$0xff]  ;;  %v16249_v43 = vld [vmem:[#allocation229_spill] sm:$0xff]  ;;  %v16250_v24 = vld [vmem:[#allocation231_spill] sm:$0xff] }
 0x5c8   :  { %16243 = vst [vmem:[#allocation221_spill] sm:$0xff] %v12542_v18  ;;  %v7270_v14 = vsel %vm4438_vm10, 1.0, %v15867_v17  ;;  %v12546_v34 = vsel %vm5870_vm11, 1.0, %v15867_v17  ;;  %v6974_v23 = vsel %vm2188_vm12, 1.0, %v15867_v17  ;;  %16245 = vst [vmem:[#allocation215_spill] sm:$0xff] %v12549_v59  ;;  %v12551_v8 = vpop.permute.xlu0 %3295  ;;  %vm4440_vm0 = vcmp.eq.s32.totalorder %v16247_v19, %v11266_v51  ;;  %v3954_v59 = vld [vmem:[%s15234_s2 + $0x80] sm:$0xff]  ;;  %3767 = vperm.xlu0 %8402, %v9993_v10  }
 0x5c9   :  { %16244 = vst [vmem:[#allocation216_spill] sm:$0xff] %v12546_v34  ;;  %16246 = vst [vmem:[#allocation217_spill] sm:$0xff] %v12551_v8  ;;  %v12556_v45 = vadd.f32 %v11414_v28, %v6965_v13  ;;  %v6976_v60 = vsel %vm2190_vm13, 1.0, %v15867_v17  ;;  %v6978_v34 = vsel %vm2192_vm14, 1.0, %v15867_v17  ;;  %v3955_v8 = vld [vmem:[%s15234_s2 + $0x88] sm:$0xff]  ;;  %v3956_v28 = vld [vmem:[%s15234_s2 + $0x90] sm:$0xff]  ;;  %vm3107_vm1 = vcmp.eq.s32.totalorder %v16249_v43, %v11266_v51 }
 0x5ca   :  { %v12579_v13 = vsel %vm4437_vm15, 1.0, %v15867_v17  ;;  %vm3110_vm2 = vcmp.eq.s32.totalorder %v16250_v24, %v11266_v51  ;;  %v4486_v11 = vadd.f32 %v7270_v14, %v7254_v50  ;;  %v16251_v32 = vld [vmem:[#allocation226_spill] sm:$0xff]  ;;  %v12593_v62 = vadd.f32 %v11440_v42, %v6974_v23  ;;  %v16258_v19 = vld [vmem:[#allocation233_spill] sm:$0xff]  ;;  %v16261_v43 = vld [vmem:[#allocation235_spill] sm:$0xff] }
 0x5cb   :  { %16248 = vst [vmem:[#allocation218_spill] sm:$0xff] %v12556_v45  ;;  %8374 = vset.pattern.permute.xlu1 %v15495_v39  ;;  %v8074_v45 = vpack.c.bf16 %v3955_v8, %v3954_v59  ;;  %vm4442_vm3 = vcmp.eq.s32.totalorder %v16251_v32, %v11266_v51  ;;  %v8078_v18 = vpack.c.bf16 %v3957_v33, %v3956_v28  ;;  %v12600_v10 = vsel %vm4440_vm0, 1.0, %v15867_v17  ;;  %v16253_v59 = vld [vmem:[#allocation228_spill] sm:$0xff]  ;;  %v16257_v33 = vld [vmem:[#allocation230_spill] sm:$0xff]  ;;  %v16262_v32 = vld [vmem:[#allocation239_spill] sm:$0xff] }
 0x5cc   :  { %16252 = vst [vmem:[#allocation222_spill] sm:$0xff] %v12593_v62  ;;  %6165 = vperm.xlu1 %8374, %v11169_v36   ;;  %vm4444_vm4 = vcmp.eq.s32.totalorder %v16253_v59, %v11266_v51  ;;  %v12605_v50 = vadd.f32 %v11447_v25, %v6976_v60  ;;  %v12608_v14 = vadd.f32 %v11450_v12, %v6978_v34  ;;  %v12610_v42 = vpop.permute.xlu0 %3301  ;;  %v7109_v23 = vsel %vm3107_vm1, 1.0, %v15867_v17  ;;  %v12624_v12 = vpop.permute.xlu1 %5714  ;;  %v3958_v34 = vld [vmem:[%s15234_s2 + $0xa0] sm:$0xff]  ;;  %v3959_v60 = vld [vmem:[%s15234_s2 + $0xa8] sm:$0xff] }
 0x5cd   :  { %16256 = vst [vmem:[#allocation225_spill] sm:$0xff] %v12610_v42  ;;  %8075 = vmatprep.subr.bf16.mxu0 %v8074_v45  ;;  %vm4446_vm5 = vcmp.eq.s32.totalorder %v16257_v33, %v11266_v51  ;;  %v7112_v25 = vsel %vm3110_vm2, 1.0, %v15867_v17  ;;  %vm3112_vm6 = vcmp.eq.s32.totalorder %v16258_v19, %v11266_v51  ;;  %16259 = vst [vmem:[#allocation227_spill] sm:$0xff] %v12624_v12  ;;  %v12636_v8 = vsel %vm4442_vm3, 1.0, %v15867_v17  ;;  %v16260_v28 = vld [vmem:[#allocation232_spill] sm:$0xff] }
 0x5ce   :  { %16254 = vst [vmem:[#allocation219_spill] sm:$0xff] %v12605_v50  ;;  %16255 = vst [vmem:[#allocation223_spill] sm:$0xff] %v12608_v14  ;;  %8077 = vmatpush3.bf16.msra.mxu0 %v8074_v45  ;;  %vm4448_vm7 = vcmp.eq.s32.totalorder %v16260_v28, %v11266_v51  ;;  %vm3114_vm8 = vcmp.eq.s32.totalorder %v16261_v43, %v11266_v51  ;;  %3773 = vperm.xlu0 %8402, %v9999_v55   ;;  %v12647_v24 = vsel %vm4444_vm4, 1.0, %v15867_v17  ;;  %v16263_v12 = vld [vmem:[#allocation236_spill] sm:$0xff]  ;;  %v16264_v14 = vld [vmem:[#allocation238_spill] sm:$0xff] }
 0x5cf   :  { %8079 = vmatprep.subr.bf16.mxu0 %v8078_v18  ;;  %v8082_v45 = vpack.c.bf16 %v3959_v60, %v3958_v34  ;;  %vm4550_vm9 = vcmp.eq.s32.totalorder %v16262_v32, %v11266_v51  ;;  %vm3116_vm10 = vcmp.eq.s32.totalorder %v16263_v12, %v11266_v51  ;;  %vm3118_vm11 = vcmp.eq.s32.totalorder %v16264_v14, %v11266_v51  ;;  %v3961_v32 = vld [vmem:[%s15234_s2 + $0xb8] sm:$0xff]  ;;  %v16272_v12 = vld [vmem:[#allocation241_spill] sm:$0xff] }
 0x5d0   :  { %8375 = vset.pattern.permute.xlu1 %v15524_v29  ;;  %v12660_v55 = vsel %vm4446_vm5, 1.0, %v15867_v17  ;;  %v12663_v59 = vadd.f32 %v11888_v56, %v7109_v23  ;;  %v12666_v34 = vadd.f32 %v11923_v27, %v7112_v25  ;;  %v7114_v60 = vsel %vm3112_vm6, 1.0, %v15867_v17  ;;  %v12673_v50 = vpop.permute.xlu0 %3307  ;;  %v16268_v56 = vld [vmem:[#allocation234_spill] sm:$0xff]  ;;  %v16269_v23 = vld [vmem:[#allocation240_spill] sm:$0xff]  ;;  %v16270_v25 = vld [vmem:[#allocation237_spill] sm:$0xff]  ;;  %v12703_v62 = vpop.permute.xlu1 %6150 }
 0x5d1   :  { %5620 = vperm.xlu1 %8375, %v12179_v16   ;;  %16267 = vst [vmem:[#allocation229_spill] sm:$0xff] %v12673_v50  ;;  %v12679_v33 = vsel %vm4448_vm7, 1.0, %v15867_v17  ;;  %vm4450_vm12 = vcmp.eq.s32.totalorder %v16268_v56, %v11266_v51  ;;  %v7116_v27 = vsel %vm3114_vm8, 1.0, %v15867_v17  ;;  %vm3120_vm13 = vcmp.eq.s32.totalorder %v16269_v23, %v11266_v51  ;;  %16271 = vst [vmem:[#allocation231_spill] sm:$0xff] %v12703_v62  ;;  %v16274_v14 = vld [vmem:[#allocation242_spill] sm:$0xff] }
 0x5d2   :  { %16265 = vst [vmem:[#allocation220_spill] sm:$0xff] %v12663_v59  ;;  %16266 = vst [vmem:[#allocation224_spill] sm:$0xff] %v12666_v34  ;;  %8081 = vmatpush3.bf16.msra.mxu0 %v8078_v18  ;;  %vm4548_vm14 = vcmp.eq.s32.totalorder %v16270_v25, %v11266_v51  ;;  %v7286_v19 = vsel %vm4550_vm9, 1.0, %v15867_v17  ;;  %v7118_v28 = vsel %vm3116_vm10, 1.0, %v15867_v17  ;;  %v7120_v43 = vsel %vm3118_vm11, 1.0, %v15867_v17  ;;  %4952 = vperm.xlu0 %8402, %v10289_v30   ;;  %v3960_v18 = vld [vmem:[%s15234_s2 + $0xb0] sm:$0xff] }
 0x5d3   :  { %8083 = vmatprep.subr.bf16.mxu0 %v8082_v45  ;;  %vm4551_vm15 = vcmp.eq.s32.totalorder %v16272_v12, %v11266_v51  ;;  %v12715_v50 = vadd.f32 %v11939_v5, %v7114_v60  ;;  %vm4325_vm0 = vcmp.eq.s32.totalorder %v16274_v14, %v11266_v51  ;;  %v8086_v62 = vpack.c.bf16 %v3961_v32, %v3960_v18  ;;  %v16276_v5 = vld [vmem:[#allocation244_spill] sm:$0xff]  ;;  %v16281_v25 = vld [vmem:[#allocation243_spill] sm:$0xff]  ;;  %v16289_v12 = vld [vmem:[#allocation254_spill] sm:$0xff] }
 0x5d4   :  { %v12723_v30 = vsel %vm4450_vm12, 1.0, %v15867_v17  ;;  %v12726_v34 = vadd.f32 %v11953_v20, %v7116_v27  ;;  %v7122_v42 = vsel %vm3120_vm13, 1.0, %v15867_v17  ;;  %vm4328_vm1 = vcmp.eq.s32.totalorder %v16276_v5, %v11266_v51  ;;  %v12735_v60 = vpop.permute.xlu0 %3313  ;;  %v3963_v32 = vld [vmem:[%s15234_s2 + $0xc8] sm:$0xff]  ;;  %v16408_v59 = vld [vmem:[#allocation293_spill] sm:$0xff] }
 0x5d5   :  { %16273 = vst [vmem:[#allocation226_spill] sm:$0xff] %v12715_v50  ;;  %8376 = vset.pattern.permute.xlu1 %v15570_v6  ;;  %16277 = vst [vmem:[#allocation230_spill] sm:$0xff] %v12735_v60  ;;  %v12741_v56 = vsel %vm4548_vm14, 1.0, %v15867_v17  ;;  %v12743_v20 = vadd.f32 %v7286_v19, %v4486_v11  ;;  %v12746_v27 = vadd.f32 %v11962_v31, %v7118_v28  ;;  %v12756_v18 = vsel %vm4551_vm15, 1.0, %v15867_v17  ;;  %v16283_v11 = vld [vmem:[#allocation245_spill] sm:$0xff] }
 0x5d6   :  { %16275 = vst [vmem:[#allocation228_spill] sm:$0xff] %v12726_v34  ;;  %v12749_v23 = vadd.f32 %v11977_v26, %v7120_v43  ;;  %6056 = vperm.xlu1 %8376, %v10693_v48   ;;  %8085 = vmatpush3.bf16.msra.mxu0 %v8082_v45  ;;  %vm4553_vm2 = vcmp.eq.s32.totalorder %v16281_v25, %v11266_v51  ;;  %v7253_v31 = vsel %vm4325_vm0, 1.0, %v15867_v17  ;;  %v16282_v26 = vld [vmem:[#allocation247_spill] sm:$0xff]  ;;  %v7256_v19 = vsel %vm4328_vm1, 1.0, %v15867_v17  ;;  %v16285_v28 = vld [vmem:[#allocation249_spill] sm:$0xff]  ;;  %v12778_v43 = vpop.permute.xlu1 %5387 }
 0x5d7   :  { %16278 = vst [vmem:[#allocation233_spill] sm:$0xff] %v12743_v20  ;;  %16279 = vst [vmem:[#allocation232_spill] sm:$0xff] %v12746_v27  ;;  %vm4330_vm3 = vcmp.eq.s32.totalorder %v16282_v26, %v11266_v51  ;;  %4955 = vperm.xlu0 %8402, %v10447_v35   ;;  %8087 = vmatprep.subr.bf16.mxu0 %v8086_v62  ;;  %vm4555_vm4 = vcmp.eq.s32.totalorder %v16283_v11, %v11266_v51  ;;  %v3962_v35 = vld [vmem:[%s15234_s2 + $0xc0] sm:$0xff]  ;;  %v3965_v27 = vld [vmem:[%s15234_s2 + $0xd8] sm:$0xff] }
 0x5d8   :  { %16280 = vst [vmem:[#allocation235_spill] sm:$0xff] %v12749_v23  ;;  %v12770_v45 = vadd.f32 %v11989_v47, %v7122_v42  ;;  %vm4332_vm5 = vcmp.eq.s32.totalorder %v16285_v28, %v11266_v51  ;;  %16286 = vst [vmem:[#allocation236_spill] sm:$0xff] %v12778_v43  ;;  %v16287_v47 = vld [vmem:[#allocation246_spill] sm:$0xff]  ;;  %v16288_v42 = vld [vmem:[#allocation252_spill] sm:$0xff]  ;;  %vm4336_vm8 = vcmp.eq.s32.totalorder %v16289_v12, %v11266_v51  ;;  %v12792_v14 = vpop.permute.xlu0 %3319  ;;  %v12798_v43 = vsel %vm4553_vm2, 1.0, %v15867_v17 }
 0x5d9   :  { %vm4557_vm6 = vcmp.eq.s32.totalorder %v16287_v47, %v11266_v51  ;;  %vm4334_vm7 = vcmp.eq.s32.totalorder %v16288_v42, %v11266_v51  ;;  %16290 = vst [vmem:[#allocation238_spill] sm:$0xff] %v12792_v14  ;;  %v8090_v5 = vpack.c.bf16 %v3963_v32, %v3962_v35  ;;  %v12801_v20 = vadd.f32 %v12579_v13, %v7253_v31  ;;  %v16292_v23 = vld [vmem:[#allocation20_spill] sm:$0xff]  ;;  %v16296_v35 = vld [vmem:[#allocation250_spill] sm:$0xff]  ;;  %v16297_v28 = vld [vmem:[#allocation251_spill] sm:$0xff] }
 0x5da   :  { %16284 = vst [vmem:[#allocation239_spill] sm:$0xff] %v12770_v45  ;;  %v7258_v45 = vsel %vm4330_vm3, 1.0, %v15867_v17  ;;  %vm4338_vm9 = vcmp.eq.s32.totalorder %v16292_v23, %v11266_v51  ;;  %8377 = vset.pattern.permute.xlu1 %v15524_v29  ;;  %8089 = vmatpush3.bf16.msra.mxu0 %v8086_v62  ;;  %v12814_v25 = vsel %vm4555_vm4, 1.0, %v15867_v17  ;;  %v16293_v13 = vld [vmem:[#allocation248_spill] sm:$0xff]  ;;  %v12819_v31 = vadd.f32 %v12600_v10, %v7256_v19  ;;  %v16295_v62 = vld [vmem:[#allocation137_spill] sm:$0xff] }
 0x5db   :  { %16291 = vst [vmem:[#allocation234_spill] sm:$0xff] %v12801_v20  ;;  %vm4559_vm10 = vcmp.eq.s32.totalorder %v16293_v13, %v11266_v51  ;;  %v7260_v26 = vsel %vm4332_vm5, 1.0, %v15867_v17  ;;  %5623 = vperm.xlu1 %8377, %v16222_v3   ;;  %4970 = vperm.xlu0 %8402, %v16295_v62   ;;  %v12831_v11 = vsel %vm4557_vm6, 1.0, %v15867_v17  ;;  %vm4561_vm11 = vcmp.eq.s32.totalorder %v16296_v35, %v11266_v51  ;;  %v16298_v32 = vld [vmem:[#allocation253_spill] sm:$0xff]  ;;  %v16309_v35 = vld [vmem:[#allocation259_spill] sm:$0xff] }
 0x5dc   :  { %16294 = vst [vmem:[#allocation240_spill] sm:$0xff] %v12819_v31  ;;  %v7262_v10 = vsel %vm4334_vm7, 1.0, %v15867_v17  ;;  %v7264_v19 = vsel %vm4336_vm8, 1.0, %v15867_v17  ;;  %8091 = vmatprep.subr.bf16.mxu0 %v8090_v5  ;;  %vm4660_vm12 = vcmp.eq.s32.totalorder %v16297_v28, %v11266_v51  ;;  %vm4772_vm13 = vcmp.eq.s32.totalorder %v16298_v32, %v11266_v51  ;;  %v12854_v31 = vpop.permute.xlu1 %5717  ;;  %v12856_v20 = vpop.permute.xlu0 %3325  ;;  %v3964_v12 = vld [vmem:[%s15234_s2 + $0xd0] sm:$0xff]  ;;  %v3969_v28 = vld [vmem:[%s15234_s2 + $0xf8] sm:$0xff]  ;;  %v16312_v32 = vld [vmem:[#allocation256_spill] sm:$0xff] }
 0x5dd   :  { %v12848_v47 = vadd.f32 %v12636_v8, %v7258_v45  ;;  %v7266_v42 = vsel %vm4338_vm9, 1.0, %v15867_v17  ;;  %16300 = vst [vmem:[#allocation241_spill] sm:$0xff] %v12854_v31  ;;  %16301 = vst [vmem:[#allocation242_spill] sm:$0xff] %v12856_v20  ;;  %v3966_v8 = vld [vmem:[%s15234_s2 + $0xe0] sm:$0xff]  ;;  %v12871_v23 = vsel %vm4559_vm10, 1.0, %v15867_v17  ;;  %v12874_v45 = vadd.f32 %v12647_v24, %v7260_v26  ;;  %v3967_v20 = vld [vmem:[%s15234_s2 + $0xe8] sm:$0xff] }
 0x5de   :  { %8093 = vmatpush3.bf16.msra.mxu0 %v8090_v5  ;;  %v8094_v31 = vpack.c.bf16 %v3965_v27, %v3964_v12  ;;  %v12885_v14 = vsel %vm4561_vm11, 1.0, %v15867_v17  ;;  %v12888_v13 = vadd.f32 %v12660_v55, %v7262_v10  ;;  %v12891_v24 = vadd.f32 %v12679_v33, %v7264_v19  ;;  %v16306_v33 = vld [vmem:[#allocation255_spill] sm:$0xff]  ;;  %v16310_v10 = vld [vmem:[#allocation268_spill] sm:$0xff]  ;;  %v3968_v19 = vld [vmem:[%s15234_s2 + $0xf0] sm:$0xff] }
 0x5df   :  { %16299 = vst [vmem:[#allocation237_spill] sm:$0xff] %v12848_v47  ;;  %16302 = vst [vmem:[#allocation244_spill] sm:$0xff] %v12874_v45  ;;  %v16303_v47 = vld [vmem:[#allocation257_spill] sm:$0xff]  ;;  %8379 = vset.pattern.permute.xlu1 %v15570_v6  ;;  %4973 = vperm.xlu0 %8402, %v10465_v57   ;;  %v8098_v27 = vpack.c.bf16 %v3967_v20, %v3966_v8  ;;  %v12899_v5 = vsel %vm4660_vm12, 1.0, %v15867_v17  ;;  %v12905_v55 = vsel %vm4772_vm13, 1.0, %v15867_v17  ;;  %v16308_v57 = vld [vmem:[#allocation22_spill] sm:$0xff] }
 0x5e0   :  { %vm5413_vm14 = vcmp.eq.s32.totalorder %v16303_v47, %v11266_v51  ;;  %16304 = vst [vmem:[#allocation243_spill] sm:$0xff] %v12888_v13  ;;  %16305 = vst [vmem:[#allocation247_spill] sm:$0xff] %v12891_v24  ;;  %vm4773_vm15 = vcmp.eq.s32.totalorder %v16306_v33, %v11266_v51  ;;  %v12910_v26 = vadd.f32 %v12723_v30, %v7266_v42  ;;  %6059 = vperm.xlu1 %8379, %v10965_v37   ;;  %v12925_v30 = vpop.permute.xlu0 %4504  ;;  %v16313_v47 = vld [vmem:[#allocation261_spill] sm:$0xff]  ;;  %v16314_v42 = vld [vmem:[#allocation263_spill] sm:$0xff]  ;;  %v12941_v8 = vpop.permute.xlu1 %5935 }
 0x5e1   :  { %8095 = vmatprep.subr.bf16.mxu0 %v8094_v31  ;;  %vm4884_vm0 = vcmp.eq.s32.totalorder %v16308_v57, %v11266_v51  ;;  %v12919_v20 = vsel %vm5413_vm14, 1.0, %v15867_v17  ;;  %vm5416_vm1 = vcmp.eq.s32.totalorder %v16309_v35, %v11266_v51  ;;  %vm2290_vm2 = vcmp.eq.s32.totalorder %v16310_v10, %v11266_v51  ;;  %16311 = vst [vmem:[#allocation249_spill] sm:$0xff] %v12925_v30  ;;  %v16315_v12 = vld [vmem:[#allocation269_spill] sm:$0xff]  ;;  %v16319_v13 = vld [vmem:[#allocation271_spill] sm:$0xff] }
 0x5e2   :  { %16307 = vst [vmem:[#allocation245_spill] sm:$0xff] %v12910_v26  ;;  %vm4885_vm3 = vcmp.eq.s32.totalorder %v16312_v32, %v11266_v51  ;;  %vm5419_vm4 = vcmp.eq.s32.totalorder %v16313_v47, %v11266_v51  ;;  %vm5424_vm5 = vcmp.eq.s32.totalorder %v16314_v42, %v11266_v51  ;;  %vm2293_vm6 = vcmp.eq.s32.totalorder %v16315_v12, %v11266_v51  ;;  %v16318_v24 = vld [vmem:[#allocation265_spill] sm:$0xff]  ;;  %v16329_v12 = vld [vmem:[#allocation278_spill] sm:$0xff] }
 0x5e3   :  { %16316 = vst [vmem:[#allocation246_spill] sm:$0xff] %v12941_v8  ;;  %8097 = vmatpush3.bf16.msra.mxu0 %v8094_v31  ;;  %v12947_v26 = vsel %vm4773_vm15, 1.0, %v15867_v17  ;;  %vm5425_vm7 = vcmp.eq.s32.totalorder %v16318_v24, %v11266_v51  ;;  %vm2295_vm8 = vcmp.eq.s32.totalorder %v16319_v13, %v11266_v51  ;;  %4991 = vperm.xlu0 %8402, %v10585_v0   ;;  %v12958_v31 = vsel %vm4884_vm0, 1.0, %v15867_v17  ;;  %v16321_v0 = vld [vmem:[#allocation275_spill] sm:$0xff]  ;;  %v16332_v24 = vld [vmem:[#allocation280_spill] sm:$0xff]  ;;  %v16338_v6 = vld [vmem:[#allocation5_spill] sm:$0xff] }
 0x5e4   :  { %16317 = vst [vmem:[#allocation252_spill] sm:$0xff] %v12947_v26  ;;  %8099 = vmatprep.subr.bf16.mxu0 %v8098_v27  ;;  %v8102_v45 = vpack.c.bf16 %v3969_v28, %v3968_v19  ;;  %v12964_v33 = vsel %vm5416_vm1, 1.0, %v15867_v17  ;;  %v6980_v8 = vsel %vm2290_vm2, 1.0, %v15867_v17  ;;  %vm2297_vm9 = vcmp.eq.s32.totalorder %v16321_v0, %v11266_v51  ;;  %8381 = vset.pattern.permute.xlu1 %v15514_v53  ;;  %v16325_v28 = vld [vmem:[#allocation199_spill] sm:$0xff]  ;;  %v12996_v32 = vpop.permute.xlu0 %4513  ;;  %v16327_v0 = vld [vmem:[#allocation258_spill] sm:$0xff]  ;;  %v16411_v53 = vld [vmem:[#allocation85_spill] sm:$0xff] }
 0x5e5   :  { %16320 = vst [vmem:[#allocation254_spill] sm:$0xff] %v12964_v33  ;;  %v12977_v57 = vsel %vm4885_vm3, 1.0, %v15867_v17  ;;  %v12983_v35 = vsel %vm5419_vm4, 1.0, %v15867_v17  ;;  %v12989_v10 = vsel %vm5424_vm5, 1.0, %v15867_v17  ;;  %v6983_v19 = vsel %vm2293_vm6, 1.0, %v15867_v17  ;;  %5514 = vperm.xlu1 %8381, %v16325_v28   ;;  %16326 = vst [vmem:[#allocation250_spill] sm:$0xff] %v12996_v32 }
 0x5e6   :  { %16322 = vst [vmem:[#allocation20_spill] sm:$0xff] %v12977_v57  ;;  %16323 = vst [vmem:[#allocation248_spill] sm:$0xff] %v12983_v35  ;;  %vm4996_vm10 = vcmp.eq.s32.totalorder %v16327_v0, %v11266_v51  ;;  %v13004_v47 = vsel %vm5425_vm7, 1.0, %v15867_v17  ;;  %v6985_v42 = vsel %vm2295_vm8, 1.0, %v15867_v17  ;;  %vm2299_vm11 = vcmp.eq.s32.totalorder %v16329_v12, %v11266_v51  ;;  %v16330_v57 = vld [vmem:[#allocation260_spill] sm:$0xff]  ;;  %v16331_v26 = vld [vmem:[#allocation3_spill] sm:$0xff] }
 0x5e7   :  { %16324 = vst [vmem:[#allocation137_spill] sm:$0xff] %v12989_v10  ;;  %16328 = vst [vmem:[#allocation251_spill] sm:$0xff] %v13004_v47  ;;  %8101 = vmatpush3.bf16.msra.mxu0 %v8098_v27  ;;  %vm4775_vm12 = vcmp.eq.s32.totalorder %v16330_v57, %v11266_v51  ;;  %v2338_v32 = vadd.f32 %v6980_v8, %v16331_v26  ;;  %v6987_v30 = vsel %vm2297_vm9, 1.0, %v15867_v17  ;;  %v13018_v47 = vpop.permute.xlu1 %5608  ;;  %4994 = vperm.xlu0 %8402, %v15737_v54   ;;  %v3026_v13 = vld [vmem:[%s15234_s2] sm:$0xff]  ;;  %v3027_v27 = vld [vmem:[%s15234_s2 + $0x8] sm:$0xff] }
 0x5e8   :  { %vm2301_vm13 = vcmp.eq.s32.totalorder %v16332_v24, %v11266_v51  ;;  %16333 = vst [vmem:[#allocation253_spill] sm:$0xff] %v13018_v47  ;;  %8103 = vmatprep.subr.bf16.mxu0 %v8102_v45  ;;  %v16334_v26 = vld [vmem:[#allocation262_spill] sm:$0xff]  ;;  %v16335_v8 = vld [vmem:[#allocation4_spill] sm:$0xff]  ;;  %v13032_v35 = vpack.c.bf16 %v3027_v27, %v3026_v13  ;;  %v13038_v47 = vsel %vm4996_vm10, 1.0, %v15867_v17  ;;  %v2343_v34 = vadd.f32 %v6985_v42, %v16338_v6  ;;  %v13048_v13 = vpop.permute.xlu0 %4519  ;;  %v16347_v57 = vld [vmem:[#allocation9_spill] sm:$0xff] }
 0x5e9   :  { %vm4664_vm14 = vcmp.eq.s32.totalorder %v16334_v26, %v11266_v51  ;;  %v2341_v10 = vadd.f32 %v6983_v19, %v16335_v8  ;;  %v16336_v33 = vld [vmem:[#allocation282_spill] sm:$0xff]  ;;  %v6989_v60 = vsel %vm2299_vm11, 1.0, %v15867_v17  ;;  %v16339_v19 = vld [vmem:[#allocation284_spill] sm:$0xff]  ;;  %8382 = vset.pattern.permute.xlu1 %v15534_v7  ;;  %16340 = vst [vmem:[#allocation255_spill] sm:$0xff] %v13048_v13  ;;  %v6991_v6 = vsel %vm2301_vm13, 1.0, %v15867_v17 }
 0x5ea   :  { %vm2303_vm15 = vcmp.eq.s32.totalorder %v16336_v33, %v11266_v51  ;;  %16337 = vst [vmem:[#allocation257_spill] sm:$0xff] %v13032_v35  ;;  %vm2305_vm0 = vcmp.eq.s32.totalorder %v16339_v19, %v11266_v51  ;;  %v16341_v27 = vld [vmem:[#allocation264_spill] sm:$0xff]  ;;  %5732 = vperm.xlu1 %8382, %v12179_v16   ;;  %v13064_v12 = vsel %vm4775_vm12, 1.0, %v15867_v17  ;;  %v2347_v13 = vadd.f32 %v6989_v60, %v16347_v57  ;;  %v16351_v60 = vld [vmem:[#allocation266_spill] sm:$0xff] }
 0x5eb   :  { %vm4886_vm1 = vcmp.eq.s32.totalorder %v16341_v27, %v11266_v51  ;;  %v16342_v0 = vld [vmem:[#allocation8_spill] sm:$0xff]  ;;  %8105 = vmatpush3.bf16.msra.mxu0 %v8102_v45  ;;  %16344 = vst [vmem:[#allocation22_spill] sm:$0xff] %v13064_v12  ;;  %v6993_v24 = vsel %vm2303_vm15, 1.0, %v15867_v17  ;;  %v16346_v45 = vld [vmem:[#allocation155_spill] sm:$0xff]  ;;  %v6995_v26 = vsel %vm2305_vm0, 1.0, %v15867_v17  ;;  %v13089_v33 = vadd.f32 %v11463_v40, %v2341_v10  ;;  %v13091_v12 = vpop.permute.xlu1 %5826  ;;  %v16356_v27 = vld [vmem:[#allocation26_spill] sm:$0xff] }
 0x5ec   :  { %v2345_v8 = vadd.f32 %v6987_v30, %v16342_v0  ;;  %v16343_v42 = vld [vmem:[#allocation288_spill] sm:$0xff]  ;;  %v13070_v30 = vsel %vm4664_vm14, 1.0, %v15867_v17  ;;  %v13077_v0 = vadd.f32 %v11460_v4, %v2338_v32  ;;  %6044 = vperm.xlu0 %8402, %v16346_v45   ;;  %8107 = vmatprep.subr.bf16.mxu0 %v13032_v35  ;;  %16349 = vst [vmem:[#allocation268_spill] sm:$0xff] %v13091_v12  ;;  %v13097_v4 = vsel %vm4886_vm1, 1.0, %v15867_v17  ;;  %v16352_v32 = vld [vmem:[#allocation11_spill] sm:$0xff]  ;;  %v13106_v40 = vpop.permute.xlu0 %4525 }
 0x5ed   :  { %vm3221_vm2 = vcmp.eq.s32.totalorder %v16343_v42, %v11266_v51  ;;  %16345 = vst [vmem:[#allocation259_spill] sm:$0xff] %v13070_v30  ;;  %v16348_v30 = vld [vmem:[#allocation290_spill] sm:$0xff]  ;;  %16350 = vst [vmem:[#allocation256_spill] sm:$0xff] %v13097_v4  ;;  %vm4665_vm4 = vcmp.eq.s32.totalorder %v16351_v60, %v11266_v51  ;;  %v2349_v19 = vadd.f32 %v6991_v6, %v16352_v32  ;;  %v16354_v10 = vld [vmem:[#allocation267_spill] sm:$0xff] }
 0x5ee   :  { %vm3223_vm3 = vcmp.eq.s32.totalorder %v16348_v30, %v11266_v51  ;;  %v7127_v30 = vsel %vm3221_vm2, 1.0, %v15867_v17  ;;  %16353 = vst [vmem:[#allocation261_spill] sm:$0xff] %v13106_v40  ;;  %vm4887_vm5 = vcmp.eq.s32.totalorder %v16354_v10, %v11266_v51  ;;  %v16355_v57 = vld [vmem:[#allocation16_spill] sm:$0xff]  ;;  %v13112_v35 = vadd.f32 %v16356_v27, %v2343_v34  ;;  %v16357_v4 = vld [vmem:[#allocation21_spill] sm:$0xff]  ;;  %8383 = vset.pattern.permute.xlu1 %v15495_v39  ;;  %v16358_v6 = vld [vmem:[#allocation143_spill] sm:$0xff] }
 0x5ef   :  { %v2351_v12 = vadd.f32 %v6993_v24, %v16355_v57  ;;  %v13115_v50 = vadd.f32 %v16357_v4, %v2345_v8  ;;  %vm4776_vm6 = vcmp.eq.s32.totalorder %v16358_v6, %v11266_v51  ;;  %v16359_v42 = vld [vmem:[#allocation12_spill] sm:$0xff]  ;;  %v7129_v32 = vsel %vm3223_vm3, 1.0, %v15867_v17  ;;  %v16360_v40 = vld [vmem:[#allocation303_spill] sm:$0xff]  ;;  %6168 = vperm.xlu1 %8383, %v10693_v48   ;;  %v16361_v8 = vld [vmem:[#allocation270_spill] sm:$0xff] }
 0x5f0   :  { %v2353_v60 = vadd.f32 %v6995_v26, %v16359_v42  ;;  %vm4436_vm7 = vcmp.eq.s32.totalorder %v16360_v40, %v11266_v51  ;;  %6047 = vperm.xlu0 %8402, %v10494_v49   ;;  %v13127_v34 = vsel %vm4665_vm4, 1.0, %v15867_v17  ;;  %vm4777_vm8 = vcmp.eq.s32.totalorder %v16361_v8, %v11266_v51  ;;  %v16362_v24 = vld [vmem:[#allocation83_spill] sm:$0xff]  ;;  %v16363_v10 = vld [vmem:[#allocation24_spill] sm:$0xff]  ;;  %v16365_v40 = vld [vmem:[#allocation273_spill] sm:$0xff]  ;;  %v13145_v42 = vpop.permute.xlu1 %5611  ;;  %v13147_v8 = vpop.permute.xlu0 %4531 }
 0x5f1   :  { %v3269_v4 = vadd.f32 %v7127_v30, %v16362_v24  ;;  %v13133_v57 = vadd.f32 %v16363_v10, %v2347_v13  ;;  %v13136_v26 = vsel %vm4887_vm5, 1.0, %v15867_v17  ;;  %vm4999_vm9 = vcmp.eq.s32.totalorder %v16365_v40, %v11266_v51  ;;  %v16366_v48 = vld [vmem:[#allocation307_spill] sm:$0xff]  ;;  %v16367_v49 = vld [vmem:[#allocation25_spill] sm:$0xff]  ;;  %16368 = vst [vmem:[#allocation269_spill] sm:$0xff] %v13145_v42  ;;  %16369 = vst [vmem:[#allocation265_spill] sm:$0xff] %v13147_v8 }
 0x5f2   :  { %16364 = vst [vmem:[#allocation263_spill] sm:$0xff] %v13136_v26  ;;  %vm4441_vm10 = vcmp.eq.s32.totalorder %v16366_v48, %v11266_v51  ;;  %v13143_v27 = vadd.f32 %v16367_v49, %v2349_v19  ;;  %v13153_v13 = vsel %vm4776_vm6, 1.0, %v15867_v17  ;;  %v16371_v30 = vld [vmem:[#allocation84_spill] sm:$0xff]  ;;  %v7268_v10 = vsel %vm4436_vm7, 1.0, %v15867_v17  ;;  %v16372_v40 = vld [vmem:[#allocation27_spill] sm:$0xff]  ;;  %v16374_v42 = vld [vmem:[#allocation277_spill] sm:$0xff] }
 0x5f3   :  { %16370 = vst [vmem:[#allocation271_spill] sm:$0xff] %v13153_v13  ;;  %v3271_v24 = vadd.f32 %v7129_v32, %v16371_v30  ;;  %v13158_v26 = vadd.f32 %v16372_v40, %v2351_v12  ;;  %v13161_v19 = vsel %vm4777_vm8, 1.0, %v15867_v17  ;;  %v16373_v49 = vld [vmem:[#allocation276_spill] sm:$0xff]  ;;  %vm5110_vm12 = vcmp.eq.s32.totalorder %v16374_v42, %v11266_v51  ;;  %8384 = vset.pattern.permute.xlu1 %v15761_v44  ;;  %v16378_v12 = vld [vmem:[#allocation279_spill] sm:$0xff]  ;;  %v16412_v39 = vld [vmem:[#allocation301_spill] sm:$0xff] }
 0x5f4   :  { %vm4888_vm11 = vcmp.eq.s32.totalorder %v16373_v49, %v11266_v51  ;;  %v16375_v8 = vld [vmem:[#allocation28_spill] sm:$0xff]  ;;  %6053 = vperm.xlu0 %8402, %v11169_v36   ;;  %v13173_v32 = vsel %vm4999_vm9, 1.0, %v15867_v17  ;;  %vm4889_vm13 = vcmp.eq.s32.totalorder %v16378_v12, %v11266_v51  ;;  %v7273_v30 = vsel %vm4441_vm10, 1.0, %v15867_v17  ;;  %v16382_v36 = vld [vmem:[#allocation283_spill] sm:$0xff]  ;;  %v13192_v12 = vpop.permute.xlu0 %4537 }
 0x5f5   :  { %v13168_v6 = vadd.f32 %v16375_v8, %v2353_v60  ;;  %16377 = vst [vmem:[#allocation199_spill] sm:$0xff] %v13173_v32  ;;  %v13182_v42 = vadd.f32 %v11998_v41, %v3269_v4  ;;  %v16380_v60 = vld [vmem:[#allocation272_spill] sm:$0xff]  ;;  %v16381_v8 = vld [vmem:[#allocation281_spill] sm:$0xff]  ;;  %vm5000_vm15 = vcmp.eq.s32.totalorder %v16382_v36, %v11266_v51  ;;  %v4484_v40 = vadd.f32 %v7268_v10, %v12438_v38  ;;  %v16383_v49 = vld [vmem:[#allocation311_spill] sm:$0xff]  ;;  %v13205_v36 = vpop.permute.xlu1 %5829 }
 0x5f6   :  { %5405 = vperm.xlu1 %8384, %v16380_v60   ;;  %vm4778_vm14 = vcmp.eq.s32.totalorder %v16381_v8, %v11266_v51  ;;  %vm4445_vm0 = vcmp.eq.s32.totalorder %v16383_v49, %v11266_v51  ;;  %16384 = vst [vmem:[#allocation278_spill] sm:$0xff] %v13192_v12  ;;  %v13195_v48 = vsel %vm4888_vm11, 1.0, %v15867_v17  ;;  %v13198_v41 = vsel %vm5110_vm12, 1.0, %v15867_v17  ;;  %v16387_v4 = vld [vmem:[#allocation285_spill] sm:$0xff]  ;;  %16390 = vst [vmem:[#allocation262_spill] sm:$0xff] %v13205_v36  ;;  %v16391_v10 = vld [vmem:[#allocation286_spill] sm:$0xff] }
 0x5f7   :  { %16376 = vst [vmem:[#allocation275_spill] sm:$0xff] %v13168_v6  ;;  %16379 = vst [vmem:[#allocation258_spill] sm:$0xff] %v13182_v42  ;;  %vm5001_vm1 = vcmp.eq.s32.totalorder %v16387_v4, %v11266_v51  ;;  %v16388_v8 = vld [vmem:[#allocation105_spill] sm:$0xff]  ;;  %v13208_v38 = vsel %vm4889_vm13, 1.0, %v15867_v17  ;;  %vm4668_vm2 = vcmp.eq.s32.totalorder %v16391_v10, %v11266_v51  ;;  %v16392_v49 = vld [vmem:[#allocation287_spill] sm:$0xff]  ;;  %v4489_v12 = vadd.f32 %v7273_v30, %v12467_v1 }
 0x5f8   :  { %16385 = vst [vmem:[#allocation260_spill] sm:$0xff] %v13195_v48  ;;  %16386 = vst [vmem:[#allocation3_spill] sm:$0xff] %v13198_v41  ;;  %v13203_v13 = vadd.f32 %v16388_v8, %v3271_v24  ;;  %vm5112_vm3 = vcmp.eq.s32.totalorder %v16392_v49, %v11266_v51  ;;  %v16393_v41 = vld [vmem:[#allocation161_spill] sm:$0xff]  ;;  %v13217_v4 = vsel %vm4778_vm14, 1.0, %v15867_v17  ;;  %v13220_v24 = vsel %vm5000_vm15, 1.0, %v15867_v17  ;;  %v16396_v8 = vld [vmem:[#allocation294_spill] sm:$0xff] }
 0x5f9   :  { %6062 = vperm.xlu0 %8402, %v16393_v41   ;;  %16394 = vst [vmem:[#allocation4_spill] sm:$0xff] %v13217_v4  ;;  %16395 = vst [vmem:[#allocation282_spill] sm:$0xff] %v13220_v24  ;;  %vm3225_vm4 = vcmp.eq.s32.totalorder %v16396_v8, %v11266_v51  ;;  %v7277_v48 = vsel %vm4445_vm0, 1.0, %v15867_v17  ;;  %v13227_v10 = vsel %vm5001_vm1, 1.0, %v15867_v17  ;;  %v16397_v1 = vld [vmem:[#allocation289_spill] sm:$0xff]  ;;  %v16398_v30 = vld [vmem:[#allocation291_spill] sm:$0xff]  ;;  %v4596_v49 = vadd.f32 %v12741_v56, %v4484_v40  ;;  %v13235_v4 = vpop.permute.xlu0 %4543  ;;  %v13252_v32 = vpop.permute.xlu1 %5390 }
 0x5fa   :  { %16389 = vst [vmem:[#allocation280_spill] sm:$0xff] %v13203_v13  ;;  %8385 = vset.pattern.permute.xlu1 %v15534_v7  ;;  %vm4669_vm5 = vcmp.eq.s32.totalorder %v16397_v1, %v11266_v51  ;;  %vm5113_vm6 = vcmp.eq.s32.totalorder %v16398_v30, %v11266_v51  ;;  %16399 = vst [vmem:[#allocation5_spill] sm:$0xff] %v13235_v4  ;;  %v13238_v8 = vsel %vm4668_vm2, 1.0, %v15867_v17  ;;  %v13241_v24 = vsel %vm5112_vm3, 1.0, %v15867_v17  ;;  %v16402_v36 = vld [vmem:[#allocation296_spill] sm:$0xff]  ;;  %v16403_v1 = vld [vmem:[#allocation298_spill] sm:$0xff] }
 0x5fb   :  { %5735 = vperm.xlu1 %8385, %v16222_v3   ;;  %16400 = vst [vmem:[#allocation284_spill] sm:$0xff] %v13238_v8  ;;  %16401 = vst [vmem:[#allocation264_spill] sm:$0xff] %v13241_v24  ;;  %vm3227_vm7 = vcmp.eq.s32.totalorder %v16402_v36, %v11266_v51  ;;  %vm3229_vm8 = vcmp.eq.s32.totalorder %v16403_v1, %v11266_v51  ;;  %v7131_v30 = vsel %vm3225_vm4, 1.0, %v15867_v17  ;;  %v16404_v56 = vld [vmem:[#allocation300_spill] sm:$0xff]  ;;  %v7309_v24 = vsel %vm4669_vm5, 1.0, %v15867_v17  ;;  %v16417_v42 = vld [vmem:[#allocation305_spill] sm:$0xff] }
 0x5fc   :  { %vm3231_vm9 = vcmp.eq.s32.totalorder %v16404_v56, %v11266_v51  ;;  %v4601_v40 = vadd.f32 %v12798_v43, %v4489_v12  ;;  %v4493_v4 = vadd.f32 %v7277_v48, %v12480_v61  ;;  %16405 = vst [vmem:[#allocation8_spill] sm:$0xff] %v13252_v32  ;;  %v13257_v36 = vsel %vm5113_vm6, 1.0, %v15867_v17  ;;  %v16406_v1 = vld [vmem:[#allocation292_spill] sm:$0xff]  ;;  %v16410_v32 = vld [vmem:[#allocation295_spill] sm:$0xff] }
 0x5fd   :  { %6065 = vperm.xlu0 %8402, %v16010_v58   ;;  %vm5002_vm10 = vcmp.eq.s32.totalorder %v16406_v1, %v11266_v51  ;;  %v16407_v8 = vld [vmem:[#allocation312_spill] sm:$0xff]  ;;  %vm4781_vm12 = vcmp.eq.s32.totalorder %v16408_v59, %v11266_v51  ;;  %v7133_v61 = vsel %vm3227_vm7, 1.0, %v15867_v17  ;;  %v7135_v43 = vsel %vm3229_vm8, 1.0, %v15867_v17  ;;  %v13269_v48 = vpop.permute.xlu0 %4546  ;;  %v16416_v56 = vld [vmem:[#allocation87_spill] sm:$0xff] }
 0x5fe   :  { %vm4447_vm11 = vcmp.eq.s32.totalorder %v16407_v8, %v11266_v51  ;;  %v4708_v12 = vadd.f32 %v12899_v5, %v4596_v49  ;;  %16409 = vst [vmem:[#allocation288_spill] sm:$0xff] %v13269_v48  ;;  %vm4670_vm13 = vcmp.eq.s32.totalorder %v16410_v32, %v11266_v51  ;;  %v3273_v54 = vadd.f32 %v7131_v30, %v16411_v53  ;;  %v16413_v5 = vld [vmem:[#allocation297_spill] sm:$0xff] }
 0x5ff   :  { %8386 = vset.pattern.permute.xlu1 %v15556_v15  ;;  %v7137_v8 = vsel %vm3231_vm9, 1.0, %v15867_v17  ;;  %vm3233_vm14 = vcmp.eq.s32.totalorder %v16412_v39, %v11266_v51  ;;  %vm4892_vm15 = vcmp.eq.s32.totalorder %v16413_v5, %v11266_v51  ;;  %v4713_v49 = vadd.f32 %v13127_v34, %v4601_v40  ;;  %v16415_v39 = vld [vmem:[#allocation89_spill] sm:$0xff]  ;;  %v13297_v34 = vpop.permute.xlu1 %5720  ;;  %v16424_v5 = vld [vmem:[#allocation299_spill] sm:$0xff] }
 0x600   :  { %5953 = vperm.xlu1 %8386, %v16010_v58   ;;  %v4605_v48 = vadd.f32 %v12831_v11, %v4493_v4  ;;  %v7279_v13 = vsel %vm4447_vm11, 1.0, %v15867_v17  ;;  %v13291_v53 = vsel %vm5002_vm10, 1.0, %v15867_v17  ;;  %v3275_v30 = vadd.f32 %v7133_v61, %v16415_v39  ;;  %v16418_v4 = vld [vmem:[#allocation124_spill] sm:$0xff]  ;;  %v16423_v32 = vld [vmem:[#allocation309_spill] sm:$0xff] }
 0x601   :  { %6071 = vperm.xlu0 %8402, %v16222_v3   ;;  %16414 = vst [vmem:[#allocation155_spill] sm:$0xff] %v13291_v53  ;;  %v3277_v58 = vadd.f32 %v7135_v43, %v16416_v56  ;;  %vm4439_vm0 = vcmp.eq.s32.totalorder %v16417_v42, %v11266_v51  ;;  %v7325_v11 = vsel %vm4781_vm12, 1.0, %v15867_v17  ;;  %v3279_v40 = vadd.f32 %v7137_v8, %v16418_v4  ;;  %v13306_v6 = vpop.permute.xlu0 %5590  ;;  %v16422_v43 = vld [vmem:[#allocation107_spill] sm:$0xff] }
 0x602   :  { %v7139_v1 = vsel %vm3233_vm14, 1.0, %v15867_v17  ;;  %v4820_v53 = vadd.f32 %v12905_v55, %v4708_v12  ;;  %16419 = vst [vmem:[#allocation9_spill] sm:$0xff] %v13306_v6  ;;  %v13312_v42 = vsel %vm4670_vm13, 1.0, %v15867_v17  ;;  %v13318_v59 = vsel %vm4892_vm15, 1.0, %v15867_v17  ;;  %v16519_v6 = vld [vmem:[#allocation280_spill] sm:$0xff] }
 0x603   :  { %16420 = vst [vmem:[#allocation290_spill] sm:$0xff] %v13312_v42  ;;  %16421 = vst [vmem:[#allocation266_spill] sm:$0xff] %v13318_v59  ;;  %v4495_v61 = vadd.f32 %v7279_v13, %v12512_v63  ;;  %v13322_v8 = vadd.f32 %v16422_v43, %v3273_v54  ;;  %v7271_v55 = vsel %vm4439_vm0, 1.0, %v15867_v17  ;;  %v4825_v12 = vadd.f32 %v13161_v19, %v4713_v49  ;;  %v16425_v63 = vld [vmem:[#allocation126_spill] sm:$0xff]  ;;  %v16426_v13 = vld [vmem:[#allocation117_spill] sm:$0xff]  ;;  %v13347_v43 = vpop.permute.xlu1 %5938 }
 0x604   :  { %8387 = vset.pattern.permute.xlu1 %v15524_v29  ;;  %vm4443_vm1 = vcmp.eq.s32.totalorder %v16423_v32, %v11266_v51  ;;  %v4717_v39 = vadd.f32 %v7309_v24, %v4605_v48  ;;  %vm4671_vm2 = vcmp.eq.s32.totalorder %v16424_v5, %v11266_v51  ;;  %v3281_v54 = vadd.f32 %v7139_v1, %v16425_v63  ;;  %v16427_v19 = vld [vmem:[#allocation302_spill] sm:$0xff]  ;;  %v16428_v24 = vld [vmem:[#allocation304_spill] sm:$0xff] }
 0x605   :  { %5626 = vperm.xlu1 %8387, %v16325_v28   ;;  %6074 = vperm.xlu0 %8402, %v16325_v28   ;;  %v13335_v56 = vadd.f32 %v16426_v13, %v3275_v30  ;;  %v13338_v4 = vadd.f32 %v12035_v46, %v3277_v58  ;;  %vm4893_vm3 = vcmp.eq.s32.totalorder %v16427_v19, %v11266_v51  ;;  %v16429_v48 = vld [vmem:[#allocation112_spill] sm:$0xff]  ;;  %v13349_v32 = vpop.permute.xlu0 %5593  ;;  %v7275_v58 = vsel %vm4443_vm1, 1.0, %v15867_v17  ;;  %v16432_v5 = vld [vmem:[#allocation314_spill] sm:$0xff] }
 0x606   :  { %vm4782_vm4 = vcmp.eq.s32.totalorder %v16428_v24, %v11266_v51  ;;  %v13345_v49 = vadd.f32 %v16429_v48, %v3279_v40  ;;  %16430 = vst [vmem:[#allocation11_spill] sm:$0xff] %v13347_v43  ;;  %16431 = vst [vmem:[#allocation267_spill] sm:$0xff] %v13349_v32  ;;  %v4932_v1 = vadd.f32 %v12958_v31, %v4820_v53  ;;  %v7311_v63 = vsel %vm4671_vm2, 1.0, %v15867_v17  ;;  %v16433_v40 = vld [vmem:[#allocation306_spill] sm:$0xff]  ;;  %v16435_v53 = vld [vmem:[#allocation329_spill] sm:$0xff] }
 0x607   :  { %v4487_v30 = vadd.f32 %v7271_v55, %v12458_v22  ;;  %v4607_v46 = vadd.f32 %v12871_v23, %v4495_v61  ;;  %vm4449_vm5 = vcmp.eq.s32.totalorder %v16432_v5, %v11266_v51  ;;  %vm4783_vm6 = vcmp.eq.s32.totalorder %v16433_v40, %v11266_v51  ;;  %v16438_v55 = vld [vmem:[#allocation308_spill] sm:$0xff]  ;;  %v16484_v43 = vld [vmem:[#allocation338_spill] sm:$0xff] }
 0x608   :  { %v4829_v13 = vadd.f32 %v7325_v11, %v4717_v39  ;;  %v4937_v31 = vadd.f32 %v13208_v38, %v4825_v12  ;;  %v7341_v22 = vsel %vm4893_vm3, 1.0, %v15867_v17  ;;  %v13371_v23 = vsel %vm4782_vm4, 1.0, %v15867_v17  ;;  %v16436_v11 = vld [vmem:[#allocation114_spill] sm:$0xff]  ;;  %v16440_v5 = vld [vmem:[#allocation316_spill] sm:$0xff] }
 0x609   :  { %8388 = vset.pattern.permute.xlu1 %v15543_v2  ;;  %8409 = vset.pattern.permute.xlu0 %v15556_v15  ;;  %16434 = vst [vmem:[#allocation16_spill] sm:$0xff] %v13371_v23  ;;  %vm2514_vm7 = vcmp.eq.s32.totalorder %v16435_v53, %v11266_v51  ;;  %v13376_v61 = vadd.f32 %v16436_v11, %v3281_v54  ;;  %v16437_v38 = vld [vmem:[#allocation134_spill] sm:$0xff]  ;;  %v7281_v39 = vsel %vm4449_vm5, 1.0, %v15867_v17  ;;  %v13384_v19 = vpop.permute.xlu0 %5614  ;;  %v7327_v54 = vsel %vm4783_vm6, 1.0, %v15867_v17  ;;  %v13396_v11 = vpop.permute.xlu1 %5393 }
 0x60a   :  { %5844 = vperm.xlu1 %8388, %v12179_v16   ;;  %4855 = vperm.xlu0 %8409, %v16437_v38   ;;  %vm5005_vm8 = vcmp.eq.s32.totalorder %v16438_v55, %v11266_v51  ;;  %v4491_v12 = vadd.f32 %v7275_v58, %v12470_v9  ;;  %16439 = vst [vmem:[#allocation26_spill] sm:$0xff] %v13384_v19  ;;  %16441 = vst [vmem:[#allocation21_spill] sm:$0xff] %v13396_v11  ;;  %v7012_v9 = vsel %vm2514_vm7, 1.0, %v15867_v17  ;;  %v16442_v58 = vld [vmem:[#allocation331_spill] sm:$0xff]  ;;  %v16448_v38 = vld [vmem:[#allocation332_spill] sm:$0xff] }
 0x60b   :  { %v5044_v24 = vadd.f32 %v13038_v47, %v4932_v1  ;;  %v4719_v48 = vadd.f32 %v7311_v63, %v4607_v46  ;;  %vm4451_vm9 = vcmp.eq.s32.totalorder %v16440_v5, %v11266_v51  ;;  %v13394_v53 = vadd.f32 %v12756_v18, %v4487_v30  ;;  %v16443_v46 = vld [vmem:[#allocation310_spill] sm:$0xff]  ;;  %v16444_v63 = vld [vmem:[#allocation313_spill] sm:$0xff]  ;;  %v16445_v30 = vld [vmem:[#allocation315_spill] sm:$0xff] }
 0x60c   :  { %vm2517_vm10 = vcmp.eq.s32.totalorder %v16442_v58, %v11266_v51  ;;  %v5049_v47 = vadd.f32 %v13227_v10, %v4937_v31  ;;  %v4941_v1 = vadd.f32 %v7341_v22, %v4829_v13  ;;  %v7357_v40 = vsel %vm5005_vm8, 1.0, %v15867_v17  ;;  %v16458_v58 = vld [vmem:[#allocation318_spill] sm:$0xff]  ;;  %v16591_v11 = vld [vmem:[#allocation195_spill] sm:$0xff] }
 0x60d   :  { %vm4894_vm11 = vcmp.eq.s32.totalorder %v16443_v46, %v11266_v51  ;;  %vm5116_vm12 = vcmp.eq.s32.totalorder %v16444_v63, %v11266_v51  ;;  %v4497_v18 = vadd.f32 %v7281_v39, %v12525_v21  ;;  %vm4895_vm13 = vcmp.eq.s32.totalorder %v16445_v30, %v11266_v51  ;;  %v13417_v31 = vpop.permute.xlu0 %5617  ;;  %v16461_v46 = vld [vmem:[#allocation319_spill] sm:$0xff]  ;;  %v16462_v63 = vld [vmem:[#allocation320_spill] sm:$0xff] }
 0x60e   :  { %8389 = vset.pattern.permute.xlu1 %v15524_v29  ;;  %4858 = vperm.xlu0 %8409, %v16295_v62   ;;  %v7283_v10 = vsel %vm4451_vm9, 1.0, %v15867_v17  ;;  %v13414_v13 = vadd.f32 %v12814_v25, %v4491_v12  ;;  %16446 = vst [vmem:[#allocation143_spill] sm:$0xff] %v13417_v31  ;;  %v13420_v22 = vadd.f32 %v12241_v52, %v5044_v24  ;;  %v7015_v62 = vsel %vm2517_vm10, 1.0, %v15867_v17  ;;  %v13435_v12 = vpop.permute.xlu1 %5505  ;;  %v16453_v24 = vld [vmem:[#allocation317_spill] sm:$0xff] }
 0x60f   :  { %5629 = vperm.xlu1 %8389, %v16380_v60   ;;  %v4831_v21 = vadd.f32 %v7327_v54, %v4719_v48  ;;  %v2562_v29 = vadd.f32 %v7012_v9, %v13077_v0  ;;  %vm2519_vm14 = vcmp.eq.s32.totalorder %v16448_v38, %v11266_v51  ;;  %v13430_v25 = vsel %vm4894_vm11, 1.0, %v15867_v17  ;;  %16451 = vst [vmem:[#allocation83_spill] sm:$0xff] %v13435_v12  ;;  %v16454_v54 = vld [vmem:[#allocation221_spill] sm:$0xff]  ;;  %v16457_v9 = vld [vmem:[#allocation160_spill] sm:$0xff]  ;;  %v16467_v38 = vld [vmem:[#allocation346_spill] sm:$0xff] }
 0x610   :  { %16447 = vst [vmem:[#allocation12_spill] sm:$0xff] %v13420_v22  ;;  %16449 = vst [vmem:[#allocation303_spill] sm:$0xff] %v13430_v25  ;;  %v13433_v55 = vsel %vm5116_vm12, 1.0, %v15867_v17  ;;  %v13438_v52 = vadd.f32 %v13257_v36, %v5049_v47  ;;  %v5053_v0 = vadd.f32 %v7357_v40, %v4941_v1  ;;  %v7343_v39 = vsel %vm4895_vm13, 1.0, %v15867_v17  ;;  %v16459_v1 = vld [vmem:[#allocation334_spill] sm:$0xff]  ;;  %v16577_v22 = vld [vmem:[#allocation119_spill] sm:$0xff] }
 0x611   :  { %16450 = vst [vmem:[#allocation270_spill] sm:$0xff] %v13433_v55  ;;  %vm4784_vm15 = vcmp.eq.s32.totalorder %v16453_v24, %v11266_v51  ;;  %v13444_v48 = vadd.f32 %v7283_v10, %v16454_v54  ;;  %v13447_v5 = vadd.f32 %v12885_v14, %v4497_v18  ;;  %vm5526_vm0 = vcmp.eq.s32.totalorder %v16458_v58, %v11266_v51  ;;  %v13457_v40 = vpop.permute.xlu0 %5632  ;;  %v16463_v18 = vld [vmem:[#allocation38_spill] sm:$0xff] }
 0x612   :  { %16452 = vst [vmem:[#allocation24_spill] sm:$0xff] %v13438_v52  ;;  %4876 = vperm.xlu0 %8409, %v16457_v9   ;;  %v2565_v36 = vadd.f32 %v7015_v62, %v13089_v33  ;;  %v7017_v47 = vsel %vm2519_vm14, 1.0, %v15867_v17  ;;  %vm2521_vm1 = vcmp.eq.s32.totalorder %v16459_v1, %v11266_v51  ;;  %16460 = vst [vmem:[#allocation25_spill] sm:$0xff] %v13457_v40  ;;  %v13466_v33 = vsel %vm4784_vm15, 1.0, %v15867_v17  ;;  %v16465_v10 = vld [vmem:[#allocation322_spill] sm:$0xff]  ;;  %v16466_v62 = vld [vmem:[#allocation321_spill] sm:$0xff]  ;;  %v13482_v9 = vpop.permute.xlu1 %5941 }
 0x613   :  { %16455 = vst [vmem:[#allocation273_spill] sm:$0xff] %v13444_v48  ;;  %16456 = vst [vmem:[#allocation307_spill] sm:$0xff] %v13447_v5  ;;  %8390 = vset.pattern.permute.xlu1 %v15543_v2  ;;  %vm5006_vm2 = vcmp.eq.s32.totalorder %v16461_v46, %v11266_v51  ;;  %v4943_v14 = vadd.f32 %v7343_v39, %v4831_v21  ;;  %vm5529_vm3 = vcmp.eq.s32.totalorder %v16462_v63, %v11266_v51  ;;  %v16469_v39 = vld [vmem:[#allocation323_spill] sm:$0xff]  ;;  %v16473_v46 = vld [vmem:[#allocation40_spill] sm:$0xff]  ;;  %v16520_v52 = vmov 7  }
 0x614   :  { %v2674_v30 = vadd.f32 %v16463_v18, %v2562_v29  ;;  %5847 = vperm.xlu1 %8390, %v16222_v3   ;;  %16464 = vst [vmem:[#allocation84_spill] sm:$0xff] %v13466_v33  ;;  %vm4785_vm4 = vcmp.eq.s32.totalorder %v16465_v10, %v11266_v51  ;;  %vm5532_vm5 = vcmp.eq.s32.totalorder %v16466_v62, %v11266_v51  ;;  %v13476_v21 = vsel %vm5526_vm0, 1.0, %v15867_v17  ;;  %v16477_v10 = vld [vmem:[#allocation59_spill] sm:$0xff] }
 0x615   :  { %v13473_v24 = vadd.f32 %v16467_v38, %v5053_v0  ;;  %vm5533_vm6 = vcmp.eq.s32.totalorder %v16469_v39, %v11266_v51  ;;  %v2567_v29 = vadd.f32 %v7017_v47, %v13112_v35  ;;  %v7019_v54 = vsel %vm2521_vm1, 1.0, %v15867_v17  ;;  %v16471_v0 = vld [vmem:[#allocation324_spill] sm:$0xff]  ;;  %v13494_v18 = vpop.permute.xlu0 %5635  ;;  %v16486_v39 = vld [vmem:[#allocation326_spill] sm:$0xff] }
 0x616   :  { %5932 = vperm.xlu0 %8409, %v16346_v45   ;;  %v13486_v58 = vsel %vm5006_vm2, 1.0, %v15867_v17  ;;  %vm5007_vm7 = vcmp.eq.s32.totalorder %v16471_v0, %v11266_v51  ;;  %v13491_v1 = vsel %vm5529_vm3, 1.0, %v15867_v17  ;;  %v2677_v63 = vadd.f32 %v16473_v46, %v2565_v36  ;;  %16474 = vst [vmem:[#allocation28_spill] sm:$0xff] %v13494_v18  ;;  %v16478_v38 = vld [vmem:[#allocation336_spill] sm:$0xff]  ;;  %v16479_v0 = vld [vmem:[#allocation330_spill] sm:$0xff]  ;;  %v16481_v46 = vld [vmem:[#allocation325_spill] sm:$0xff]  ;;  %v13531_v33 = vpop.permute.xlu1 %6159 }
 0x617   :  { %16468 = vst [vmem:[#allocation27_spill] sm:$0xff] %v13473_v24  ;;  %16470 = vst [vmem:[#allocation276_spill] sm:$0xff] %v13486_v58  ;;  %v13497_v35 = vsel %vm4785_vm4, 1.0, %v15867_v17  ;;  %v13500_v47 = vsel %vm5532_vm5, 1.0, %v15867_v17  ;;  %v2786_v62 = vadd.f32 %v16477_v10, %v2674_v30  ;;  %vm2523_vm8 = vcmp.eq.s32.totalorder %v16478_v38, %v11266_v51  ;;  %v16482_v30 = vld [vmem:[#allocation274_spill] sm:$0xff]  ;;  %v16483_v38 = vld [vmem:[#allocation41_spill] sm:$0xff] }
 0x618   :  { %16472 = vst [vmem:[#allocation277_spill] sm:$0xff] %v13491_v1  ;;  %16475 = vst [vmem:[#allocation279_spill] sm:$0xff] %v13497_v35  ;;  %8391 = vset.pattern.permute.xlu1 %v15761_v44  ;;  %vm5525_vm9 = vcmp.eq.s32.totalorder %v16479_v0, %v11266_v51  ;;  %v13512_v36 = vsel %vm5533_vm6, 1.0, %v15867_v17  ;;  %vm5538_vm10 = vcmp.eq.s32.totalorder %v16481_v46, %v11266_v51  ;;  %v7359_v10 = vsel %vm5007_vm7, 1.0, %v15867_v17  ;;  %v16485_v0 = vld [vmem:[#allocation339_spill] sm:$0xff]  ;;  %v16487_v46 = vld [vmem:[#allocation328_spill] sm:$0xff] }
 0x619   :  { %16476 = vst [vmem:[#allocation272_spill] sm:$0xff] %v13500_v47  ;;  %16480 = vst [vmem:[#allocation281_spill] sm:$0xff] %v13512_v36  ;;  %v2569_v18 = vadd.f32 %v7019_v54, %v13115_v50  ;;  %5408 = vperm.xlu1 %8391, %v16482_v30   ;;  %v2679_v40 = vadd.f32 %v16483_v38, %v2567_v29  ;;  %vm2525_vm11 = vcmp.eq.s32.totalorder %v16484_v43, %v11266_v51  ;;  %v16488_v50 = vld [vmem:[#allocation62_spill] sm:$0xff]  ;;  %v16503_v58 = vld [vmem:[#allocation93_spill] sm:$0xff] }
 0x61a   :  { %vm2527_vm12 = vcmp.eq.s32.totalorder %v16485_v0, %v11266_v51  ;;  %5947 = vperm.xlu0 %8409, %v10965_v37   ;;  %vm4896_vm13 = vcmp.eq.s32.totalorder %v16486_v39, %v11266_v51  ;;  %vm5118_vm14 = vcmp.eq.s32.totalorder %v16487_v46, %v11266_v51  ;;  %v2789_v54 = vadd.f32 %v16488_v50, %v2677_v63  ;;  %v13537_v0 = vpop.permute.xlu0 %2806  ;;  %v16491_v47 = vld [vmem:[#allocation58_spill] sm:$0xff]  ;;  %v16493_v50 = vld [vmem:[#allocation77_spill] sm:$0xff]  ;;  %v16565_v1 = vld [vmem:[#allocation116_spill] sm:$0xff] }
 0x61b   :  { %v7021_v36 = vsel %vm2523_vm8, 1.0, %v15867_v17  ;;  %16489 = vst [vmem:[#allocation283_spill] sm:$0xff] %v13531_v33  ;;  %v7412_v29 = vsel %vm5525_vm9, 1.0, %v15867_v17  ;;  %v5055_v43 = vadd.f32 %v7359_v10, %v4943_v14  ;;  %v13535_v38 = vsel %vm5538_vm10, 1.0, %v15867_v17  ;;  %v16492_v39 = vld [vmem:[#allocation42_spill] sm:$0xff]  ;;  %v16496_v33 = vld [vmem:[#allocation88_spill] sm:$0xff] }
 0x61c   :  { %16490 = vst [vmem:[#allocation311_spill] sm:$0xff] %v13535_v38  ;;  %v2898_v19 = vadd.f32 %v16491_v47, %v2786_v62  ;;  %v2681_v48 = vadd.f32 %v16492_v39, %v2569_v18  ;;  %v7023_v46 = vsel %vm2525_vm11, 1.0, %v15867_v17  ;;  %v7025_v63 = vsel %vm2527_vm12, 1.0, %v15867_v17  ;;  %v16498_v62 = vld [vmem:[#allocation333_spill] sm:$0xff]  ;;  %v16499_v39 = vld [vmem:[#allocation106_spill] sm:$0xff] }
 0x61d   :  { %vm2529_vm15 = vcmp.eq.s32.totalorder %v16493_v50, %v11266_v51  ;;  %8393 = vset.pattern.permute.xlu1 %v15534_v7  ;;  %v13547_v14 = vsel %vm4896_vm13, 1.0, %v15867_v17  ;;  %v13550_v10 = vsel %vm5118_vm14, 1.0, %v15867_v17  ;;  %v2791_v24 = vadd.f32 %v16496_v33, %v2679_v40  ;;  %v16500_v50 = vld [vmem:[#allocation60_spill] sm:$0xff]  ;;  %v16501_v33 = vld [vmem:[#allocation157_spill] sm:$0xff] }
 0x61e   :  { %16494 = vst [vmem:[#allocation285_spill] sm:$0xff] %v13547_v14  ;;  %16495 = vst [vmem:[#allocation105_spill] sm:$0xff] %v13550_v10  ;;  %v2571_v47 = vadd.f32 %v7021_v36, %v13133_v57  ;;  %5738 = vperm.xlu1 %8393, %v16325_v28   ;;  %5950 = vperm.xlu0 %8409, %v16393_v41   ;;  %v13557_v18 = vadd.f32 %v7412_v29, %v12919_v20  ;;  %v7027_v57 = vsel %vm2529_vm15, 1.0, %v15867_v17  ;;  %v13569_v36 = vpop.permute.xlu1 %5832  ;;  %v13571_v20 = vpop.permute.xlu0 %2815  ;;  %v16502_v29 = vld [vmem:[#allocation335_spill] sm:$0xff]  ;;  %v16513_v38 = vld [vmem:[#allocation45_spill] sm:$0xff] }
 0x61f   :  { %vm4675_vm0 = vcmp.eq.s32.totalorder %v16498_v62, %v11266_v51  ;;  %vm3445_vm1 = vcmp.eq.s32.totalorder %v16499_v39, %v11266_v51  ;;  %v2901_v14 = vadd.f32 %v16500_v50, %v2789_v54  ;;  %v2573_v10 = vadd.f32 %v7023_v46, %v13143_v27  ;;  %v16504_v54 = vld [vmem:[#allocation7_spill] sm:$0xff]  ;;  %v16505_v27 = vld [vmem:[#allocation90_spill] sm:$0xff]  ;;  %v16551_v35 = vld [vmem:[#allocation113_spill] sm:$0xff] }
 0x620   :  { %16497 = vst [vmem:[#allocation286_spill] sm:$0xff] %v13557_v18  ;;  %v2575_v40 = vadd.f32 %v7025_v63, %v13158_v26  ;;  %vm3447_vm2 = vcmp.eq.s32.totalorder %v16501_v33, %v11266_v51  ;;  %vm5119_vm3 = vcmp.eq.s32.totalorder %v16502_v29, %v11266_v51  ;;  %v2793_v39 = vadd.f32 %v16503_v58, %v2681_v48  ;;  %v16506_v26 = vld [vmem:[#allocation337_spill] sm:$0xff]  ;;  %v16507_v63 = vld [vmem:[#allocation44_spill] sm:$0xff]  ;;  %v16508_v29 = vld [vmem:[#allocation86_spill] sm:$0xff] }
 0x621   :  { %vm3449_vm4 = vcmp.eq.s32.totalorder %v16504_v54, %v11266_v51  ;;  %v13579_v46 = vadd.f32 %v16505_v27, %v2898_v19  ;;  %vm5414_vm5 = vcmp.eq.s32.totalorder %v16506_v26, %v11266_v51  ;;  %v2683_v50 = vadd.f32 %v16507_v63, %v2571_v47  ;;  %v16509_v48 = vld [vmem:[#allocation275_spill] sm:$0xff]  ;;  %v16510_v19 = vld [vmem:[#allocation10_spill] sm:$0xff]  ;;  %v16512_v63 = vld [vmem:[#allocation52_spill] sm:$0xff] }
 0x622   :  { %v7159_v33 = vsel %vm3445_vm1, 1.0, %v15867_v17  ;;  %8394 = vset.pattern.permute.xlu1 %v15556_v15  ;;  %5968 = vperm.xlu0 %8409, %v16482_v30   ;;  %v2903_v55 = vadd.f32 %v16508_v29, %v2791_v24  ;;  %v2577_v58 = vadd.f32 %v7027_v57, %v16509_v48  ;;  %v7161_v18 = vsel %vm3447_vm2, 1.0, %v15867_v17  ;;  %v16511_v27 = vld [vmem:[#allocation130_spill] sm:$0xff]  ;;  %v13603_v57 = vpop.permute.xlu0 %2821  ;;  %v16528_v62 = vld [vmem:[#allocation67_spill] sm:$0xff] }
 0x623   :  { %vm3451_vm6 = vcmp.eq.s32.totalorder %v16510_v19, %v11266_v51  ;;  %5956 = vperm.xlu1 %8394, %v12179_v16   ;;  %v13594_v32 = vadd.f32 %v16511_v27, %v2901_v14  ;;  %v7375_v47 = vsel %vm5119_vm3, 1.0, %v15867_v17  ;;  %v2685_v25 = vadd.f32 %v16512_v63, %v2573_v10  ;;  %v16515_v48 = vld [vmem:[#allocation258_spill] sm:$0xff]  ;;  %v13612_v27 = vpop.permute.xlu1 %6050  ;;  %v16517_v10 = vld [vmem:[#allocation91_spill] sm:$0xff] }
 0x624   :  { %v2687_v59 = vadd.f32 %v16513_v38, %v2575_v40  ;;  %v7163_v24 = vsel %vm3449_vm4, 1.0, %v15867_v17  ;;  %v13605_v29 = vadd.f32 %v7375_v47, %v5055_v43  ;;  %v7397_v14 = vsel %vm5414_vm5, 1.0, %v15867_v17  ;;  %16516 = vst [vmem:[#allocation161_spill] sm:$0xff] %v13612_v27  ;;  %v16518_v40 = vld [vmem:[#allocation70_spill] sm:$0xff] }
 0x625   :  { %v3493_v19 = vadd.f32 %v7159_v33, %v16515_v48  ;;  %v2905_v38 = vadd.f32 %v16517_v10, %v2793_v39  ;;  %v2795_v63 = vadd.f32 %v16518_v40, %v2683_v50  ;;  %v3495_v54 = vadd.f32 %v7161_v18, %v16519_v6  ;;  %v16521_v43 = vld [vmem:[#allocation94_spill] sm:$0xff]  ;;  %v16524_v50 = vld [vmem:[#allocation213_spill] sm:$0xff]  ;;  %v16525_v6 = vld [vmem:[#allocation175_spill] sm:$0xff] }
 0x626   :  { %16514 = vst [vmem:[#allocation287_spill] sm:$0xff] %v13605_v29  ;;  %v7165_v23 = vsel %vm3451_vm6, 1.0, %v15867_v17  ;;  %8411 = vset.pattern.permute.xlu0 %v16520_v52  ;;  %v13620_v47 = vadd.f32 %v16521_v43, %v2903_v55  ;;  %v13626_v26 = vsel %vm4675_vm0, 1.0, %v15867_v17  ;;  %v16523_v33 = vld [vmem:[#allocation46_spill] sm:$0xff]  ;;  %v3497_v39 = vadd.f32 %v7163_v24, %v13322_v8  ;;  %v16527_v18 = vld [vmem:[#allocation56_spill] sm:$0xff]  ;;  %v16529_v40 = vld [vmem:[#allocation101_spill] sm:$0xff]  ;;  %v13642_v8 = vpop.permute.xlu0 %2827 }
 0x627   :  { %16522 = vst [vmem:[#allocation294_spill] sm:$0xff] %v13626_v26  ;;  %v2689_v48 = vadd.f32 %v16523_v33, %v2577_v58  ;;  %vm3331_vm7 = vcmp.eq.s32.totalorder %v16524_v50, %v11266_v51  ;;  %8395 = vset.pattern.permute.xlu1 %v15761_v44  ;;  %5097 = vperm.xlu0 %8411, %v16525_v6   ;;  %v16530_v58 = vld [vmem:[#allocation132_spill] sm:$0xff]  ;;  %v16531_v24 = vld [vmem:[#allocation139_spill] sm:$0xff]  ;;  %v16532_v50 = vld [vmem:[#allocation14_spill] sm:$0xff] }
 0x628   :  { %v13635_v55 = vadd.f32 %v13476_v21, %v7397_v14  ;;  %vm4786_vm8 = vcmp.eq.s32.totalorder %v16527_v18, %v11266_v51  ;;  %v2797_v10 = vadd.f32 %v16528_v62, %v2685_v25  ;;  %v2799_v43 = vadd.f32 %v16529_v40, %v2687_v59  ;;  %5411 = vperm.xlu1 %8395, %v16530_v58   ;;  %v16533_v21 = vld [vmem:[#allocation102_spill] sm:$0xff]  ;;  %v16534_v6 = vld [vmem:[#allocation141_spill] sm:$0xff]  ;;  %v13655_v62 = vpop.permute.xlu1 %5835 }
 0x629   :  { %v3605_v33 = vadd.f32 %v16531_v24, %v3493_v19  ;;  %v3499_v44 = vadd.f32 %v7165_v23, %v13335_v56  ;;  %vm3453_vm9 = vcmp.eq.s32.totalorder %v16532_v50, %v11266_v51  ;;  %v13649_v14 = vadd.f32 %v16533_v21, %v2905_v38  ;;  %v16535_v59 = vld [vmem:[#allocation217_spill] sm:$0xff]  ;;  %16536 = vst [vmem:[#allocation291_spill] sm:$0xff] %v13655_v62  ;;  %v16539_v56 = vld [vmem:[#allocation100_spill] sm:$0xff]  ;;  %v16540_v23 = vld [vmem:[#allocation103_spill] sm:$0xff] }
 0x62a   :  { %16526 = vst [vmem:[#allocation289_spill] sm:$0xff] %v13635_v55  ;;  %v3607_v18 = vadd.f32 %v16534_v6, %v3495_v54  ;;  %v7141_v25 = vsel %vm3331_vm7, 1.0, %v15867_v17  ;;  %vm3334_vm10 = vcmp.eq.s32.totalorder %v16535_v59, %v11266_v51  ;;  %v16537_v40 = vld [vmem:[#allocation65_spill] sm:$0xff]  ;;  %v13659_v19 = vsel %vm4786_vm8, 1.0, %v15867_v17  ;;  %v16541_v24 = vld [vmem:[#allocation142_spill] sm:$0xff]  ;;  %v16542_v54 = vld [vmem:[#allocation163_spill] sm:$0xff] }
 0x62b   :  { %v2907_v27 = vadd.f32 %v16537_v40, %v2795_v63  ;;  %16538 = vst [vmem:[#allocation296_spill] sm:$0xff] %v13659_v19  ;;  %vm5008_vm11 = vcmp.eq.s32.totalorder %v16539_v56, %v11266_v51  ;;  %v2801_v38 = vadd.f32 %v16540_v23, %v2689_v48  ;;  %v3609_v50 = vadd.f32 %v16541_v24, %v3497_v39  ;;  %v16543_v6 = vld [vmem:[#allocation23_spill] sm:$0xff]  ;;  %v13670_v63 = vpop.permute.xlu0 %2833  ;;  %v16545_v40 = vld [vmem:[#allocation96_spill] sm:$0xff]  ;;  %v16546_v26 = vld [vmem:[#allocation66_spill] sm:$0xff] }
 0x62c   :  { %5106 = vperm.xlu0 %8411, %v16542_v54   ;;  %v7167_v21 = vsel %vm3453_vm9, 1.0, %v15867_v17  ;;  %vm3455_vm12 = vcmp.eq.s32.totalorder %v16543_v6, %v11266_v51  ;;  %v16544_v62 = vmov 1   ;;  %v2909_v19 = vadd.f32 %v16545_v40, %v2797_v10  ;;  %v16547_v56 = vld [vmem:[#allocation72_spill] sm:$0xff] }
 0x62d   :  { %8396 = vset.pattern.permute.xlu1 %v16544_v62  ;;  %v2911_v29 = vadd.f32 %v16546_v26, %v2799_v43  ;;  %v3717_v55 = vadd.f32 %v16547_v56, %v3605_v33  ;;  %v16548_v48 = vld [vmem:[#allocation148_spill] sm:$0xff]  ;;  %v7144_v54 = vsel %vm3334_vm10, 1.0, %v15867_v17  ;;  %v13683_v62 = vsel %vm5008_vm11, 1.0, %v15867_v17  ;;  %v16552_v26 = vld [vmem:[#allocation225_spill] sm:$0xff]  ;;  %v16553_v43 = vld [vmem:[#allocation135_spill] sm:$0xff]  ;;  %v13697_v56 = vpop.permute.xlu1 %5396 }
 0x62e   :  { %v3611_v23 = vadd.f32 %v16548_v48, %v3499_v44  ;;  %v16549_v39 = vld [vmem:[#allocation220_spill] sm:$0xff]  ;;  %5523 = vperm.xlu1 %8396, %v16530_v58   ;;  %16550 = vst [vmem:[#allocation298_spill] sm:$0xff] %v13683_v62  ;;  %v3719_v10 = vadd.f32 %v16551_v35, %v3607_v18  ;;  %vm3336_vm13 = vcmp.eq.s32.totalorder %v16552_v26, %v11266_v51  ;;  %v16555_v44 = vld [vmem:[#allocation118_spill] sm:$0xff]  ;;  %v7169_v59 = vsel %vm3455_vm12, 1.0, %v15867_v17 }
 0x62f   :  { %v3379_v24 = vadd.f32 %v7141_v25, %v16549_v39  ;;  %v13689_v33 = vadd.f32 %v16553_v43, %v2907_v27  ;;  %v3721_v25 = vadd.f32 %v16555_v44, %v3609_v50  ;;  %v3501_v40 = vadd.f32 %v7167_v21, %v13338_v4  ;;  %v16556_v48 = vld [vmem:[#allocation154_spill] sm:$0xff]  ;;  %v16557_v35 = vld [vmem:[#allocation68_spill] sm:$0xff]  ;;  %v16558_v39 = vld [vmem:[#allocation131_spill] sm:$0xff]  ;;  %v13704_v43 = vpop.permute.xlu0 %2839 }
 0x630   :  { %6153 = vperm.xlu0 %8411, %v16556_v48   ;;  %v2913_v18 = vadd.f32 %v16557_v35, %v2801_v38  ;;  %vm4787_vm14 = vcmp.eq.s32.totalorder %v16558_v39, %v11266_v51  ;;  %v16559_v27 = vld [vmem:[#allocation224_spill] sm:$0xff]  ;;  %v16560_v50 = vld [vmem:[#allocation97_spill] sm:$0xff]  ;;  %v16562_v21 = vld [vmem:[#allocation99_spill] sm:$0xff]  ;;  %v7146_v48 = vsel %vm3336_vm13, 1.0, %v15867_v17 }
 0x631   :  { %16554 = vst [vmem:[#allocation300_spill] sm:$0xff] %v13689_v33  ;;  %v3382_v26 = vadd.f32 %v7144_v54, %v16559_v27  ;;  %v13707_v4 = vadd.f32 %v16560_v50, %v2909_v19  ;;  %v13710_v44 = vadd.f32 %v16562_v21, %v2911_v29  ;;  %v16564_v6 = vld [vmem:[#allocation76_spill] sm:$0xff]  ;;  %v3491_v42 = vadd.f32 %v16565_v1, %v3379_v24  ;;  %v16566_v38 = vld [vmem:[#allocation158_spill] sm:$0xff]  ;;  %v16567_v27 = vld [vmem:[#allocation31_spill] sm:$0xff] }
 0x632   :  { %v3723_v62 = vadd.f32 %v16564_v6, %v3611_v23  ;;  %8398 = vset.pattern.permute.xlu1 %v15556_v15  ;;  %v3829_v35 = vadd.f32 %v16566_v38, %v3717_v55  ;;  %v3503_v54 = vadd.f32 %v7169_v59, %v13345_v49  ;;  %vm3457_vm15 = vcmp.eq.s32.totalorder %v16567_v27, %v11266_v51  ;;  %v16568_v19 = vld [vmem:[#allocation229_spill] sm:$0xff]  ;;  %v16569_v29 = vld [vmem:[#allocation162_spill] sm:$0xff]  ;;  %v16570_v1 = vld [vmem:[#allocation19_spill] sm:$0xff] }
 0x633   :  { %16561 = vst [vmem:[#allocation292_spill] sm:$0xff] %v13707_v4  ;;  %16563 = vst [vmem:[#allocation312_spill] sm:$0xff] %v13710_v44  ;;  %vm3338_vm0 = vcmp.eq.s32.totalorder %v16568_v19, %v11266_v51  ;;  %5959 = vperm.xlu1 %8398, %v16222_v3   ;;  %v3831_v23 = vadd.f32 %v16569_v29, %v3719_v10  ;;  %vm5527_vm1 = vcmp.eq.s32.totalorder %v16570_v1, %v11266_v51  ;;  %v16571_v24 = vld [vmem:[#allocation145_spill] sm:$0xff]  ;;  %v16572_v55 = vld [vmem:[#allocation348_spill] sm:$0xff]  ;;  %v13738_v44 = vpop.permute.xlu1 %5508 }
 0x634   :  { %v3613_v50 = vadd.f32 %v16571_v24, %v3501_v40  ;;  %6156 = vperm.xlu0 %8411, %v16346_v45   ;;  %v3833_v21 = vadd.f32 %v16572_v55, %v3721_v25  ;;  %v16573_v49 = vld [vmem:[#allocation104_spill] sm:$0xff]  ;;  %v16575_v6 = vld [vmem:[#allocation159_spill] sm:$0xff]  ;;  %v16576_v38 = vld [vmem:[#allocation17_spill] sm:$0xff]  ;;  %v3494_v10 = vadd.f32 %v16577_v22, %v3382_v26  ;;  %v13740_v40 = vpop.permute.xlu0 %2845  ;;  %v7171_v25 = vsel %vm3457_vm15, 1.0, %v15867_v17 }
 0x635   :  { %v13730_v59 = vadd.f32 %v16573_v49, %v2913_v18  ;;  %vm5009_vm2 = vcmp.eq.s32.totalorder %v16575_v6, %v11266_v51  ;;  %vm5415_vm3 = vcmp.eq.s32.totalorder %v16576_v38, %v11266_v51  ;;  %v16578_v29 = vld [vmem:[#allocation226_spill] sm:$0xff]  ;;  %v7148_v18 = vsel %vm3338_vm0, 1.0, %v15867_v17  ;;  %v3031_v6 = vld [vmem:[%s15234_s2 + $0x28] sm:$0xff] }
 0x636   :  { %v3384_v5 = vadd.f32 %v7146_v48, %v16578_v29  ;;  %v16579_v45 = vld [vmem:[#allocation6_spill] sm:$0xff]  ;;  %v16581_v48 = vld [vmem:[#allocation179_spill] sm:$0xff]  ;;  %v7414_v55 = vsel %vm5527_vm1, 1.0, %v15867_v17  ;;  %v7398_v19 = vsel %vm5415_vm3, 1.0, %v15867_v17  ;;  %v3606_v12 = vadd.f32 %v16591_v11, %v3494_v10 }
 0x637   :  { %16574 = vst [vmem:[#allocation293_spill] sm:$0xff] %v13730_v59  ;;  %vm4898_vm4 = vcmp.eq.s32.totalorder %v16579_v45, %v11266_v51  ;;  %v16580_v22 = vld [vmem:[#allocation194_spill] sm:$0xff]  ;;  %v3835_v24 = vadd.f32 %v16581_v48, %v3723_v62  ;;  %8399 = vset.pattern.permute.xlu1 %v16520_v52  ;;  %v16587_v48 = vld [vmem:[#allocation164_spill] sm:$0xff]  ;;  %v13797_v10 = vsel %vm4787_vm14, 1.0, %v15867_v17 }
 0x638   :  { %v3603_v26 = vadd.f32 %v16580_v22, %v3491_v42  ;;  %v16582_v49 = vld [vmem:[#allocation146_spill] sm:$0xff]  ;;  %6177 = vperm.xlu1 %8399, %v16587_v48   ;;  %6171 = vperm.xlu0 %8411, %v10965_v37   ;;  %v3735_v31 = vpop.permute.xlu0 %3734  ;;  %v16593_v37 = vld [vmem:[#allocation171_spill] sm:$0xff]  ;;  %16596 = vst [vmem:[#allocation295_spill] sm:$0xff] %v13797_v10 }
 0x639   :  { %v3615_v38 = vadd.f32 %v16582_v49, %v3503_v54  ;;  %v16583_v27 = vld [vmem:[#allocation166_spill] sm:$0xff]  ;;  %v16588_v54 = vld [vmem:[#allocation167_spill] sm:$0xff]  ;;  %v16589_v49 = vld [vmem:[#allocation121_spill] sm:$0xff]  ;;  %vm3779_vm6 = vcmp.eq.s32.totalorder %v3735_v31, %v11266_v51 }
 0x63a   :  { %v13761_v29 = vadd.f32 %v16583_v27, %v3829_v35  ;;  %v16584_v59 = vld [vmem:[#allocation342_spill] sm:$0xff]  ;;  %v13773_v1 = vadd.f32 %v16588_v54, %v3833_v21  ;;  %v3505_v35 = vadd.f32 %v7171_v25, %v13376_v61  ;;  %v3496_v27 = vadd.f32 %v16589_v49, %v3384_v5  ;;  %v16594_v54 = vld [vmem:[#allocation79_spill] sm:$0xff]  ;;  %v16597_v31 = vld [vmem:[#allocation29_spill] sm:$0xff] }
 0x63b   :  { %v13764_v4 = vadd.f32 %v16584_v59, %v3831_v23  ;;  %v16585_v42 = vld [vmem:[#allocation78_spill] sm:$0xff]  ;;  %v16590_v23 = vld [vmem:[#allocation228_spill] sm:$0xff]  ;;  %v13786_v21 = vadd.f32 %v16593_v37, %v3835_v24  ;;  %v3727_v61 = vadd.f32 %v16594_v54, %v3615_v38  ;;  %v7205_v11 = vsel %vm3779_vm6, 1.0, %v15867_v17  ;;  %v16599_v38 = vld [vmem:[#allocation147_spill] sm:$0xff] }
 0x63c   :  { %v3725_v22 = vadd.f32 %v16585_v42, %v3613_v50  ;;  %v16586_v62 = vld [vmem:[#allocation230_spill] sm:$0xff]  ;;  %v3386_v59 = vadd.f32 %v7148_v18, %v16590_v23  ;;  %v13779_v50 = vadd.f32 %v7414_v55, %v7398_v19  ;;  %v13781_v42 = vpop.permute.xlu1 %5944  ;;  %vm4899_vm8 = vcmp.eq.s32.totalorder %v16597_v31, %v11266_v51  ;;  %8400 = vset.pattern.permute.xlu1 %v15543_v2  ;;  %v16598_v55 = vld [vmem:[#allocation185_spill] sm:$0xff]  ;;  %v3744_v37 = vpop.permute.xlu0 %3743 }
 0x63d   :  { %vm3340_vm5 = vcmp.eq.s32.totalorder %v16586_v62, %v11266_v51  ;;  %v16592_v62 = vld [vmem:[#allocation149_spill] sm:$0xff]  ;;  %v16595_v25 = vld [vmem:[#allocation238_spill] sm:$0xff]  ;;  %6174 = vperm.xlu0 %8411, %v16393_v41   ;;  %v3617_v19 = vadd.f32 %v16599_v38, %v3505_v35  ;;  %5850 = vperm.xlu1 %8400, %v16325_v28   ;;  %vm3782_vm9 = vcmp.eq.s32.totalorder %v3744_v37, %v11266_v51 }
 0x63e   :  { %v3715_v48 = vadd.f32 %v16592_v62, %v3603_v26  ;;  %v7150_v5 = vsel %vm3340_vm5, 1.0, %v15867_v17  ;;  %vm3342_vm7 = vcmp.eq.s32.totalorder %v16595_v25, %v11266_v51  ;;  %v3028_v26 = vld [vmem:[%s15234_s2 + $0x10] sm:$0xff]  ;;  %v3029_v24 = vld [vmem:[%s15234_s2 + $0x18] sm:$0xff]  ;;  %v3837_v39 = vadd.f32 %v16598_v55, %v3725_v22  ;;  %v16604_v22 = vld [vmem:[#allocation187_spill] sm:$0xff] }
 0x63f   :  { %v16600_v49 = vld [vmem:[#allocation122_spill] sm:$0xff]  ;;  %v16602_v41 = vld [vmem:[#allocation201_spill] sm:$0xff]  ;;  %v7152_v33 = vsel %vm3342_vm7, 1.0, %v15867_v17  ;;  %v8110_v38 = vpack.c.bf16 %v3029_v24, %v3028_v26  ;;  %v16609_v25 = vld [vmem:[#allocation156_spill] sm:$0xff]  ;;  %v13849_v26 = vsel %vm4898_vm4, 1.0, %v15867_v17  ;;  %vm5535_vm6 = vcmp.eq.s32.totalorder %v13738_v44, %v11266_v51 }
 0x640   :  { %v3827_v18 = vadd.f32 %v7205_v11, %v3715_v48  ;;  %v3498_v23 = vadd.f32 %v16600_v49, %v3386_v59  ;;  %v16601_v62 = vld [vmem:[#allocation150_spill] sm:$0xff]  ;;  %v3608_v54 = vadd.f32 %v16602_v41, %v3496_v27  ;;  %v16603_v11 = vld [vmem:[#allocation232_spill] sm:$0xff]  ;;  %v13824_v55 = vpop.permute.xlu1 %6162  ;;  %vm2403_vm11 = vcmp.eq.s32.totalorder %v16609_v25, %v11266_v51  ;;  %16611 = vst [vmem:[#allocation297_spill] sm:$0xff] %v13849_v26  ;;  %v16612_v24 = vld [vmem:[#allocation235_spill] sm:$0xff] }
 0x641   :  { %v3718_v48 = vadd.f32 %v16601_v62, %v3606_v12  ;;  %v3388_v10 = vadd.f32 %v7150_v5, %v16603_v11  ;;  %v16605_v59 = vld [vmem:[#allocation242_spill] sm:$0xff]  ;;  %16606 = vst [vmem:[#allocation85_spill] sm:$0xff] %v13824_v55  ;;  %v7208_v12 = vsel %vm3782_vm9, 1.0, %v15867_v17  ;;  %v13832_v5 = vsel %vm5009_vm2, 1.0, %v15867_v17  ;;  %6180 = vperm.xlu0 %8411, %v12179_v16   ;;  %v16614_v41 = vld [vmem:[#allocation351_spill] sm:$0xff]  ;;  %v16617_v55 = vld [vmem:[#allocation125_spill] sm:$0xff] }
 0x642   :  { %v3939_v35 = vadd.f32 %v16604_v22, %v3827_v18  ;;  %vm3344_vm10 = vcmp.eq.s32.totalorder %v16605_v59, %v11266_v51  ;;  %v16607_v27 = vld [vmem:[#allocation182_spill] sm:$0xff]  ;;  %16608 = vst [vmem:[#allocation301_spill] sm:$0xff] %v13832_v5  ;;  %v16610_v18 = vld [vmem:[#allocation169_spill] sm:$0xff]  ;;  %v3390_v37 = vadd.f32 %v7152_v33, %v16612_v24  ;;  %v16615_v11 = vld [vmem:[#allocation151_spill] sm:$0xff]  ;;  %vm5423_vm9 = vcmp.eq.s32.totalorder %v13697_v56, %v11266_v51 }
 0x643   :  { %v3839_v49 = vadd.f32 %v16607_v27, %v3727_v61  ;;  %vm2406_vm12 = vcmp.eq.s32.totalorder %v16610_v18, %v11266_v51  ;;  %v3830_v62 = vadd.f32 %v7208_v12, %v3718_v48  ;;  %v3030_v61 = vld [vmem:[%s15234_s2 + $0x20] sm:$0xff]  ;;  %v16613_v48 = vmov 6   ;;  %v16616_v12 = vld [vmem:[#allocation352_spill] sm:$0xff]  ;;  %v16618_v26 = vld [vmem:[#allocation257_spill] sm:$0xff] }
 0x644   :  { %7819 = vmatmul.mubr.f32.vlgmr.msra.gmra.mrb[0].mxu0 %v3939_v35  ;;  %8401 = vset.pattern.permute.xlu1 %v16613_v48  ;;  %v3720_v22 = vadd.f32 %v16615_v11, %v3608_v54  ;;  %v3750_v35 = vpop.permute.xlu0 %3749  ;;  %v3610_v27 = vadd.f32 %v16616_v12, %v3498_v23  ;;  %v3500_v5 = vadd.f32 %v16617_v55, %v3388_v10  ;;  %v7154_v45 = vsel %vm3344_vm10, 1.0, %v15867_v17  ;;  %v16619_v33 = vld [vmem:[#allocation191_spill] sm:$0xff]  ;;  %v16621_v10 = vld [vmem:[#allocation172_spill] sm:$0xff]  ;;  %v16622_v59 = vld [vmem:[#allocation57_spill] sm:$0xff] }
 0x645   :  { %7821 = vmatprep.mubr.f32.mxu0 %v16614_v41  ;;  %6068 = vperm.xlu1 %8401, %v12179_v16   ;;  %vm3784_vm13 = vcmp.eq.s32.totalorder %v3750_v35, %v11266_v51  ;;  %v3942_v24 = vadd.f32 %v16619_v33, %v3830_v62  ;;  %v16620_v41 = vld [vmem:[#allocation80_spill] sm:$0xff]  ;;  %v8114_v23 = vpack.c.bf16 %v3031_v6, %v3030_v61  ;;  %v6997_v16 = vsel %vm2403_vm11, 1.0, %v15867_v17  ;;  %v16623_v61 = vld [vmem:[#allocation173_spill] sm:$0xff]  ;;  %v16625_v35 = vld [vmem:[#allocation239_spill] sm:$0xff] }
 0x646   :  { %8109 = vmatpush3.bf16.msra.mxu0 %v16618_v26  ;;  %v3729_v54 = vadd.f32 %v16620_v41, %v3617_v19  ;;  %v7210_v11 = vsel %vm3784_vm13, 1.0, %v15867_v17  ;;  %v13868_v55 = vadd.f32 %v16621_v10, %v3837_v39  ;;  %vm4663_vm14 = vcmp.eq.s32.totalorder %v16622_v59, %v11266_v51  ;;  %v13876_v26 = vpop.permute.xlu1 %5511  ;;  %6183 = vperm.xlu0 %8411, %v16222_v3   ;;  %v3032_v39 = vld [vmem:[%s15234_s2 + $0x30] sm:$0xff]  ;;  %v3033_v19 = vld [vmem:[%s15234_s2 + $0x38] sm:$0xff]  ;;  %v16626_v12 = vld [vmem:[#allocation152_spill] sm:$0xff] }
 0x647   :  { %8111 = vmatprep.subr.bf16.mxu0 %v8110_v38  ;;  %v3832_v62 = vadd.f32 %v7210_v11, %v3720_v22  ;;  %v13887_v6 = vadd.f32 %v16623_v61, %v3839_v49  ;;  %v7000_v25 = vsel %vm2406_vm12, 1.0, %v15867_v17  ;;  %v16624_v22 = vld [vmem:[#allocation127_spill] sm:$0xff]  ;;  %v3722_v33 = vadd.f32 %v16626_v12, %v3610_v27  ;;  %v16628_v49 = vld [vmem:[#allocation197_spill] sm:$0xff]  ;;  %v16631_v27 = vld [vmem:[#allocation218_spill] sm:$0xff] }
 0x648   :  { %7822 = vmatmul.mubr.f32.gmra.mrb[2].mxu0 %v13761_v29  ;;  %v3502_v3 = vadd.f32 %v16624_v22, %v3390_v37  ;;  %v3392_v29 = vadd.f32 %v7154_v45, %v16625_v35  ;;  %v3756_v41 = vpop.permute.xlu0 %3755  ;;  %v13900_v11 = vsel %vm4899_vm8, 1.0, %v15867_v17  ;;  %v16629_v37 = vld [vmem:[#allocation202_spill] sm:$0xff]  ;;  %v16630_v45 = vld [vmem:[#allocation48_spill] sm:$0xff]  ;;  %v8118_v61 = vpack.c.bf16 %v3033_v19, %v3032_v39  ;;  %v16632_v22 = vld [vmem:[#allocation13_spill] sm:$0xff] }
 0x649   :  { %7824 = vmatprep.mubr.f32.mxu0 %v3942_v24  ;;  %16627 = vst [vmem:[#allocation89_spill] sm:$0xff] %v13900_v11  ;;  %8403 = vset.pattern.permute.xlu1 %v15543_v2  ;;  %vm3786_vm15 = vcmp.eq.s32.totalorder %v3756_v41, %v11266_v51  ;;  %v3944_v18 = vadd.f32 %v16628_v49, %v3832_v62  ;;  %v16633_v39 = vld [vmem:[#allocation186_spill] sm:$0xff]  ;;  %v16636_v12 = vld [vmem:[#allocation136_spill] sm:$0xff]  ;;  %v16637_v49 = vld [vmem:[#allocation203_spill] sm:$0xff] }
 0x64a   :  { %8113 = vmatpush3.bf16.msra.mxu0 %v8110_v38  ;;  %v3612_v10 = vadd.f32 %v16629_v37, %v3500_v5  ;;  %vm4662_vm0 = vcmp.eq.s32.totalorder %v16630_v45, %v11266_v51  ;;  %v2451_v24 = vadd.f32 %v6997_v16, %v16631_v27  ;;  %5853 = vperm.xlu1 %8403, %v16380_v60   ;;  %v7212_v31 = vsel %vm3786_vm15, 1.0, %v15867_v17  ;;  %v3034_v5 = vld [vmem:[%s15234_s2 + $0x40] sm:$0xff]  ;;  %v3035_v16 = vld [vmem:[%s15234_s2 + $0x48] sm:$0xff]  ;;  %v16634_v59 = vld [vmem:[#allocation50_spill] sm:$0xff] }
 0x64b   :  { %8115 = vmatprep.subr.bf16.mxu0 %v8114_v23  ;;  %v7303_v38 = vsel %vm4663_vm14, 1.0, %v15867_v17  ;;  %v2454_v62 = vadd.f32 %v7000_v25, %v16632_v22  ;;  %v3834_v35 = vadd.f32 %v7212_v31, %v3722_v33  ;;  %6189 = vperm.xlu0 %8411, %v16380_v60   ;;  %v13925_v19 = vadd.f32 %v16633_v39, %v3729_v54  ;;  %v16635_v25 = vld [vmem:[#allocation347_spill] sm:$0xff]  ;;  %v16639_v54 = vld [vmem:[#allocation153_spill] sm:$0xff]  ;;  %v3037_v45 = vld [vmem:[%s15234_s2 + $0x58] sm:$0xff] }
 0x64c   :  { %7825 = vmatmul.mubr.f32.gmra.mrb[4].mxu0 %v13764_v4  ;;  %vm5528_vm1 = vcmp.eq.s32.totalorder %v16634_v59, %v11266_v51  ;;  %vm2408_vm2 = vcmp.eq.s32.totalorder %v16635_v25, %v11266_v51  ;;  %v3504_v33 = vadd.f32 %v16636_v12, %v3392_v29  ;;  %v13932_v4 = vpop.permute.xlu1 %5729  ;;  %v3762_v41 = vpop.permute.xlu0 %3761  ;;  %v3614_v37 = vadd.f32 %v16637_v49, %v3502_v3  ;;  %v16638_v27 = vld [vmem:[#allocation215_spill] sm:$0xff]  ;;  %v16640_v22 = vld [vmem:[#allocation193_spill] sm:$0xff]  ;;  %v16641_v29 = vld [vmem:[#allocation30_spill] sm:$0xff] }
 0x64d   :  { %7827 = vmatprep.mubr.f32.mxu0 %v3944_v18  ;;  %vm5531_vm3 = vcmp.eq.s32.totalorder %v16638_v27, %v11266_v51  ;;  %v3724_v31 = vadd.f32 %v16639_v54, %v3612_v10  ;;  %vm3788_vm4 = vcmp.eq.s32.totalorder %v3762_v41, %v11266_v51  ;;  %v3946_v39 = vadd.f32 %v16640_v22, %v3834_v35  ;;  %v16642_v10 = vld [vmem:[#allocation35_spill] sm:$0xff]  ;;  %v16645_v54 = vld [vmem:[#allocation206_spill] sm:$0xff] }
 0x64e   :  { %8117 = vmatpush3.bf16.msra.mxu0 %v8114_v23  ;;  %v13941_v11 = vadd.f32 %v7303_v38, %v13394_v53  ;;  %v13944_v12 = vadd.f32 %v16641_v29, %v2451_v24  ;;  %8404 = vset.pattern.permute.xlu1 %v15534_v7  ;;  %v7214_v3 = vsel %vm3788_vm4, 1.0, %v15867_v17  ;;  %v8122_v18 = vpack.c.bf16 %v3035_v16, %v3034_v5  ;;  %v16643_v53 = vld [vmem:[#allocation253_spill] sm:$0xff]  ;;  %v16644_v5 = vld [vmem:[#allocation168_spill] sm:$0xff]  ;;  %v16652_v56 = vld [vmem:[#allocation43_spill] sm:$0xff] }
 0x64f   :  { %8119 = vmatprep.subr.bf16.mxu0 %v8118_v61  ;;  %v7302_v23 = vsel %vm4662_vm0, 1.0, %v15867_v17  ;;  %v13953_v41 = vadd.f32 %v16642_v10, %v2454_v62  ;;  %vm5643_vm5 = vcmp.eq.s32.totalorder %v16643_v53, %v11266_v51  ;;  %5744 = vperm.xlu1 %8404, %v16482_v30   ;;  %v3836_v24 = vadd.f32 %v7214_v3, %v3724_v31  ;;  %v3036_v38 = vld [vmem:[%s15234_s2 + $0x50] sm:$0xff]  ;;  %v16647_v29 = vld [vmem:[#allocation248_spill] sm:$0xff]  ;;  %v3038_v53 = vld [vmem:[%s15234_s2 + $0x60] sm:$0xff] }
 0x650   :  { %6192 = vperm.xlu0 %8411, %v16482_v30   ;;  %v7418_v62 = vsel %vm5531_vm3, 1.0, %v15867_v17  ;;  %v7002_v35 = vsel %vm2408_vm2, 1.0, %v15867_v17  ;;  %7828 = vmatmul.mubr.f32.gmra.mrb[6].mxu0 %v13773_v1  ;;  %v3726_v16 = vadd.f32 %v16644_v5, %v3614_v37  ;;  %v3768_v49 = vpop.permute.xlu0 %3767  ;;  %v3616_v31 = vadd.f32 %v16645_v54, %v3504_v33  ;;  %v13984_v27 = vpop.permute.xlu1 %6165  ;;  %v16646_v1 = vld [vmem:[#allocation200_spill] sm:$0xff]  ;;  %v16651_v54 = vld [vmem:[#allocation198_spill] sm:$0xff] }
 0x651   :  { %v13980_v22 = vsel %vm5528_vm1, 1.0, %v15867_v17  ;;  %7830 = vmatprep.mubr.f32.mxu0 %v3946_v39  ;;  %vm3790_vm7 = vcmp.eq.s32.totalorder %v3768_v49, %v11266_v51  ;;  %v3948_v25 = vadd.f32 %v16646_v1, %v3836_v24  ;;  %v7434_v33 = vsel %vm5643_vm5, 1.0, %v15867_v17  ;;  %v16648_v39 = vld [vmem:[#allocation18_spill] sm:$0xff]  ;;  %v3039_v24 = vld [vmem:[%s15234_s2 + $0x68] sm:$0xff] }
 0x652   :  { %8121 = vmatpush3.bf16.msra.mxu0 %v8118_v61  ;;  %vm5755_vm8 = vcmp.eq.s32.totalorder %v13297_v34, %v11266_v51  ;;  %v7216_v59 = vsel %vm3790_vm7, 1.0, %v15867_v17  ;;  %v8126_v37 = vpack.c.bf16 %v3037_v45, %v3036_v38  ;;  %v5579_v3 = vadd.f32 %v7418_v62, %v16647_v29  ;;  %v16649_v38 = vld [vmem:[#allocation183_spill] sm:$0xff]  ;;  %v16650_v62 = vld [vmem:[#allocation170_spill] sm:$0xff] }
 0x653   :  { %8123 = vmatprep.subr.bf16.mxu0 %v8122_v18  ;;  %v2456_v61 = vadd.f32 %v7002_v35, %v16648_v39  ;;  %8405 = vset.pattern.permute.xlu1 %v15556_v15  ;;  %v3838_v10 = vadd.f32 %v7216_v59, %v3726_v16  ;;  %vm2410_vm10 = vcmp.eq.s32.totalorder %v16649_v38, %v11266_v51  ;;  %v7422_v45 = vsel %vm5535_vm6, 1.0, %v15867_v17  ;;  %v16653_v59 = vld [vmem:[#allocation233_spill] sm:$0xff]  ;;  %v16654_v39 = vld [vmem:[#allocation178_spill] sm:$0xff] }
 0x654   :  { %vm5867_vm11 = vcmp.eq.s32.totalorder %v13569_v36, %v11266_v51  ;;  %5962 = vperm.xlu1 %8405, %v16325_v28   ;;  %7831 = vmatmul.mubr.f32.gmra.mrb[8].mxu0 %v13786_v21  ;;  %v3728_v35 = vadd.f32 %v16650_v62, %v3616_v31  ;;  %v3774_v5 = vpop.permute.xlu0 %3773  ;;  %v5691_v16 = vadd.f32 %v7434_v33, %v5579_v3  ;;  %v7450_v49 = vsel %vm5755_vm8, 1.0, %v15867_v17  ;;  %v5621_v31 = vpop.permute.xlu1 %5620  ;;  %v16656_v62 = vld [vmem:[#allocation22_spill] sm:$0xff] }
 0x655   :  { %7833 = vmatprep.mubr.f32.mxu0 %v3948_v25  ;;  %vm3792_vm12 = vcmp.eq.s32.totalorder %v3774_v5, %v11266_v51  ;;  %v3950_v44 = vadd.f32 %v16651_v54, %v3838_v10  ;;  %v7406_v21 = vsel %vm5423_vm9, 1.0, %v15867_v17  ;;  %vm5979_vm13 = vcmp.eq.s32.totalorder %v13781_v42, %v11266_v51  ;;  %v16658_v54 = vld [vmem:[#allocation39_spill] sm:$0xff] }
 0x656   :  { %8125 = vmatpush3.bf16.msra.mxu0 %v8122_v18  ;;  %v7218_v1 = vsel %vm3792_vm12, 1.0, %v15867_v17  ;;  %v8130_v34 = vpack.c.bf16 %v3039_v24, %v3038_v53  ;;  %v7466_v18 = vsel %vm5867_vm11, 1.0, %v15867_v17  ;;  %v5583_v25 = vadd.f32 %v7422_v45, %v7406_v21  ;;  %v3040_v24 = vld [vmem:[%s15234_s2 + $0x70] sm:$0xff]  ;;  %v16659_v21 = vld [vmem:[#allocation32_spill] sm:$0xff] }
 0x657   :  { %8127 = vmatprep.subr.bf16.mxu0 %v8126_v37  ;;  %vm5647_vm14 = vcmp.eq.s32.totalorder %v5621_v31, %v11266_v51  ;;  %v3840_v33 = vadd.f32 %v7218_v1, %v3728_v35  ;;  %vm5121_vm15 = vcmp.eq.s32.totalorder %v16652_v56, %v11266_v51  ;;  %v4710_v29 = vadd.f32 %v7302_v23, %v16653_v59  ;;  %v3041_v23 = vld [vmem:[%s15234_s2 + $0x78] sm:$0xff]  ;;  %v16677_v56 = vld [vmem:[#allocation256_spill] sm:$0xff] }
 0x658   :  { %v5803_v3 = vadd.f32 %v7450_v49, %v5691_v16  ;;  %v2675_v10 = vadd.f32 %v16654_v39, %v13944_v12  ;;  %v7438_v53 = vsel %vm5647_vm14, 1.0, %v15867_v17  ;;  %8406 = vset.pattern.permute.xlu1 %v15534_v7  ;;  %7834 = vmatmul.mubr.f32.gmra.mrb[10].mxu0 %v13868_v55  ;;  %v14043_v36 = vpop.permute.xlu0 %4952  ;;  %v7482_v12 = vsel %vm5979_vm13, 1.0, %v15867_v17  ;;  %v16655_v55 = vld [vmem:[#allocation354_spill] sm:$0xff]  ;;  %v6057_v1 = vpop.permute.xlu1 %6056  ;;  %v16664_v39 = vld [vmem:[#allocation47_spill] sm:$0xff] }
 0x659   :  { %vm2851_vm0 = vcmp.eq.s32.totalorder %v13537_v0, %v11266_v51  ;;  %v14057_v7 = vadd.f32 %v7438_v53, %v5583_v25  ;;  %5747 = vperm.xlu1 %8406, %v16530_v58   ;;  %7836 = vmatprep.mubr.f32.mxu0 %v3950_v44  ;;  %v3952_v45 = vadd.f32 %v16655_v55, %v3840_v33  ;;  %v7004_v5 = vsel %vm2410_vm10, 1.0, %v15867_v17  ;;  %v16657_v16 = vld [vmem:[#allocation174_spill] sm:$0xff]  ;;  %v5173_v25 = vld [vmem:[%s15234_s2 + $0x108] sm:$0xff]  ;;  %v16663_v0 = vld [vmem:[#allocation15_spill] sm:$0xff] }
 0x65a   :  { %v4823_v35 = vadd.f32 %v16656_v62, %v13941_v11  ;;  %v5915_v42 = vadd.f32 %v7466_v18, %v5803_v3  ;;  %8129 = vmatpush3.bf16.msra.mxu0 %v8126_v37  ;;  %v3953_v49 = vadd.f32 %v16657_v16, %v13925_v19  ;;  %vm4661_vm1 = vcmp.eq.s32.totalorder %v16658_v54, %v11266_v51  ;;  %v16660_v11 = vld [vmem:[#allocation181_spill] sm:$0xff]  ;;  %v16661_v18 = vld [vmem:[#allocation190_spill] sm:$0xff] }
 0x65b   :  { %v2568_v44 = vadd.f32 %v16659_v21, %v2456_v61  ;;  %vm5536_vm2 = vcmp.eq.s32.totalorder %v13876_v26, %v11266_v51  ;;  %v2678_v31 = vadd.f32 %v16660_v11, %v13953_v41  ;;  %8131 = vmatprep.subr.bf16.mxu0 %v8130_v34  ;;  %v8134_v38 = vpack.c.bf16 %v3041_v23, %v3040_v24  ;;  %v5172_v41 = vld [vmem:[%s15234_s2 + $0x100] sm:$0xff]  ;;  %v16662_v33 = vld [vmem:[#allocation254_spill] sm:$0xff]  ;;  %v16665_v24 = vld [vmem:[#allocation208_spill] sm:$0xff] }
 0x65c   :  { %vm2412_vm3 = vcmp.eq.s32.totalorder %v16661_v18, %v11266_v51  ;;  %v6027_v37 = vadd.f32 %v7482_v12, %v5915_v42  ;;  %v7061_v19 = vsel %vm2851_vm0, 1.0, %v15867_v17  ;;  %vm6091_vm4 = vcmp.eq.s32.totalorder %v6057_v1, %v11266_v51  ;;  %7837 = vmatmul.mubr.f32.gmra.mrb[12].mxu0 %v13887_v6  ;;  %v14084_v61 = vpop.permute.xlu0 %4955  ;;  %v16667_v55 = vld [vmem:[#allocation353_spill] sm:$0xff]  ;;  %v16668_v62 = vld [vmem:[#allocation98_spill] sm:$0xff]  ;;  %v16671_v21 = vld [vmem:[#allocation184_spill] sm:$0xff]  ;;  %v5624_v1 = vpop.permute.xlu1 %5623 }
 0x65d   :  { %v14094_v59 = vadd.f32 %v13980_v22, %v16662_v33  ;;  %v2458_v3 = vadd.f32 %v7004_v5, %v16663_v0  ;;  %v2787_v53 = vadd.f32 %v16664_v39, %v2675_v10  ;;  %v7498_v6 = vsel %vm6091_vm4, 1.0, %v15867_v17  ;;  %8407 = vset.pattern.permute.xlu1 %v15556_v15  ;;  %7839 = vmatprep.mubr.f32.mxu0 %v3952_v45  ;;  %v16666_v10 = vld [vmem:[#allocation63_spill] sm:$0xff]  ;;  %v5174_v18 = vld [vmem:[%s15234_s2 + $0x110] sm:$0xff] }
 0x65e   :  { %v4822_v23 = vadd.f32 %v16665_v24, %v4710_v29  ;;  %v7423_v12 = vsel %vm5536_vm2, 1.0, %v15867_v17  ;;  %vm2854_vm5 = vcmp.eq.s32.totalorder %v13571_v20, %v11266_v51  ;;  %v14107_v22 = vadd.f32 %v7498_v6, %v6027_v37  ;;  %5965 = vperm.xlu1 %8407, %v16380_v60   ;;  %8133 = vmatpush3.bf16.msra.mxu0 %v8130_v34  ;;  %v16669_v5 = vld [vmem:[#allocation263_spill] sm:$0xff]  ;;  %v16670_v34 = vld [vmem:[#allocation49_spill] sm:$0xff] }
 0x65f   :  { %vm5750_vm6 = vcmp.eq.s32.totalorder %v16666_v10, %v11266_v51  ;;  %v7006_v29 = vsel %vm2412_vm3, 1.0, %v15867_v17  ;;  %vm2414_vm7 = vcmp.eq.s32.totalorder %v16667_v55, %v11266_v51  ;;  %v2899_v26 = vadd.f32 %v7061_v19, %v2787_v53  ;;  %8135 = vmatprep.subr.bf16.mxu0 %v8134_v38  ;;  %v5175_v19 = vld [vmem:[%s15234_s2 + $0x118] sm:$0xff]  ;;  %v16673_v33 = vld [vmem:[#allocation137_spill] sm:$0xff]  ;;  %v5176_v55 = vld [vmem:[%s15234_s2 + $0x120] sm:$0xff] }
 0x660   :  { %v8138_v45 = vpack.c.bf16 %v5173_v25, %v5172_v41  ;;  %vm5639_vm8 = vcmp.eq.s32.totalorder %v16668_v62, %v11266_v51  ;;  %v4935_v42 = vadd.f32 %v16669_v5, %v4823_v35  ;;  %v2790_v16 = vadd.f32 %v16670_v34, %v2678_v31  ;;  %7840 = vmatmul.mubr.f32.gmra.mrb[14].mxu0 %v3953_v49  ;;  %v14123_v37 = vpop.permute.xlu0 %4970  ;;  %v16672_v41 = vld [vmem:[#allocation33_spill] sm:$0xff]  ;;  %v16674_v49 = vld [vmem:[#allocation222_spill] sm:$0xff]  ;;  %v16679_v5 = vld [vmem:[#allocation219_spill] sm:$0xff] }
 0x661   :  { %v2680_v11 = vadd.f32 %v16671_v21, %v2568_v44  ;;  %v2570_v25 = vadd.f32 %v16672_v41, %v2458_v3  ;;  %v5584_v35 = vadd.f32 %v7423_v12, %v16673_v33  ;;  %v7064_v44 = vsel %vm2854_vm5, 1.0, %v15867_v17  ;;  %7874 = vmatprep.mubr.f32.mxu0 %v13579_v46  ;;  %v16675_v46 = vld [vmem:[#allocation108_spill] sm:$0xff]  ;;  %v16678_v62 = vld [vmem:[#allocation69_spill] sm:$0xff]  ;;  %v16682_v33 = vld [vmem:[#allocation51_spill] sm:$0xff] }
 0x662   :  { %vm5648_vm9 = vcmp.eq.s32.totalorder %v5624_v1, %v11266_v51  ;;  %v2460_v31 = vadd.f32 %v7006_v29, %v16674_v49  ;;  %v7008_v0 = vsel %vm2414_vm7, 1.0, %v15867_v17  ;;  %vm2856_vm10 = vcmp.eq.s32.totalorder %v13603_v57, %v11266_v51  ;;  %8408 = vset.pattern.permute.xlu1 %v15543_v2  ;;  %8137 = vmatpush3.bf16.msra.mxu0 %v8134_v38  ;;  %v16676_v38 = vld [vmem:[#allocation205_spill] sm:$0xff]  ;;  %v14183_v1 = vpop.permute.xlu1 %6059  ;;  %v16683_v57 = vld [vmem:[#allocation71_spill] sm:$0xff] }
 0x663   :  { %v7439_v3 = vsel %vm5648_vm9, 1.0, %v15867_v17  ;;  %v14152_v20 = vsel %vm5121_vm15, 1.0, %v15867_v17  ;;  %v3011_v39 = vadd.f32 %v16675_v46, %v2899_v26  ;;  %5856 = vperm.xlu1 %8408, %v16482_v30   ;;  %8139 = vmatprep.subr.bf16.mxu0 %v8138_v45  ;;  %v8142_v6 = vpack.c.bf16 %v5175_v19, %v5174_v18  ;;  %v5177_v26 = vld [vmem:[%s15234_s2 + $0x128] sm:$0xff]  ;;  %v16681_v19 = vld [vmem:[#allocation34_spill] sm:$0xff]  ;;  %v16685_v49 = vld [vmem:[#allocation199_spill] sm:$0xff] }
 0x664   :  { %v14155_v53 = vadd.f32 %v7439_v3, %v5584_v35  ;;  %v7430_v2 = vsel %vm5639_vm8, 1.0, %v15867_v17  ;;  %vm2416_vm11 = vcmp.eq.s32.totalorder %v16676_v38, %v11266_v51  ;;  %v2902_v24 = vadd.f32 %v7064_v44, %v2790_v16  ;;  %v14167_v29 = vpop.permute.xlu0 %4973  ;;  %v16680_v16 = vld [vmem:[#allocation349_spill] sm:$0xff]  ;;  %v16686_v3 = vld [vmem:[#allocation111_spill] sm:$0xff] }
 0x665   :  { %v14165_v12 = vadd.f32 %v16677_v56, %v4822_v23  ;;  %vm4667_vm12 = vcmp.eq.s32.totalorder %v16678_v62, %v11266_v51  ;;  %v2462_v34 = vadd.f32 %v7008_v0, %v16679_v5  ;;  %v7066_v23 = vsel %vm2856_vm10, 1.0, %v15867_v17  ;;  %7875 = vmatmul.mubr.f32.vlgmr.msra.gmra.mrb[0].mxu0 %v3011_v39  ;;  %v5178_v38 = vld [vmem:[%s15234_s2 + $0x130] sm:$0xff]  ;;  %v16690_v5 = vld [vmem:[#allocation223_spill] sm:$0xff] }
 0x666   :  { %v2682_v21 = vadd.f32 %v16680_v16, %v2570_v25  ;;  %v14189_v18 = vsel %vm4661_vm1, 1.0, %v15867_v17  ;;  %v2572_v41 = vadd.f32 %v16681_v19, %v2460_v31  ;;  %v2792_v35 = vadd.f32 %v16682_v33, %v2680_v11  ;;  %7877 = vmatprep.mubr.f32.mxu0 %v16683_v57  ;;  %8141 = vmatpush3.bf16.msra.mxu0 %v8138_v45  ;;  %v16684_v25 = vld [vmem:[#allocation64_spill] sm:$0xff]  ;;  %v16688_v56 = vld [vmem:[#allocation249_spill] sm:$0xff] }
 0x667   :  { %vm2858_vm13 = vcmp.eq.s32.totalorder %v13642_v8, %v11266_v51  ;;  %vm4666_vm14 = vcmp.eq.s32.totalorder %v16684_v25, %v11266_v51  ;;  %v7010_v54 = vsel %vm2416_vm11, 1.0, %v15867_v17  ;;  %5859 = vperm.xlu1 %8408, %v16530_v58   ;;  %8143 = vmatprep.subr.bf16.mxu0 %v8142_v6  ;;  %v8146_v44 = vpack.c.bf16 %v5177_v26, %v5176_v55  ;;  %v16689_v55 = vld [vmem:[#allocation53_spill] sm:$0xff] }
 0x668   :  { %v14204_v11 = vadd.f32 %v16685_v49, %v4935_v42  ;;  %v14207_v31 = vadd.f32 %v7430_v2, %v13779_v50  ;;  %v7307_v45 = vsel %vm4667_vm12, 1.0, %v15867_v17  ;;  %v2904_v0 = vadd.f32 %v7066_v23, %v2792_v35  ;;  %v14214_v39 = vpop.permute.xlu0 %4991  ;;  %v5179_v42 = vld [vmem:[%s15234_s2 + $0x138] sm:$0xff]  ;;  %v16687_v50 = vld [vmem:[#allocation36_spill] sm:$0xff]  ;;  %v16692_v8 = vld [vmem:[#allocation341_spill] sm:$0xff] }
 0x669   :  { %v3014_v46 = vadd.f32 %v16686_v3, %v2902_v24  ;;  %v2574_v2 = vadd.f32 %v16687_v50, %v2462_v34  ;;  %vm4549_vm15 = vcmp.eq.s32.totalorder %v16688_v56, %v11266_v51  ;;  %v2794_v26 = vadd.f32 %v16689_v55, %v2682_v21  ;;  %7878 = vmatmul.mubr.f32.gmra.mrb[2].mxu0 %v13594_v32  ;;  %v16691_v23 = vld [vmem:[#allocation350_spill] sm:$0xff]  ;;  %v14241_v21 = vpop.permute.xlu1 %5514  ;;  %v16694_v35 = vld [vmem:[#allocation73_spill] sm:$0xff] }
 0x66a   :  { %v7068_v24 = vsel %vm2858_vm13, 1.0, %v15867_v17  ;;  %v14235_v62 = vsel %vm5750_vm6, 1.0, %v15867_v17  ;;  %v2464_v34 = vadd.f32 %v7010_v54, %v16690_v5  ;;  %v2684_v16 = vadd.f32 %v16691_v23, %v2572_v41  ;;  %8145 = vmatpush3.bf16.msra.mxu0 %v8142_v6  ;;  %v16693_v41 = vld [vmem:[#allocation250_spill] sm:$0xff]  ;;  %v5181_v54 = vld [vmem:[%s15234_s2 + $0x148] sm:$0xff]  ;;  %v16695_v49 = vld [vmem:[#allocation165_spill] sm:$0xff] }
 0x66b   :  { %vm2860_vm0 = vcmp.eq.s32.totalorder %v13670_v63, %v11266_v51  ;;  %7880 = vmatprep.mubr.f32.mxu0 %v3014_v46  ;;  %v14247_v32 = vsel %vm4666_vm14, 1.0, %v15867_v17  ;;  %vm5530_vm1 = vcmp.eq.s32.totalorder %v16692_v8, %v11266_v51  ;;  %v14252_v10 = vadd.f32 %v7307_v45, %v13414_v13  ;;  %8410 = vset.pattern.permute.xlu1 %v16613_v48  ;;  %v5180_v13 = vld [vmem:[%s15234_s2 + $0x140] sm:$0xff]  ;;  %v16696_v45 = vld [vmem:[#allocation204_spill] sm:$0xff]  ;;  %v16699_v50 = vld [vmem:[#allocation54_spill] sm:$0xff] }
 0x66c   :  { %8147 = vmatprep.subr.bf16.mxu0 %v8146_v44  ;;  %v8150_v19 = vpack.c.bf16 %v5179_v42, %v5178_v38  ;;  %v7285_v6 = vsel %vm4549_vm15, 1.0, %v15867_v17  ;;  %vm4552_vm2 = vcmp.eq.s32.totalorder %v16693_v41, %v11266_v51  ;;  %v2906_v33 = vadd.f32 %v7068_v24, %v2794_v26  ;;  %6077 = vperm.xlu1 %8410, %v16380_v60   ;;  %v14263_v25 = vpop.permute.xlu0 %4994  ;;  %v16698_v38 = vld [vmem:[#allocation37_spill] sm:$0xff]  ;;  %v16702_v23 = vld [vmem:[#allocation75_spill] sm:$0xff]  ;;  %v16703_v41 = vld [vmem:[#allocation262_spill] sm:$0xff] }
 0x66d   :  { %v3016_v57 = vadd.f32 %v16694_v35, %v2904_v0  ;;  %vm5418_vm3 = vcmp.eq.s32.totalorder %v16695_v49, %v11266_v51  ;;  %vm5642_vm4 = vcmp.eq.s32.totalorder %v16696_v45, %v11266_v51  ;;  %v7070_v60 = vsel %vm2860_vm0, 1.0, %v15867_v17  ;;  %v16697_v0 = vld [vmem:[#allocation188_spill] sm:$0xff]  ;;  %7881 = vmatmul.mubr.f32.gmra.mrb[4].mxu0 %v13620_v47  ;;  %v16700_v63 = vld [vmem:[#allocation241_spill] sm:$0xff]  ;;  %v14296_v26 = vpop.permute.xlu1 %5732 }
 0x66e   :  { %v2686_v3 = vadd.f32 %v16697_v0, %v2574_v2  ;;  %v7417_v46 = vsel %vm5530_vm1, 1.0, %v15867_v17  ;;  %v2576_v42 = vadd.f32 %v16698_v38, %v2464_v34  ;;  %v2796_v56 = vadd.f32 %v16699_v50, %v2684_v16  ;;  %8149 = vmatpush3.bf16.msra.mxu0 %v8146_v44  ;;  %v16701_v2 = vld [vmem:[#allocation234_spill] sm:$0xff]  ;;  %v16704_v35 = vld [vmem:[#allocation61_spill] sm:$0xff]  ;;  %v16705_v45 = vld [vmem:[#allocation240_spill] sm:$0xff] }
 0x66f   :  { %vm2862_vm5 = vcmp.eq.s32.totalorder %v13704_v43, %v11266_v51  ;;  %7883 = vmatprep.mubr.f32.mxu0 %v3016_v57  ;;  %vm5754_vm6 = vcmp.eq.s32.totalorder %v16700_v63, %v11266_v51  ;;  %v4597_v55 = vadd.f32 %v7285_v6, %v16701_v2  ;;  %v7288_v47 = vsel %vm4552_vm2, 1.0, %v15867_v17  ;;  %8151 = vmatprep.subr.bf16.mxu0 %v8150_v19  ;;  %v16708_v38 = vld [vmem:[#allocation115_spill] sm:$0xff] }
 0x670   :  { %v8154_v24 = vpack.c.bf16 %v5181_v54, %v5180_v13  ;;  %v7401_v5 = vsel %vm5418_vm3, 1.0, %v15867_v17  ;;  %v7433_v44 = vsel %vm5642_vm4, 1.0, %v15867_v17  ;;  %v2908_v34 = vadd.f32 %v7070_v60, %v2796_v56  ;;  %8412 = vset.pattern.permute.xlu1 %v16520_v52  ;;  %v14308_v8 = vpop.permute.xlu0 %6044  ;;  %v5183_v54 = vld [vmem:[%s15234_s2 + $0x158] sm:$0xff]  ;;  %v16706_v60 = vld [vmem:[#allocation189_spill] sm:$0xff] }
 0x671   :  { %v3018_v16 = vadd.f32 %v16702_v23, %v2906_v33  ;;  %v5578_v6 = vadd.f32 %v7417_v46, %v7401_v5  ;;  %vm5866_vm7 = vcmp.eq.s32.totalorder %v16703_v41, %v11266_v51  ;;  %v2798_v57 = vadd.f32 %v16704_v35, %v2686_v3  ;;  %6186 = vperm.xlu1 %8412, %v16325_v28   ;;  %v5182_v33 = vld [vmem:[%s15234_s2 + $0x150] sm:$0xff]  ;;  %v16707_v3 = vld [vmem:[#allocation343_spill] sm:$0xff]  ;;  %v14346_v50 = vpop.permute.xlu1 %6168  ;;  %v5185_v23 = vld [vmem:[%s15234_s2 + $0x168] sm:$0xff] }
 0x672   :  { %v7072_v13 = vsel %vm2862_vm5, 1.0, %v15867_v17  ;;  %7884 = vmatmul.mubr.f32.gmra.mrb[6].mxu0 %v13649_v14  ;;  %v7449_v49 = vsel %vm5754_vm6, 1.0, %v15867_v17  ;;  %v4600_v43 = vadd.f32 %v7288_v47, %v16705_v45  ;;  %v2688_v0 = vadd.f32 %v16706_v60, %v2576_v42  ;;  %v16719_v45 = vld [vmem:[#allocation143_spill] sm:$0xff] }
 0x673   :  { %vm2864_vm8 = vcmp.eq.s32.totalorder %v13740_v40, %v11266_v51  ;;  %7886 = vmatprep.mubr.f32.mxu0 %v3018_v16  ;;  %8153 = vmatpush3.bf16.msra.mxu0 %v8150_v19  ;;  %v5690_v28 = vadd.f32 %v7433_v44, %v5578_v6  ;;  %v4709_v14 = vadd.f32 %v14189_v18, %v4597_v55  ;;  %v7465_v42 = vsel %vm5866_vm7, 1.0, %v15867_v17  ;;  %v16709_v18 = vld [vmem:[#allocation120_spill] sm:$0xff]  ;;  %v16710_v55 = vld [vmem:[#allocation74_spill] sm:$0xff]  ;;  %v16713_v16 = vld [vmem:[#allocation83_spill] sm:$0xff] }
 0x674   :  { %vm5978_vm9 = vcmp.eq.s32.totalorder %v13482_v9, %v11266_v51  ;;  %8155 = vmatprep.subr.bf16.mxu0 %v8154_v24  ;;  %v14338_v46 = vadd.f32 %v16707_v3, %v14204_v11  ;;  %vm5861_vm10 = vcmp.eq.s32.totalorder %v16708_v38, %v11266_v51  ;;  %v2910_v19 = vadd.f32 %v7072_v13, %v2798_v57  ;;  %v14349_v63 = vpop.permute.xlu0 %6047  ;;  %v16711_v11 = vld [vmem:[#allocation81_spill] sm:$0xff]  ;;  %v16712_v44 = vld [vmem:[#allocation300_spill] sm:$0xff]  ;;  %v16714_v6 = vld [vmem:[#allocation259_spill] sm:$0xff] }
 0x675   :  { %v3020_v56 = vadd.f32 %v16709_v18, %v2908_v34  ;;  %v8158_v2 = vpack.c.bf16 %v5183_v54, %v5182_v33  ;;  %vm4672_vm11 = vcmp.eq.s32.totalorder %v16710_v55, %v11266_v51  ;;  %vm4673_vm12 = vcmp.eq.s32.totalorder %v16711_v11, %v11266_v51  ;;  %8413 = vset.pattern.permute.xlu1 %v15556_v15  ;;  %v5184_v34 = vld [vmem:[%s15234_s2 + $0x160] sm:$0xff]  ;;  %v16716_v57 = vld [vmem:[#allocation82_spill] sm:$0xff]  ;;  %v16717_v33 = vld [vmem:[#allocation21_spill] sm:$0xff] }
 0x676   :  { %v5802_v47 = vadd.f32 %v7449_v49, %v5690_v28  ;;  %v7074_v5 = vsel %vm2864_vm8, 1.0, %v15867_v17  ;;  %7887 = vmatmul.mubr.f32.gmra.mrb[8].mxu0 %v16712_v44  ;;  %vm5534_vm13 = vcmp.eq.s32.totalorder %v16713_v16, %v11266_v51  ;;  %v4712_v41 = vadd.f32 %v16714_v6, %v4600_v43  ;;  %v16715_v40 = vld [vmem:[#allocation55_spill] sm:$0xff]  ;;  %5971 = vperm.xlu1 %8413, %v16530_v58   ;;  %v16718_v54 = vld [vmem:[#allocation252_spill] sm:$0xff]  ;;  %v5187_v18 = vld [vmem:[%s15234_s2 + $0x178] sm:$0xff] }
 0x677   :  { %v7481_v15 = vsel %vm5978_vm9, 1.0, %v15867_v17  ;;  %v2800_v35 = vadd.f32 %v16715_v40, %v2688_v0  ;;  %7889 = vmatprep.mubr.f32.mxu0 %v3020_v56  ;;  %vm5640_vm14 = vcmp.eq.s32.totalorder %v16716_v57, %v11266_v51  ;;  %vm5422_vm15 = vcmp.eq.s32.totalorder %v16717_v33, %v11266_v51  ;;  %8157 = vmatpush3.bf16.msra.mxu0 %v8154_v24  ;;  %v16720_v43 = vld [vmem:[#allocation123_spill] sm:$0xff]  ;;  %v16721_v24 = vld [vmem:[#allocation292_spill] sm:$0xff]  ;;  %v6263_v55 = vld [vmem:[%s15234_s2 + $0x190] sm:$0xff] }
 0x678   :  { %v5914_v13 = vadd.f32 %v7465_v42, %v5802_v47  ;;  %v4821_v49 = vadd.f32 %v16718_v54, %v4709_v14  ;;  %vm5646_vm0 = vcmp.eq.s32.totalorder %v16719_v45, %v11266_v51  ;;  %8159 = vmatprep.subr.bf16.mxu0 %v8158_v2  ;;  %v3022_v60 = vadd.f32 %v16720_v43, %v2910_v19  ;;  %v6054_v0 = vpop.permute.xlu0 %6053  ;;  %v14390_v14 = vpop.permute.xlu1 %5405  ;;  %v5186_v19 = vld [vmem:[%s15234_s2 + $0x170] sm:$0xff]  ;;  %v16722_v56 = vld [vmem:[#allocation271_spill] sm:$0xff]  ;;  %v16723_v6 = vld [vmem:[#allocation340_spill] sm:$0xff] }
 0x679   :  { %v2912_v9 = vadd.f32 %v7074_v5, %v2800_v35  ;;  %v8162_v28 = vpack.c.bf16 %v5185_v23, %v5184_v34  ;;  %v7421_v3 = vsel %vm5534_vm13, 1.0, %v15867_v17  ;;  %vm6202_vm1 = vcmp.eq.s32.totalorder %v13984_v27, %v11266_v51  ;;  %v16724_v35 = vld [vmem:[#allocation261_spill] sm:$0xff]  ;;  %v6262_v33 = vld [vmem:[%s15234_s2 + $0x188] sm:$0xff] }
 0x67a   :  { %v6026_v42 = vadd.f32 %v7481_v15, %v5914_v13  ;;  %7890 = vmatmul.mubr.f32.gmra.mrb[10].mxu0 %v16721_v24  ;;  %vm6090_vm2 = vcmp.eq.s32.totalorder %v6054_v0, %v11266_v51  ;;  %v4824_v47 = vadd.f32 %v16722_v56, %v4712_v41  ;;  %vm5758_vm3 = vcmp.eq.s32.totalorder %v13932_v4, %v11266_v51  ;;  %v6261_v13 = vld [vmem:[%s15234_s2 + $0x180] sm:$0xff]  ;;  %v16729_v56 = vld [vmem:[#allocation265_spill] sm:$0xff] }
 0x67b   :  { %8414 = vset.pattern.permute.xlu1 %v16613_v48  ;;  %vm4997_vm4 = vcmp.eq.s32.totalorder %v14043_v36, %v11266_v51  ;;  %7892 = vmatprep.mubr.f32.mxu0 %v3022_v60  ;;  %v7497_v5 = vsel %vm6090_vm2, 1.0, %v15867_v17  ;;  %v7405_v44 = vsel %vm5422_vm15, 1.0, %v15867_v17  ;;  %v7437_v34 = vsel %vm5646_vm0, 1.0, %v15867_v17 }
 0x67c   :  { %6080 = vperm.xlu1 %8414, %v16482_v30   ;;  %vm4998_vm5 = vcmp.eq.s32.totalorder %v14084_v61, %v11266_v51  ;;  %8161 = vmatpush3.bf16.msra.mxu0 %v8158_v2  ;;  %v6138_v48 = vadd.f32 %v7497_v5, %v6026_v42  ;;  %v5582_v23 = vadd.f32 %v7421_v3, %v7405_v44  ;;  %v7513_v16 = vsel %vm6202_vm1, 1.0, %v15867_v17  ;;  %v14423_v15 = vpop.permute.xlu0 %6062  ;;  %v16725_v2 = vld [vmem:[#allocation312_spill] sm:$0xff]  ;;  %v14448_v36 = vpop.permute.xlu1 %5735  ;;  %v16727_v61 = vld [vmem:[#allocation255_spill] sm:$0xff]  ;;  %v16730_v44 = vld [vmem:[#allocation293_spill] sm:$0xff] }
 0x67d   :  { %8163 = vmatprep.subr.bf16.mxu0 %v8162_v28  ;;  %v3024_v41 = vadd.f32 %v16723_v6, %v2912_v9  ;;  %v8166_v40 = vpack.c.bf16 %v5187_v18, %v5186_v19  ;;  %vm4556_vm6 = vcmp.eq.s32.totalorder %v16724_v35, %v11266_v51  ;;  %v7453_v30 = vsel %vm5758_vm3, 1.0, %v15867_v17  ;;  %v16726_v9 = vld [vmem:[#allocation20_spill] sm:$0xff]  ;;  %v6264_v19 = vld [vmem:[%s15234_s2 + $0x198] sm:$0xff]  ;;  %v16728_v18 = vld [vmem:[#allocation307_spill] sm:$0xff] }
 0x67e   :  { %v7349_v27 = vsel %vm4997_vm4, 1.0, %v15867_v17  ;;  %7893 = vmatmul.mubr.f32.gmra.mrb[12].mxu0 %v16725_v2  ;;  %v14442_v54 = vadd.f32 %v7513_v16, %v6138_v48  ;;  %v7313_v4 = vsel %vm4673_vm12, 1.0, %v15867_v17  ;;  %v5694_v45 = vadd.f32 %v7437_v34, %v5582_v23  ;;  %v16731_v34 = vld [vmem:[#allocation260_spill] sm:$0xff]  ;;  %v16732_v23 = vld [vmem:[#allocation138_spill] sm:$0xff] }
 0x67f   :  { %v4933_v43 = vadd.f32 %v16726_v9, %v4821_v49  ;;  %v7350_v60 = vsel %vm4998_vm5, 1.0, %v15867_v17  ;;  %7895 = vmatprep.mubr.f32.mxu0 %v3024_v41  ;;  %v14459_v0 = vsel %vm5861_vm10, 1.0, %v15867_v17  ;;  %v7431_v11 = vsel %vm5640_vm14, 1.0, %v15867_v17  ;;  %v16733_v16 = vld [vmem:[#allocation128_spill] sm:$0xff] }
 0x680   :  { %v14469_v49 = vsel %vm4672_vm11, 1.0, %v15867_v17  ;;  %vm4554_vm7 = vcmp.eq.s32.totalorder %v16727_v61, %v11266_v51  ;;  %6083 = vperm.xlu1 %8414, %v16530_v58   ;;  %8165 = vmatpush3.bf16.msra.mxu0 %v8162_v28  ;;  %v7292_v38 = vsel %vm4556_vm6, 1.0, %v15867_v17  ;;  %v5806_v3 = vadd.f32 %v7453_v30, %v5694_v45  ;;  %v6066_v42 = vpop.permute.xlu0 %6065  ;;  %v16734_v6 = vld [vmem:[#allocation140_spill] sm:$0xff]  ;;  %v5954_v30 = vpop.permute.xlu1 %5953  ;;  %v16740_v61 = vld [vmem:[#allocation282_spill] sm:$0xff] }
 0x681   :  { %v5045_v57 = vadd.f32 %v7349_v27, %v4933_v43  ;;  %8167 = vmatprep.subr.bf16.mxu0 %v8166_v40  ;;  %v8170_v24 = vpack.c.bf16 %v6262_v33, %v6261_v13  ;;  %v14485_v28 = vadd.f32 %v7313_v4, %v16728_v18  ;;  %vm4558_vm8 = vcmp.eq.s32.totalorder %v16729_v56, %v11266_v51  ;;  %v16735_v41 = vld [vmem:[#allocation12_spill] sm:$0xff]  ;;  %v16739_v43 = vld [vmem:[#allocation3_spill] sm:$0xff] }
 0x682   :  { %v5046_v5 = vadd.f32 %v7350_v60, %v14165_v12  ;;  %7896 = vmatmul.mubr.f32.gmra.mrb[14].mxu0 %v16730_v44  ;;  %v4936_v48 = vadd.f32 %v16731_v34, %v4824_v47  ;;  %vm5417_vm9 = vcmp.eq.s32.totalorder %v16732_v23, %v11266_v51  ;;  %vm4674_vm10 = vcmp.eq.s32.totalorder %v16733_v16, %v11266_v51  ;;  %v16736_v35 = vld [vmem:[#allocation244_spill] sm:$0xff]  ;;  %v16744_v34 = vld [vmem:[#allocation95_spill] sm:$0xff] }
 0x683   :  { %vm5752_vm11 = vcmp.eq.s32.totalorder %v16734_v6, %v11266_v51  ;;  %7930 = vmatprep.mubr.f32.mxu0 %v16735_v41  ;;  %vm6094_vm12 = vcmp.eq.s32.totalorder %v6066_v42, %v11266_v51  ;;  %v7290_v12 = vsel %vm4554_vm7, 1.0, %v15867_v17  ;;  %v4604_v47 = vadd.f32 %v7292_v38, %v16736_v35  ;;  %v16737_v13 = vld [vmem:[#allocation176_spill] sm:$0xff] }
 0x684   :  { %vm5537_vm13 = vcmp.eq.s32.totalorder %v14241_v21, %v11266_v51  ;;  %8415 = vset.pattern.permute.xlu1 %v16520_v52  ;;  %8169 = vmatpush3.bf16.msra.mxu0 %v8166_v40  ;;  %v8174_v27 = vpack.c.bf16 %v6264_v19, %v6263_v55  ;;  %v7294_v2 = vsel %vm4558_vm8, 1.0, %v15867_v17  ;;  %v5157_v33 = vadd.f32 %v16737_v13, %v5045_v57  ;;  %v16738_v4 = vld [vmem:[#allocation216_spill] sm:$0xff]  ;;  %v14516_v9 = vpop.permute.xlu0 %6071  ;;  %v16741_v55 = vld [vmem:[#allocation237_spill] sm:$0xff] }
 0x685   :  { %v5918_v45 = vadd.f32 %v16738_v4, %v5806_v3  ;;  %vm5982_vm14 = vcmp.eq.s32.totalorder %v5954_v30, %v11266_v51  ;;  %6195 = vperm.xlu1 %8415, %v16530_v58   ;;  %8171 = vmatprep.subr.bf16.mxu0 %v8170_v24  ;;  %v7501_v40 = vsel %vm6094_vm12, 1.0, %v15867_v17  ;;  %v5158_v60 = vadd.f32 %v16739_v43, %v5046_v5  ;;  %v6265_v3 = vld [vmem:[%s15234_s2 + $0x1a0] sm:$0xff]  ;;  %v6266_v58 = vld [vmem:[%s15234_s2 + $0x1a8] sm:$0xff] }
 0x686   :  { %v7485_v52 = vsel %vm5982_vm14, 1.0, %v15867_v17  ;;  %v5048_v38 = vadd.f32 %v16740_v61, %v4936_v48  ;;  %v5688_v57 = vadd.f32 %v7431_v11, %v14094_v59  ;;  %v4602_v19 = vadd.f32 %v7290_v12, %v16741_v55  ;;  %v16742_v56 = vld [vmem:[#allocation92_spill] sm:$0xff]  ;;  %v16743_v11 = vld [vmem:[#allocation243_spill] sm:$0xff]  ;;  %v5627_v48 = vpop.permute.xlu1 %5626  ;;  %v6267_v12 = vld [vmem:[%s15234_s2 + $0x1b0] sm:$0xff] }
 0x687   :  { %v7424_v42 = vsel %vm5537_vm13, 1.0, %v15867_v17  ;;  %v6030_v18 = vadd.f32 %v7485_v52, %v5918_v45  ;;  %7931 = vmatmul.mubr.f32.vlgmr.msra.gmra.mrb[0].mxu0 %v5157_v33  ;;  %vm5122_vm15 = vcmp.eq.s32.totalorder %v16742_v56, %v11266_v51  ;;  %v14542_v5 = vsel %vm4674_vm10, 1.0, %v15867_v17  ;;  %v16746_v23 = vld [vmem:[#allocation284_spill] sm:$0xff]  ;;  %v16747_v30 = vld [vmem:[#allocation251_spill] sm:$0xff]  ;;  %v16749_v45 = vld [vmem:[#allocation109_spill] sm:$0xff] }
 0x688   :  { %v7447_v59 = vsel %vm5752_vm11, 1.0, %v15867_v17  ;;  %v4606_v44 = vadd.f32 %v7294_v2, %v16743_v11  ;;  %7933 = vmatprep.mubr.f32.mxu0 %v5158_v60  ;;  %8173 = vmatpush3.bf16.msra.mxu0 %v8170_v24  ;;  %v7400_v21 = vsel %vm5417_vm9, 1.0, %v15867_v17  ;;  %vm5749_vm0 = vcmp.eq.s32.totalorder %v16744_v34, %v11266_v51  ;;  %v14557_v41 = vpop.permute.xlu0 %6074  ;;  %v6268_v24 = vld [vmem:[%s15234_s2 + $0x1b8] sm:$0xff]  ;;  %v16748_v13 = vld [vmem:[#allocation264_spill] sm:$0xff]  ;;  %v8428_v4 = vld [vmem:[%s15235_s7] sm:$0xff]  }
 0x689   :  { %v14555_v16 = vadd.f32 %v7501_v40, %v6030_v18  ;;  %16745 = vst [vmem:[#allocation87_spill] sm:$0xff] %v14557_v41  ;;  %8175 = vmatprep.subr.bf16.mxu0 %v8174_v27  ;;  %v8178_v6 = vpack.c.bf16 %v6266_v58, %v6265_v3  ;;  %v4716_v35 = vadd.f32 %v16746_v23, %v4604_v47  ;;  %v14581_v47 = vsel %vm5122_vm15, 1.0, %v15867_v17  ;;  %v16750_v60 = vld [vmem:[#allocation110_spill] sm:$0xff]  ;;  %v16757_v23 = vld [vmem:[#allocation24_spill] sm:$0xff] }
 0x68a   :  { %v5585_v2 = vadd.f32 %v7424_v42, %v16747_v30  ;;  %vm5649_vm1 = vcmp.eq.s32.totalorder %v5627_v48, %v11266_v51  ;;  %v5160_v33 = vadd.f32 %v16748_v13, %v5048_v38  ;;  %vm5751_vm2 = vcmp.eq.s32.totalorder %v16749_v45, %v11266_v51  ;;  %v16751_v61 = vld [vmem:[#allocation290_spill] sm:$0xff]  ;;  %8010 = vmatprep.subr.bf16.mxu1 %v8428_v4  ;;  %v14611_v56 = vpop.permute.xlu1 %5844  ;;  %v6270_v48 = vld [vmem:[%s15234_s2 + $0x1c8] sm:$0xff] }
 0x68b   :  { %v5800_v52 = vadd.f32 %v7447_v59, %v5688_v57  ;;  %v4714_v40 = vadd.f32 %v14247_v32, %v4602_v19  ;;  %v7440_v43 = vsel %vm5649_vm1, 1.0, %v15867_v17  ;;  %7934 = vmatmul.mubr.f32.gmra.mrb[2].mxu0 %v14338_v46  ;;  %vm5756_vm3 = vcmp.eq.s32.totalorder %v16750_v60, %v11266_v51  ;;  %v8429_v32 = vld [vmem:[%s15235_s7 + $0x8] sm:$0xff]   ;;  %v16752_v58 = vld [vmem:[#allocation210_spill] sm:$0xff]  ;;  %v16753_v19 = vld [vmem:[#allocation277_spill] sm:$0xff]  ;;  %8011 = vmatpush3.bf16.msra.mxu1 %v8428_v4 }
 0x68c   :  { %v4718_v38 = vadd.f32 %v16751_v61, %v4606_v44  ;;  %v14586_v3 = vadd.f32 %v7440_v43, %v5585_v2  ;;  %7936 = vmatprep.mubr.f32.mxu0 %v5160_v33  ;;  %8177 = vmatpush3.bf16.msra.mxu0 %v8174_v27  ;;  %v14595_v46 = vsel %vm5749_vm0, 1.0, %v15867_v17  ;;  %vm5426_vm4 = vcmp.eq.s32.totalorder %v14390_v14, %v11266_v51  ;;  %v6269_v27 = vld [vmem:[%s15234_s2 + $0x1c0] sm:$0xff]  ;;  %v16759_v2 = vld [vmem:[#allocation16_spill] sm:$0xff]  ;;  %v16761_v60 = vld [vmem:[#allocation129_spill] sm:$0xff] }
 0x68d   :  { %v4827_v57 = vadd.f32 %v16752_v58, %v14252_v10  ;;  %8179 = vmatprep.subr.bf16.mxu0 %v8178_v6  ;;  %v8182_v55 = vpack.c.bf16 %v6268_v24, %v6267_v12  ;;  %v14605_v42 = vadd.f32 %v16753_v19, %v7400_v21  ;;  %v7446_v18 = vsel %vm5751_vm2, 1.0, %v15867_v17  ;;  %v16754_v59 = vld [vmem:[#allocation207_spill] sm:$0xff]  ;;  %v4856_v10 = vpop.permute.xlu0 %4855  ;;  %v16756_v12 = vld [vmem:[#allocation196_spill] sm:$0xff]  ;;  %8012 = vmatprep.subr.bf16.mxu1 %v8429_v32  ;;  %v16762_v14 = vld [vmem:[#allocation278_spill] sm:$0xff] }
 0x68e   :  { %v4828_v11 = vadd.f32 %v16754_v59, %v4716_v35  ;;  %v16755_v44 = vld [vmem:[#allocation279_spill] sm:$0xff]  ;;  %v14625_v21 = vsel %vm5756_vm3, 1.0, %v15867_v17  ;;  %v14628_v24 = vadd.f32 %v16756_v12, %v5800_v52  ;;  %v16758_v35 = vld [vmem:[#allocation4_spill] sm:$0xff]  ;;  %vm4890_vm5 = vcmp.eq.s32.totalorder %v4856_v10, %v11266_v51  ;;  %v16760_v52 = vld [vmem:[#allocation133_spill] sm:$0xff] }
 0x68f   :  { %v14616_v34 = vadd.f32 %v16755_v44, %v14485_v28  ;;  %7937 = vmatmul.mubr.f32.gmra.mrb[4].mxu0 %v16757_v23  ;;  %v4826_v30 = vadd.f32 %v16758_v35, %v4714_v40  ;;  %v8430_v28 = vld [vmem:[%s15235_s7 + $0x10] sm:$0xff]   ;;  %v4830_v13 = vadd.f32 %v16759_v2, %v4718_v38  ;;  %v7409_v33 = vsel %vm5426_vm4, 1.0, %v15867_v17  ;;  %v16764_v38 = vld [vmem:[#allocation266_spill] sm:$0xff]  ;;  %8013 = vmatpush3.bf16.msra.mxu1 %v8429_v32  ;;  %v16765_v59 = vld [vmem:[#allocation155_spill] sm:$0xff] }
 0x690   :  { %vm5004_vm6 = vcmp.eq.s32.totalorder %v14167_v29, %v11266_v51  ;;  %v7338_v4 = vsel %vm4890_vm5, 1.0, %v15867_v17  ;;  %8181 = vmatpush3.bf16.msra.mxu0 %v8178_v6  ;;  %v5799_v45 = vadd.f32 %v7446_v18, %v14207_v31  ;;  %vm5757_vm7 = vcmp.eq.s32.totalorder %v16760_v52, %v11266_v51  ;;  %v16763_v61 = vld [vmem:[#allocation9_spill] sm:$0xff]  ;;  %v5630_v18 = vpop.permute.xlu1 %5629  ;;  %8014 = vmatprep.subr.bf16.mxu1 %v8430_v28  ;;  %v8431_v10 = vld [vmem:[%s15235_s7 + $0x18] sm:$0xff]   ;;  %v16766_v44 = vld [vmem:[#allocation311_spill] sm:$0xff] }
 0x691   :  { %v4938_v40 = vadd.f32 %v7338_v4, %v4826_v30  ;;  %8183 = vmatprep.subr.bf16.mxu0 %v8182_v55  ;;  %v8186_v43 = vpack.c.bf16 %v6270_v48, %v6269_v27  ;;  %vm5973_vm8 = vcmp.eq.s32.totalorder %v16761_v60, %v11266_v51  ;;  %vm4560_vm9 = vcmp.eq.s32.totalorder %v16762_v14, %v11266_v51  ;;  %v4859_v6 = vpop.permute.xlu0 %4858  ;;  %v6271_v31 = vld [vmem:[%s15234_s2 + $0x1d0] sm:$0xff]  ;;  %v6272_v27 = vld [vmem:[%s15234_s2 + $0x1d8] sm:$0xff]  ;;  %v16767_v12 = vld [vmem:[#allocation303_spill] sm:$0xff] }
 0x692   :  { %vm5637_vm10 = vcmp.eq.s32.totalorder %v16763_v61, %v11266_v51  ;;  %v4940_v58 = vadd.f32 %v16764_v38, %v4828_v11  ;;  %vm5003_vm11 = vcmp.eq.s32.totalorder %v14123_v37, %v11266_v51  ;;  %v7356_v19 = vsel %vm5004_vm6, 1.0, %v15867_v17  ;;  %v16768_v30 = vld [vmem:[#allocation344_spill] sm:$0xff]  ;;  %v16770_v61 = vld [vmem:[#allocation5_spill] sm:$0xff]  ;;  %v16775_v60 = vld [vmem:[#allocation286_spill] sm:$0xff] }
 0x693   :  { %v5050_v11 = vadd.f32 %v16765_v59, %v4938_v40  ;;  %vm4891_vm12 = vcmp.eq.s32.totalorder %v4859_v6, %v11266_v51  ;;  %v5586_v32 = vadd.f32 %v16766_v44, %v7409_v33  ;;  %vm5650_vm13 = vcmp.eq.s32.totalorder %v5630_v18, %v11266_v51  ;;  %v6274_v6 = vld [vmem:[%s15234_s2 + $0x1e8] sm:$0xff]  ;;  %8015 = vmatpush3.bf16.msra.mxu1 %v8430_v28  ;;  %v16773_v18 = vld [vmem:[#allocation267_spill] sm:$0xff] }
 0x694   :  { %v7339_v48 = vsel %vm4891_vm12, 1.0, %v15867_v17  ;;  %v4942_v23 = vadd.f32 %v16767_v12, %v4830_v13  ;;  %8185 = vmatpush3.bf16.msra.mxu0 %v8182_v55  ;;  %v7441_v29 = vsel %vm5650_vm13, 1.0, %v15867_v17  ;;  %v8190_v4 = vpack.c.bf16 %v6272_v27, %v6271_v31  ;;  %v16771_v31 = vld [vmem:[#allocation211_spill] sm:$0xff]  ;;  %8016 = vmatprep.subr.bf16.mxu1 %v8431_v10  ;;  %v16772_v52 = vld [vmem:[#allocation180_spill] sm:$0xff]  ;;  %v14723_v59 = vpop.permute.xlu1 %5847 }
 0x695   :  { %v4939_v35 = vadd.f32 %v7339_v48, %v4827_v57  ;;  %v5162_v2 = vadd.f32 %v16768_v30, %v5050_v11  ;;  %8187 = vmatprep.subr.bf16.mxu0 %v8186_v43  ;;  %v7428_v40 = vsel %vm5637_vm10, 1.0, %v15867_v17  ;;  %v7355_v33 = vsel %vm5003_vm11, 1.0, %v15867_v17  ;;  %v14687_v55 = vpop.permute.xlu0 %4876  ;;  %v6273_v57 = vld [vmem:[%s15234_s2 + $0x1e0] sm:$0xff]  ;;  %v16774_v11 = vld [vmem:[#allocation177_spill] sm:$0xff] }
 0x696   :  { %v5052_v38 = vadd.f32 %v7356_v19, %v4940_v58  ;;  %v14685_v13 = vadd.f32 %v7441_v29, %v5586_v32  ;;  %v14699_v37 = vsel %vm5757_vm7, 1.0, %v15867_v17  ;;  %vm4562_vm14 = vcmp.eq.s32.totalorder %v16770_v61, %v11266_v51  ;;  %v8432_v19 = vld [vmem:[%s15235_s7 + $0x20] sm:$0xff]   ;;  %v16776_v32 = vld [vmem:[#allocation345_spill] sm:$0xff]  ;;  %v16777_v29 = vld [vmem:[#allocation288_spill] sm:$0xff] }
 0x697   :  { %v5051_v58 = vadd.f32 %v7355_v33, %v4939_v35  ;;  %7939 = vmatprep.mubr.f32.mxu0 %v5162_v2  ;;  %v14704_v27 = vadd.f32 %v16771_v31, %v5799_v45  ;;  %v14713_v28 = vsel %vm5973_vm8, 1.0, %v15867_v17  ;;  %vm5641_vm15 = vcmp.eq.s32.totalorder %v16772_v52, %v11266_v51  ;;  %v16779_v2 = vld [vmem:[#allocation276_spill] sm:$0xff]  ;;  %8017 = vmatpush3.bf16.msra.mxu1 %v8431_v10 }
 0x698   :  { %16769 = vst [vmem:[#allocation305_spill] sm:$0xff] %v14685_v13  ;;  %v7296_v45 = vsel %vm4560_vm9, 1.0, %v15867_v17  ;;  %vm5638_vm0 = vcmp.eq.s32.totalorder %v16773_v18, %v11266_v51  ;;  %8189 = vmatpush3.bf16.msra.mxu0 %v8186_v43  ;;  %vm5974_vm1 = vcmp.eq.s32.totalorder %v16774_v11, %v11266_v51  ;;  %v5685_v44 = vadd.f32 %v7428_v40, %v16775_v60  ;;  %v16778_v43 = vld [vmem:[#allocation270_spill] sm:$0xff]  ;;  %v6275_v40 = vld [vmem:[%s15234_s2 + $0x1f0] sm:$0xff]  ;;  %v16780_v61 = vld [vmem:[#allocation192_spill] sm:$0xff] }
 0x699   :  { %v5163_v48 = vadd.f32 %v16776_v32, %v5051_v58  ;;  %8191 = vmatprep.subr.bf16.mxu0 %v8190_v4  ;;  %v8194_v12 = vpack.c.bf16 %v6274_v6, %v6273_v57  ;;  %v7298_v14 = vsel %vm4562_vm14, 1.0, %v15867_v17  ;;  %vm4563_vm2 = vcmp.eq.s32.totalorder %v16777_v29, %v11266_v51  ;;  %v14735_v35 = vpop.permute.xlu0 %5932  ;;  %v6276_v57 = vld [vmem:[%s15234_s2 + $0x1f8] sm:$0xff]  ;;  %8018 = vmatprep.subr.bf16.mxu1 %v8432_v19  ;;  %v8433_v10 = vld [vmem:[%s15235_s7 + $0x28] sm:$0xff]   ;;  %v16785_v60 = vld [vmem:[#allocation245_spill] sm:$0xff] }
 0x69a   :  { %v5164_v30 = vadd.f32 %v16778_v43, %v5052_v38  ;;  %v5054_v33 = vadd.f32 %v16779_v2, %v4942_v23  ;;  %v7432_v6 = vsel %vm5641_vm15, 1.0, %v15867_v17  ;;  %vm6085_vm3 = vcmp.eq.s32.totalorder %v16780_v61, %v11266_v51  ;;  %v16781_v38 = vld [vmem:[#allocation247_spill] sm:$0xff]  ;;  %v16782_v52 = vld [vmem:[#allocation212_spill] sm:$0xff]  ;;  %v14777_v43 = vpop.permute.xlu1 %5408  ;;  %v16792_v61 = vld [vmem:[#allocation26_spill] sm:$0xff] }
 0x69b   :  { %v4608_v58 = vadd.f32 %v7296_v45, %v16781_v38  ;;  %v7429_v23 = vsel %vm5638_vm0, 1.0, %v15867_v17  ;;  %7940 = vmatmul.mubr.f32.gmra.mrb[6].mxu0 %v5163_v48  ;;  %v14763_v31 = vsel %vm5974_vm1, 1.0, %v15867_v17  ;;  %vm6086_vm4 = vcmp.eq.s32.totalorder %v16782_v52, %v11266_v51  ;;  %v16783_v45 = vld [vmem:[#allocation227_spill] sm:$0xff]  ;;  %v16784_v18 = vld [vmem:[#allocation236_spill] sm:$0xff]  ;;  %8019 = vmatpush3.bf16.msra.mxu1 %v8432_v19 }
 0x69c   :  { %vm5753_vm5 = vcmp.eq.s32.totalorder %v16783_v45, %v11266_v51  ;;  %vm5420_vm6 = vcmp.eq.s32.totalorder %v16784_v18, %v11266_v51  ;;  %7942 = vmatprep.mubr.f32.mxu0 %v5164_v30  ;;  %8193 = vmatpush3.bf16.msra.mxu0 %v8190_v4  ;;  %v4610_v32 = vadd.f32 %v7298_v14, %v16785_v60  ;;  %v7299_v11 = vsel %vm4563_vm2, 1.0, %v15867_v17  ;;  %v16786_v13 = vld [vmem:[#allocation8_spill] sm:$0xff]  ;;  %v16787_v30 = vld [vmem:[#allocation289_spill] sm:$0xff]  ;;  %v16794_v18 = vld [vmem:[#allocation246_spill] sm:$0xff] }
 0x69d   :  { %v5797_v48 = vadd.f32 %v14595_v46, %v5685_v44  ;;  %8195 = vmatprep.subr.bf16.mxu0 %v8194_v12  ;;  %v8198_v2 = vpack.c.bf16 %v6276_v57, %v6275_v40  ;;  %v5689_v38 = vadd.f32 %v7432_v6, %v14605_v42  ;;  %vm5421_vm7 = vcmp.eq.s32.totalorder %v16786_v13, %v11266_v51  ;;  %v14783_v41 = vpop.permute.xlu0 %5947  ;;  %v16788_v14 = vld [vmem:[#allocation105_spill] sm:$0xff]  ;;  %v16793_v52 = vld [vmem:[#allocation272_spill] sm:$0xff] }
 0x69e   :  { %v5686_v4 = vadd.f32 %v7429_v23, %v16787_v30  ;;  %v5166_v60 = vadd.f32 %v16788_v14, %v5054_v33  ;;  %v7492_v46 = vsel %vm6085_vm3, 1.0, %v15867_v17  ;;  %v14794_v42 = vsel %vm6086_vm4, 1.0, %v15867_v17  ;;  %v16789_v33 = vld [vmem:[#allocation27_spill] sm:$0xff]  ;;  %8020 = vmatprep.subr.bf16.mxu1 %v8433_v10  ;;  %v16790_v40 = vld [vmem:[#allocation269_spill] sm:$0xff]  ;;  %v5739_v13 = vpop.permute.xlu1 %5738 }
 0x69f   :  { %v7403_v44 = vsel %vm5420_vm6, 1.0, %v15867_v17  ;;  %v4720_v29 = vadd.f32 %v14469_v49, %v4608_v58  ;;  %7943 = vmatmul.mubr.f32.gmra.mrb[8].mxu0 %v16789_v33  ;;  %v7448_v19 = vsel %vm5753_vm5, 1.0, %v15867_v17  ;;  %vm5644_vm8 = vcmp.eq.s32.totalorder %v16790_v40, %v11266_v51  ;;  %v16791_v57 = vld [vmem:[#allocation273_spill] sm:$0xff]  ;;  %8021 = vmatpush3.bf16.msra.mxu1 %v8433_v10  ;;  %v16797_v14 = vld [vmem:[#allocation287_spill] sm:$0xff]  ;;  %v16800_v33 = vld [vmem:[#allocation296_spill] sm:$0xff] }
 0x6a0   :  { %v4611_v6 = vadd.f32 %v7299_v11, %v16791_v57  ;;  %vm5645_vm9 = vcmp.eq.s32.totalorder %v16792_v61, %v11266_v51  ;;  %7945 = vmatprep.mubr.f32.mxu0 %v5166_v60  ;;  %8197 = vmatpush3.bf16.msra.mxu0 %v8194_v12  ;;  %v7404_v49 = vsel %vm5421_vm7, 1.0, %v15867_v17  ;;  %v4722_v58 = vadd.f32 %v14542_v5, %v4610_v32  ;;  %v16795_v12 = vld [vmem:[#allocation268_spill] sm:$0xff]  ;;  %v16799_v60 = vld [vmem:[#allocation294_spill] sm:$0xff] }
 0x6a1   :  { %v5909_v23 = vadd.f32 %v14459_v0, %v5797_v48  ;;  %vm4897_vm10 = vcmp.eq.s32.totalorder %v14687_v55, %v11266_v51  ;;  %8199 = vmatprep.subr.bf16.mxu0 %v8198_v2  ;;  %v5580_v45 = vadd.f32 %v16793_v52, %v7403_v44  ;;  %vm5976_vm11 = vcmp.eq.s32.totalorder %v16794_v18, %v11266_v51  ;;  %v14825_v30 = vpop.permute.xlu0 %5950  ;;  %v16796_v5 = vld [vmem:[#allocation84_spill] sm:$0xff] }
 0x6a2   :  { %vm5865_vm12 = vcmp.eq.s32.totalorder %v16795_v12, %v11266_v51  ;;  %v5798_v11 = vadd.f32 %v14235_v62, %v5686_v4  ;;  %v7435_v0 = vsel %vm5644_vm8, 1.0, %v15867_v17  ;;  %v4832_v32 = vadd.f32 %v16796_v5, %v4720_v29  ;;  %v16798_v62 = vld [vmem:[#allocation281_spill] sm:$0xff]  ;;  %v14863_v5 = vpop.permute.xlu1 %5956 }
 0x6a3   :  { %v7436_v48 = vsel %vm5645_vm9, 1.0, %v15867_v17  ;;  %vm5761_vm13 = vcmp.eq.s32.totalorder %v5739_v13, %v11266_v51  ;;  %7946 = vmatmul.mubr.f32.gmra.mrb[10].mxu0 %v16797_v14  ;;  %v5581_v4 = vadd.f32 %v16798_v62, %v7404_v49  ;;  %v4723_v10 = vadd.f32 %v16799_v60, %v4611_v6  ;;  %v16801_v6 = vld [vmem:[#allocation231_spill] sm:$0xff]  ;;  %v16802_v49 = vld [vmem:[#allocation209_spill] sm:$0xff] }
 0x6a4   :  { %v7456_v44 = vsel %vm5761_vm13, 1.0, %v15867_v17  ;;  %v7345_v29 = vsel %vm4897_vm10, 1.0, %v15867_v17  ;;  %8201 = vmatpush3.bf16.msra.mxu0 %v8198_v2  ;;  %v4834_v40 = vadd.f32 %v16800_v33, %v4722_v58  ;;  %vm5010_vm14 = vcmp.eq.s32.totalorder %v14214_v39, %v11266_v51  ;;  %v16805_v14 = vld [vmem:[#allocation285_spill] sm:$0xff] }
 0x6a5   :  { %v14849_v57 = vadd.f32 %v7456_v44, %v14586_v3  ;;  %v6021_v61 = vadd.f32 %v14713_v28, %v5909_v23  ;;  %vm6197_vm15 = vcmp.eq.s32.totalorder %v16801_v6, %v11266_v51  ;;  %v7479_v55 = vsel %vm5976_vm11, 1.0, %v15867_v17  ;;  %v14859_v58 = vpop.permute.xlu0 %5968  ;;  %v16803_v3 = vld [vmem:[#allocation11_spill] sm:$0xff] }
 0x6a6   :  { %v5910_v2 = vadd.f32 %v16802_v49, %v5798_v11  ;;  %v5693_v52 = vadd.f32 %v7436_v48, %v5581_v4  ;;  %v5801_v13 = vadd.f32 %v7448_v19, %v5689_v38  ;;  %v5692_v39 = vadd.f32 %v7435_v0, %v5580_v45  ;;  %v16804_v11 = vld [vmem:[#allocation295_spill] sm:$0xff]  ;;  %v16806_v45 = vld [vmem:[#allocation297_spill] sm:$0xff] }
 0x6a7   :  { %vm5977_vm0 = vcmp.eq.s32.totalorder %v16803_v3, %v11266_v51  ;;  %v4945_v28 = vadd.f32 %v7345_v29, %v14616_v34  ;;  %v7464_v23 = vsel %vm5865_vm12, 1.0, %v15867_v17  ;;  %v7362_v18 = vsel %vm5010_vm14, 1.0, %v15867_v17  ;;  %v16807_v29 = vld [vmem:[#allocation301_spill] sm:$0xff]  ;;  %v5412_v6 = vpop.permute.xlu1 %5411 }
 0x6a8   :  { %v4835_v48 = vadd.f32 %v16804_v11, %v4723_v10  ;;  %v4944_v62 = vadd.f32 %v16805_v14, %v4832_v32  ;;  %v7508_v38 = vsel %vm6197_vm15, 1.0, %v15867_v17  ;;  %v6024_v19 = vadd.f32 %v7479_v55, %v14628_v24  ;;  %v16813_v14 = vld [vmem:[#allocation291_spill] sm:$0xff] }
 0x6a9   :  { %v4946_v0 = vadd.f32 %v16806_v45, %v4834_v40  ;;  %v6133_v4 = vadd.f32 %v7492_v46, %v6021_v61  ;;  %v7480_v34 = vsel %vm5977_vm0, 1.0, %v15867_v17  ;;  %v5805_v60 = vadd.f32 %v14699_v37, %v5693_v52  ;;  %v5098_v24 = vpop.permute.xlu0 %5097  ;;  %v16808_v40 = vld [vmem:[#allocation283_spill] sm:$0xff]  ;;  %v16809_v46 = vld [vmem:[#allocation89_spill] sm:$0xff]  ;;  %v16810_v37 = vld [vmem:[#allocation298_spill] sm:$0xff] }
 0x6aa   :  { %vm5011_vm1 = vcmp.eq.s32.totalorder %v14263_v25, %v11266_v51  ;;  %v6022_v12 = vadd.f32 %v14763_v31, %v5910_v2  ;;  %v5913_v44 = vadd.f32 %v7464_v23, %v5801_v13  ;;  %v14882_v10 = vadd.f32 %v14625_v21, %v5692_v39  ;;  %v16811_v2 = vld [vmem:[#allocation214_spill] sm:$0xff] }
 0x6ab   :  { %v5058_v32 = vadd.f32 %v7362_v18, %v4946_v0  ;;  %v5057_v33 = vadd.f32 %v16807_v29, %v4945_v28  ;;  %vm6200_vm2 = vcmp.eq.s32.totalorder %v16808_v40, %v11266_v51  ;;  %v4947_v61 = vadd.f32 %v16809_v46, %v4835_v48 }
 0x6ac   :  { %v5056_v55 = vadd.f32 %v16810_v37, %v4944_v62  ;;  %vm5120_vm3 = vcmp.eq.s32.totalorder %v5098_v24, %v11266_v51  ;;  %v14890_v25 = vadd.f32 %v7480_v34, %v5913_v44  ;;  %v7363_v31 = vsel %vm5011_vm1, 1.0, %v15867_v17  ;;  %v16814_v44 = vld [vmem:[#allocation85_spill] sm:$0xff] }
 0x6ad   :  { %v7376_v21 = vsel %vm5120_vm3, 1.0, %v15867_v17  ;;  %v6245_v49 = vadd.f32 %v7508_v38, %v6133_v4  ;;  %vm5975_vm4 = vcmp.eq.s32.totalorder %v14735_v35, %v11266_v51  ;;  %v14897_v52 = vadd.f32 %v16811_v2, %v5805_v60  ;;  %v5107_v28 = vpop.permute.xlu0 %5106  ;;  %v5524_v48 = vpop.permute.xlu1 %5523 }
 0x6ae   :  { %v5168_v13 = vadd.f32 %v7376_v21, %v5056_v55  ;;  %v6134_v39 = vadd.f32 %v14794_v42, %v6022_v12  ;;  %v14901_v3 = vsel %vm6200_vm2, 1.0, %v15867_v17  ;;  %vm5760_vm5 = vcmp.eq.s32.totalorder %v14448_v36, %v11266_v51  ;;  %v16812_v42 = vld [vmem:[#allocation161_spill] sm:$0xff] }
 0x6af   :  { %v5169_v23 = vadd.f32 %v14152_v20, %v5057_v33  ;;  %v5170_v18 = vadd.f32 %v14581_v47, %v5058_v32  ;;  %v5059_v11 = vadd.f32 %v7363_v31, %v4947_v61  ;;  %vm6088_vm6 = vcmp.eq.s32.totalorder %v14349_v63, %v11266_v51 }
 0x6b0   :  { %vm5428_vm7 = vcmp.eq.s32.totalorder %v5412_v6, %v11266_v51  ;;  %vm5123_vm8 = vcmp.eq.s32.totalorder %v5107_v28, %v11266_v51  ;;  %7948 = vmatprep.mubr.f32.mxu0 %v5168_v13  ;;  %vm6089_vm9 = vcmp.eq.s32.totalorder %v16812_v42, %v11266_v51  ;;  %vm5872_vm10 = vcmp.eq.s32.totalorder %v14723_v59, %v11266_v51 }
 0x6b1   :  { %v7478_v20 = vsel %vm5975_vm4, 1.0, %v15867_v17  ;;  %v7379_v47 = vsel %vm5123_vm8, 1.0, %v15867_v17  ;;  %7949 = vmatmul.mubr.f32.gmra.mrb[12].mxu0 %v5169_v23  ;;  %vm5868_vm11 = vcmp.eq.s32.totalorder %v16813_v14, %v11266_v51  ;;  %v7455_v62 = vsel %vm5760_vm5, 1.0, %v15867_v17  ;;  %v6154_v36 = vpop.permute.xlu0 %6153 }
 0x6b2   :  { %vm5540_vm12 = vcmp.eq.s32.totalorder %v5524_v48, %v11266_v51  ;;  %v5171_v59 = vadd.f32 %v7379_v47, %v5059_v11  ;;  %7951 = vmatprep.mubr.f32.mxu0 %v5170_v18  ;;  %vm6087_vm13 = vcmp.eq.s32.totalorder %v14308_v8, %v11266_v51  ;;  %v7495_v35 = vsel %vm6088_vm6, 1.0, %v15867_v17  ;;  %v5960_v29 = vpop.permute.xlu1 %5959 }
 0x6b3   :  { %v7411_v38 = vsel %vm5428_vm7, 1.0, %v15867_v17  ;;  %v7427_v45 = vsel %vm5540_vm12, 1.0, %v15867_v17  ;;  %v7471_v0 = vsel %vm5872_vm10, 1.0, %v15867_v17  ;;  %v6023_v34 = vadd.f32 %v7478_v20, %v14704_v27 }
 0x6b4   :  { %v14938_v4 = vadd.f32 %v7427_v45, %v7411_v38  ;;  %vm6198_vm14 = vcmp.eq.s32.totalorder %v6154_v36, %v11266_v51  ;;  %v7496_v8 = vsel %vm6089_vm9, 1.0, %v15867_v17  ;;  %v7467_v63 = vsel %vm5868_vm11, 1.0, %v15867_v17 }
 0x6b5   :  { %v5808_v60 = vadd.f32 %v7455_v62, %v14155_v53  ;;  %v7509_v12 = vsel %vm6198_vm14, 1.0, %v15867_v17  ;;  %7952 = vmatmul.mubr.f32.gmra.mrb[14].mxu0 %v5171_v59  ;;  %vm6201_vm15 = vcmp.eq.s32.totalorder %v16814_v44, %v11266_v51  ;;  %v7494_v32 = vsel %vm6087_vm13, 1.0, %v15867_v17  ;;  %v6157_v53 = vpop.permute.xlu0 %6156  ;;  %v16815_v44 = vld [vmem:[#allocation87_spill] sm:$0xff] }
 0x6b6   :  { %v6136_v27 = vadd.f32 %v7495_v35, %v6024_v19  ;;  %v6246_v33 = vadd.f32 %v7509_v12, %v6134_v39  ;;  %7986 = vmatprep.mubr.f32.mxu0 %v6245_v49  ;;  %vm6096_vm0 = vcmp.eq.s32.totalorder %v14516_v9, %v11266_v51  ;;  %vm5984_vm1 = vcmp.eq.s32.totalorder %v5960_v29, %v11266_v51 }
 0x6b7   :  { %v5920_v24 = vadd.f32 %v7471_v0, %v5808_v60  ;;  %vm5980_vm2 = vcmp.eq.s32.totalorder %v14783_v41, %v11266_v51  ;;  %v7487_v40 = vsel %vm5984_vm1, 1.0, %v15867_v17  ;;  %vm5981_vm3 = vcmp.eq.s32.totalorder %v14825_v30, %v11266_v51  ;;  %v6178_v31 = vpop.permute.xlu1 %6177 }
 0x6b8   :  { %v6135_v46 = vadd.f32 %v7494_v32, %v6023_v34  ;;  %vm6199_vm4 = vcmp.eq.s32.totalorder %v6157_v53, %v11266_v51  ;;  %v7512_v19 = vsel %vm6201_vm15, 1.0, %v15867_v17  ;;  %vm6203_vm5 = vcmp.eq.s32.totalorder %v14346_v50, %v11266_v51 }
 0x6b9   :  { %v6032_v9 = vadd.f32 %v7487_v40, %v5920_v24  ;;  %v7510_v61 = vsel %vm6199_vm4, 1.0, %v15867_v17  ;;  %7987 = vmatmul.mubr.f32.vlgmr.msra.gmra.mrb[0].mxu0 %v6246_v33  ;;  %v6137_v41 = vadd.f32 %v7496_v8, %v14890_v25  ;;  %v7503_v6 = vsel %vm6096_vm0, 1.0, %v15867_v17  ;;  %v6172_v49 = vpop.permute.xlu0 %6171  ;;  %v16816_v40 = vld [vmem:[#allocation327_spill] sm:$0xff] }
 0x6ba   :  { %v7483_v37 = vsel %vm5980_vm2, 1.0, %v15867_v17  ;;  %v6247_v55 = vadd.f32 %v7510_v61, %v6135_v46  ;;  %v5916_v30 = vadd.f32 %v7467_v63, %v14882_v10  ;;  %v7484_v21 = vsel %vm5981_vm3, 1.0, %v15867_v17 }
 0x6bb   :  { %v6248_v2 = vadd.f32 %v14901_v3, %v6136_v27  ;;  %v6144_v13 = vadd.f32 %v7503_v6, %v6032_v9  ;;  %v6249_v39 = vadd.f32 %v7512_v19, %v6137_v41  ;;  %vm6092_vm6 = vcmp.eq.s32.totalorder %v14183_v1, %v11266_v51 }
 0x6bc   :  { %vm5759_vm7 = vcmp.eq.s32.totalorder %v14296_v26, %v11266_v51  ;;  %v7514_v25 = vsel %vm6203_vm5, 1.0, %v15867_v17  ;;  %7989 = vmatprep.mubr.f32.mxu0 %v6247_v55  ;;  %vm6093_vm8 = vcmp.eq.s32.totalorder %v14423_v15, %v11266_v51  ;;  %v6028_v10 = vadd.f32 %v7483_v37, %v5916_v30  ;;  %v5851_v23 = vpop.permute.xlu1 %5850 }
 0x6bd   :  { %vm6204_vm9 = vcmp.eq.s32.totalorder %v6172_v49, %v11266_v51  ;;  %7990 = vmatmul.mubr.f32.gmra.mrb[2].mxu0 %v6248_v2  ;;  %vm5871_vm10 = vcmp.eq.s32.totalorder %v14611_v56, %v11266_v51  ;;  %v6029_v1 = vadd.f32 %v7484_v21, %v14897_v52  ;;  %v7499_v26 = vsel %vm6092_vm6, 1.0, %v15867_v17  ;;  %v6175_v28 = vpop.permute.xlu0 %6174  ;;  %v16818_v21 = vld [vmem:[#allocation144_spill] sm:$0xff] }
 0x6be   :  { %7992 = vmatprep.mubr.f32.mxu0 %v6249_v39  ;;  %v7454_v3 = vsel %vm5759_vm7, 1.0, %v15867_v17  ;;  %v6251_v50 = vadd.f32 %v7514_v25, %v14107_v22  ;;  %vm5983_vm11 = vcmp.eq.s32.totalorder %v14863_v5, %v11266_v51  ;;  %v7500_v15 = vsel %vm6093_vm8, 1.0, %v15867_v17 }
 0x6bf   :  { %v7515_v18 = vsel %vm6204_vm9, 1.0, %v15867_v17  ;;  %vm6205_vm12 = vcmp.eq.s32.totalorder %v6175_v28, %v11266_v51  ;;  %v7470_v56 = vsel %vm5871_vm10, 1.0, %v15867_v17  ;;  %vm6206_vm13 = vcmp.eq.s32.totalorder %v6178_v31, %v11266_v51 }
 0x6c0   :  { %v6140_v52 = vadd.f32 %v7499_v26, %v6028_v10  ;;  %v7516_v11 = vsel %vm6205_vm12, 1.0, %v15867_v17  ;;  %v5807_v22 = vadd.f32 %v7454_v3, %v14057_v7  ;;  %v6141_v42 = vadd.f32 %v7500_v15, %v6029_v1  ;;  %v16819_v10 = vld [vmem:[#allocation305_spill] sm:$0xff] }
 0x6c1   :  { %7993 = vmatmul.mubr.f32.gmra.mrb[4].mxu0 %v14442_v54  ;;  %v7486_v5 = vsel %vm5983_vm11, 1.0, %v15867_v17  ;;  %v6181_v20 = vpop.permute.xlu0 %6180  ;;  %v7517_v14 = vsel %vm6206_vm13, 1.0, %v15867_v17  ;;  %vm5873_vm1 = vcmp.eq.s32.totalorder %v5851_v23, %v11266_v51  ;;  %vm6097_vm2 = vcmp.eq.s32.totalorder %v16815_v44, %v11266_v51  ;;  %v8434_v44 = vld [vmem:[%s15235_s7 + $0x30] sm:$0xff]  }
 0x6c2   :  { %7995 = vmatprep.mubr.f32.mxu0 %v6251_v50  ;;  %v6252_v48 = vadd.f32 %v7515_v18, %v6140_v52  ;;  %v5919_v47 = vadd.f32 %v7470_v56, %v5807_v22  ;;  %v6253_v62 = vadd.f32 %v7516_v11, %v6141_v42  ;;  %vm6207_vm14 = vcmp.eq.s32.totalorder %v6181_v20, %v11266_v51 }
 0x6c3   :  { %v6254_v7 = vadd.f32 %v7517_v14, %v14555_v16  ;;  %v7518_v38 = vsel %vm6207_vm14, 1.0, %v15867_v17  ;;  %v7472_v16 = vsel %vm5873_vm1, 1.0, %v15867_v17  ;;  %vm5427_vm4 = vcmp.eq.s32.totalorder %v14777_v43, %v11266_v51  ;;  %8022 = vmatprep.subr.bf16.mxu1 %v8434_v44 }
 0x6c4   :  { %v6069_v59 = vpop.permute.xlu1 %6068  ;;  %v6031_v35 = vadd.f32 %v7486_v5, %v5919_v47  ;;  %v5921_v32 = vadd.f32 %v7472_v16, %v14849_v57  ;;  %v7504_v33 = vsel %vm6097_vm2, 1.0, %v15867_v17  ;;  %vm5539_vm5 = vcmp.eq.s32.totalorder %v16816_v40, %v11266_v51  ;;  %v16817_v57 = vld [vmem:[#allocation25_spill] sm:$0xff]  ;;  %v16820_v5 = vld [vmem:[#allocation28_spill] sm:$0xff]  ;;  %8023 = vmatpush3.bf16.msra.mxu1 %v8434_v44 }
 0x6c5   :  { %7996 = vmatmul.mubr.f32.gmra.mrb[6].mxu0 %v6252_v48  ;;  %vm6095_vm15 = vcmp.eq.s32.totalorder %v6069_v59, %v11266_v51  ;;  %v6184_v45 = vpop.permute.xlu0 %6183  ;;  %v7410_v46 = vsel %vm5427_vm4, 1.0, %v15867_v17  ;;  %v7426_v19 = vsel %vm5539_vm5, 1.0, %v15867_v17  ;;  %vm5651_vm6 = vcmp.eq.s32.totalorder %v16817_v57, %v11266_v51 }
 0x6c6   :  { %7998 = vmatprep.mubr.f32.mxu0 %v6253_v62  ;;  %v7502_v54 = vsel %vm6095_vm15, 1.0, %v15867_v17  ;;  %vm6208_vm0 = vcmp.eq.s32.totalorder %v6184_v45, %v11266_v51  ;;  %v5587_v9 = vadd.f32 %v7426_v19, %v7410_v46  ;;  %v7442_v43 = vsel %vm5651_vm6, 1.0, %v15867_v17 }
 0x6c7   :  { %v6143_v36 = vadd.f32 %v7502_v54, %v6031_v35  ;;  %v7519_v0 = vsel %vm6208_vm0, 1.0, %v15867_v17  ;;  %vm5987_vm8 = vcmp.eq.s32.totalorder %v14859_v58, %v11266_v51  ;;  %vm5762_vm10 = vcmp.eq.s32.totalorder %v16818_v21, %v11266_v51 }
 0x6c8   :  { %v6256_v63 = vadd.f32 %v7519_v0, %v6144_v13  ;;  %v5699_v6 = vadd.f32 %v7442_v43, %v5587_v9  ;;  %v7490_v49 = vsel %vm5987_vm8, 1.0, %v15867_v17  ;;  %v7457_v39 = vsel %vm5762_vm10, 1.0, %v15867_v17 }
 0x6c9   :  { %7999 = vmatmul.mubr.f32.gmra.mrb[8].mxu0 %v6254_v7  ;;  %v5854_v34 = vpop.permute.xlu1 %5853  ;;  %v6255_v8 = vadd.f32 %v7518_v38, %v6143_v36  ;;  %v5810_v1 = vadd.f32 %v7457_v39, %v16819_v10  ;;  %vm5652_vm0 = vcmp.eq.s32.totalorder %v16820_v5, %v11266_v51  ;;  %v8439_v39 = vld [vmem:[%s15236_s9 + $0x18] sm:$0xff]  }
 0x6ca   :  { %vm5874_vm11 = vcmp.eq.s32.totalorder %v5854_v34, %v11266_v51  ;;  %v6190_v25 = vpop.permute.xlu0 %6189  ;;  %v7443_v47 = vsel %vm5652_vm0, 1.0, %v15867_v17 }
 0x6cb   :  { %8001 = vmatprep.mubr.f32.mxu0 %v6255_v8  ;;  %v7473_v58 = vsel %vm5874_vm11, 1.0, %v15867_v17  ;;  %vm6210_vm14 = vcmp.eq.s32.totalorder %v6190_v25, %v11266_v51  ;;  %v5700_v62 = vadd.f32 %v7443_v47, %v14938_v4 }
 0x6cc   :  { %v5922_v50 = vadd.f32 %v7473_v58, %v5810_v1  ;;  %v7521_v23 = vsel %vm6210_vm14, 1.0, %v15867_v17 }
 0x6cd   :  { %8002 = vmatmul.mubr.f32.gmra.mrb[10].mxu0 %v6256_v63 }
 0x6ce   :  { %v5745_v60 = vpop.permute.xlu1 %5744 }
 0x6cf   :  { %vm5763_vm7 = vcmp.eq.s32.totalorder %v5745_v60, %v11266_v51  ;;  %v6193_v48 = vpop.permute.xlu0 %6192 }
 0x6d0   :  { %v7458_v41 = vsel %vm5763_vm7, 1.0, %v15867_v17 }
 0x6d1   :  { %v5811_v55 = vadd.f32 %v7458_v41, %v5699_v6 }
 0x6d3   :  { %v5963_v12 = vpop.permute.xlu1 %5962 }
 0x6d4   :  { %vm5985_vm3 = vcmp.eq.s32.totalorder %v5963_v12, %v11266_v51 }
 0x6d5   :  { %v7488_v27 = vsel %vm5985_vm3, 1.0, %v15867_v17  ;;  %vm6211_vm3 = vcmp.eq.s32.totalorder %v6193_v48, %v11266_v51 }
 0x6d6   :  { %v6033_v29 = vadd.f32 %v7488_v27, %v5921_v32  ;;  %v7522_v38 = vsel %vm6211_vm3, 1.0, %v15867_v17  ;;  %v8435_v32 = vld [vmem:[%s15235_s7 + $0x38] sm:$0xff]  }
 0x6d7   :  { %8024 = vmatprep.subr.bf16.mxu1 %v8435_v32 }
 0x6d8   :  { %v5748_v24 = vpop.permute.xlu1 %5747  ;;  %v6145_v53 = vadd.f32 %v7504_v33, %v6033_v29  ;;  %8025 = vmatpush3.bf16.msra.mxu1 %v8435_v32 }
 0x6d9   :  { %vm5764_vm1 = vcmp.eq.s32.totalorder %v5748_v24, %v11266_v51 }
 0x6da   :  { %v7459_v14 = vsel %vm5764_vm1, 1.0, %v15867_v17 }
 0x6db   :  { %v5812_v54 = vadd.f32 %v7459_v14, %v5700_v62  ;;  %v8442_v62 = vld [vmem:[%s15236_s9 + $0x30] sm:$0xff]  }
 0x6dd   :  { %v5966_v61 = vpop.permute.xlu1 %5965 }
 0x6de   :  { %vm5986_vm12 = vcmp.eq.s32.totalorder %v5966_v61, %v11266_v51  ;;  %v8437_v61 = vld [vmem:[%s15236_s9 + $0x8] sm:$0xff]  }
 0x6df   :  { %v7489_v26 = vsel %vm5986_vm12, 1.0, %v15867_v17 }
 0x6e0   :  { %v6034_v15 = vadd.f32 %v7489_v26, %v5922_v50 }
 0x6e2   :  { %v5857_v37 = vpop.permute.xlu1 %5856 }
 0x6e3   :  { %vm5875_vm9 = vcmp.eq.s32.totalorder %v5857_v37, %v11266_v51 }
 0x6e4   :  { %v7474_v30 = vsel %vm5875_vm9, 1.0, %v15867_v17 }
 0x6e5   :  { %v5923_v31 = vadd.f32 %v7474_v30, %v5811_v55  ;;  %v8438_v30 = vld [vmem:[%s15236_s9 + $0x10] sm:$0xff]  }
 0x6e6   :  { %v5860_v2 = vpop.permute.xlu1 %5859 }
 0x6e7   :  { %v6035_v13 = vadd.f32 %v7490_v49, %v5923_v31  ;;  %vm5876_vm2 = vcmp.eq.s32.totalorder %v5860_v2, %v11266_v51 }
 0x6e8   :  { %v7475_v35 = vsel %vm5876_vm2, 1.0, %v15867_v17 }
 0x6e9   :  { %v5924_v34 = vadd.f32 %v7475_v35, %v5812_v54  ;;  %v7524_v35 = vld [vmem:[%s15237_s8] ss:$0 sm:$0xff] }
 0x6eb   :  { %v6078_v3 = vpop.permute.xlu1 %6077 }
 0x6ec   :  { %vm6098_vm13 = vcmp.eq.s32.totalorder %v6078_v3, %v11266_v51  ;;  %v8440_v3 = vld [vmem:[%s15236_s9 + $0x20] sm:$0xff]  }
 0x6ed   :  { %v7505_v28 = vsel %vm6098_vm13, 1.0, %v15867_v17 }
 0x6ee   :  { %v6146_v18 = vadd.f32 %v7505_v28, %v6034_v15 }
 0x6f0   :  { %v6187_v56 = vpop.permute.xlu1 %6186  ;;  %v6258_v11 = vadd.f32 %v7521_v23, %v6146_v18  ;;  %v8441_v18 = vld [vmem:[%s15236_s9 + $0x28] sm:$0xff]  }
 0x6f1   :  { %vm6209_vm15 = vcmp.eq.s32.totalorder %v6187_v56, %v11266_v51 }
 0x6f2   :  { %v7520_v52 = vsel %vm6209_vm15, 1.0, %v15867_v17 }
 0x6f3   :  { %v6257_v22 = vadd.f32 %v7520_v52, %v6145_v53 }
 0x6f5   :  { %v5972_v42 = vpop.permute.xlu1 %5971  ;;  %8004 = vmatprep.mubr.f32.mxu0 %v6257_v22 }
 0x6f6   :  { %8005 = vmatmul.mubr.f32.gmra.mrb[12].mxu0 %v6258_v11  ;;  %vm5988_vm5 = vcmp.eq.s32.totalorder %v5972_v42, %v11266_v51 }
 0x6f7   :  { %v7491_v36 = vsel %vm5988_vm5, 1.0, %v15867_v17 }
 0x6f8   :  { %v6036_v4 = vadd.f32 %v7491_v36, %v5924_v34 }
 0x6fb   :  { %v6081_v20 = vpop.permute.xlu1 %6080 }
 0x6fc   :  { %vm6099_vm4 = vcmp.eq.s32.totalorder %v6081_v20, %v11266_v51 }
 0x6fd   :  { %v7506_v59 = vsel %vm6099_vm4, 1.0, %v15867_v17 }
 0x6fe   :  { %v6147_v7 = vadd.f32 %v7506_v59, %v6035_v13  ;;  %v8443_v59 = vld [vmem:[%s15236_s9 + $0x38] sm:$0xff]  }
 0x6ff   :  { %v6084_v45 = vpop.permute.xlu1 %6083 }
 0x700   :  { %vm6100_vm6 = vcmp.eq.s32.totalorder %v6084_v45, %v11266_v51  ;;  %v6259_v0 = vadd.f32 %v7522_v38, %v6147_v7 }
 0x701   :  { %v7507_v8 = vsel %vm6100_vm6, 1.0, %v15867_v17 }
 0x702   :  { %8007 = vmatprep.mubr.f32.mxu0 %v6259_v0  ;;  %v6148_v60 = vadd.f32 %v7507_v8, %v6036_v4 }
 0x704   :  { %v6196_v63 = vpop.permute.xlu1 %6195 }
 0x705   :  { %vm6212_vm7 = vcmp.eq.s32.totalorder %v6196_v63, %v11266_v51  ;;  %v8436_v51 = vld [vmem:[%s15236_s9] sm:$0xff]  }
 0x706   :  { %v7523_v16 = vsel %vm6212_vm7, 1.0, %v15867_v17  ;;  %8042 = vmatprep.subr.bf16.mxu1 %v8436_v51 }
 0x707   :  { %v6260_v12 = vadd.f32 %v7523_v16, %v6148_v60 }
 0x709   :  { %8008 = vmatmul.mubr.f32.gmra.mrb[14].mxu0 %v6260_v12 }
 0x78c   :  { %v7988_v17 = vpop.f32.mrb[0].mxu0 }
 0x78d   :  { %v6439_v27 = vmul.f32 0.125, %v7988_v17  ;;  %v6343_v29 = vpop.f32.mrb[1].mxu0 }
 0x78e   :  { %v6438_v33 = vmul.f32 0.125, %v6343_v29 }
 0x790   :  { %v6454_v24 = vpack.c.bf16 %v6439_v27, %v6438_v33  ;;  %v7991_v53 = vpop.f32.mrb[2].mxu0 }
 0x791   :  { %v6441_v40 = vmul.f32 0.125, %v7991_v53  ;;  %v6353_v46 = vpop.f32.mrb[3].mxu0 }
 0x792   :  { %v6440_v19 = vmul.f32 0.125, %v6353_v46  ;;  %8026 = vmatprep.mubr.bf16.mxu1 %v6454_v24 }
 0x794   :  { %v6455_v57 = vpack.c.bf16 %v6441_v40, %v6440_v19  ;;  %v7994_v9 = vpop.f32.mrb[4].mxu0 }
 0x795   :  { %v6443_v43 = vmul.f32 0.125, %v7994_v9  ;;  %v6363_v41 = vpop.f32.mrb[5].mxu0 }
 0x796   :  { %v6442_v6 = vmul.f32 0.125, %v6363_v41  ;;  %8027 = vmatmul.mubr.bf16.vlgmr.msra.gmra.mrb[32].mxu1 %v6455_v57 }
 0x797   :  { %8043 = vmatpush3.bf16.msra.mxu1 %v8436_v51 }
 0x798   :  { %v6456_v37 = vpack.c.bf16 %v6443_v43, %v6442_v6  ;;  %v7997_v55 = vpop.f32.mrb[6].mxu0  ;;  %8044 = vmatprep.subr.bf16.mxu1 %v8437_v61 }
 0x799   :  { %v6445_v31 = vmul.f32 0.125, %v7997_v55  ;;  %v6373_v21 = vpop.f32.mrb[7].mxu0 }
 0x79a   :  { %v6444_v49 = vmul.f32 0.125, %v6373_v21  ;;  %8030 = vmatprep.mubr.bf16.mxu1 %v6456_v37 }
 0x79b   :  { %8045 = vmatpush3.bf16.msra.mxu1 %v8437_v61 }
 0x79c   :  { %v6457_v2 = vpack.c.bf16 %v6445_v31, %v6444_v49  ;;  %v8000_v13 = vpop.f32.mrb[8].mxu0  ;;  %8046 = vmatprep.subr.bf16.mxu1 %v8438_v30 }
 0x79d   :  { %v6447_v58 = vmul.f32 0.125, %v8000_v13  ;;  %v6383_v25 = vpop.f32.mrb[9].mxu0 }
 0x79e   :  { %v6446_v10 = vmul.f32 0.125, %v6383_v25  ;;  %8031 = vmatmul.mubr.bf16.gmra.mrb[36].mxu1 %v6457_v2 }
 0x79f   :  { %8047 = vmatpush3.bf16.msra.mxu1 %v8438_v30 }
 0x7a0   :  { %v6458_v1 = vpack.c.bf16 %v6447_v58, %v6446_v10  ;;  %v8003_v26 = vpop.f32.mrb[10].mxu0  ;;  %8048 = vmatprep.subr.bf16.mxu1 %v8439_v39 }
 0x7a1   :  { %v6449_v50 = vmul.f32 0.125, %v8003_v26  ;;  %v6393_v28 = vpop.f32.mrb[11].mxu0 }
 0x7a2   :  { %v6448_v15 = vmul.f32 0.125, %v6393_v28  ;;  %8034 = vmatprep.mubr.bf16.mxu1 %v6458_v1 }
 0x7a3   :  { %8049 = vmatpush3.bf16.msra.mxu1 %v8439_v39 }
 0x7a4   :  { %v6459_v23 = vpack.c.bf16 %v6449_v50, %v6448_v15  ;;  %8050 = vmatprep.subr.bf16.mxu1 %v8440_v3 }
 0x7a6   :  { %8035 = vmatmul.mubr.bf16.gmra.mrb[40].mxu1 %v6459_v23 }
 0x7a7   :  { %8051 = vmatpush3.bf16.msra.mxu1 %v8440_v3 }
 0x7a8   :  { %8052 = vmatprep.subr.bf16.mxu1 %v8441_v18 }
 0x7ab   :  { %8053 = vmatpush3.bf16.msra.mxu1 %v8441_v18 }
 0x7ac   :  { %8054 = vmatprep.subr.bf16.mxu1 %v8442_v62 }
 0x7af   :  { %8055 = vmatpush3.bf16.msra.mxu1 %v8442_v62 }
 0x7b0   :  { %8056 = vmatprep.subr.bf16.mxu1 %v8443_v59 }
 0x7b3   :  { %8057 = vmatpush3.bf16.msra.mxu1 %v8443_v59 }
 0x7c9   :  { %v8006_v56 = vpop.f32.mrb[12].mxu0 }
 0x7ca   :  { %v6451_v52 = vmul.f32 0.125, %v8006_v56  ;;  %v6403_v11 = vpop.f32.mrb[13].mxu0 }
 0x7cb   :  { %v6450_v22 = vmul.f32 0.125, %v6403_v11 }
 0x7cd   :  { %v6460_v42 = vpack.c.bf16 %v6451_v52, %v6450_v22 }
 0x7cf   :  { %8038 = vmatprep.mubr.bf16.mxu1 %v6460_v42 }
 0x7dc   :  { %v8009_v5 = vpop.f32.mrb[14].mxu0 }
 0x7dd   :  { %v6453_v48 = vmul.f32 0.125, %v8009_v5  ;;  %v6413_v20 = vpop.f32.mrb[15].mxu0  ;;  %v7533_v5 = vld [vmem:[%s15238_s10] ss:$0 sm:$0xff] }
 0x7de   :  { %v6452_v47 = vmul.f32 0.125, %v6413_v20 }
 0x7e0   :  { %v6461_v14 = vpack.c.bf16 %v6453_v48, %v6452_v47 }
 0x7e2   :  { %8039 = vmatmul.mubr.bf16.gmra.mrb[44].mxu1 %v6461_v14 }
 0x869   :  { %v8028_v7 = vpop.f32.mrb[32].mxu1 }
 0x86a   :  { %v6576_v54 = vadd.f32 %v8028_v7, %v7524_v35  ;;  %v6567_v38 = vpop.f32.mrb[33].mxu1 }
 0x86b   :  { %v6568_v45 = vadd.f32 %v7524_v35, %v6567_v38  ;;  %v8029_v36 = vpop.f32.mrb[34].mxu1 }
 0x86c   :  { %v6579_v0 = vadd.f32 %v8029_v36, %v7524_v35  ;;  %v6570_v34 = vpop.f32.mrb[35].mxu1  ;;  %v6632_v4 = vmax.f32 %v6576_v54, 0.0 }
 0x86d   :  { %v6571_v8 = vadd.f32 %v7524_v35, %v6570_v34  ;;  %v6630_v60 = vmax.f32 %v6568_v45, 0.0 }
 0x86e   :  { %v6633_v63 = vmax.f32 %v6579_v0, 0.0 }
 0x86f   :  { %v6631_v16 = vmax.f32 %v6571_v8, 0.0 }
 0x870   :  { %v6647_v12 = vpack.c.bf16 %v6633_v63, %v6632_v4 }
 0x871   :  { %v6646_v44 = vpack.c.bf16 %v6631_v16, %v6630_v60  ;;  %v8032_v32 = vpop.f32.mrb[36].mxu1 }
 0x872   :  { %v6592_v51 = vadd.f32 %v8032_v32, %v7524_v35  ;;  %v6583_v17 = vpop.f32.mrb[37].mxu1 }
 0x873   :  { %v6584_v27 = vadd.f32 %v7524_v35, %v6583_v17  ;;  %v8033_v29 = vpop.f32.mrb[38].mxu1  ;;  %8058 = vmatprep.mubr.bf16.mxu1 %v6646_v44 }
 0x874   :  { %v6595_v33 = vadd.f32 %v8033_v29, %v7524_v35  ;;  %v6586_v24 = vpop.f32.mrb[39].mxu1  ;;  %8059 = vmatmul.mubr.bf16.vlgmr.msra.gmra.mrb[48].mxu1 %v6647_v12  ;;  %v6636_v40 = vmax.f32 %v6592_v51, 0.0 }
 0x875   :  { %v6587_v53 = vadd.f32 %v7524_v35, %v6586_v24  ;;  %v6634_v19 = vmax.f32 %v6584_v27, 0.0 }
 0x876   :  { %v6637_v46 = vmax.f32 %v6595_v33, 0.0 }
 0x877   :  { %v6635_v57 = vmax.f32 %v6587_v53, 0.0 }
 0x878   :  { %v6649_v9 = vpack.c.bf16 %v6637_v46, %v6636_v40 }
 0x879   :  { %v6648_v61 = vpack.c.bf16 %v6635_v57, %v6634_v19  ;;  %v8036_v43 = vpop.f32.mrb[40].mxu1 }
 0x87a   :  { %v6608_v41 = vadd.f32 %v8036_v43, %v7524_v35  ;;  %v6599_v6 = vpop.f32.mrb[41].mxu1 }
 0x87b   :  { %v6600_v37 = vadd.f32 %v7524_v35, %v6599_v6  ;;  %v8037_v55 = vpop.f32.mrb[42].mxu1  ;;  %8062 = vmatprep.mubr.bf16.mxu1 %v6648_v61 }
 0x87c   :  { %v6611_v30 = vadd.f32 %v8037_v55, %v7524_v35  ;;  %v6602_v31 = vpop.f32.mrb[43].mxu1  ;;  %8063 = vmatmul.mubr.bf16.gmra.mrb[52].mxu1 %v6649_v9  ;;  %v6640_v49 = vmax.f32 %v6608_v41, 0.0 }
 0x87d   :  { %v6603_v21 = vadd.f32 %v7524_v35, %v6602_v31  ;;  %v6638_v13 = vmax.f32 %v6600_v37, 0.0 }
 0x87e   :  { %v6641_v2 = vmax.f32 %v6611_v30, 0.0 }
 0x87f   :  { %v6639_v39 = vmax.f32 %v6603_v21, 0.0 }
 0x880   :  { %v6651_v58 = vpack.c.bf16 %v6641_v2, %v6640_v49 }
 0x881   :  { %v6650_v25 = vpack.c.bf16 %v6639_v39, %v6638_v13 }
 0x883   :  { %8066 = vmatprep.mubr.bf16.mxu1 %v6650_v25 }
 0x884   :  { %8067 = vmatmul.mubr.bf16.gmra.mrb[56].mxu1 %v6651_v58 }
 0x8b5   :  { %v8040_v10 = vpop.f32.mrb[44].mxu1 }
 0x8b6   :  { %v6624_v1 = vadd.f32 %v8040_v10, %v7524_v35  ;;  %v6615_v26 = vpop.f32.mrb[45].mxu1 }
 0x8b7   :  { %v6616_v3 = vadd.f32 %v7524_v35, %v6615_v26  ;;  %v8041_v50 = vpop.f32.mrb[46].mxu1 }
 0x8b8   :  { %v6627_v28 = vadd.f32 %v8041_v50, %v7524_v35  ;;  %v6618_v15 = vpop.f32.mrb[47].mxu1  ;;  %v6644_v18 = vmax.f32 %v6624_v1, 0.0 }
 0x8b9   :  { %v6619_v23 = vadd.f32 %v7524_v35, %v6618_v15  ;;  %v6642_v52 = vmax.f32 %v6616_v3, 0.0 }
 0x8ba   :  { %v6645_v56 = vmax.f32 %v6627_v28, 0.0 }
 0x8bb   :  { %v6643_v11 = vmax.f32 %v6619_v23, 0.0 }
 0x8bc   :  { %v6653_v22 = vpack.c.bf16 %v6645_v56, %v6644_v18 }
 0x8bd   :  { %v6652_v42 = vpack.c.bf16 %v6643_v11, %v6642_v52 }
 0x8bf   :  { %8070 = vmatprep.mubr.bf16.mxu1 %v6652_v42 }
 0x8c0   :  { %8071 = vmatmul.mubr.bf16.gmra.mrb[60].mxu1 %v6653_v22 }
 0x947   :  { %v8060_v48 = vpop.f32.mrb[48].mxu1 }
 0x948   :  { %v6759_v20 = vpop.f32.mrb[49].mxu1  ;;  %v15101_v59 = vadd.f32 %v8060_v48, %v7533_v5 }
 0x949   :  { %v15099_v47 = vadd.f32 %v7533_v5, %v6759_v20  ;;  %v8061_v14 = vpop.f32.mrb[50].mxu1 }
 0x94a   :  { %v6762_v62 = vpop.f32.mrb[51].mxu1  ;;  %v6824_v38 = vmul.f32 %v15101_v59, %v15101_v59  ;;  %v15111_v45 = vadd.f32 %v8061_v14, %v7533_v5 }
 0x94b   :  { %v6822_v35 = vmul.f32 %v15099_v47, %v15099_v47  ;;  %v15105_v7 = vadd.f32 %v7533_v5, %v6762_v62 }
 0x94c   :  { %v6825_v63 = vmul.f32 %v15111_v45, %v15111_v45 }
 0x94d   :  { %v6823_v54 = vmul.f32 %v15105_v7, %v15105_v7  ;;  %6838 = vadd.xlane.f32.xlu0 %v6822_v35 }
 0x94f   :  { %v8064_v36 = vpop.f32.mrb[52].mxu1  ;;  %6840 = vadd.xlane.f32.xlu1 %v6823_v54 }
 0x950   :  { %v6775_v0 = vpop.f32.mrb[53].mxu1  ;;  %v15117_v60 = vadd.f32 %v8064_v36, %v7533_v5 }
 0x951   :  { %v15113_v34 = vadd.f32 %v7533_v5, %v6775_v0  ;;  %v8065_v8 = vpop.f32.mrb[54].mxu1  ;;  %6842 = vadd.xlane.f32.xlu0 %v6824_v38 }
 0x952   :  { %v6778_v4 = vpop.f32.mrb[55].mxu1  ;;  %v6828_v44 = vmul.f32 %v15117_v60, %v15117_v60  ;;  %v15125_v32 = vadd.f32 %v8065_v8, %v7533_v5 }
 0x953   :  { %v6826_v16 = vmul.f32 %v15113_v34, %v15113_v34  ;;  %v15121_v12 = vadd.f32 %v7533_v5, %v6778_v4 }
 0x954   :  { %v6829_v53 = vmul.f32 %v15125_v32, %v15125_v32 }
 0x955   :  { %6846 = vadd.xlane.f32.xlu1 %v6826_v16  ;;  %6844 = vadd.xlane.f32.xlu0 %v6825_v63  ;;  %v6827_v51 = vmul.f32 %v15121_v12, %v15121_v12 }
 0x957   :  { %v8068_v17 = vpop.f32.mrb[56].mxu1 }
 0x958   :  { %v6791_v27 = vpop.f32.mrb[57].mxu1  ;;  %v15133_v40 = vadd.f32 %v8068_v17, %v7533_v5 }
 0x959   :  { %v15129_v29 = vadd.f32 %v7533_v5, %v6791_v27  ;;  %v8069_v33 = vpop.f32.mrb[58].mxu1  ;;  %6850 = vadd.xlane.f32.xlu1 %v6828_v44  ;;  %6848 = vadd.xlane.f32.xlu0 %v6827_v51 }
 0x95a   :  { %v6794_v24 = vpop.f32.mrb[59].mxu1  ;;  %v6832_v57 = vmul.f32 %v15133_v40, %v15133_v40  ;;  %v15141_v9 = vadd.f32 %v8069_v33, %v7533_v5 }
 0x95b   :  { %v6830_v46 = vmul.f32 %v15129_v29, %v15129_v29  ;;  %v15137_v19 = vadd.f32 %v7533_v5, %v6794_v24 }
 0x95c   :  { %v6833_v43 = vmul.f32 %v15141_v9, %v15141_v9 }
 0x95d   :  { %6854 = vadd.xlane.f32.xlu1 %v6830_v46  ;;  %6852 = vadd.xlane.f32.xlu0 %v6829_v53  ;;  %v6831_v61 = vmul.f32 %v15137_v19, %v15137_v19 }
 0x961   :  { %6858 = vadd.xlane.f32.xlu1 %v6832_v57  ;;  %6856 = vadd.xlane.f32.xlu0 %v6831_v61 }
 0x965   :  { %6860 = vadd.xlane.f32.xlu0 %v6833_v43 }
 0x993   :  { %v8072_v41 = vpop.f32.mrb[60].mxu1 }
 0x994   :  { %v6807_v6 = vpop.f32.mrb[61].mxu1  ;;  %v15149_v31 = vadd.f32 %v8072_v41, %v7533_v5 }
 0x995   :  { %v15147_v37 = vadd.f32 %v7533_v5, %v6807_v6  ;;  %v8073_v55 = vpop.f32.mrb[62].mxu1 }
 0x996   :  { %v6810_v30 = vpop.f32.mrb[63].mxu1  ;;  %v15155_v2 = vadd.f32 %v8073_v55, %v7533_v5  ;;  %v6836_v39 = vmul.f32 %v15149_v31, %v15149_v31 }
 0x997   :  { %v6834_v21 = vmul.f32 %v15147_v37, %v15147_v37  ;;  %v15153_v49 = vadd.f32 %v7533_v5, %v6810_v30 }
 0x998   :  { %v6837_v58 = vmul.f32 %v15155_v2, %v15155_v2 }
 0x999   :  { %v6835_v13 = vmul.f32 %v15153_v49, %v15153_v49  ;;  %6862 = vadd.xlane.f32.xlu1 %v6834_v21 }
 0x99b   :  { %6864 = vadd.xlane.f32.xlu0 %v6835_v13 }
 0x99d   :  { %6866 = vadd.xlane.f32.xlu1 %v6836_v39 }
 0x99f   :  { %6868 = vadd.xlane.f32.xlu0 %v6837_v58 }
 0x9da   :  { %v6839_v25 = vpop.xlane.xlu0 %6838 }
 0x9db   :  { %v6870_v10 = vmax.f32 %v6839_v25, 1e-24 }
 0x9dc   :  { %v6841_v1 = vpop.xlane.xlu1 %6840 }
 0x9dd   :  { %8476 = vrsqrt.f32 %v6870_v10  ;;  %v6871_v26 = vmax.f32 %v6841_v1, 1e-24 }
 0x9de   :  { %v6843_v3 = vpop.xlane.xlu0 %6842 }
 0x9df   :  { %8478 = vrsqrt.f32 %v6871_v26  ;;  %v6872_v50 = vmax.f32 %v6843_v3, 1e-24 }
 0x9e1   :  { %8480 = vrsqrt.f32 %v6872_v50 }
 0x9e2   :  { %v6847_v28 = vpop.xlane.xlu1 %6846  ;;  %v6845_v15 = vpop.xlane.xlu0 %6844 }
 0x9e3   :  { %v6874_v23 = vmax.f32 %v6847_v28, 1e-24  ;;  %v6873_v18 = vmax.f32 %v6845_v15, 1e-24 }
 0x9e5   :  { %8482 = vrsqrt.f32 %v6874_v23 }
 0x9e6   :  { %8484 = vrsqrt.f32 %v6873_v18  ;;  %v6851_v56 = vpop.xlane.xlu1 %6850  ;;  %v6849_v52 = vpop.xlane.xlu0 %6848 }
 0x9e7   :  { %v8477_v11 = vpop.eup %8476  ;;  %v6876_v22 = vmax.f32 %v6851_v56, 1e-24  ;;  %v6875_v42 = vmax.f32 %v6849_v52, 1e-24 }
 0x9e8   :  { %v6902_v5 = vmul.f32 %v8477_v11, %v15099_v47 }
 0x9e9   :  { %v8479_v48 = vpop.eup %8478  ;;  %8486 = vrsqrt.f32 %v6876_v22 }
 0x9ea   :  { %6918 = vst [vmem:[%s15239_s12] sm:$0xff] %v6902_v5  ;;  %v6903_v20 = vmul.f32 %v8479_v48, %v15105_v7  ;;  %8488 = vrsqrt.f32 %v6875_v42  ;;  %v6855_v14 = vpop.xlane.xlu1 %6854  ;;  %v6853_v62 = vpop.xlane.xlu0 %6852 }
 0x9eb   :  { %v8481_v35 = vpop.eup %8480  ;;  %v6878_v54 = vmax.f32 %v6855_v14, 1e-24  ;;  %v6877_v38 = vmax.f32 %v6853_v62, 1e-24 }
 0x9ec   :  { %6919 = vst [vmem:[%s15239_s12 + $0x8] sm:$0xff] %v6903_v20  ;;  %v6904_v47 = vmul.f32 %v8481_v35, %v15101_v59 }
 0x9ed   :  { %8490 = vrsqrt.f32 %v6878_v54 }
 0x9ee   :  { %6920 = vst [vmem:[%s15239_s12 + $0x10] sm:$0xff] %v6904_v47  ;;  %8492 = vrsqrt.f32 %v6877_v38  ;;  %v6859_v36 = vpop.xlane.xlu1 %6858  ;;  %v6857_v7 = vpop.xlane.xlu0 %6856 }
 0x9ef   :  { %v8483_v0 = vpop.eup %8482  ;;  %v6880_v8 = vmax.f32 %v6859_v36, 1e-24  ;;  %v6879_v4 = vmax.f32 %v6857_v7, 1e-24 }
 0x9f0   :  { %v8485_v63 = vpop.eup %8484  ;;  %v6906_v16 = vmul.f32 %v8483_v0, %v15113_v34 }
 0x9f1   :  { %v6905_v44 = vmul.f32 %v8485_v63, %v15111_v45  ;;  %8494 = vrsqrt.f32 %v6880_v8 }
 0x9f2   :  { %6922 = vst [vmem:[%s15239_s12 + $0x20] sm:$0xff] %v6906_v16  ;;  %8496 = vrsqrt.f32 %v6879_v4  ;;  %v6861_v59 = vpop.xlane.xlu0 %6860 }
 0x9f3   :  { %v8487_v51 = vpop.eup %8486  ;;  %6921 = vst [vmem:[%s15239_s12 + $0x18] sm:$0xff] %v6905_v44  ;;  %v6881_v17 = vmax.f32 %v6861_v59, 1e-24 }
 0x9f4   :  { %v8489_v27 = vpop.eup %8488  ;;  %v6908_v33 = vmul.f32 %v8487_v51, %v15117_v60 }
 0x9f5   :  { %v6907_v34 = vmul.f32 %v8489_v27, %v15121_v12  ;;  %8498 = vrsqrt.f32 %v6881_v17 }
 0x9f6   :  { %6924 = vst [vmem:[%s15239_s12 + $0x30] sm:$0xff] %v6908_v33 }
 0x9f7   :  { %v8491_v45 = vpop.eup %8490  ;;  %6923 = vst [vmem:[%s15239_s12 + $0x28] sm:$0xff] %v6907_v34 }
 0x9f8   :  { %v8493_v24 = vpop.eup %8492  ;;  %v6910_v53 = vmul.f32 %v8491_v45, %v15129_v29 }
 0x9f9   :  { %v6909_v46 = vmul.f32 %v8493_v24, %v15125_v32 }
 0x9fa   :  { %6926 = vst [vmem:[%s15239_s12 + $0x40] sm:$0xff] %v6910_v53 }
 0x9fb   :  { %v8495_v60 = vpop.eup %8494  ;;  %6925 = vst [vmem:[%s15239_s12 + $0x38] sm:$0xff] %v6909_v46 }
 0x9fc   :  { %v8497_v12 = vpop.eup %8496  ;;  %v6912_v57 = vmul.f32 %v8495_v60, %v15133_v40 }
 0x9fd   :  { %v6911_v61 = vmul.f32 %v8497_v12, %v15137_v19 }
 0x9fe   :  { %6928 = vst [vmem:[%s15239_s12 + $0x50] sm:$0xff] %v6912_v57 }
 0x9ff   :  { %v8499_v29 = vpop.eup %8498  ;;  %6927 = vst [vmem:[%s15239_s12 + $0x48] sm:$0xff] %v6911_v61 }
 0xa00   :  { %v6913_v32 = vmul.f32 %v8499_v29, %v15141_v9 }
 0xa02   :  { %6929 = vst [vmem:[%s15239_s12 + $0x58] sm:$0xff] %v6913_v32 }
 0xa26   :  { %v6863_v43 = vpop.xlane.xlu1 %6862 }
 0xa27   :  { %v6882_v41 = vmax.f32 %v6863_v43, 1e-24 }
 0xa28   :  { %v6865_v40 = vpop.xlane.xlu0 %6864 }
 0xa29   :  { %8500 = vrsqrt.f32 %v6882_v41  ;;  %v6883_v19 = vmax.f32 %v6865_v40, 1e-24 }
 0xa2a   :  { %v6867_v6 = vpop.xlane.xlu1 %6866 }
 0xa2b   :  { %8502 = vrsqrt.f32 %v6883_v19  ;;  %v6884_v55 = vmax.f32 %v6867_v6, 1e-24 }
 0xa2c   :  { %v6869_v30 = vpop.xlane.xlu0 %6868 }
 0xa2d   :  { %8504 = vrsqrt.f32 %v6884_v55  ;;  %v6885_v21 = vmax.f32 %v6869_v30, 1e-24 }
 0xa2f   :  { %8506 = vrsqrt.f32 %v6885_v21 }
 0xa33   :  { %v8501_v13 = vpop.eup %8500 }
 0xa34   :  { %v6914_v39 = vmul.f32 %v8501_v13, %v15147_v37 }
 0xa35   :  { %v8503_v9 = vpop.eup %8502 }
 0xa36   :  { %6930 = vst [vmem:[%s15239_s12 + $0x60] sm:$0xff] %v6914_v39  ;;  %v6915_v58 = vmul.f32 %v8503_v9, %v15153_v49 }
 0xa37   :  { %v8505_v25 = vpop.eup %8504 }
 0xa38   :  { %6931 = vst [vmem:[%s15239_s12 + $0x68] sm:$0xff] %v6915_v58  ;;  %v6916_v10 = vmul.f32 %v8505_v25, %v15149_v31 }
 0xa39   :  { %v8507_v1 = vpop.eup %8506 }
 0xa3a   :  { %6932 = vst [vmem:[%s15239_s12 + $0x70] sm:$0xff] %v6916_v10  ;;  %v6917_v37 = vmul.f32 %v8507_v1, %v15155_v2 }
 0xa3c   :  { %6933 = vst [vmem:[%s15239_s12 + $0x78] sm:$0xff] %v6917_v37 }

</bundles_post_ra>
